<compile_context>
chip_gen: v7x
topology: tpu7x:2x2x1
jax: 0.10.0
libtpu: 0.0.40
codegen_flags: <defaults>
</compile_context>

<pallas_src>
import functools

import numpy as np
import jax
import jax.numpy as jnp
from jax import lax
from jax.experimental import pallas as pl
from jax.experimental.pallas import tpu as pltpu

_LANES = 128


def _round_up(n, m):
    return (n + m - 1) // m * m


def _nbytes(shape, dtype):
    return int(np.prod(shape)) * np.dtype(dtype).itemsize


def _vmem_compiler_params(block_bytes):
    """Chip-aware VMEM window + parallel batch axis."""
    try:
        vmem_cap = int(pltpu.get_tpu_info().vmem_capacity_bytes)
    except Exception:
        vmem_cap = 64 << 20                       # conservative (v7x-sized)
    # Leave ~25% headroom for Mosaic internal scratch / relayouts:
    #   v7x (64 MiB physical) -> <=48 MiB; v5e/v6e (128 MiB) -> <=96 MiB.
    ceiling = min((vmem_cap * 3) // 4, 112 << 20)
    limit = int(2 * block_bytes) + (16 << 20)
    limit = max(32 << 20, min(limit, ceiling))
    return pltpu.CompilerParams(dimension_semantics=("parallel",),
                                vmem_limit_bytes=limit)


def _pick_batch_tile(n, per_image_bytes, budget_bytes=6 << 20, cap=8):
    """Largest divisor of n (<= cap) whose per-step blocks fit the budget."""
    best = 1
    for bt in range(1, min(n, cap) + 1):
        if n % bt == 0 and bt * per_image_bytes <= budget_bytes:
            best = bt
    return best


def _zero_halo(pad_ref):
    """Zero only the 1-px halo (border strips) of a (B, H+2, W+2, C) ref."""
    b, hp, wp, c = pad_ref.shape
    zrow = jnp.zeros((b, 1, wp, c), pad_ref.dtype)
    pad_ref[:, 0:1, :, :] = zrow
    pad_ref[:, hp - 1:hp, :, :] = zrow
    zcol = jnp.zeros((b, hp, 1, c), pad_ref.dtype)
    pad_ref[:, :, 0:1, :] = zcol
    pad_ref[:, :, wp - 1:wp, :] = zcol


# --------------------------------------------------------------------------
# Kernel A: a1 = relu(bn1(x)); c1 = conv3x3(a1, stride); sc = conv1x1(a1, stride)
#           + per-step BN2 partial sums over c1.
# --------------------------------------------------------------------------
def _make_conv1_kernel(*, B_t, H, W, Ho, Wo, Cin_p, Cp_p, stride, has_shortcut,
                       compute_dtype, act_dtype):
    M = B_t * Ho * Wo
    Hq, Wq = (H + 2) // 2, (W + 2) // 2      # stride-2 parity plane extents

    def kernel(x_ref, s1_ref, b1_ref, w1_ref, *rest):
        if stride == 1:
            if has_shortcut:
                wsc_ref, c1_ref, stats_ref, sc_ref, pad_ref = rest
            else:
                c1_ref, stats_ref, pad_ref = rest
                wsc_ref = sc_ref = None
        else:
            wsc_ref, c1_ref, stats_ref, sc_ref = rest
            pad_ref = None

        s1 = s1_ref[...]                     # (1, Cin_p) f32
        b1 = b1_ref[...]

        taps = {}
        if stride == 1:
            # BN + ReLU on the unpadded tile (no border masking needed); the
            # conv halo is materialized once in a VMEM scratch.
            x = x_ref[...].astype(jnp.float32)              # (B_t, H, W, Cin_p)
            a1 = jnp.maximum(x * s1 + b1, 0.0).astype(compute_dtype)
            _zero_halo(pad_ref)                             # halo strips only
            pad_ref[:, 1:1 + H, 1:1 + W, :] = a1
            for dh in range(3):
                for dw in range(3):
                    taps[(dh, dw)] = pad_ref[:, dh:dh + Ho, dw:dw + Wo, :]
        else:
            # stride == 2: the input holds the 4 (row,col)-parity planes of
            # the spatially padded image stacked along H; each is (Hq, Wq).
            x4 = x_ref[...].astype(jnp.float32)             # (B_t, 4*Hq, Wq, Cin_p)
            a14 = jnp.maximum(x4 * s1 + b1, 0.0)
            hi = lax.broadcasted_iota(jnp.int32, (Hq, Wq), 0)
            wi = lax.broadcasted_iota(jnp.int32, (Hq, Wq), 1)
            q = {}
            for a in (0, 1):
                for b in (0, 1):
                    k = 2 * a + b
                    plane = a14[:, k * Hq:(k + 1) * Hq]
                    vi = (hi >= 1) if a == 0 else (hi <= Hq - 2)
                    vj = (wi >= 1) if b == 0 else (wi <= Wq - 2)
                    q[(a, b)] = jnp.where((vi & vj)[None, :, :, None], plane,
                                          0.0).astype(compute_dtype)
            for dh in range(3):
                for dw in range(3):
                    a, oh = dh % 2, dh // 2
                    b, ow = dw % 2, dw // 2
                    taps[(dh, dw)] = q[(a, b)][:, oh:oh + Ho, ow:ow + Wo, :]

        # 3x3 conv as 3 K-concatenated MXU matmuls (K = 3*Cin_p), f32 accum:
        # 3 accumulator RMWs instead of 9.
        # TODO(synk): replace the sublane-offset tap slices with pltpu.roll
        # (XLU) shifts to avoid per-tap relayout copies.
        acc = jnp.zeros((M, Cp_p), jnp.float32)
        for dh in range(3):
            lhs = jnp.concatenate(
                [taps[(dh, 0)], taps[(dh, 1)], taps[(dh, 2)]],
                axis=-1).reshape(M, 3 * Cin_p)
            acc = acc + jnp.dot(lhs, w1_ref[dh],
                                preferred_element_type=jnp.float32)

        # Per-step BN2 partial sums (f32) -> wrapper never re-reads c1.
        psum = jnp.sum(acc, axis=0, keepdims=True)
        psumsq = jnp.sum(acc * acc, axis=0, keepdims=True)
        stats_ref[0] = jnp.concatenate(
            [psum, psumsq, jnp.zeros((6, Cp_p), jnp.float32)], axis=0)

        c1_ref[...] = acc.reshape(B_t, Ho, Wo, Cp_p).astype(act_dtype)

        if has_shortcut:
            # 1x1 (strided) shortcut reuses the center-tap LHS (identical
            # patch) -> no duplicate repack / slice.
            lhs_c = taps[(1, 1)].reshape(M, Cin_p)
            sc = jnp.dot(lhs_c, wsc_ref[...],
                         preferred_element_type=jnp.float32)
            sc_ref[...] = sc.reshape(B_t, Ho, Wo, Cp_p).astype(act_dtype)

    return kernel


# --------------------------------------------------------------------------
# Kernel B: out = conv3x3(relu(bn2(c1)), 1) + shortcut
# --------------------------------------------------------------------------
def _make_conv2_kernel(*, B_t, Ho, Wo, Cp_p, compute_dtype):
    M = B_t * Ho * Wo

    def kernel(c1_ref, s2_ref, b2_ref, w2_ref, sc_ref, out_ref, pad_ref):
        a2 = jnp.maximum(c1_ref[...].astype(jnp.float32) * s2_ref[...]
                         + b2_ref[...], 0.0).astype(compute_dtype)
        _zero_halo(pad_ref)
        pad_ref[:, 1:1 + Ho, 1:1 + Wo, :] = a2

        acc = jnp.zeros((M, Cp_p), jnp.float32)
        for dh in range(3):
            lhs = jnp.concatenate(
                [pad_ref[:, dh:dh + Ho, dw:dw + Wo, :] for dw in range(3)],
                axis=-1).reshape(M, 3 * Cp_p)
            acc = acc + jnp.dot(lhs, w2_ref[dh],
                                preferred_element_type=jnp.float32)

        out = acc.reshape(B_t, Ho, Wo, Cp_p) + sc_ref[...].astype(jnp.float32)
        out_ref[...] = out.astype(out_ref.dtype)

    return kernel


# --------------------------------------------------------------------------
# Public wrapper: PyTorch-style NCHW in / NCHW (f32) out.
# --------------------------------------------------------------------------
@functools.partial(jax.jit, static_argnames=("stride", "eps", "compute_dtype"))
def preact_block_pallas(x_nchw, params, *, stride, eps=1e-5,
                        compute_dtype=jnp.bfloat16):
    N, Cin, H, W = x_nchw.shape
    Cp = params["w1"].shape[-1]
    assert stride in (1, 2), "PreActBlock only uses stride 1 or 2"
    assert H % stride == 0 and W % stride == 0
    has_shortcut = (stride != 1) or (Cin != Cp)
    Ho, Wo = H // stride, W // stride
    Cin_p = _round_up(Cin, _LANES)
    Cp_p = _round_up(Cp, _LANES)
    # HBM-resident activations live in the compute dtype (bf16 fast path);
    # BN stats / matmul accumulation stay f32.
    act_dtype = compute_dtype

    # ---- XLA glue: layout + BN1 stats (one-pass, biased var, clamped) ------
    x = jnp.transpose(x_nchw, (0, 2, 3, 1)).astype(jnp.float32)   # NCHW->NHWC
    mu1 = jnp.mean(x, axis=(0, 1, 2))
    var1 = jnp.maximum(jnp.mean(jnp.square(x), axis=(0, 1, 2))
                       - jnp.square(mu1), 0.0)
    s1 = params["g1"].astype(jnp.float32) * lax.rsqrt(var1 + eps)
    b1 = params["b1"].astype(jnp.float32) - mu1 * s1
    s1 = jnp.pad(s1, (0, Cin_p - Cin)).reshape(1, Cin_p)
    b1 = jnp.pad(b1, (0, Cin_p - Cin)).reshape(1, Cin_p)

    if stride == 1:
        # Channel pad only; the conv halo is built in-kernel (VMEM scratch),
        # so no spatial pad pass over x and no in-kernel border masking.
        x_in = jnp.pad(x, ((0, 0), (0, 0), (0, 0),
                           (0, Cin_p - Cin))).astype(act_dtype)
    else:
        # stride 2: spatial pad + (row,col) parity deinterleave ONCE in XLA,
        # so the kernel only performs contiguous slices for all 9 taps and
        # the strided 1x1 shortcut.
        xp = jnp.pad(x, ((0, 0), (1, 1), (1, 1), (0, Cin_p - Cin)))
        planes = [xp[:, a::2, b::2, :] for a in (0, 1) for b in (0, 1)]
        x_in = jnp.concatenate(planes, axis=1).astype(act_dtype)

    # K-concat weight layout: (3, 3*Cin, Cp) with K blocks ordered by dw.
    w1 = jnp.pad(params["w1"].astype(jnp.float32),
                 ((0, 0), (0, 0), (0, Cin_p - Cin), (0, Cp_p - Cp)))
    w1 = w1.reshape(3, 3 * Cin_p, Cp_p).astype(compute_dtype)
    w2 = jnp.pad(params["w2"].astype(jnp.float32),
                 ((0, 0), (0, 0), (0, Cp_p - Cp), (0, Cp_p - Cp)))
    w2 = w2.reshape(3, 3 * Cp_p, Cp_p).astype(compute_dtype)

    # ---- batch-group tiling -------------------------------------------------
    per_img = (_nbytes(x_in.shape[1:], act_dtype)
               + 3 * _nbytes((Ho, Wo, Cp_p), act_dtype)
               + _nbytes((H + 2, W + 2, max(Cin_p, Cp_p)), compute_dtype))
    B_t = _pick_batch_tile(N, per_img)
    num_steps = N // B_t

    x_block = (B_t,) + tuple(x_in.shape[1:])
    act_block = (B_t, Ho, Wo, Cp_p)

    # ---- kernel A -----------------------------------------------------------
    kernel_a = _make_conv1_kernel(B_t=B_t, H=H, W=W, Ho=Ho, Wo=Wo, Cin_p=Cin_p,
                                  Cp_p=Cp_p, stride=stride,
                                  has_shortcut=has_shortcut,
                                  compute_dtype=compute_dtype,
                                  act_dtype=act_dtype)

    in_specs_a = [
        pl.BlockSpec(x_block, lambda n: (n, 0, 0, 0)),
        pl.BlockSpec((1, Cin_p), lambda n: (0, 0)),
        pl.BlockSpec((1, Cin_p), lambda n: (0, 0)),
        pl.BlockSpec((3, 3 * Cin_p, Cp_p), lambda n: (0, 0, 0)),
    ]
    inputs_a = [x_in, s1, b1, w1]
    out_specs_a = [pl.BlockSpec(act_block, lambda n: (n, 0, 0, 0)),
                   pl.BlockSpec((1, 8, Cp_p), lambda n: (n, 0, 0))]
    out_shapes_a = [jax.ShapeDtypeStruct((N, Ho, Wo, Cp_p), act_dtype),
                    jax.ShapeDtypeStruct((num_steps, 8, Cp_p), jnp.float32)]
    if has_shortcut:
        wsc = jnp.pad(params["wsc"].astype(jnp.float32).reshape(Cin, Cp),
                      ((0, Cin_p - Cin), (0, Cp_p - Cp))).astype(compute_dtype)
        in_specs_a.append(pl.BlockSpec((Cin_p, Cp_p), lambda n: (0, 0)))
        inputs_a.append(wsc)
        out_specs_a.append(pl.BlockSpec(act_block, lambda n: (n, 0, 0, 0)))
        out_shapes_a.append(jax.ShapeDtypeStruct((N, Ho, Wo, Cp_p), act_dtype))

    scratch_a = ([pltpu.VMEM((B_t, H + 2, W + 2, Cin_p), compute_dtype)]
                 if stride == 1 else [])

    block_bytes_a = (_nbytes(x_block, act_dtype)
                     + _nbytes(w1.shape, compute_dtype)
                     + (len(out_shapes_a) - 1) * _nbytes(act_block, act_dtype)
                     + _nbytes((1, 8, Cp_p), jnp.float32)
                     + (_nbytes((B_t, H + 2, W + 2, Cin_p), compute_dtype)
                        if stride == 1 else 0))
    flops_a = 2 * N * Ho * Wo * 9 * Cin_p * Cp_p
    if has_shortcut:
        flops_a += 2 * N * Ho * Wo * Cin_p * Cp_p
    bytes_a = (_nbytes(x_in.shape, act_dtype) + _nbytes(w1.shape, compute_dtype)
               + sum(_nbytes(s.shape, s.dtype) for s in out_shapes_a))
    cost_a = pl.CostEstimate(flops=int(flops_a), transcendentals=0,
                             bytes_accessed=int(bytes_a))

    res_a = pl.pallas_call(
        kernel_a,
        grid=(num_steps,),
        in_specs=in_specs_a,
        out_specs=tuple(out_specs_a),
        out_shape=tuple(out_shapes_a),
        scratch_shapes=scratch_a,
        compiler_params=_vmem_compiler_params(block_bytes_a),
        cost_estimate=cost_a,
    )(*inputs_a)

    if has_shortcut:
        c1, stats, sc_in = res_a
    else:
        c1, stats = res_a
        sc_in = x_in            # identity: x itself, already (N, Ho, Wo, Cp_p)

    # ---- BN2 from in-kernel partial sums (no extra pass over c1) -----------
    cnt2 = float(N * Ho * Wo)
    sum2 = jnp.sum(stats[:, 0, :], axis=0)
    sumsq2 = jnp.sum(stats[:, 1, :], axis=0)
    mu2 = sum2 / cnt2
    var2 = jnp.maximum(sumsq2 / cnt2 - jnp.square(mu2), 0.0)
    g2 = jnp.pad(params["g2"].astype(jnp.float32), (0, Cp_p - Cp))
    b2p = jnp.pad(params["b2"].astype(jnp.float32), (0, Cp_p - Cp))
    s2 = g2 * lax.rsqrt(var2 + eps)
    b2 = (b2p - mu2 * s2).reshape(1, Cp_p)
    s2 = s2.reshape(1, Cp_p)

    # ---- kernel B -----------------------------------------------------------
    kernel_b = _make_conv2_kernel(B_t=B_t, Ho=Ho, Wo=Wo, Cp_p=Cp_p,
                                  compute_dtype=compute_dtype)

    block_bytes_b = (3 * _nbytes(act_block, act_dtype)
                     + _nbytes(w2.shape, compute_dtype)
                     + _nbytes(act_block, act_dtype)
                     + _nbytes((B_t, Ho + 2, Wo + 2, Cp_p), compute_dtype))
    flops_b = 2 * N * Ho * Wo * 9 * Cp_p * Cp_p
    bytes_b = (3 * _nbytes((N, Ho, Wo, Cp_p), act_dtype)
               + _nbytes(w2.shape, compute_dtype))
    cost_b = pl.CostEstimate(flops=int(flops_b), transcendentals=0,
                             bytes_accessed=int(bytes_b))

    out_p = pl.pallas_call(
        kernel_b,
        grid=(num_steps,),
        in_specs=[
            pl.BlockSpec(act_block, lambda n: (n, 0, 0, 0)),   # c1
            pl.BlockSpec((1, Cp_p), lambda n: (0, 0)),
            pl.BlockSpec((1, Cp_p), lambda n: (0, 0)),
            pl.BlockSpec((3, 3 * Cp_p, Cp_p), lambda n: (0, 0, 0)),
            pl.BlockSpec(act_block, lambda n: (n, 0, 0, 0)),   # shortcut
        ],
        out_specs=pl.BlockSpec(act_block, lambda n: (n, 0, 0, 0)),
        out_shape=jax.ShapeDtypeStruct((N, Ho, Wo, Cp_p), act_dtype),
        scratch_shapes=[pltpu.VMEM((B_t, Ho + 2, Wo + 2, Cp_p), compute_dtype)],
        compiler_params=_vmem_compiler_params(block_bytes_b),
        cost_estimate=cost_b,
    )(c1, s2, b2, w2, sc_in)

    out = out_p[..., :Cp].astype(jnp.float32)       # drop channel pad, f32 out
    return jnp.transpose(out, (0, 3, 1, 2))         # NHWC -> NCHW


# --------------------------------------------------------------------------
# Pure-JAX reference (lax conv) mirroring the PyTorch forward.
# --------------------------------------------------------------------------
def preact_block_reference(x_nchw, params, stride, eps=1e-5):
    def bn_relu(x, g, b):
        mu = x.mean(axis=(0, 1, 2), keepdims=True)
        var = ((x - mu) ** 2).mean(axis=(0, 1, 2), keepdims=True)
        return jnp.maximum((x - mu) / jnp.sqrt(var + eps) * g + b, 0.0)

    dn = ("NHWC", "HWIO", "NHWC")
    x = jnp.transpose(x_nchw, (0, 2, 3, 1)).astype(jnp.float32)
    Cin, Cp = params["w1"].shape[2], params["w1"].shape[3]
    has_shortcut = (stride != 1) or (Cin != Cp)

    a1 = bn_relu(x, params["g1"], params["b1"])
    c1 = lax.conv_general_dilated(a1, params["w1"], (stride, stride),
                                  [(1, 1), (1, 1)], dimension_numbers=dn)
    a2 = bn_relu(c1, params["g2"], params["b2"])
    c2 = lax.conv_general_dilated(a2, params["w2"], (1, 1),
                                  [(1, 1), (1, 1)], dimension_numbers=dn)
    if has_shortcut:
        sc = lax.conv_general_dilated(a1, params["wsc"], (stride, stride),
                                      [(0, 0), (0, 0)], dimension_numbers=dn)
    else:
        sc = x
    return jnp.transpose(c2 + sc, (0, 3, 1, 2))


if __name__ == "__main__":
    key = jax.random.PRNGKey(0)
    N, H, W = 2, 16, 16

    configs = [
        # (name, in_planes, planes, stride)
        ("proj_1x1_stride1", 4, 8, 1),   # 1x1 shortcut (in_planes != planes)
        ("identity_stride1", 8, 8, 1),   # identity shortcut
        ("proj_1x1_stride2", 4, 8, 2),   # strided conv + strided 1x1 shortcut
    ]

    for name, cin, cp, s in configs:
        key, k1, k2, k3, kx = jax.random.split(key, 5)
        has_shortcut = (s != 1) or (cin != cp)
        params = {
            # conv weights stored HWIO, PyTorch-like scale
            "w1": jax.random.normal(k1, (3, 3, cin, cp), jnp.float32)
                  * (1.0 / np.sqrt(9 * cin)),
            "w2": jax.random.normal(k2, (3, 3, cp, cp), jnp.float32)
                  * (1.0 / np.sqrt(9 * cp)),
            # BatchNorm affine params at PyTorch init: gamma=1, beta=0
            "g1": jnp.ones((cin,), jnp.float32),
            "b1": jnp.zeros((cin,), jnp.float32),
            "g2": jnp.ones((cp,), jnp.float32),
            "b2": jnp.zeros((cp,), jnp.float32),
        }
        if has_shortcut:
            params["wsc"] = (jax.random.normal(k3, (1, 1, cin, cp), jnp.float32)
                             * (1.0 / np.sqrt(cin)))

        x = jax.random.normal(kx, (N, cin, H, W), jnp.float32)   # NCHW
        ref = np.asarray(preact_block_reference(x, params, s))

        # exact-math path (f32 storage + f32 MXU operands): tight tolerance
        out_f32 = jax.block_until_ready(
            preact_block_pallas(x, params, stride=s, compute_dtype=jnp.float32))
        np.testing.assert_allclose(np.asarray(out_f32), ref, rtol=2e-3, atol=2e-3,
                                   err_msg=f"{name} (f32 compute)")

        # fast path (bf16 HBM activations + bf16 MXU operands, f32 accum)
        out_bf16 = jax.block_until_ready(
            preact_block_pallas(x, params, stride=s, compute_dtype=jnp.bfloat16))
        np.testing.assert_allclose(np.asarray(out_bf16), ref, rtol=5e-2, atol=5e-2,
                                   err_msg=f"{name} (bf16 compute)")

    print("KERNEL_OK")
</pallas_src>

<mosaic_0001>
module attributes {stable_mosaic.version = 11 : i64} {
  func.func @kernel(%arg0: i32, %arg1: memref<2x16x16x128xf32, #tpu.memory_space<vmem>>, %arg2: memref<1x128xf32, #tpu.memory_space<vmem>>, %arg3: memref<1x128xf32, #tpu.memory_space<vmem>>, %arg4: memref<3x384x128xf32, #tpu.memory_space<vmem>>, %arg5: memref<128x128xf32, #tpu.memory_space<vmem>>, %arg6: memref<2x16x16x128xf32, #tpu.memory_space<vmem>>, %arg7: memref<1x8x128xf32, #tpu.memory_space<vmem>>, %arg8: memref<2x16x16x128xf32, #tpu.memory_space<vmem>>, %arg9: memref<2x18x18x128xf32, #tpu.memory_space<vmem>>) attributes {dimension_semantics = [#tpu.dimension_semantics<parallel>], iteration_bounds = array<i64: 1>, scalar_prefetch = 0 : i64, scratch_operands = 1 : i64, tpu.core_type = #tpu.core_type<tc>, window_params = [{transform_indices = @transform_0, window_bounds = array<i64: 2, 16, 16, 128>}, {pipeline_mode = #tpu.pipeline_mode<synchronous>, transform_indices = @transform_1, window_bounds = array<i64: 1, 128>}, {pipeline_mode = #tpu.pipeline_mode<synchronous>, transform_indices = @transform_2, window_bounds = array<i64: 1, 128>}, {pipeline_mode = #tpu.pipeline_mode<synchronous>, transform_indices = @transform_3, window_bounds = array<i64: 3, 384, 128>}, {pipeline_mode = #tpu.pipeline_mode<synchronous>, transform_indices = @transform_4, window_bounds = array<i64: 128, 128>}, {transform_indices = @transform_5, window_bounds = array<i64: 2, 16, 16, 128>}, {transform_indices = @transform_6, window_bounds = array<i64: 1, 8, 128>}, {transform_indices = @transform_7, window_bounds = array<i64: 2, 16, 16, 128>}]} {
    %c0 = arith.constant 0 : index
    %c0_0 = arith.constant 0 : index
    %0 = vector.load %arg2[%c0, %c0_0] : memref<1x128xf32, #tpu.memory_space<vmem>>, vector<1x128xf32>
    %c0_1 = arith.constant 0 : index
    %c0_2 = arith.constant 0 : index
    %1 = vector.load %arg3[%c0_1, %c0_2] : memref<1x128xf32, #tpu.memory_space<vmem>>, vector<1x128xf32>
    %c0_3 = arith.constant 0 : index
    %c0_4 = arith.constant 0 : index
    %c0_5 = arith.constant 0 : index
    %c0_6 = arith.constant 0 : index
    %2 = vector.load %arg1[%c0_3, %c0_4, %c0_5, %c0_6] : memref<2x16x16x128xf32, #tpu.memory_space<vmem>>, vector<2x16x16x128xf32>
    %3 = vector.shape_cast %0 : vector<1x128xf32> to vector<1x1x1x128xf32>
    %4 = vector.broadcast %3 : vector<1x1x1x128xf32> to vector<2x16x16x128xf32>
    %5 = arith.mulf %2, %4 : vector<2x16x16x128xf32>
    %6 = vector.shape_cast %1 : vector<1x128xf32> to vector<1x1x1x128xf32>
    %7 = vector.broadcast %6 : vector<1x1x1x128xf32> to vector<2x16x16x128xf32>
    %8 = arith.addf %5, %7 : vector<2x16x16x128xf32>
    %cst = arith.constant 0.000000e+00 : f32
    %9 = vector.broadcast %cst : f32 to vector<2x16x16x128xf32>
    %10 = arith.maximumf %8, %9 : vector<2x16x16x128xf32>
    %cst_7 = arith.constant 0.000000e+00 : f32
    %11 = vector.broadcast %cst_7 : f32 to vector<2x1x18x128xf32>
    %c0_8 = arith.constant 0 : index
    %c0_9 = arith.constant 0 : index
    %c0_10 = arith.constant 0 : index
    %c0_11 = arith.constant 0 : index
    %12 = vector.load %arg9[%c0_8, %c0_9, %c0_10, %c0_11] : memref<2x18x18x128xf32, #tpu.memory_space<vmem>>, vector<2x1x18x128xf32>
    tpu.vector_store %arg9[%c0_8, %c0_9, %c0_10, %c0_11], %11 {strides = array<i32>} : memref<2x18x18x128xf32, #tpu.memory_space<vmem>>, vector<2x1x18x128xf32>,
    %c0_12 = arith.constant 0 : index
    %c17 = arith.constant 17 : index
    %c0_13 = arith.constant 0 : index
    %c0_14 = arith.constant 0 : index
    %13 = vector.load %arg9[%c0_12, %c17, %c0_13, %c0_14] : memref<2x18x18x128xf32, #tpu.memory_space<vmem>>, vector<2x1x18x128xf32>
    tpu.vector_store %arg9[%c0_12, %c17, %c0_13, %c0_14], %11 {strides = array<i32>} : memref<2x18x18x128xf32, #tpu.memory_space<vmem>>, vector<2x1x18x128xf32>,
    %cst_15 = arith.constant 0.000000e+00 : f32
    %14 = vector.broadcast %cst_15 : f32 to vector<2x18x1x128xf32>
    %c0_16 = arith.constant 0 : index
    %c0_17 = arith.constant 0 : index
    %c0_18 = arith.constant 0 : index
    %c0_19 = arith.constant 0 : index
    %15 = vector.load %arg9[%c0_16, %c0_17, %c0_18, %c0_19] : memref<2x18x18x128xf32, #tpu.memory_space<vmem>>, vector<2x18x1x128xf32>
    tpu.vector_store %arg9[%c0_16, %c0_17, %c0_18, %c0_19], %14 {strides = array<i32>} : memref<2x18x18x128xf32, #tpu.memory_space<vmem>>, vector<2x18x1x128xf32>,
    %c0_20 = arith.constant 0 : index
    %c0_21 = arith.constant 0 : index
    %c17_22 = arith.constant 17 : index
    %c0_23 = arith.constant 0 : index
    %16 = vector.load %arg9[%c0_20, %c0_21, %c17_22, %c0_23] : memref<2x18x18x128xf32, #tpu.memory_space<vmem>>, vector<2x18x1x128xf32>
    tpu.vector_store %arg9[%c0_20, %c0_21, %c17_22, %c0_23], %14 {strides = array<i32>} : memref<2x18x18x128xf32, #tpu.memory_space<vmem>>, vector<2x18x1x128xf32>,
    %c0_24 = arith.constant 0 : index
    %c1 = arith.constant 1 : index
    %c1_25 = arith.constant 1 : index
    %c0_26 = arith.constant 0 : index
    %17 = vector.load %arg9[%c0_24, %c1, %c1_25, %c0_26] : memref<2x18x18x128xf32, #tpu.memory_space<vmem>>, vector<2x16x16x128xf32>
    tpu.vector_store %arg9[%c0_24, %c1, %c1_25, %c0_26], %10 {strides = array<i32>} : memref<2x18x18x128xf32, #tpu.memory_space<vmem>>, vector<2x16x16x128xf32>,
    %c0_27 = arith.constant 0 : index
    %c0_28 = arith.constant 0 : index
    %c0_29 = arith.constant 0 : index
    %c0_30 = arith.constant 0 : index
    %18 = vector.load %arg9[%c0_27, %c0_28, %c0_29, %c0_30] : memref<2x18x18x128xf32, #tpu.memory_space<vmem>>, vector<2x16x16x128xf32>
    %c0_31 = arith.constant 0 : index
    %c0_32 = arith.constant 0 : index
    %c1_33 = arith.constant 1 : index
    %c0_34 = arith.constant 0 : index
    %19 = vector.load %arg9[%c0_31, %c0_32, %c1_33, %c0_34] : memref<2x18x18x128xf32, #tpu.memory_space<vmem>>, vector<2x16x16x128xf32>
    %c0_35 = arith.constant 0 : index
    %c0_36 = arith.constant 0 : index
    %c2 = arith.constant 2 : index
    %c0_37 = arith.constant 0 : index
    %20 = vector.load %arg9[%c0_35, %c0_36, %c2, %c0_37] : memref<2x18x18x128xf32, #tpu.memory_space<vmem>>, vector<2x16x16x128xf32>
    %c0_38 = arith.constant 0 : index
    %c1_39 = arith.constant 1 : index
    %c0_40 = arith.constant 0 : index
    %c0_41 = arith.constant 0 : index
    %21 = vector.load %arg9[%c0_38, %c1_39, %c0_40, %c0_41] : memref<2x18x18x128xf32, #tpu.memory_space<vmem>>, vector<2x16x16x128xf32>
    %c0_42 = arith.constant 0 : index
    %c1_43 = arith.constant 1 : index
    %c1_44 = arith.constant 1 : index
    %c0_45 = arith.constant 0 : index
    %22 = vector.load %arg9[%c0_42, %c1_43, %c1_44, %c0_45] : memref<2x18x18x128xf32, #tpu.memory_space<vmem>>, vector<2x16x16x128xf32>
    %c0_46 = arith.constant 0 : index
    %c1_47 = arith.constant 1 : index
    %c2_48 = arith.constant 2 : index
    %c0_49 = arith.constant 0 : index
    %23 = vector.load %arg9[%c0_46, %c1_47, %c2_48, %c0_49] : memref<2x18x18x128xf32, #tpu.memory_space<vmem>>, vector<2x16x16x128xf32>
    %c0_50 = arith.constant 0 : index
    %c2_51 = arith.constant 2 : index
    %c0_52 = arith.constant 0 : index
    %c0_53 = arith.constant 0 : index
    %24 = vector.load %arg9[%c0_50, %c2_51, %c0_52, %c0_53] : memref<2x18x18x128xf32, #tpu.memory_space<vmem>>, vector<2x16x16x128xf32>
    %c0_54 = arith.constant 0 : index
    %c2_55 = arith.constant 2 : index
    %c1_56 = arith.constant 1 : index
    %c0_57 = arith.constant 0 : index
    %25 = vector.load %arg9[%c0_54, %c2_55, %c1_56, %c0_57] : memref<2x18x18x128xf32, #tpu.memory_space<vmem>>, vector<2x16x16x128xf32>
    %c0_58 = arith.constant 0 : index
    %c2_59 = arith.constant 2 : index
    %c2_60 = arith.constant 2 : index
    %c0_61 = arith.constant 0 : index
    %26 = vector.load %arg9[%c0_58, %c2_59, %c2_60, %c0_61] : memref<2x18x18x128xf32, #tpu.memory_space<vmem>>, vector<2x16x16x128xf32>
    %cst_62 = arith.constant 0.000000e+00 : f32
    %27 = vector.broadcast %cst_62 : f32 to vector<512x128xf32>
    %28 = tpu.concatenate %18, %19, %20 in 3 : vector<2x16x16x128xf32>, vector<2x16x16x128xf32>, vector<2x16x16x128xf32> -> vector<2x16x16x384xf32>
    %29 = vector.shape_cast %28 : vector<2x16x16x384xf32> to vector<512x384xf32>
    %c0_63 = arith.constant 0 : index
    %c0_64 = arith.constant 0 : index
    %c0_65 = arith.constant 0 : index
    %30 = vector.load %arg4[%c0_63, %c0_64, %c0_65] : memref<3x384x128xf32, #tpu.memory_space<vmem>>, vector<1x384x128xf32>
    %31 = vector.shape_cast %30 : vector<1x384x128xf32> to vector<384x128xf32>
    %cst_66 = arith.constant dense<0.000000e+00> : vector<512x128xf32>
    %32 = tpu.matmul %29, %31, %cst_66 {dimension_numbers = #tpu.dot_dimension_numbers<[1], [0], [0], [1], [0, 0, 1, 1], [], []>} : vector<512x384xf32>, vector<384x128xf32>, vector<512x128xf32> -> vector<512x128xf32>
    %33 = arith.addf %27, %32 : vector<512x128xf32>
    %34 = tpu.concatenate %21, %22, %23 in 3 : vector<2x16x16x128xf32>, vector<2x16x16x128xf32>, vector<2x16x16x128xf32> -> vector<2x16x16x384xf32>
    %35 = vector.shape_cast %34 : vector<2x16x16x384xf32> to vector<512x384xf32>
    %c1_67 = arith.constant 1 : index
    %c0_68 = arith.constant 0 : index
    %c0_69 = arith.constant 0 : index
    %36 = vector.load %arg4[%c1_67, %c0_68, %c0_69] : memref<3x384x128xf32, #tpu.memory_space<vmem>>, vector<1x384x128xf32>
    %37 = vector.shape_cast %36 : vector<1x384x128xf32> to vector<384x128xf32>
    %cst_70 = arith.constant dense<0.000000e+00> : vector<512x128xf32>
    %38 = tpu.matmul %35, %37, %cst_70 {dimension_numbers = #tpu.dot_dimension_numbers<[1], [0], [0], [1], [0, 0, 1, 1], [], []>} : vector<512x384xf32>, vector<384x128xf32>, vector<512x128xf32> -> vector<512x128xf32>
    %39 = arith.addf %33, %38 : vector<512x128xf32>
    %40 = tpu.concatenate %24, %25, %26 in 3 : vector<2x16x16x128xf32>, vector<2x16x16x128xf32>, vector<2x16x16x128xf32> -> vector<2x16x16x384xf32>
    %41 = vector.shape_cast %40 : vector<2x16x16x384xf32> to vector<512x384xf32>
    %c2_71 = arith.constant 2 : index
    %c0_72 = arith.constant 0 : index
    %c0_73 = arith.constant 0 : index
    %42 = vector.load %arg4[%c2_71, %c0_72, %c0_73] : memref<3x384x128xf32, #tpu.memory_space<vmem>>, vector<1x384x128xf32>
    %43 = vector.shape_cast %42 : vector<1x384x128xf32> to vector<384x128xf32>
    %cst_74 = arith.constant dense<0.000000e+00> : vector<512x128xf32>
    %44 = tpu.matmul %41, %43, %cst_74 {dimension_numbers = #tpu.dot_dimension_numbers<[1], [0], [0], [1], [0, 0, 1, 1], [], []>} : vector<512x384xf32>, vector<384x128xf32>, vector<512x128xf32> -> vector<512x128xf32>
    %45 = arith.addf %39, %44 : vector<512x128xf32>
    %cst_75 = arith.constant dense<0.000000e+00> : vector<128xf32>
    %46 = vector.multi_reduction <add>, %45, %cst_75 [0] : vector<512x128xf32> to vector<128xf32>
    %47 = vector.shape_cast %46 : vector<128xf32> to vector<1x128xf32>
    %48 = arith.mulf %45, %45 : vector<512x128xf32>
    %cst_76 = arith.constant dense<0.000000e+00> : vector<128xf32>
    %49 = vector.multi_reduction <add>, %48, %cst_76 [0] : vector<512x128xf32> to vector<128xf32>
    %50 = vector.shape_cast %49 : vector<128xf32> to vector<1x128xf32>
    %cst_77 = arith.constant 0.000000e+00 : f32
    %51 = vector.broadcast %cst_77 : f32 to vector<6x128xf32>
    %52 = tpu.concatenate %47, %50, %51 in 0 : vector<1x128xf32>, vector<1x128xf32>, vector<6x128xf32> -> vector<8x128xf32>
    %c0_78 = arith.constant 0 : index
    %c0_79 = arith.constant 0 : index
    %c0_80 = arith.constant 0 : index
    %53 = vector.load %arg7[%c0_78, %c0_79, %c0_80] : memref<1x8x128xf32, #tpu.memory_space<vmem>>, vector<1x8x128xf32>
    %54 = vector.shape_cast %53 : vector<1x8x128xf32> to vector<8x128xf32>
    %55 = vector.shape_cast %52 : vector<8x128xf32> to vector<1x8x128xf32>
    tpu.vector_store %arg7[%c0_78, %c0_79, %c0_80], %55 {strides = array<i32>} : memref<1x8x128xf32, #tpu.memory_space<vmem>>, vector<1x8x128xf32>,
    %56 = vector.shape_cast %45 : vector<512x128xf32> to vector<2x16x16x128xf32>
    %c0_81 = arith.constant 0 : index
    %c0_82 = arith.constant 0 : index
    %c0_83 = arith.constant 0 : index
    %c0_84 = arith.constant 0 : index
    %57 = vector.load %arg6[%c0_81, %c0_82, %c0_83, %c0_84] : memref<2x16x16x128xf32, #tpu.memory_space<vmem>>, vector<2x16x16x128xf32>
    tpu.vector_store %arg6[%c0_81, %c0_82, %c0_83, %c0_84], %56 {strides = array<i32>} : memref<2x16x16x128xf32, #tpu.memory_space<vmem>>, vector<2x16x16x128xf32>,
    %58 = vector.shape_cast %22 : vector<2x16x16x128xf32> to vector<512x128xf32>
    %c0_85 = arith.constant 0 : index
    %c0_86 = arith.constant 0 : index
    %59 = vector.load %arg5[%c0_85, %c0_86] : memref<128x128xf32, #tpu.memory_space<vmem>>, vector<128x128xf32>
    %cst_87 = arith.constant dense<0.000000e+00> : vector<512x128xf32>
    %60 = tpu.matmul %58, %59, %cst_87 {dimension_numbers = #tpu.dot_dimension_numbers<[1], [0], [0], [1], [0, 0, 1, 1], [], []>} : vector<512x128xf32>, vector<128x128xf32>, vector<512x128xf32> -> vector<512x128xf32>
    %61 = vector.shape_cast %60 : vector<512x128xf32> to vector<2x16x16x128xf32>
    %c0_88 = arith.constant 0 : index
    %c0_89 = arith.constant 0 : index
    %c0_90 = arith.constant 0 : index
    %c0_91 = arith.constant 0 : index
    %62 = vector.load %arg8[%c0_88, %c0_89, %c0_90, %c0_91] : memref<2x16x16x128xf32, #tpu.memory_space<vmem>>, vector<2x16x16x128xf32>
    tpu.vector_store %arg8[%c0_88, %c0_89, %c0_90, %c0_91], %61 {strides = array<i32>} : memref<2x16x16x128xf32, #tpu.memory_space<vmem>>, vector<2x16x16x128xf32>,
    return
  }
  func.func @transform_0(%arg0: i32) -> (i32, i32, i32, i32) {
    %c0_i32 = arith.constant 0 : i32
    %c0_i32_0 = arith.constant 0 : i32
    %c0_i32_1 = arith.constant 0 : i32
    %c0_i32_2 = arith.constant 0 : i32
    return %arg0, %c0_i32, %c0_i32_0, %c0_i32_1 : i32, i32, i32, i32
  }
  func.func @transform_1(%arg0: i32) -> (i32, i32) {
    %c0_i32 = arith.constant 0 : i32
    %c0_i32_0 = arith.constant 0 : i32
    %c0_i32_1 = arith.constant 0 : i32
    return %c0_i32, %c0_i32_0 : i32, i32
  }
  func.func @transform_2(%arg0: i32) -> (i32, i32) {
    %c0_i32 = arith.constant 0 : i32
    %c0_i32_0 = arith.constant 0 : i32
    %c0_i32_1 = arith.constant 0 : i32
    return %c0_i32, %c0_i32_0 : i32, i32
  }
  func.func @transform_3(%arg0: i32) -> (i32, i32, i32) {
    %c0_i32 = arith.constant 0 : i32
    %c0_i32_0 = arith.constant 0 : i32
    %c0_i32_1 = arith.constant 0 : i32
    %c0_i32_2 = arith.constant 0 : i32
    return %c0_i32, %c0_i32_0, %c0_i32_1 : i32, i32, i32
  }
  func.func @transform_4(%arg0: i32) -> (i32, i32) {
    %c0_i32 = arith.constant 0 : i32
    %c0_i32_0 = arith.constant 0 : i32
    %c0_i32_1 = arith.constant 0 : i32
    return %c0_i32, %c0_i32_0 : i32, i32
  }
  func.func @transform_5(%arg0: i32) -> (i32, i32, i32, i32) {
    %c0_i32 = arith.constant 0 : i32
    %c0_i32_0 = arith.constant 0 : i32
    %c0_i32_1 = arith.constant 0 : i32
    %c0_i32_2 = arith.constant 0 : i32
    return %arg0, %c0_i32, %c0_i32_0, %c0_i32_1 : i32, i32, i32, i32
  }
  func.func @transform_6(%arg0: i32) -> (i32, i32, i32) {
    %c0_i32 = arith.constant 0 : i32
    %c0_i32_0 = arith.constant 0 : i32
    %c0_i32_1 = arith.constant 0 : i32
    return %arg0, %c0_i32, %c0_i32_0 : i32, i32, i32
  }
  func.func @transform_7(%arg0: i32) -> (i32, i32, i32, i32) {
    %c0_i32 = arith.constant 0 : i32
    %c0_i32_0 = arith.constant 0 : i32
    %c0_i32_1 = arith.constant 0 : i32
    %c0_i32_2 = arith.constant 0 : i32
    return %arg0, %c0_i32, %c0_i32_0, %c0_i32_1 : i32, i32, i32, i32
  }
}

module attributes {stable_mosaic.version = 11 : i64} {
  func.func @kernel(%arg0: i32, %arg1: memref<2x16x16x128xf32, #tpu.memory_space<vmem>>, %arg2: memref<1x128xf32, #tpu.memory_space<vmem>>, %arg3: memref<1x128xf32, #tpu.memory_space<vmem>>, %arg4: memref<3x384x128xf32, #tpu.memory_space<vmem>>, %arg5: memref<2x16x16x128xf32, #tpu.memory_space<vmem>>, %arg6: memref<2x16x16x128xf32, #tpu.memory_space<vmem>>, %arg7: memref<2x18x18x128xf32, #tpu.memory_space<vmem>>) attributes {dimension_semantics = [#tpu.dimension_semantics<parallel>], iteration_bounds = array<i64: 1>, scalar_prefetch = 0 : i64, scratch_operands = 1 : i64, tpu.core_type = #tpu.core_type<tc>, window_params = [{transform_indices = @transform_0, window_bounds = array<i64: 2, 16, 16, 128>}, {pipeline_mode = #tpu.pipeline_mode<synchronous>, transform_indices = @transform_1, window_bounds = array<i64: 1, 128>}, {pipeline_mode = #tpu.pipeline_mode<synchronous>, transform_indices = @transform_2, window_bounds = array<i64: 1, 128>}, {pipeline_mode = #tpu.pipeline_mode<synchronous>, transform_indices = @transform_3, window_bounds = array<i64: 3, 384, 128>}, {transform_indices = @transform_4, window_bounds = array<i64: 2, 16, 16, 128>}, {transform_indices = @transform_5, window_bounds = array<i64: 2, 16, 16, 128>}]} {
    %c0 = arith.constant 0 : index
    %c0_0 = arith.constant 0 : index
    %c0_1 = arith.constant 0 : index
    %c0_2 = arith.constant 0 : index
    %0 = vector.load %arg1[%c0, %c0_0, %c0_1, %c0_2] : memref<2x16x16x128xf32, #tpu.memory_space<vmem>>, vector<2x16x16x128xf32>
    %c0_3 = arith.constant 0 : index
    %c0_4 = arith.constant 0 : index
    %1 = vector.load %arg2[%c0_3, %c0_4] : memref<1x128xf32, #tpu.memory_space<vmem>>, vector<1x128xf32>
    %2 = vector.shape_cast %1 : vector<1x128xf32> to vector<1x1x1x128xf32>
    %3 = vector.broadcast %2 : vector<1x1x1x128xf32> to vector<2x16x16x128xf32>
    %4 = arith.mulf %0, %3 : vector<2x16x16x128xf32>
    %c0_5 = arith.constant 0 : index
    %c0_6 = arith.constant 0 : index
    %5 = vector.load %arg3[%c0_5, %c0_6] : memref<1x128xf32, #tpu.memory_space<vmem>>, vector<1x128xf32>
    %6 = vector.shape_cast %5 : vector<1x128xf32> to vector<1x1x1x128xf32>
    %7 = vector.broadcast %6 : vector<1x1x1x128xf32> to vector<2x16x16x128xf32>
    %8 = arith.addf %4, %7 : vector<2x16x16x128xf32>
    %cst = arith.constant 0.000000e+00 : f32
    %9 = vector.broadcast %cst : f32 to vector<2x16x16x128xf32>
    %10 = arith.maximumf %8, %9 : vector<2x16x16x128xf32>
    %cst_7 = arith.constant 0.000000e+00 : f32
    %11 = vector.broadcast %cst_7 : f32 to vector<2x1x18x128xf32>
    %c0_8 = arith.constant 0 : index
    %c0_9 = arith.constant 0 : index
    %c0_10 = arith.constant 0 : index
    %c0_11 = arith.constant 0 : index
    %12 = vector.load %arg7[%c0_8, %c0_9, %c0_10, %c0_11] : memref<2x18x18x128xf32, #tpu.memory_space<vmem>>, vector<2x1x18x128xf32>
    tpu.vector_store %arg7[%c0_8, %c0_9, %c0_10, %c0_11], %11 {strides = array<i32>} : memref<2x18x18x128xf32, #tpu.memory_space<vmem>>, vector<2x1x18x128xf32>,
    %c0_12 = arith.constant 0 : index
    %c17 = arith.constant 17 : index
    %c0_13 = arith.constant 0 : index
    %c0_14 = arith.constant 0 : index
    %13 = vector.load %arg7[%c0_12, %c17, %c0_13, %c0_14] : memref<2x18x18x128xf32, #tpu.memory_space<vmem>>, vector<2x1x18x128xf32>
    tpu.vector_store %arg7[%c0_12, %c17, %c0_13, %c0_14], %11 {strides = array<i32>} : memref<2x18x18x128xf32, #tpu.memory_space<vmem>>, vector<2x1x18x128xf32>,
    %cst_15 = arith.constant 0.000000e+00 : f32
    %14 = vector.broadcast %cst_15 : f32 to vector<2x18x1x128xf32>
    %c0_16 = arith.constant 0 : index
    %c0_17 = arith.constant 0 : index
    %c0_18 = arith.constant 0 : index
    %c0_19 = arith.constant 0 : index
    %15 = vector.load %arg7[%c0_16, %c0_17, %c0_18, %c0_19] : memref<2x18x18x128xf32, #tpu.memory_space<vmem>>, vector<2x18x1x128xf32>
    tpu.vector_store %arg7[%c0_16, %c0_17, %c0_18, %c0_19], %14 {strides = array<i32>} : memref<2x18x18x128xf32, #tpu.memory_space<vmem>>, vector<2x18x1x128xf32>,
    %c0_20 = arith.constant 0 : index
    %c0_21 = arith.constant 0 : index
    %c17_22 = arith.constant 17 : index
    %c0_23 = arith.constant 0 : index
    %16 = vector.load %arg7[%c0_20, %c0_21, %c17_22, %c0_23] : memref<2x18x18x128xf32, #tpu.memory_space<vmem>>, vector<2x18x1x128xf32>
    tpu.vector_store %arg7[%c0_20, %c0_21, %c17_22, %c0_23], %14 {strides = array<i32>} : memref<2x18x18x128xf32, #tpu.memory_space<vmem>>, vector<2x18x1x128xf32>,
    %c0_24 = arith.constant 0 : index
    %c1 = arith.constant 1 : index
    %c1_25 = arith.constant 1 : index
    %c0_26 = arith.constant 0 : index
    %17 = vector.load %arg7[%c0_24, %c1, %c1_25, %c0_26] : memref<2x18x18x128xf32, #tpu.memory_space<vmem>>, vector<2x16x16x128xf32>
    tpu.vector_store %arg7[%c0_24, %c1, %c1_25, %c0_26], %10 {strides = array<i32>} : memref<2x18x18x128xf32, #tpu.memory_space<vmem>>, vector<2x16x16x128xf32>,
    %cst_27 = arith.constant 0.000000e+00 : f32
    %18 = vector.broadcast %cst_27 : f32 to vector<512x128xf32>
    %c0_28 = arith.constant 0 : index
    %c0_29 = arith.constant 0 : index
    %c0_30 = arith.constant 0 : index
    %c0_31 = arith.constant 0 : index
    %19 = vector.load %arg7[%c0_28, %c0_29, %c0_30, %c0_31] : memref<2x18x18x128xf32, #tpu.memory_space<vmem>>, vector<2x16x16x128xf32>
    %c0_32 = arith.constant 0 : index
    %c0_33 = arith.constant 0 : index
    %c1_34 = arith.constant 1 : index
    %c0_35 = arith.constant 0 : index
    %20 = vector.load %arg7[%c0_32, %c0_33, %c1_34, %c0_35] : memref<2x18x18x128xf32, #tpu.memory_space<vmem>>, vector<2x16x16x128xf32>
    %c0_36 = arith.constant 0 : index
    %c0_37 = arith.constant 0 : index
    %c2 = arith.constant 2 : index
    %c0_38 = arith.constant 0 : index
    %21 = vector.load %arg7[%c0_36, %c0_37, %c2, %c0_38] : memref<2x18x18x128xf32, #tpu.memory_space<vmem>>, vector<2x16x16x128xf32>
    %22 = tpu.concatenate %19, %20, %21 in 3 : vector<2x16x16x128xf32>, vector<2x16x16x128xf32>, vector<2x16x16x128xf32> -> vector<2x16x16x384xf32>
    %23 = vector.shape_cast %22 : vector<2x16x16x384xf32> to vector<512x384xf32>
    %c0_39 = arith.constant 0 : index
    %c0_40 = arith.constant 0 : index
    %c0_41 = arith.constant 0 : index
    %24 = vector.load %arg4[%c0_39, %c0_40, %c0_41] : memref<3x384x128xf32, #tpu.memory_space<vmem>>, vector<1x384x128xf32>
    %25 = vector.shape_cast %24 : vector<1x384x128xf32> to vector<384x128xf32>
    %cst_42 = arith.constant dense<0.000000e+00> : vector<512x128xf32>
    %26 = tpu.matmul %23, %25, %cst_42 {dimension_numbers = #tpu.dot_dimension_numbers<[1], [0], [0], [1], [0, 0, 1, 1], [], []>} : vector<512x384xf32>, vector<384x128xf32>, vector<512x128xf32> -> vector<512x128xf32>
    %27 = arith.addf %18, %26 : vector<512x128xf32>
    %c0_43 = arith.constant 0 : index
    %c1_44 = arith.constant 1 : index
    %c0_45 = arith.constant 0 : index
    %c0_46 = arith.constant 0 : index
    %28 = vector.load %arg7[%c0_43, %c1_44, %c0_45, %c0_46] : memref<2x18x18x128xf32, #tpu.memory_space<vmem>>, vector<2x16x16x128xf32>
    %c0_47 = arith.constant 0 : index
    %c1_48 = arith.constant 1 : index
    %c1_49 = arith.constant 1 : index
    %c0_50 = arith.constant 0 : index
    %29 = vector.load %arg7[%c0_47, %c1_48, %c1_49, %c0_50] : memref<2x18x18x128xf32, #tpu.memory_space<vmem>>, vector<2x16x16x128xf32>
    %c0_51 = arith.constant 0 : index
    %c1_52 = arith.constant 1 : index
    %c2_53 = arith.constant 2 : index
    %c0_54 = arith.constant 0 : index
    %30 = vector.load %arg7[%c0_51, %c1_52, %c2_53, %c0_54] : memref<2x18x18x128xf32, #tpu.memory_space<vmem>>, vector<2x16x16x128xf32>
    %31 = tpu.concatenate %28, %29, %30 in 3 : vector<2x16x16x128xf32>, vector<2x16x16x128xf32>, vector<2x16x16x128xf32> -> vector<2x16x16x384xf32>
    %32 = vector.shape_cast %31 : vector<2x16x16x384xf32> to vector<512x384xf32>
    %c1_55 = arith.constant 1 : index
    %c0_56 = arith.constant 0 : index
    %c0_57 = arith.constant 0 : index
    %33 = vector.load %arg4[%c1_55, %c0_56, %c0_57] : memref<3x384x128xf32, #tpu.memory_space<vmem>>, vector<1x384x128xf32>
    %34 = vector.shape_cast %33 : vector<1x384x128xf32> to vector<384x128xf32>
    %cst_58 = arith.constant dense<0.000000e+00> : vector<512x128xf32>
    %35 = tpu.matmul %32, %34, %cst_58 {dimension_numbers = #tpu.dot_dimension_numbers<[1], [0], [0], [1], [0, 0, 1, 1], [], []>} : vector<512x384xf32>, vector<384x128xf32>, vector<512x128xf32> -> vector<512x128xf32>
    %36 = arith.addf %27, %35 : vector<512x128xf32>
    %c0_59 = arith.constant 0 : index
    %c2_60 = arith.constant 2 : index
    %c0_61 = arith.constant 0 : index
    %c0_62 = arith.constant 0 : index
    %37 = vector.load %arg7[%c0_59, %c2_60, %c0_61, %c0_62] : memref<2x18x18x128xf32, #tpu.memory_space<vmem>>, vector<2x16x16x128xf32>
    %c0_63 = arith.constant 0 : index
    %c2_64 = arith.constant 2 : index
    %c1_65 = arith.constant 1 : index
    %c0_66 = arith.constant 0 : index
    %38 = vector.load %arg7[%c0_63, %c2_64, %c1_65, %c0_66] : memref<2x18x18x128xf32, #tpu.memory_space<vmem>>, vector<2x16x16x128xf32>
    %c0_67 = arith.constant 0 : index
    %c2_68 = arith.constant 2 : index
    %c2_69 = arith.constant 2 : index
    %c0_70 = arith.constant 0 : index
    %39 = vector.load %arg7[%c0_67, %c2_68, %c2_69, %c0_70] : memref<2x18x18x128xf32, #tpu.memory_space<vmem>>, vector<2x16x16x128xf32>
    %40 = tpu.concatenate %37, %38, %39 in 3 : vector<2x16x16x128xf32>, vector<2x16x16x128xf32>, vector<2x16x16x128xf32> -> vector<2x16x16x384xf32>
    %41 = vector.shape_cast %40 : vector<2x16x16x384xf32> to vector<512x384xf32>
    %c2_71 = arith.constant 2 : index
    %c0_72 = arith.constant 0 : index
    %c0_73 = arith.constant 0 : index
    %42 = vector.load %arg4[%c2_71, %c0_72, %c0_73] : memref<3x384x128xf32, #tpu.memory_space<vmem>>, vector<1x384x128xf32>
    %43 = vector.shape_cast %42 : vector<1x384x128xf32> to vector<384x128xf32>
    %cst_74 = arith.constant dense<0.000000e+00> : vector<512x128xf32>
    %44 = tpu.matmul %41, %43, %cst_74 {dimension_numbers = #tpu.dot_dimension_numbers<[1], [0], [0], [1], [0, 0, 1, 1], [], []>} : vector<512x384xf32>, vector<384x128xf32>, vector<512x128xf32> -> vector<512x128xf32>
    %45 = arith.addf %36, %44 : vector<512x128xf32>
    %46 = vector.shape_cast %45 : vector<512x128xf32> to vector<2x16x16x128xf32>
    %c0_75 = arith.constant 0 : index
    %c0_76 = arith.constant 0 : index
    %c0_77 = arith.constant 0 : index
    %c0_78 = arith.constant 0 : index
    %47 = vector.load %arg5[%c0_75, %c0_76, %c0_77, %c0_78] : memref<2x16x16x128xf32, #tpu.memory_space<vmem>>, vector<2x16x16x128xf32>
    %48 = arith.addf %46, %47 : vector<2x16x16x128xf32>
    %c0_79 = arith.constant 0 : index
    %c0_80 = arith.constant 0 : index
    %c0_81 = arith.constant 0 : index
    %c0_82 = arith.constant 0 : index
    %49 = vector.load %arg6[%c0_79, %c0_80, %c0_81, %c0_82] : memref<2x16x16x128xf32, #tpu.memory_space<vmem>>, vector<2x16x16x128xf32>
    tpu.vector_store %arg6[%c0_79, %c0_80, %c0_81, %c0_82], %48 {strides = array<i32>} : memref<2x16x16x128xf32, #tpu.memory_space<vmem>>, vector<2x16x16x128xf32>,
    return
  }
  func.func @transform_0(%arg0: i32) -> (i32, i32, i32, i32) {
    %c0_i32 = arith.constant 0 : i32
    %c0_i32_0 = arith.constant 0 : i32
    %c0_i32_1 = arith.constant 0 : i32
    %c0_i32_2 = arith.constant 0 : i32
    return %arg0, %c0_i32, %c0_i32_0, %c0_i32_1 : i32, i32, i32, i32
  }
  func.func @transform_1(%arg0: i32) -> (i32, i32) {
    %c0_i32 = arith.constant 0 : i32
    %c0_i32_0 = arith.constant 0 : i32
    %c0_i32_1 = arith.constant 0 : i32
    return %c0_i32, %c0_i32_0 : i32, i32
  }
  func.func @transform_2(%arg0: i32) -> (i32, i32) {
    %c0_i32 = arith.constant 0 : i32
    %c0_i32_0 = arith.constant 0 : i32
    %c0_i32_1 = arith.constant 0 : i32
    return %c0_i32, %c0_i32_0 : i32, i32
  }
  func.func @transform_3(%arg0: i32) -> (i32, i32, i32) {
    %c0_i32 = arith.constant 0 : i32
    %c0_i32_0 = arith.constant 0 : i32
    %c0_i32_1 = arith.constant 0 : i32
    %c0_i32_2 = arith.constant 0 : i32
    return %c0_i32, %c0_i32_0, %c0_i32_1 : i32, i32, i32
  }
  func.func @transform_4(%arg0: i32) -> (i32, i32, i32, i32) {
    %c0_i32 = arith.constant 0 : i32
    %c0_i32_0 = arith.constant 0 : i32
    %c0_i32_1 = arith.constant 0 : i32
    %c0_i32_2 = arith.constant 0 : i32
    return %arg0, %c0_i32, %c0_i32_0, %c0_i32_1 : i32, i32, i32, i32
  }
  func.func @transform_5(%arg0: i32) -> (i32, i32, i32, i32) {
    %c0_i32 = arith.constant 0 : i32
    %c0_i32_0 = arith.constant 0 : i32
    %c0_i32_1 = arith.constant 0 : i32
    %c0_i32_2 = arith.constant 0 : i32
    return %arg0, %c0_i32, %c0_i32_0, %c0_i32_1 : i32, i32, i32, i32
  }
}

</mosaic_0001>

<bundles_post_ra>
// kernel: preact_block_pallas.3
= control target key start
LH: loop header
LB: loop body
LE: loop exit
PB: predicated region body
PF: predicated region fallthrough
CT: control target
= control target key end

     0   :  { %v4715_v0 = vmov 0.0|0.0   ;;  %v4716_v4 = vmov 0.0   ;;  %s7920_s3 = inlined_call_operand.vmem [shape: f32[3,384,128], index: 3, kind: input, shape index: {}]   ;;  %s7921_s0 = inlined_call_operand.vmem [shape: f32[2,16,16,128], index: 0, kind: input, shape index: {}]   ;;  %s7922_s1 = inlined_call_operand.vmem [shape: f32[1,128], index: 1, kind: input, shape index: {}]   ;;  %s7923_s2 = inlined_call_operand.vmem [shape: f32[1,128], index: 2, kind: input, shape index: {}]   ;;  %s7924_s4 = inlined_call_operand.vmem [shape: f32[2,16,16,128], index: 4, kind: input, shape index: {}]   ;;  %s7925_s5 = inlined_call_operand.vmem [shape: f32[2,16,16,128], index: 5, kind: output, shape index: {}]  }
   0x1   :  { %4455 = vmatprep.subr.bf16.mxu0 %v4715_v0  ;;  %v4751_v1 = vld [vmem:[%s7920_s3 + $0x180] sm:$0xff]  ;;  %v4756_v2 = vld [vmem:[%s7920_s3 + $0x188] sm:$0xff]  ;;  %352 = vst [vmem:[#allocation2 + $0x149] sm:$0x1] %v4716_v4  ;;  %290 = vst [vmem:[#allocation2] sm:$0xff] %v4716_v4 }
   0x2   :  { %v4761_v3 = vld [vmem:[%s7920_s3 + $0x280] sm:$0xff]  ;;  %291 = vst [vmem:[#allocation2 + $0x8] sm:$0xff] %v4716_v4  ;;  %292 = vst [vmem:[#allocation2 + $0x10] sm:$0x3] %v4716_v4  ;;  %v4456_v5 = vpack.c.bf16 %v4756_v2, %v4751_v1  ;;  %v3768_v6 = vld [vmem:[%s7920_s3 + $0x288] sm:$0xff] }
   0x3   :  { %293 = vst [vmem:[#allocation2 + $0x1b0] sm:$0xff] %v4716_v4  ;;  %294 = vst [vmem:[#allocation2 + $0x1b8] sm:$0xff] %v4716_v4  ;;  %v3737_v7 = vld [vmem:[%s7920_s3 + $0x190] sm:$0xff]  ;;  %v3738_v8 = vld [vmem:[%s7920_s3 + $0x198] sm:$0xff]  ;;  %v4859_v9 = vpack.c.bf16 %v3768_v6, %v4761_v3 }
   0x4   :  { %295 = vst [vmem:[#allocation2 + $0x1c0] sm:$0x3] %v4716_v4  ;;  %297 = vst [vmem:[#allocation2 + $0x198] sm:$0xff] %v4716_v4  ;;  %v3769_v10 = vld [vmem:[%s7920_s3 + $0x290] sm:$0xff]  ;;  %v3770_v11 = vld [vmem:[%s7920_s3 + $0x298] sm:$0xff]  ;;  %4457 = vmatpush1.bf16.msra.mxu0 %v4456_v5  ;;  %v4459_v12 = vpack.c.bf16 %v3738_v8, %v3737_v7 }
   0x5   :  { %298 = vst [vmem:[#allocation2 + $0x1a0] sm:$0xff] %v4716_v4  ;;  %299 = vst [vmem:[#allocation2 + $0x1a8] sm:$0x3] %v4716_v4  ;;  %v4867_v13 = vpack.c.bf16 %v3770_v11, %v3769_v10  ;;  %v3771_v14 = vld [vmem:[%s7920_s3 + $0x2a0] sm:$0xff]  ;;  %v3772_v15 = vld [vmem:[%s7920_s3 + $0x2a8] sm:$0xff]  ;;  %4695 = vmatprep.subr.bf16.mxu1 %v4859_v9  ;;  %4458 = vmatprep.subr.bf16.mxu0 %v4715_v0 }
   0x6   :  { %300 = vst [vmem:[#allocation2 + $0x348] sm:$0xff] %v4716_v4  ;;  %301 = vst [vmem:[#allocation2 + $0x350] sm:$0xff] %v4716_v4  ;;  %v3739_v16 = vld [vmem:[%s7920_s3 + $0x1a0] sm:$0xff]  ;;  %v3740_v17 = vld [vmem:[%s7920_s3 + $0x1a8] sm:$0xff]  ;;  %4703 = vmatpush3.bf16.msra.mxu1 %v4859_v9  ;;  %v4885_v18 = vpack.c.bf16 %v3772_v15, %v3771_v14 }
   0x7   :  { %302 = vst [vmem:[#allocation2 + $0x358] sm:$0x3] %v4716_v4  ;;  %304 = vst [vmem:[#allocation2 + $0x18] sm:$0x1] %v4716_v4  ;;  %4696 = vmatprep.subr.bf16.mxu1 %v4867_v13  ;;  %v4462_v19 = vpack.c.bf16 %v3740_v17, %v3739_v16  ;;  %v3773_v20 = vld [vmem:[%s7920_s3 + $0x2b0] sm:$0xff]  ;;  %v3774_v21 = vld [vmem:[%s7920_s3 + $0x2b8] sm:$0xff] }
   0x8   :  { %305 = vst [vmem:[#allocation2 + $0x30] sm:$0x1] %v4716_v4  ;;  %306 = vst [vmem:[#allocation2 + $0x48] sm:$0x1] %v4716_v4  ;;  %4460 = vmatpush1.bf16.msra.mxu0 %v4459_v12  ;;  %v3741_v22 = vld [vmem:[%s7920_s3 + $0x1b0] sm:$0xff]  ;;  %v3742_v23 = vld [vmem:[%s7920_s3 + $0x1b8] sm:$0xff]  ;;  %v4902_v24 = vpack.c.bf16 %v3774_v21, %v3773_v20 }
   0x9   :  { %307 = vst [vmem:[#allocation2 + $0x60] sm:$0x1] %v4716_v4  ;;  %308 = vst [vmem:[#allocation2 + $0x78] sm:$0x1] %v4716_v4  ;;  %4461 = vmatprep.subr.bf16.mxu0 %v4715_v0  ;;  %v3775_v25 = vld [vmem:[%s7920_s3 + $0x2c0] sm:$0xff]  ;;  %v3776_v26 = vld [vmem:[%s7920_s3 + $0x2c8] sm:$0xff]  ;;  %v4465_v28 = vpack.c.bf16 %v3742_v23, %v3741_v22 }
   0xa   :  { %309 = vst [vmem:[#allocation2 + $0x90] sm:$0x1] %v4716_v4  ;;  %310 = vst [vmem:[#allocation2 + $0xa8] sm:$0x1] %v4716_v4  ;;  %4704 = vmatpush3.bf16.msra.mxu1 %v4867_v13  ;;  %v44_v27 = vld [vmem:[%s7921_s0 + $0xc0] sm:$0xff]  ;;  %v45_v29 = vld [vmem:[%s7921_s0 + $0xc8] sm:$0xff]  ;;  %v4953_v40 = vpack.c.bf16 %v3776_v26, %v3775_v25 }
   0xb   :  { %311 = vst [vmem:[#allocation2 + $0xc0] sm:$0x1] %v4716_v4  ;;  %312 = vst [vmem:[#allocation2 + $0xd8] sm:$0x1] %v4716_v4  ;;  %4697 = vmatprep.subr.bf16.mxu1 %v4885_v18  ;;  %v4919_v30 = vld [vmem:[%s7922_s1] ss:$0 sm:$0xff] }
   0xc   :  { %313 = vst [vmem:[#allocation2 + $0xf0] sm:$0x1] %v4716_v4  ;;  %314 = vst [vmem:[#allocation2 + $0x108] sm:$0x1] %v4716_v4  ;;  %4463 = vmatpush1.bf16.msra.mxu0 %v4462_v19  ;;  %v4924_v31 = vld [vmem:[%s7923_s2] ss:$0 sm:$0xff]  ;;  %v115_v35 = vmul.f32 %v4919_v30, %v44_v27  ;;  %v116_v36 = vmul.f32 %v4919_v30, %v45_v29 }
   0xd   :  { %315 = vst [vmem:[#allocation2 + $0x120] sm:$0x1] %v4716_v4  ;;  %316 = vst [vmem:[#allocation2 + $0x138] sm:$0x1] %v4716_v4  ;;  %4464 = vmatprep.subr.bf16.mxu0 %v4715_v0  ;;  %v3743_v32 = vld [vmem:[%s7920_s3 + $0x1c0] sm:$0xff]  ;;  %v3744_v33 = vld [vmem:[%s7920_s3 + $0x1c8] sm:$0xff] }
   0xe   :  { %317 = vst [vmem:[#allocation2 + $0x150] sm:$0x1] %v4716_v4  ;;  %318 = vst [vmem:[#allocation2 + $0x168] sm:$0x1] %v4716_v4  ;;  %v4936_v34 = vld [vmem:[%s7920_s3 + $0x1d0] sm:$0xff]  ;;  %4705 = vmatpush3.bf16.msra.mxu1 %v4885_v18  ;;  %v4944_v37 = vld [vmem:[%s7920_s3 + $0x1d8] sm:$0xff]  ;;  %v186_v44 = vadd.f32 %v4924_v31, %v115_v35  ;;  %v187_v45 = vadd.f32 %v4924_v31, %v116_v36  ;;  %v4468_v47 = vpack.c.bf16 %v3744_v33, %v3743_v32 }
   0xf   :  { %319 = vst [vmem:[#allocation2 + $0x180] sm:$0x1] %v4716_v4  ;;  %322 = vst [vmem:[#allocation2 + $0x1c8] sm:$0x1] %v4716_v4  ;;  %v46_v38 = vld [vmem:[%s7921_s0 + $0xd0] sm:$0xff]  ;;  %v47_v39 = vld [vmem:[%s7921_s0 + $0xd8] sm:$0xff]  ;;  %4698 = vmatprep.subr.bf16.mxu1 %v4902_v24  ;;  %v4471_v52 = vpack.c.bf16 %v4944_v37, %v4936_v34 }
  0x10   :  { %323 = vst [vmem:[#allocation2 + $0x1e0] sm:$0x1] %v4716_v4  ;;  %324 = vst [vmem:[#allocation2 + $0x1f8] sm:$0x1] %v4716_v4  ;;  %v3777_v41 = vld [vmem:[%s7920_s3 + $0x2d0] sm:$0xff]  ;;  %v3778_v42 = vld [vmem:[%s7920_s3 + $0x2d8] sm:$0xff]  ;;  %v117_v46 = vmul.f32 %v4919_v30, %v46_v38  ;;  %4466 = vmatpush1.bf16.msra.mxu0 %v4465_v28  ;;  %v118_v49 = vmul.f32 %v4919_v30, %v47_v39 }
  0x11   :  { %325 = vst [vmem:[#allocation2 + $0x210] sm:$0x1] %v4716_v4  ;;  %326 = vst [vmem:[#allocation2 + $0x228] sm:$0x1] %v4716_v4  ;;  %v4964_v43 = vld [vmem:[%s7920_s3 + $0x1e0] sm:$0xff]  ;;  %v4972_v48 = vld [vmem:[%s7920_s3 + $0x1e8] sm:$0xff]  ;;  %4467 = vmatprep.subr.bf16.mxu0 %v4715_v0  ;;  %v4995_v59 = vpack.c.bf16 %v3778_v42, %v3777_v41 }
  0x12   :  { %327 = vst [vmem:[#allocation2 + $0x240] sm:$0x1] %v4716_v4  ;;  %328 = vst [vmem:[#allocation2 + $0x258] sm:$0x1] %v4716_v4  ;;  %v48_v50 = vld [vmem:[%s7921_s0 + $0xe0] sm:$0xff]  ;;  %v49_v51 = vld [vmem:[%s7921_s0 + $0xe8] sm:$0xff]  ;;  %v188_v57 = vadd.f32 %v4924_v31, %v117_v46  ;;  %4706 = vmatpush3.bf16.msra.mxu1 %v4902_v24  ;;  %v189_v62 = vadd.f32 %v4924_v31, %v118_v49  ;;  %v4474_v3 = vpack.c.bf16 %v4972_v48, %v4964_v43 }
  0x13   :  { %329 = vst [vmem:[#allocation2 + $0x270] sm:$0x1] %v4716_v4  ;;  %330 = vst [vmem:[#allocation2 + $0x288] sm:$0x1] %v4716_v4  ;;  %v3779_v53 = vld [vmem:[%s7920_s3 + $0x2e0] sm:$0xff]  ;;  %v3780_v54 = vld [vmem:[%s7920_s3 + $0x2e8] sm:$0xff]  ;;  %v119_v63 = vmul.f32 %v4919_v30, %v48_v50  ;;  %v120_v1 = vmul.f32 %v4919_v30, %v49_v51  ;;  %4699 = vmatprep.subr.bf16.mxu1 %v4953_v40 }
  0x14   :  { %331 = vst [vmem:[#allocation2 + $0x2a0] sm:$0x1] %v4716_v4  ;;  %332 = vst [vmem:[#allocation2 + $0x2b8] sm:$0x1] %v4716_v4  ;;  %v250_v55 = vmax.f32 %v186_v44, 0.0  ;;  %v251_v56 = vmax.f32 %v187_v45, 0.0  ;;  %4469 = vmatpush1.bf16.msra.mxu0 %v4468_v47  ;;  %v5027_v11 = vpack.c.bf16 %v3780_v54, %v3779_v53 }
  0x15   :  { %333 = vst [vmem:[#allocation2 + $0x2d0] sm:$0x1] %v4716_v4  ;;  %334 = vst [vmem:[#allocation2 + $0x2e8] sm:$0x1] %v4716_v4  ;;  %v50_v58 = vld [vmem:[%s7921_s0 + $0xf0] sm:$0xff]  ;;  %v5005_v61 = vld [vmem:[%s7920_s3 + $0x1f8] sm:$0xff]  ;;  %v190_v16 = vadd.f32 %v4924_v31, %v119_v63  ;;  %v191_v17 = vadd.f32 %v4924_v31, %v120_v1  ;;  %4470 = vmatprep.subr.bf16.mxu0 %v4715_v0 }
  0x16   :  { %335 = vst [vmem:[#allocation2 + $0x300] sm:$0x1] %v4716_v4  ;;  %336 = vst [vmem:[#allocation2 + $0x318] sm:$0x1] %v4716_v4  ;;  %v5000_v60 = vld [vmem:[%s7920_s3 + $0x1f0] sm:$0xff]  ;;  %v51_v2 = vld [vmem:[%s7921_s0 + $0xf8] sm:$0xff]  ;;  %v121_v7 = vmul.f32 %v4919_v30, %v50_v58  ;;  %4707 = vmatpush3.bf16.msra.mxu1 %v4953_v40 }
  0x17   :  { %337 = vst [vmem:[#allocation2 + $0x330] sm:$0x1] %v4716_v4  ;;  %340 = vst [vmem:[#allocation2 + $0x29] sm:$0x1] %v4716_v4  ;;  %v3782_v5 = vld [vmem:[%s7920_s3 + $0x2f8] sm:$0xff]  ;;  %v252_v6 = vmax.f32 %v188_v57, 0.0  ;;  %v122_v8 = vmul.f32 %v4919_v30, %v51_v2  ;;  %v4477_v28 = vpack.c.bf16 %v5005_v61, %v5000_v60  ;;  %4700 = vmatprep.subr.bf16.mxu1 %v4995_v59 }
  0x18   :  { %341 = vst [vmem:[#allocation2 + $0x41] sm:$0x1] %v4716_v4  ;;  %342 = vst [vmem:[#allocation2 + $0x59] sm:$0x1] %v4716_v4  ;;  %v52_v10 = vld [vmem:[%s7921_s0 + $0x100] sm:$0xff]  ;;  %v5037_v14 = vld [vmem:[%s7920_s3 + $0x208] sm:$0xff]  ;;  %v192_v22 = vadd.f32 %v4924_v31, %v121_v7  ;;  %4472 = vmatpush1.bf16.msra.mxu0 %v4471_v52 }
  0x19   :  { %343 = vst [vmem:[#allocation2 + $0x71] sm:$0x1] %v4716_v4  ;;  %344 = vst [vmem:[#allocation2 + $0x89] sm:$0x1] %v4716_v4  ;;  %v5032_v12 = vld [vmem:[%s7920_s3 + $0x200] sm:$0xff]  ;;  %v253_v15 = vmax.f32 %v189_v62, 0.0  ;;  %v193_v23 = vadd.f32 %v4924_v31, %v122_v8  ;;  %v123_v25 = vmul.f32 %v4919_v30, %v52_v10  ;;  %4473 = vmatprep.subr.bf16.mxu0 %v4715_v0 }
  0x1a   :  { %345 = vst [vmem:[#allocation2 + $0xa1] sm:$0x1] %v4716_v4  ;;  %346 = vst [vmem:[#allocation2 + $0xb9] sm:$0x1] %v4716_v4  ;;  %v53_v19 = vld [vmem:[%s7921_s0 + $0x108] sm:$0xff]  ;;  %v5048_v20 = vld [vmem:[%s7920_s3] sm:$0xff]  ;;  %v4480_v46 = vpack.c.bf16 %v5037_v14, %v5032_v12  ;;  %4708 = vmatpush3.bf16.msra.mxu1 %v4995_v59 }
  0x1b   :  { %347 = vst [vmem:[#allocation2 + $0xd1] sm:$0x1] %v4716_v4  ;;  %348 = vst [vmem:[#allocation2 + $0xe9] sm:$0x1] %v4716_v4  ;;  %v5053_v21 = vld [vmem:[%s7920_s3 + $0x8] sm:$0xff]  ;;  %v124_v26 = vmul.f32 %v4919_v30, %v53_v19  ;;  %v54_v27 = vld [vmem:[%s7921_s0 + $0x110] sm:$0xff]  ;;  %v194_v42 = vadd.f32 %v4924_v31, %v123_v25  ;;  %4701 = vmatprep.subr.bf16.mxu1 %v5027_v11 }
  0x1c   :  { %349 = vst [vmem:[#allocation2 + $0x101] sm:$0x1] %v4716_v4  ;;  %350 = vst [vmem:[#allocation2 + $0x119] sm:$0x1] %v4716_v4  ;;  %v5070_v32 = vld [vmem:[%s7920_s3 + $0x210] sm:$0xff]  ;;  %v5075_v33 = vld [vmem:[%s7920_s3 + $0x218] sm:$0xff]  ;;  %v4536_v47 = vpack.c.bf16 %v5053_v21, %v5048_v20  ;;  %v125_v49 = vmul.f32 %v4919_v30, %v54_v27  ;;  %4475 = vmatpush1.bf16.msra.mxu0 %v4474_v3 }
  0x1d   :  { %351 = vst [vmem:[#allocation2 + $0x131] sm:$0x1] %v4716_v4  ;;  %353 = vst [vmem:[#allocation2 + $0x161] sm:$0x1] %v4716_v4  ;;  %v254_v34 = vmax.f32 %v190_v16, 0.0  ;;  %v255_v35 = vmax.f32 %v191_v17, 0.0  ;;  %v195_v44 = vadd.f32 %v4924_v31, %v124_v26  ;;  %v4483_v63 = vpack.c.bf16 %v5075_v33, %v5070_v32  ;;  %4476 = vmatprep.subr.bf16.mxu0 %v4715_v0 }
  0x1e   :  { %354 = vst [vmem:[#allocation2 + $0x179] sm:$0x1] %v4716_v4  ;;  %355 = vst [vmem:[#allocation2 + $0x191] sm:$0x1] %v4716_v4  ;;  %v55_v36 = vld [vmem:[%s7921_s0 + $0x118] sm:$0xff]  ;;  %v5084_v37 = vld [vmem:[%s7920_s3 + $0x10] sm:$0xff]  ;;  %v196_v2 = vadd.f32 %v4924_v31, %v125_v49  ;;  %4709 = vmatpush3.bf16.msra.mxu1 %v5027_v11 }
  0x1f   :  { %358 = vst [vmem:[#allocation2 + $0x1d9] sm:$0x1] %v4716_v4  ;;  %359 = vst [vmem:[#allocation2 + $0x1f1] sm:$0x1] %v4716_v4  ;;  %v5089_v38 = vld [vmem:[%s7920_s3 + $0x18] sm:$0xff]  ;;  %v256_v39 = vmax.f32 %v192_v22, 0.0  ;;  %v126_v50 = vmul.f32 %v4919_v30, %v55_v36 }
  0x20   :  { %360 = vst [vmem:[#allocation2 + $0x209] sm:$0x1] %v4716_v4  ;;  %361 = vst [vmem:[#allocation2 + $0x221] sm:$0x1] %v4716_v4  ;;  %v257_v41 = vmax.f32 %v193_v23, 0.0  ;;  %v56_v45 = vld [vmem:[%s7921_s0 + $0x120] sm:$0xff]  ;;  %v4539_v1 = vpack.c.bf16 %v5089_v38, %v5084_v37  ;;  %4478 = vmatpush1.bf16.msra.mxu0 %v4477_v28 }
  0x21   :  { %362 = vst [vmem:[#allocation2 + $0x239] sm:$0x1] %v4716_v4  ;;  %363 = vst [vmem:[#allocation2 + $0x251] sm:$0x1] %v4716_v4  ;;  %v57_v51 = vld [vmem:[%s7921_s0 + $0x128] sm:$0xff]  ;;  %v5109_v52 = vld [vmem:[%s7920_s3 + $0x220] sm:$0xff]  ;;  %4479 = vmatprep.subr.bf16.mxu0 %v4715_v0 }
  0x22   :  { %364 = vst [vmem:[#allocation2 + $0x269] sm:$0x1] %v4716_v4  ;;  %365 = vst [vmem:[#allocation2 + $0x281] sm:$0x1] %v4716_v4  ;;  %v5114_v53 = vld [vmem:[%s7920_s3 + $0x228] sm:$0xff]  ;;  %v258_v54 = vmax.f32 %v194_v42, 0.0  ;;  %v128_v57 = vmul.f32 %v4919_v30, %v57_v51 }
  0x23   :  { %366 = vst [vmem:[#allocation2 + $0x299] sm:$0x1] %v4716_v4  ;;  %367 = vst [vmem:[#allocation2 + $0x2b1] sm:$0x1] %v4716_v4  ;;  %v58_v58 = vld [vmem:[%s7921_s0 + $0x130] sm:$0xff]  ;;  %v5140_v7 = vld [vmem:[%s7920_s3 + $0x28] sm:$0xff]  ;;  %v4486_v17 = vpack.c.bf16 %v5114_v53, %v5109_v52 }
  0x24   :  { %368 = vst [vmem:[#allocation2 + $0x2c9] sm:$0x1] %v4716_v4  ;;  %369 = vst [vmem:[#allocation2 + $0x2e1] sm:$0x1] %v4716_v4  ;;  %v199_v10 = vadd.f32 %v4924_v31, %v128_v57  ;;  %v20_v16 = vld [vmem:[%s7921_s0] sm:$0xff]  ;;  %v260_v19 = vmax.f32 %v196_v2, 0.0  ;;  %4481 = vmatpush1.bf16.msra.mxu0 %v4480_v46 }
  0x25   :  { %370 = vst [vmem:[#allocation2 + $0x2f9] sm:$0x1] %v4716_v4  ;;  %371 = vst [vmem:[#allocation2 + $0x311] sm:$0x1] %v4716_v4  ;;  %v60_v25 = vld [vmem:[%s7921_s0 + $0x140] sm:$0xff]  ;;  %v61_v26 = vld [vmem:[%s7921_s0 + $0x148] sm:$0xff]  ;;  %4482 = vmatprep.subr.bf16.mxu0 %v4715_v0 }
  0x26   :  { %372 = vst [vmem:[#allocation2 + $0x329] sm:$0x1] %v4716_v4  ;;  %373 = vst [vmem:[#allocation2 + $0x341] sm:$0x1] %v4716_v4  ;;  %v5164_v43 = vld [vmem:[%s7920_s3 + $0x230] sm:$0xff]  ;;  %v5169_v48 = vld [vmem:[%s7920_s3 + $0x238] sm:$0xff]  ;;  %v132_v42 = vmul.f32 %v4919_v30, %v61_v26 }
  0x27   :  { %303 = vst [vmem:[#allocation2] sm:$0x1] %v4716_v4  ;;  %320 = vst [vmem:[#allocation2 + $0x198] sm:$0x1] %v4716_v4  ;;  %v263_v27 = vmax.f32 %v199_v10, 0.0  ;;  %v63_v49 = vld [vmem:[%s7921_s0 + $0x158] sm:$0xff]  ;;  %v4489_v60 = vpack.c.bf16 %v5169_v48, %v5164_v43 }
  0x28   :  { %321 = vst [vmem:[#allocation2 + $0x1b0] sm:$0x1] %v4716_v4  ;;  %338 = vst [vmem:[#allocation2 + $0x348] sm:$0x1] %v4716_v4  ;;  %v5203_v57 = vld [vmem:[%s7920_s3 + $0x248] sm:$0xff]  ;;  %v203_v2 = vadd.f32 %v4924_v31, %v132_v42  ;;  %v64_v10 = vld [vmem:[%s7921_s0 + $0x160] sm:$0xff]  ;;  %4484 = vmatpush1.bf16.msra.mxu0 %v4483_v63 }
  0x29   :  { %339 = vst [vmem:[#allocation2 + $0x11] sm:$0x1] %v4716_v4  ;;  %356 = vst [vmem:[#allocation2 + $0x1a9] sm:$0x1] %v4716_v4  ;;  %v66_v42 = vld [vmem:[%s7921_s0 + $0x170] sm:$0xff]  ;;  %v67_v12 = vld [vmem:[%s7921_s0 + $0x178] sm:$0xff]  ;;  %4485 = vmatprep.subr.bf16.mxu0 %v4715_v0 }
  0x2a   :  { %357 = vst [vmem:[#allocation2 + $0x1c1] sm:$0x1] %v4716_v4  ;;  %374 = vst [vmem:[#allocation2 + $0x359] sm:$0x1] %v4716_v4  ;;  %v3781_v4 = vld [vmem:[%s7920_s3 + $0x2f0] sm:$0xff]  ;;  %v24_v14 = vld [vmem:[%s7921_s0 + $0x20] sm:$0xff] }
  0x2b   :  { %400 = vst [vmem:[#allocation2 + $0x139] sm:$0xff] %v250_v55  ;;  %401 = vst [vmem:[#allocation2 + $0x141] sm:$0xff] %v251_v56  ;;  %v5065_v29 = vpack.c.bf16 %v3782_v5, %v3781_v4  ;;  %v259_v55 = vmax.f32 %v195_v44, 0.0  ;;  %v127_v56 = vmul.f32 %v4919_v30, %v56_v45  ;;  %v197_v4 = vadd.f32 %v4924_v31, %v126_v50  ;;  %v59_v5 = vld [vmem:[%s7921_s0 + $0x138] sm:$0xff]  ;;  %v21_v44 = vld [vmem:[%s7921_s0 + $0x8] sm:$0xff] }
  0x2c   :  { %402 = vst [vmem:[#allocation2 + $0x151] sm:$0xff] %v252_v6  ;;  %403 = vst [vmem:[#allocation2 + $0x159] sm:$0xff] %v253_v15  ;;  %v5135_v6 = vld [vmem:[%s7920_s3 + $0x20] sm:$0xff]  ;;  %v129_v15 = vmul.f32 %v4919_v30, %v58_v58  ;;  %v130_v23 = vmul.f32 %v4919_v30, %v59_v5  ;;  %v62_v45 = vld [vmem:[%s7921_s0 + $0x150] sm:$0xff]  ;;  %4487 = vmatpush1.bf16.msra.mxu0 %v4486_v17 }
  0x2d   :  { %404 = vst [vmem:[#allocation2 + $0x169] sm:$0xff] %v254_v34  ;;  %405 = vst [vmem:[#allocation2 + $0x171] sm:$0xff] %v255_v35  ;;  %v198_v8 = vadd.f32 %v4924_v31, %v127_v56  ;;  %v261_v22 = vmax.f32 %v197_v4, 0.0  ;;  %v91_v35 = vmul.f32 %v4919_v30, %v20_v16  ;;  %v4542_v36 = vpack.c.bf16 %v5140_v7, %v5135_v6  ;;  %v5198_v56 = vld [vmem:[%s7920_s3 + $0x240] sm:$0xff]  ;;  %v71_v33 = vld [vmem:[%s7921_s0 + $0x198] sm:$0xff] }
  0x2e   :  { %406 = vst [vmem:[#allocation2 + $0x181] sm:$0xff] %v256_v39  ;;  %407 = vst [vmem:[#allocation2 + $0x189] sm:$0xff] %v257_v41  ;;  %v200_v34 = vadd.f32 %v4924_v31, %v129_v15  ;;  %v201_v39 = vadd.f32 %v4924_v31, %v130_v23  ;;  %v131_v41 = vmul.f32 %v4919_v30, %v60_v25  ;;  %4702 = vmatprep.subr.bf16.mxu1 %v5065_v29  ;;  %v65_v15 = vld [vmem:[%s7921_s0 + $0x168] sm:$0xff]  ;;  %v5365_v52 = vld [vmem:[%s7920_s3 + $0x260] sm:$0xff] }
  0x2f   :  { %408 = vst [vmem:[#allocation2 + $0x1c9] sm:$0xff] %v258_v54  ;;  %409 = vst [vmem:[#allocation2 + $0x1d1] sm:$0xff] %v259_v55  ;;  %v262_v3 = vmax.f32 %v198_v8, 0.0  ;;  %v162_v51 = vadd.f32 %v4924_v31, %v91_v35  ;;  %v92_v54 = vmul.f32 %v4919_v30, %v21_v44  ;;  %v133_v55 = vmul.f32 %v4919_v30, %v62_v45  ;;  %v22_v8 = vld [vmem:[%s7921_s0 + $0x10] sm:$0xff]  ;;  %v5253_v45 = vld [vmem:[%s7920_s3 + $0x38] sm:$0xff] }
  0x30   :  { %410 = vst [vmem:[#allocation2 + $0x1e1] sm:$0xff] %v260_v19  ;;  %411 = vst [vmem:[#allocation2 + $0x1e9] sm:$0xff] %v261_v22  ;;  %v264_v50 = vmax.f32 %v200_v34, 0.0  ;;  %v265_v58 = vmax.f32 %v201_v39, 0.0  ;;  %v134_v4 = vmul.f32 %v4919_v30, %v63_v49  ;;  %4710 = vmatpush3.bf16.msra.mxu1 %v5065_v29  ;;  %v5228_v19 = vld [vmem:[%s7920_s3 + $0x30] sm:$0xff]  ;;  %v267_v23 = vmax.f32 %v203_v2, 0.0  ;;  %4488 = vmatprep.subr.bf16.mxu0 %v4715_v0 }
  0x31   :  { %412 = vst [vmem:[#allocation2 + $0x1f9] sm:$0xff] %v262_v3  ;;  %413 = vst [vmem:[#allocation2 + $0x201] sm:$0xff] %v263_v27  ;;  %v5211_v61 = vmax.f32 %v162_v51, 0.0  ;;  %v163_v28 = vadd.f32 %v4924_v31, %v92_v54  ;;  %v204_v5 = vadd.f32 %v4924_v31, %v133_v55  ;;  %v93_v26 = vmul.f32 %v4919_v30, %v22_v8  ;;  %v68_v8 = vld [vmem:[%s7921_s0 + $0x180] sm:$0xff]  ;;  %v73_v37 = vld [vmem:[%s7921_s0 + $0x1a8] sm:$0xff] }
  0x32   :  { %v832_v62 = vld [vmem:[#allocation2 + $0x13a] sm:$0xff]  ;;  %414 = vst [vmem:[#allocation2 + $0x211] sm:$0xff] %v264_v50  ;;  %v833_v16 = vld [vmem:[#allocation2 + $0x142] sm:$0xff]  ;;  %415 = vst [vmem:[#allocation2 + $0x219] sm:$0xff] %v265_v58  ;;  %v205_v25 = vadd.f32 %v4924_v31, %v134_v4  ;;  %4535 = vmatprep.subr.bf16.mxu1 %v4715_v0  ;;  %v135_v35 = vmul.f32 %v4919_v30, %v64_v10  ;;  %v136_v39 = vmul.f32 %v4919_v30, %v65_v15 }
  0x33   :  { %4139 = vmatprep.mubr.f32.mxu1 %v832_v62  ;;  %v202_v62 = vadd.f32 %v4924_v31, %v131_v41  ;;  %v834_v3 = vld [vmem:[#allocation2 + $0x152] sm:$0xff]  ;;  %376 = vst [vmem:[#allocation2 + $0x19] sm:$0xff] %v5211_v61  ;;  %985 = vmatprep.mubr.f32.mxu0 %v5211_v61  ;;  %v5235_v27 = vmax.f32 %v163_v28, 0.0  ;;  %v268_v34 = vmax.f32 %v204_v5, 0.0  ;;  %v4492_v44 = vpack.c.bf16 %v5203_v57, %v5198_v56  ;;  %v835_v58 = vld [vmem:[#allocation2 + $0x15a] sm:$0xff]  ;;  %v69_v15 = vld [vmem:[%s7921_s0 + $0x188] sm:$0xff] }
  0x34   :  { %v23_v41 = vld [vmem:[%s7921_s0 + $0x18] sm:$0xff]  ;;  %417 = vst [vmem:[#allocation2 + $0x231] sm:$0xff] %v267_v23  ;;  %v269_v49 = vmax.f32 %v205_v25, 0.0  ;;  %v164_v50 = vadd.f32 %v4924_v31, %v93_v26  ;;  %4140 = vmatmul.mubr.f32.vlgmr.msra.gmra.mrb[0].mxu1 %v833_v16  ;;  %v206_v46 = vadd.f32 %v4924_v31, %v135_v35  ;;  %v207_v54 = vadd.f32 %v4924_v31, %v136_v39  ;;  %v25_v16 = vld [vmem:[%s7921_s0 + $0x28] sm:$0xff]  ;;  %v5298_v23 = vld [vmem:[%s7920_s3 + $0x250] sm:$0xff] }
  0x35   :  { %v266_v22 = vmax.f32 %v202_v62, 0.0  ;;  %v94_v51 = vmul.f32 %v4919_v30, %v23_v41  ;;  %377 = vst [vmem:[#allocation2 + $0x21] sm:$0xff] %v5235_v27  ;;  %418 = vst [vmem:[#allocation2 + $0x241] sm:$0xff] %v268_v34  ;;  %v137_v55 = vmul.f32 %v4919_v30, %v66_v42  ;;  %4537 = vmatpush1.bf16.msra.mxu1 %v4536_v47  ;;  %4142 = vmatprep.mubr.f32.mxu1 %v834_v3  ;;  %v836_v62 = vld [vmem:[#allocation2 + $0x16a] sm:$0xff]  ;;  %v5303_v25 = vld [vmem:[%s7920_s3 + $0x258] sm:$0xff] }
  0x36   :  { %419 = vst [vmem:[#allocation2 + $0x249] sm:$0xff] %v269_v49  ;;  %v5271_v2 = vmax.f32 %v164_v50, 0.0  ;;  %v138_v28 = vmul.f32 %v4919_v30, %v67_v12  ;;  %v95_v5 = vmul.f32 %v4919_v30, %v24_v14  ;;  %4538 = vmatprep.subr.bf16.mxu1 %v4715_v0  ;;  %v4545_v20 = vpack.c.bf16 %v5253_v45, %v5228_v19  ;;  %v26_v42 = vld [vmem:[%s7921_s0 + $0x30] sm:$0xff]  ;;  %v838_v38 = vld [vmem:[#allocation2 + $0x182] sm:$0xff]  ;;  %v5420_v48 = vld [vmem:[%s7920_s3 + $0x58] sm:$0xff] }
  0x37   :  { %416 = vst [vmem:[#allocation2 + $0x229] sm:$0xff] %v266_v22  ;;  %v165_v4 = vadd.f32 %v4924_v31, %v94_v51  ;;  %v270_v21 = vmax.f32 %v206_v46, 0.0  ;;  %v271_v47 = vmax.f32 %v207_v54, 0.0  ;;  %v208_v10 = vadd.f32 %v4924_v31, %v137_v55  ;;  %v70_v22 = vld [vmem:[%s7921_s0 + $0x190] sm:$0xff]  ;;  %v72_v46 = vld [vmem:[%s7921_s0 + $0x1a0] sm:$0xff]  ;;  %v5346_v55 = vld [vmem:[%s7920_s3 + $0x48] sm:$0xff]  ;;  %4490 = vmatpush1.bf16.msra.mxu0 %v4489_v60 }
  0x38   :  { %378 = vst [vmem:[#allocation2 + $0x31] sm:$0xff] %v5271_v2  ;;  %v209_v3 = vadd.f32 %v4924_v31, %v138_v28  ;;  %v166_v34 = vadd.f32 %v4924_v31, %v95_v5  ;;  %v139_v32 = vmul.f32 %v4919_v30, %v68_v8  ;;  %4143 = vmatmul.mubr.f32.gmra.mrb[2].mxu1 %v835_v58  ;;  %v837_v49 = vld [vmem:[#allocation2 + $0x172] sm:$0xff]  ;;  %v5341_v54 = vld [vmem:[%s7920_s3 + $0x40] sm:$0xff]  ;;  %v5370_v53 = vld [vmem:[%s7920_s3 + $0x268] sm:$0xff] }
  0x39   :  { %v5306_v26 = vmax.f32 %v165_v4, 0.0  ;;  %420 = vst [vmem:[#allocation2 + $0x259] sm:$0xff] %v270_v21  ;;  %421 = vst [vmem:[#allocation2 + $0x261] sm:$0xff] %v271_v47  ;;  %v272_v63 = vmax.f32 %v208_v10, 0.0  ;;  %v140_v35 = vmul.f32 %v4919_v30, %v69_v15  ;;  %v96_v39 = vmul.f32 %v4919_v30, %v25_v16  ;;  %4540 = vmatpush1.bf16.msra.mxu1 %v4539_v1  ;;  %v27_v47 = vld [vmem:[%s7921_s0 + $0x38] sm:$0xff]  ;;  %v5415_v43 = vld [vmem:[%s7920_s3 + $0x50] sm:$0xff] }
  0x3a   :  { %v141_v41 = vmul.f32 %v4919_v30, %v70_v22  ;;  %4145 = vmatprep.mubr.f32.mxu1 %v836_v62  ;;  %v273_v50 = vmax.f32 %v209_v3, 0.0  ;;  %v5325_v51 = vmax.f32 %v166_v34, 0.0  ;;  %v210_v12 = vadd.f32 %v4924_v31, %v139_v32  ;;  %4541 = vmatprep.subr.bf16.mxu1 %v4715_v0  ;;  %v74_v22 = vld [vmem:[%s7921_s0 + $0x1b0] sm:$0xff]  ;;  %v81_v56 = vld [vmem:[%s7921_s0 + $0x1e8] sm:$0xff]  ;;  %v5467_v57 = vld [vmem:[%s7920_s3 + $0x60] sm:$0xff] }
  0x3b   :  { %379 = vst [vmem:[#allocation2 + $0x39] sm:$0xff] %v5306_v26  ;;  %v142_v14 = vmul.f32 %v4919_v30, %v71_v33  ;;  %v4495_v1 = vpack.c.bf16 %v5303_v25, %v5298_v23  ;;  %422 = vst [vmem:[#allocation2 + $0x271] sm:$0xff] %v272_v63  ;;  %v211_v58 = vadd.f32 %v4924_v31, %v140_v35  ;;  %v839_v3 = vld [vmem:[#allocation2 + $0x18a] sm:$0xff]  ;;  %v75_v35 = vld [vmem:[%s7921_s0 + $0x1b8] sm:$0xff]  ;;  %4491 = vmatprep.subr.bf16.mxu0 %v4715_v0 }
  0x3c   :  { %v167_v62 = vadd.f32 %v4924_v31, %v96_v39  ;;  %v212_v4 = vadd.f32 %v4924_v31, %v141_v41  ;;  %423 = vst [vmem:[#allocation2 + $0x279] sm:$0xff] %v273_v50  ;;  %380 = vst [vmem:[#allocation2 + $0x49] sm:$0xff] %v5325_v51  ;;  %v274_v28 = vmax.f32 %v210_v12, 0.0  ;;  %v97_v8 = vmul.f32 %v4919_v30, %v26_v42  ;;  %v840_v39 = vld [vmem:[#allocation2 + $0x1ca] sm:$0xff]  ;;  %v28_v42 = vld [vmem:[%s7921_s0 + $0x40] sm:$0xff] }
  0x3d   :  { %v213_v5 = vadd.f32 %v4924_v31, %v142_v14  ;;  %v143_v21 = vmul.f32 %v4919_v30, %v72_v46  ;;  %4146 = vmatmul.mubr.f32.gmra.mrb[4].mxu1 %v837_v49  ;;  %v275_v17 = vmax.f32 %v211_v58, 0.0  ;;  %v144_v16 = vmul.f32 %v4919_v30, %v73_v37  ;;  %v76_v49 = vld [vmem:[%s7921_s0 + $0x1c0] sm:$0xff]  ;;  %v77_v37 = vld [vmem:[%s7921_s0 + $0x1c8] sm:$0xff]  ;;  %4493 = vmatpush1.bf16.msra.mxu0 %v4492_v44  ;;  %v3765_v23 = vld [vmem:[%s7920_s3 + $0x270] sm:$0xff] }
  0x3e   :  { %v5372_v10 = vmax.f32 %v167_v62, 0.0  ;;  %v276_v15 = vmax.f32 %v212_v4, 0.0  ;;  %4148 = vmatprep.mubr.f32.mxu1 %v838_v38  ;;  %4543 = vmatpush1.bf16.msra.mxu1 %v4542_v36  ;;  %v4548_v34 = vpack.c.bf16 %v5346_v55, %v5341_v54  ;;  %424 = vst [vmem:[#allocation2 + $0x289] sm:$0xff] %v274_v28  ;;  %v168_v33 = vadd.f32 %v4924_v31, %v97_v8  ;;  %v29_v4 = vld [vmem:[%s7921_s0 + $0x48] sm:$0xff]  ;;  %v841_v28 = vld [vmem:[#allocation2 + $0x1d2] sm:$0xff] }
  0x3f   :  { %v277_v32 = vmax.f32 %v213_v5, 0.0  ;;  %v214_v63 = vadd.f32 %v4924_v31, %v143_v21  ;;  %4544 = vmatprep.subr.bf16.mxu1 %v4715_v0  ;;  %425 = vst [vmem:[#allocation2 + $0x291] sm:$0xff] %v275_v17  ;;  %v215_v6 = vadd.f32 %v4924_v31, %v144_v16  ;;  %v98_v7 = vmul.f32 %v4919_v30, %v27_v47  ;;  %v78_v47 = vld [vmem:[%s7921_s0 + $0x1d0] sm:$0xff]  ;;  %v79_v17 = vld [vmem:[%s7921_s0 + $0x1d8] sm:$0xff]  ;;  %v5472_v44 = vld [vmem:[%s7920_s3 + $0x68] sm:$0xff] }
  0x40   :  { %381 = vst [vmem:[#allocation2 + $0x51] sm:$0xff] %v5372_v10  ;;  %426 = vst [vmem:[#allocation2 + $0x2a1] sm:$0xff] %v276_v15  ;;  %v145_v36 = vmul.f32 %v4919_v30, %v74_v22  ;;  %v146_v41 = vmul.f32 %v4919_v30, %v75_v35  ;;  %v4498_v50 = vpack.c.bf16 %v5370_v53, %v5365_v52  ;;  %v5405_v12 = vmax.f32 %v168_v33, 0.0  ;;  %v842_v15 = vld [vmem:[#allocation2 + $0x1e2] sm:$0xff]  ;;  %v82_v55 = vld [vmem:[%s7921_s0 + $0x1f0] sm:$0xff] }
  0x41   :  { %427 = vst [vmem:[#allocation2 + $0x2a9] sm:$0xff] %v277_v32  ;;  %v278_v14 = vmax.f32 %v214_v63, 0.0  ;;  %v99_v46 = vmul.f32 %v4919_v30, %v28_v42  ;;  %4149 = vmatmul.mubr.f32.gmra.mrb[6].mxu1 %v839_v3  ;;  %v279_v60 = vmax.f32 %v215_v6, 0.0  ;;  %v169_v38 = vadd.f32 %v4924_v31, %v98_v7  ;;  %v30_v63 = vld [vmem:[%s7921_s0 + $0x50] sm:$0xff]  ;;  %v80_v35 = vld [vmem:[%s7921_s0 + $0x1e0] sm:$0xff]  ;;  %4494 = vmatprep.subr.bf16.mxu0 %v4715_v0  ;;  %v3766_v25 = vld [vmem:[%s7920_s3 + $0x278] sm:$0xff] }
  0x42   :  { %v216_v58 = vadd.f32 %v4924_v31, %v145_v36  ;;  %v217_v62 = vadd.f32 %v4924_v31, %v146_v41  ;;  %4151 = vmatprep.mubr.f32.mxu1 %v840_v39  ;;  %4546 = vmatpush1.bf16.msra.mxu1 %v4545_v20  ;;  %382 = vst [vmem:[#allocation2 + $0x61] sm:$0xff] %v5405_v12  ;;  %v31_v36 = vld [vmem:[%s7921_s0 + $0x58] sm:$0xff]  ;;  %v843_v41 = vld [vmem:[#allocation2 + $0x1ea] sm:$0xff] }
  0x43   :  { %428 = vst [vmem:[#allocation2 + $0x2b9] sm:$0xff] %v278_v14  ;;  %v170_v5 = vadd.f32 %v4924_v31, %v99_v46  ;;  %v147_v8 = vmul.f32 %v4919_v30, %v76_v49  ;;  %v148_v21 = vmul.f32 %v4919_v30, %v77_v37  ;;  %4547 = vmatprep.subr.bf16.mxu1 %v4715_v0  ;;  %429 = vst [vmem:[#allocation2 + $0x2c1] sm:$0xff] %v279_v60  ;;  %v844_v37 = vld [vmem:[#allocation2 + $0x1fa] sm:$0xff]  ;;  %v5555_v52 = vld [vmem:[%s7920_s3 + $0x88] sm:$0xff] }
  0x44   :  { %v5442_v19 = vmax.f32 %v169_v38, 0.0  ;;  %v280_v45 = vmax.f32 %v216_v58, 0.0  ;;  %v281_v20 = vmax.f32 %v217_v62, 0.0  ;;  %v100_v16 = vmul.f32 %v4919_v30, %v29_v4  ;;  %4496 = vmatpush1.bf16.msra.mxu0 %v4495_v1  ;;  %v83_v4 = vld [vmem:[%s7921_s0 + $0x1f8] sm:$0xff] }
  0x45   :  { %v4551_v22 = vpack.c.bf16 %v5420_v48, %v5415_v43  ;;  %v5450_v3 = vmax.f32 %v170_v5, 0.0  ;;  %v218_v32 = vadd.f32 %v4924_v31, %v147_v8  ;;  %v219_v33 = vadd.f32 %v4924_v31, %v148_v21  ;;  %4152 = vmatmul.mubr.f32.gmra.mrb[8].mxu1 %v841_v28  ;;  %4497 = vmatprep.subr.bf16.mxu0 %v4715_v0  ;;  %v32_v21 = vld [vmem:[%s7921_s0 + $0x60] sm:$0xff] }
  0x46   :  { %383 = vst [vmem:[#allocation2 + $0x69] sm:$0xff] %v5442_v19  ;;  %430 = vst [vmem:[#allocation2 + $0x2d1] sm:$0xff] %v280_v45  ;;  %v171_v39 = vadd.f32 %v4924_v31, %v100_v16  ;;  %v149_v6 = vmul.f32 %v4919_v30, %v78_v47  ;;  %v150_v7 = vmul.f32 %v4919_v30, %v79_v17  ;;  %4154 = vmatprep.mubr.f32.mxu1 %v842_v15  ;;  %v845_v47 = vld [vmem:[#allocation2 + $0x202] sm:$0xff]  ;;  %v5523_v17 = vld [vmem:[%s7920_s3 + $0x70] sm:$0xff] }
  0x47   :  { %431 = vst [vmem:[#allocation2 + $0x2d9] sm:$0xff] %v281_v20  ;;  %4549 = vmatpush1.bf16.msra.mxu1 %v4548_v34  ;;  %384 = vst [vmem:[#allocation2 + $0x79] sm:$0xff] %v5450_v3  ;;  %v282_v42 = vmax.f32 %v218_v32, 0.0  ;;  %v283_v49 = vmax.f32 %v219_v33, 0.0  ;;  %v101_v14 = vmul.f32 %v4919_v30, %v30_v63  ;;  %v151_v46 = vmul.f32 %v4919_v30, %v80_v35  ;;  %v846_v32 = vld [vmem:[#allocation2 + $0x212] sm:$0xff] }
  0x48   :  { %4550 = vmatprep.subr.bf16.mxu1 %v4715_v0  ;;  %v5488_v43 = vmax.f32 %v171_v39, 0.0  ;;  %v220_v48 = vadd.f32 %v4924_v31, %v149_v6  ;;  %v221_v60 = vadd.f32 %v4924_v31, %v150_v7  ;;  %v152_v54 = vmul.f32 %v4919_v30, %v81_v56  ;;  %v647_v33 = vld [vmem:[%s7920_s3 + $0x78] sm:$0xff]  ;;  %v33_v56 = vld [vmem:[%s7921_s0 + $0x68] sm:$0xff]  ;;  %4499 = vmatpush1.bf16.msra.mxu0 %v4498_v50  ;;  %v5550_v7 = vld [vmem:[%s7920_s3 + $0x80] sm:$0xff] }
  0x49   :  { %v4554_v34 = vpack.c.bf16 %v5472_v44, %v5467_v57  ;;  %432 = vst [vmem:[#allocation2 + $0x2e9] sm:$0xff] %v282_v42  ;;  %433 = vst [vmem:[#allocation2 + $0x2f1] sm:$0xff] %v283_v49  ;;  %v172_v38 = vadd.f32 %v4924_v31, %v101_v14  ;;  %v222_v58 = vadd.f32 %v4924_v31, %v151_v46  ;;  %4155 = vmatmul.mubr.f32.gmra.mrb[10].mxu1 %v843_v41  ;;  %v847_v41 = vld [vmem:[#allocation2 + $0x21a] sm:$0xff] }
  0x4a   :  { %v102_v62 = vmul.f32 %v4919_v30, %v31_v36  ;;  %385 = vst [vmem:[#allocation2 + $0x81] sm:$0xff] %v5488_v43  ;;  %v284_v1 = vmax.f32 %v220_v48, 0.0  ;;  %v285_v28 = vmax.f32 %v221_v60, 0.0  ;;  %v223_v5 = vadd.f32 %v4924_v31, %v152_v54  ;;  %4157 = vmatprep.mubr.f32.mxu1 %v844_v37  ;;  %4500 = vmatprep.subr.bf16.mxu0 %v4715_v0  ;;  %v34_v36 = vld [vmem:[%s7921_s0 + $0x70] sm:$0xff]  ;;  %v35_v37 = vld [vmem:[%s7921_s0 + $0x78] sm:$0xff]  ;;  %v36_v48 = vld [vmem:[%s7921_s0 + $0x80] sm:$0xff] }
  0x4b   :  { %v153_v8 = vmul.f32 %v4919_v30, %v82_v55  ;;  %4552 = vmatpush1.bf16.msra.mxu1 %v4551_v22  ;;  %v5525_v15 = vmax.f32 %v172_v38, 0.0  ;;  %v286_v45 = vmax.f32 %v222_v58, 0.0  ;;  %v154_v16 = vmul.f32 %v4919_v30, %v83_v4  ;;  %v848_v60 = vld [vmem:[#allocation2 + $0x22a] sm:$0xff]  ;;  %v5576_v38 = vld [vmem:[#allocation2 + $0x18] sm:$0xff] }
  0x4c   :  { %v173_v20 = vadd.f32 %v4924_v31, %v102_v62  ;;  %4553 = vmatprep.subr.bf16.mxu1 %v4715_v0  ;;  %434 = vst [vmem:[#allocation2 + $0x301] sm:$0xff] %v284_v1  ;;  %435 = vst [vmem:[#allocation2 + $0x309] sm:$0xff] %v285_v28  ;;  %v287_v22 = vmax.f32 %v223_v5, 0.0  ;;  %v103_v35 = vmul.f32 %v4919_v30, %v32_v21  ;;  %v40_v21 = vld [vmem:[%s7921_s0 + $0xa0] sm:$0xff] }
  0x4d   :  { %v224_v63 = vadd.f32 %v4924_v31, %v153_v8  ;;  %v4501_v57 = vpack.c.bf16 %v3766_v25, %v3765_v23  ;;  %386 = vst [vmem:[#allocation2 + $0x91] sm:$0xff] %v5525_v15  ;;  %436 = vst [vmem:[#allocation2 + $0x319] sm:$0xff] %v286_v45  ;;  %v225_v39 = vadd.f32 %v4924_v31, %v154_v16  ;;  %4158 = vmatmul.mubr.f32.gmra.mrb[12].mxu1 %v845_v47  ;;  %v37_v23 = vld [vmem:[%s7921_s0 + $0x88] sm:$0xff]  ;;  %v38_v25 = vld [vmem:[%s7921_s0 + $0x90] sm:$0xff] }
  0x4e   :  { %v5542_v44 = vmax.f32 %v173_v20, 0.0  ;;  %v104_v6 = vmul.f32 %v4919_v30, %v33_v56  ;;  %437 = vst [vmem:[#allocation2 + $0x321] sm:$0xff] %v287_v22  ;;  %v174_v50 = vadd.f32 %v4924_v31, %v103_v35  ;;  %4160 = vmatprep.mubr.f32.mxu1 %v846_v32  ;;  %v4557_v42 = vpack.c.bf16 %v647_v33, %v5523_v17  ;;  %v39_v8 = vld [vmem:[%s7921_s0 + $0x98] sm:$0xff]  ;;  %v650_v17 = vld [vmem:[%s7920_s3 + $0x90] sm:$0xff]  ;;  %v850_v22 = vld [vmem:[#allocation2 + $0x242] sm:$0xff] }
  0x4f   :  { %v288_v53 = vmax.f32 %v224_v63, 0.0  ;;  %4555 = vmatpush1.bf16.msra.mxu1 %v4554_v34  ;;  %v289_v49 = vmax.f32 %v225_v39, 0.0  ;;  %v105_v46 = vmul.f32 %v4919_v30, %v34_v36  ;;  %v106_v55 = vmul.f32 %v4919_v30, %v35_v37  ;;  %4502 = vmatpush1.bf16.msra.mxu0 %v4501_v57  ;;  %v849_v47 = vld [vmem:[#allocation2 + $0x232] sm:$0xff]  ;;  %v41_v57 = vld [vmem:[%s7921_s0 + $0xa8] sm:$0xff] }
  0x50   :  { %387 = vst [vmem:[#allocation2 + $0x99] sm:$0xff] %v5542_v44  ;;  %v175_v14 = vadd.f32 %v4924_v31, %v104_v6  ;;  %4556 = vmatprep.subr.bf16.mxu1 %v4715_v0  ;;  %v5572_v54 = vmax.f32 %v174_v50, 0.0  ;;  %v107_v34 = vmul.f32 %v4919_v30, %v36_v48  ;;  %v4560_v58 = vpack.c.bf16 %v5555_v52, %v5550_v7  ;;  %v651_v45 = vld [vmem:[%s7920_s3 + $0x98] sm:$0xff]  ;;  %v42_v39 = vld [vmem:[%s7921_s0 + $0xb0] sm:$0xff]  ;;  %v5627_v6 = vld [vmem:[#allocation2 + $0x20] sm:$0xff] }
  0x51   :  { %438 = vst [vmem:[#allocation2 + $0x331] sm:$0xff] %v288_v53  ;;  %439 = vst [vmem:[#allocation2 + $0x339] sm:$0xff] %v289_v49  ;;  %v176_v4 = vadd.f32 %v4924_v31, %v105_v46  ;;  %4161 = vmatmul.mubr.f32.gmra.mrb[14].mxu1 %v847_v41  ;;  %4504 = vmatprep.subr.bf16.mxu0 %v4859_v9  ;;  %v177_v1 = vadd.f32 %v4924_v31, %v106_v55  ;;  %v43_v50 = vld [vmem:[%s7921_s0 + $0xb8] sm:$0xff]  ;;  %v851_v49 = vld [vmem:[#allocation2 + $0x24a] sm:$0xff] }
  0x52   :  { %v5580_v62 = vmax.f32 %v175_v14, 0.0  ;;  %388 = vst [vmem:[#allocation2 + $0xa9] sm:$0xff] %v5572_v54  ;;  %v178_v28 = vadd.f32 %v4924_v31, %v107_v34  ;;  %v108_v5 = vmul.f32 %v4919_v30, %v37_v23  ;;  %4163 = vmatprep.mubr.f32.mxu1 %v848_v60  ;;  %v109_v16 = vmul.f32 %v4919_v30, %v38_v25  ;;  %v852_v60 = vld [vmem:[#allocation2 + $0x25a] sm:$0xff]  ;;  %v5663_v23 = vld [vmem:[#allocation2 + $0x30] sm:$0xff] }
  0x53   :  { %4558 = vmatpush1.bf16.msra.mxu1 %v4557_v42  ;;  %v5607_v20 = vmax.f32 %v176_v4, 0.0  ;;  %v110_v32 = vmul.f32 %v4919_v30, %v39_v8  ;;  %v111_v33 = vmul.f32 %v4919_v30, %v40_v21  ;;  %986 = vmatmul.mubr.f32.vlgmr.msra.gmra.mrb[0].mxu0 %v5576_v38  ;;  %v5614_v63 = vmax.f32 %v177_v1, 0.0  ;;  %v652_v55 = vld [vmem:[%s7920_s3 + $0xa0] sm:$0xff]  ;;  %v654_v8 = vld [vmem:[%s7920_s3 + $0xb0] sm:$0xff]  ;;  %v655_v21 = vld [vmem:[%s7920_s3 + $0xb8] sm:$0xff] }
  0x54   :  { %389 = vst [vmem:[#allocation2 + $0xb1] sm:$0xff] %v5580_v62  ;;  %4559 = vmatprep.subr.bf16.mxu1 %v4715_v0  ;;  %v5616_v35 = vmax.f32 %v178_v28, 0.0  ;;  %v179_v56 = vadd.f32 %v4924_v31, %v108_v5  ;;  %4506 = vmatpush3.bf16.msra.mxu0 %v4859_v9  ;;  %v180_v7 = vadd.f32 %v4924_v31, %v109_v16  ;;  %v853_v28 = vld [vmem:[#allocation2 + $0x262] sm:$0xff]  ;;  %v856_v16 = vld [vmem:[#allocation2 + $0x28a] sm:$0xff] }
  0x55   :  { %990 = vmatprep.mubr.f32.mxu0 %v5235_v27  ;;  %390 = vst [vmem:[#allocation2 + $0xc1] sm:$0xff] %v5607_v20  ;;  %v181_v52 = vadd.f32 %v4924_v31, %v110_v32  ;;  %v182_v53 = vadd.f32 %v4924_v31, %v111_v33  ;;  %4164 = vmatmul.mubr.f32.gmra.mrb[16].mxu1 %v849_v47  ;;  %391 = vst [vmem:[#allocation2 + $0xc9] sm:$0xff] %v5614_v63  ;;  %v5688_v47 = vld [vmem:[#allocation2 + $0x38] sm:$0xff]  ;;  %v656_v32 = vld [vmem:[%s7920_s3 + $0xc0] sm:$0xff] }
  0x56   :  { %4508 = vmatprep.subr.bf16.mxu0 %v4867_v13  ;;  %392 = vst [vmem:[#allocation2 + $0xd9] sm:$0xff] %v5616_v35  ;;  %v5639_v9 = vmax.f32 %v179_v56, 0.0  ;;  %v112_v36 = vmul.f32 %v4919_v30, %v41_v57  ;;  %v113_v41 = vmul.f32 %v4919_v30, %v42_v39  ;;  %v114_v42 = vmul.f32 %v4919_v30, %v43_v50  ;;  %v653_v30 = vld [vmem:[%s7920_s3 + $0xa8] sm:$0xff]  ;;  %v658_v39 = vld [vmem:[%s7920_s3 + $0xd0] sm:$0xff]  ;;  %v860_v50 = vld [vmem:[#allocation2 + $0x2ba] sm:$0xff] }
  0x57   :  { %4166 = vmatprep.mubr.f32.mxu1 %v850_v22  ;;  %4561 = vmatpush1.bf16.msra.mxu1 %v4560_v58  ;;  %v4563_v14 = vpack.c.bf16 %v651_v45, %v650_v17  ;;  %v5644_v46 = vmax.f32 %v180_v7, 0.0  ;;  %v5646_v37 = vmax.f32 %v181_v52, 0.0  ;;  %v5648_v48 = vmax.f32 %v182_v53, 0.0  ;;  %v855_v17 = vld [vmem:[#allocation2 + $0x27a] sm:$0xff]  ;;  %v5701_v33 = vld [vmem:[#allocation2 + $0x48] sm:$0xff]  ;;  %v857_v22 = vld [vmem:[#allocation2 + $0x292] sm:$0xff] }
  0x58   :  { %991 = vmatmul.mubr.f32.gmra.mrb[2].mxu0 %v5627_v6  ;;  %4562 = vmatprep.subr.bf16.mxu1 %v4715_v0  ;;  %393 = vst [vmem:[#allocation2 + $0xe1] sm:$0xff] %v5639_v9  ;;  %v183_v34 = vadd.f32 %v4924_v31, %v112_v36  ;;  %v184_v58 = vadd.f32 %v4924_v31, %v113_v41  ;;  %v858_v57 = vld [vmem:[#allocation2 + $0x2a2] sm:$0xff]  ;;  %v5714_v7 = vld [vmem:[#allocation2 + $0x50] sm:$0xff] }
  0x59   :  { %v185_v4 = vadd.f32 %v4924_v31, %v114_v42  ;;  %995 = vmatprep.mubr.f32.mxu0 %v5271_v2  ;;  %4510 = vmatpush3.bf16.msra.mxu0 %v4867_v13  ;;  %394 = vst [vmem:[#allocation2 + $0xf1] sm:$0xff] %v5644_v46  ;;  %395 = vst [vmem:[#allocation2 + $0xf9] sm:$0xff] %v5646_v37  ;;  %v4566_v5 = vpack.c.bf16 %v653_v30, %v652_v55  ;;  %v854_v13 = vld [vmem:[#allocation2 + $0x272] sm:$0xff]  ;;  %v859_v52 = vld [vmem:[#allocation2 + $0x2aa] sm:$0xff] }
  0x5a   :  { %396 = vst [vmem:[#allocation2 + $0x109] sm:$0xff] %v5648_v48  ;;  %4167 = vmatmul.mubr.f32.gmra.mrb[18].mxu1 %v851_v49  ;;  %4512 = vmatprep.subr.bf16.mxu0 %v4885_v18  ;;  %v5670_v25 = vmax.f32 %v183_v34, 0.0  ;;  %v5672_v1 = vmax.f32 %v184_v58, 0.0  ;;  %v4569_v45 = vpack.c.bf16 %v655_v21, %v654_v8  ;;  %v660_v36 = vld [vmem:[%s7920_s3 + $0xe0] sm:$0xff]  ;;  %v5740_v55 = vld [vmem:[#allocation2 + $0x68] sm:$0xff] }
  0x5b   :  { %v5674_v31 = vmax.f32 %v185_v4, 0.0  ;;  %4169 = vmatprep.mubr.f32.mxu1 %v852_v60  ;;  %4564 = vmatpush1.bf16.msra.mxu1 %v4563_v14  ;;  %v5727_v41 = vld [vmem:[#allocation2 + $0x60] sm:$0xff]  ;;  %v862_v14 = vld [vmem:[#allocation2 + $0x2d2] sm:$0xff]  ;;  %v864_v58 = vld [vmem:[#allocation2 + $0x2ea] sm:$0xff] }
  0x5c   :  { %996 = vmatmul.mubr.f32.gmra.mrb[4].mxu0 %v5663_v23  ;;  %4565 = vmatprep.subr.bf16.mxu1 %v4715_v0  ;;  %397 = vst [vmem:[#allocation2 + $0x111] sm:$0xff] %v5670_v25  ;;  %398 = vst [vmem:[#allocation2 + $0x121] sm:$0xff] %v5672_v1  ;;  %v861_v42 = vld [vmem:[#allocation2 + $0x2c2] sm:$0xff]  ;;  %v662_v60 = vld [vmem:[%s7920_s3 + $0xf0] sm:$0xff] }
  0x5d   :  { %399 = vst [vmem:[#allocation2 + $0x129] sm:$0xff] %v5674_v31  ;;  %1000 = vmatprep.mubr.f32.mxu0 %v5306_v26  ;;  %4514 = vmatpush3.bf16.msra.mxu0 %v4885_v18  ;;  %v657_v18 = vld [vmem:[%s7920_s3 + $0xc8] sm:$0xff]  ;;  %v863_v30 = vld [vmem:[#allocation2 + $0x2da] sm:$0xff] }
  0x5e   :  { %4170 = vmatmul.mubr.f32.gmra.mrb[20].mxu1 %v853_v28  ;;  %4516 = vmatprep.subr.bf16.mxu0 %v4902_v24  ;;  %v4572_v56 = vpack.c.bf16 %v657_v18, %v656_v32  ;;  %v5747_v4 = vld [vmem:[#allocation2 + $0x78] sm:$0xff]  ;;  %v866_v28 = vld [vmem:[#allocation2 + $0x302] sm:$0xff] }
  0x5f   :  { %4172 = vmatprep.mubr.f32.mxu1 %v854_v13  ;;  %4567 = vmatpush1.bf16.msra.mxu1 %v4566_v5  ;;  %v5753_v5 = vld [vmem:[#allocation2 + $0x80] sm:$0xff]  ;;  %v867_v13 = vld [vmem:[#allocation2 + $0x30a] sm:$0xff] }
  0x60   :  { %1001 = vmatmul.mubr.f32.gmra.mrb[6].mxu0 %v5688_v47  ;;  %4568 = vmatprep.subr.bf16.mxu1 %v4715_v0  ;;  %v868_v8 = vld [vmem:[#allocation2 + $0x31a] sm:$0xff]  ;;  %v869_v21 = vld [vmem:[#allocation2 + $0x322] sm:$0xff] }
  0x61   :  { %1005 = vmatprep.mubr.f32.mxu0 %v5325_v51  ;;  %4518 = vmatpush3.bf16.msra.mxu0 %v4902_v24  ;;  %v659_v24 = vld [vmem:[%s7920_s3 + $0xd8] sm:$0xff]  ;;  %v504_v32 = vld [vmem:[#allocation2 + $0x1] sm:$0xff] }
  0x62   :  { %4173 = vmatmul.mubr.f32.gmra.mrb[22].mxu1 %v855_v17  ;;  %4520 = vmatprep.subr.bf16.mxu0 %v4953_v40  ;;  %v4575_v53 = vpack.c.bf16 %v659_v24, %v658_v39  ;;  %v870_v17 = vld [vmem:[#allocation2 + $0x332] sm:$0xff]  ;;  %v3783_v18 = vld [vmem:[%s7920_s3 + $0x300] sm:$0xff]  ;;  %v505_v24 = vld [vmem:[#allocation2 + $0x9] sm:$0xff] }
  0x63   :  { %4175 = vmatprep.mubr.f32.mxu1 %v856_v16  ;;  %4570 = vmatpush1.bf16.msra.mxu1 %v4569_v45  ;;  %v5761_v45 = vld [vmem:[#allocation2 + $0x98] sm:$0xff] }
  0x64   :  { %1006 = vmatmul.mubr.f32.gmra.mrb[8].mxu0 %v5701_v33  ;;  %4571 = vmatprep.subr.bf16.mxu1 %v4715_v0  ;;  %v871_v16 = vld [vmem:[#allocation2 + $0x33a] sm:$0xff] }
  0x65   :  { %1010 = vmatprep.mubr.f32.mxu0 %v5372_v10  ;;  %4522 = vmatpush3.bf16.msra.mxu0 %v4953_v40  ;;  %v661_v40 = vld [vmem:[%s7920_s3 + $0xe8] sm:$0xff] }
  0x66   :  { %4176 = vmatmul.mubr.f32.gmra.mrb[24].mxu1 %v857_v22  ;;  %4524 = vmatprep.subr.bf16.mxu0 %v4995_v59  ;;  %v4578_v49 = vpack.c.bf16 %v661_v40, %v660_v36  ;;  %v3784_v22 = vld [vmem:[%s7920_s3 + $0x308] sm:$0xff]  ;;  %v3787_v40 = vld [vmem:[%s7920_s3 + $0x320] sm:$0xff] }
  0x67   :  { %4178 = vmatprep.mubr.f32.mxu1 %v858_v57  ;;  %4573 = vmatpush1.bf16.msra.mxu1 %v4572_v56  ;;  %v5771_v56 = vld [vmem:[#allocation2 + $0xa8] sm:$0xff]  ;;  %v440_v57 = vld [vmem:[#allocation2] sm:$0xff]  ;;  %v4616_v39 = vpack.c.bf16 %v3784_v22, %v3783_v18 }
  0x68   :  { %1011 = vmatmul.mubr.f32.gmra.mrb[10].mxu0 %v5714_v7  ;;  %4574 = vmatprep.subr.bf16.mxu1 %v4715_v0  ;;  %v3800_v18 = vld [vmem:[%s7920_s3 + $0x388] sm:$0xff] }
  0x69   :  { %1015 = vmatprep.mubr.f32.mxu0 %v5405_v12  ;;  %4526 = vmatpush3.bf16.msra.mxu0 %v4995_v59  ;;  %v663_v59 = vld [vmem:[%s7920_s3 + $0xf8] sm:$0xff]  ;;  %v5872_v22 = vld [vmem:[#allocation2 + $0x108] sm:$0xff] }
  0x6a   :  { %4179 = vmatmul.mubr.f32.gmra.mrb[26].mxu1 %v859_v52  ;;  %4528 = vmatprep.subr.bf16.mxu0 %v5027_v11  ;;  %v4581_v34 = vpack.c.bf16 %v663_v59, %v662_v60  ;;  %v3785_v52 = vld [vmem:[%s7920_s3 + $0x310] sm:$0xff] }
  0x6b   :  { %4181 = vmatprep.mubr.f32.mxu1 %v860_v50  ;;  %4576 = vmatpush1.bf16.msra.mxu1 %v4575_v53  ;;  %v3786_v53 = vld [vmem:[%s7920_s3 + $0x318] sm:$0xff]  ;;  %v5781_v50 = vld [vmem:[#allocation2 + $0xb0] sm:$0xff] }
  0x6c   :  { %1016 = vmatmul.mubr.f32.gmra.mrb[12].mxu0 %v5727_v41  ;;  %4577 = vmatprep.subr.bf16.mxu1 %v4715_v0  ;;  %v4619_v36 = vpack.c.bf16 %v3786_v53, %v3785_v52  ;;  %v3789_v59 = vld [vmem:[%s7920_s3 + $0x330] sm:$0xff]  ;;  %v5898_v52 = vld [vmem:[#allocation2 + $0x120] sm:$0xff] }
  0x6d   :  { %1020 = vmatprep.mubr.f32.mxu0 %v5442_v19  ;;  %4530 = vmatpush3.bf16.msra.mxu0 %v5027_v11  ;;  %v865_v11 = vld [vmem:[#allocation2 + $0x2f2] sm:$0xff] }
  0x6e   :  { %4182 = vmatmul.mubr.f32.gmra.mrb[28].mxu1 %v861_v42  ;;  %4532 = vmatprep.subr.bf16.mxu0 %v5065_v29  ;;  %v3788_v42 = vld [vmem:[%s7920_s3 + $0x328] sm:$0xff]  ;;  %v5908_v53 = vld [vmem:[#allocation2 + $0x139] sm:$0xff] }
  0x6f   :  { %4184 = vmatprep.mubr.f32.mxu1 %v862_v14  ;;  %4579 = vmatpush1.bf16.msra.mxu1 %v4578_v49  ;;  %v5792_v49 = vld [vmem:[#allocation2 + $0xc0] sm:$0xff]  ;;  %v5794_v14 = vld [vmem:[#allocation2 + $0x8] sm:$0xff]  ;;  %v4622_v60 = vpack.c.bf16 %v3788_v42, %v3787_v40  ;;  %v5936_v40 = vld [vmem:[#allocation2 + $0x150] sm:$0xff] }
  0x70   :  { %1021 = vmatmul.mubr.f32.gmra.mrb[14].mxu0 %v5740_v55  ;;  %4580 = vmatprep.subr.bf16.mxu1 %v4715_v0  ;;  %v5948_v42 = vld [vmem:[#allocation2 + $0x169] sm:$0xff] }
  0x71   :  { %1025 = vmatprep.mubr.f32.mxu0 %v5450_v3  ;;  %4534 = vmatpush3.bf16.msra.mxu0 %v5065_v29  ;;  %v5757_v29 = vld [vmem:[#allocation2 + $0x90] sm:$0xff] }
  0x72   :  { %4185 = vmatmul.mubr.f32.gmra.mrb[30].mxu1 %v863_v30  ;;  %v3790_v30 = vld [vmem:[%s7920_s3 + $0x338] sm:$0xff] }
  0x73   :  { %4187 = vmatprep.mubr.f32.mxu1 %v864_v58  ;;  %4582 = vmatpush1.bf16.msra.mxu1 %v4581_v34  ;;  %v5807_v34 = vld [vmem:[#allocation2 + $0xc8] sm:$0xff]  ;;  %v3791_v58 = vld [vmem:[%s7920_s3 + $0x340] sm:$0xff] }
  0x74   :  { %1026 = vmatmul.mubr.f32.gmra.mrb[16].mxu0 %v5747_v4  ;;  %4615 = vmatprep.subr.bf16.mxu1 %v4715_v0 }
  0x75   :  { %1030 = vmatprep.mubr.f32.mxu0 %v5488_v43 }
  0x76   :  { %4188 = vmatmul.mubr.f32.gmra.mrb[32].mxu1 %v865_v11  ;;  %v3792_v11 = vld [vmem:[%s7920_s3 + $0x348] sm:$0xff] }
  0x77   :  { %4190 = vmatprep.mubr.f32.mxu1 %v866_v28  ;;  %v5820_v28 = vld [vmem:[#allocation2 + $0xd8] sm:$0xff] }
  0x78   :  { %1031 = vmatmul.mubr.f32.gmra.mrb[18].mxu0 %v5753_v5 }
  0x79   :  { %1035 = vmatprep.mubr.f32.mxu0 %v5525_v15 }
  0x7a   :  { %4191 = vmatmul.mubr.f32.gmra.mrb[34].mxu1 %v867_v13  ;;  %v3794_v13 = vld [vmem:[%s7920_s3 + $0x358] sm:$0xff] }
  0x7b   :  { %4193 = vmatprep.mubr.f32.mxu1 %v868_v8  ;;  %v5833_v8 = vld [vmem:[#allocation2 + $0xe0] sm:$0xff] }
  0x7c   :  { %1036 = vmatmul.mubr.f32.gmra.mrb[20].mxu0 %v5757_v29 }
  0x7d   :  { %1040 = vmatprep.mubr.f32.mxu0 %v5542_v44 }
  0x7e   :  { %4194 = vmatmul.mubr.f32.gmra.mrb[36].mxu1 %v869_v21  ;;  %v3796_v21 = vld [vmem:[%s7920_s3 + $0x368] sm:$0xff] }
  0x7f   :  { %4196 = vmatprep.mubr.f32.mxu1 %v870_v17  ;;  %v5846_v17 = vld [vmem:[#allocation2 + $0xf0] sm:$0xff] }
  0x80   :  { %1041 = vmatmul.mubr.f32.gmra.mrb[22].mxu0 %v5761_v45 }
  0x81   :  { %1045 = vmatprep.mubr.f32.mxu0 %v5572_v54 }
  0x82   :  { %4197 = vmatmul.mubr.f32.gmra.mrb[38].mxu1 %v871_v16  ;;  %v3798_v16 = vld [vmem:[%s7920_s3 + $0x378] sm:$0xff] }
  0x83   :  { %1755 = vmatprep.mubr.f32.mxu1 %v504_v32  ;;  %v5859_v32 = vld [vmem:[#allocation2 + $0xf8] sm:$0xff] }
  0x84   :  { %1046 = vmatmul.mubr.f32.gmra.mrb[24].mxu0 %v5771_v56 }
  0x85   :  { %1050 = vmatprep.mubr.f32.mxu0 %v5580_v62 }
  0x86   :  { %1756 = vmatmul.mubr.f32.vlgmr.msra.gmra.mrb[40].mxu1 %v440_v57  ;;  %v3802_v57 = vld [vmem:[%s7920_s3 + $0x398] sm:$0xff] }
  0x87   :  { %4617 = vmatpush1.bf16.msra.mxu1 %v4616_v39  ;;  %1760 = vmatprep.mubr.f32.mxu1 %v505_v24  ;;  %v5885_v39 = vld [vmem:[#allocation2 + $0x110] sm:$0xff]  ;;  %v3804_v24 = vld [vmem:[%s7920_s3 + $0x3a8] sm:$0xff] }
  0x88   :  { %1051 = vmatmul.mubr.f32.gmra.mrb[26].mxu0 %v5781_v50  ;;  %4618 = vmatprep.subr.bf16.mxu1 %v4715_v0 }
  0x89   :  { %1055 = vmatprep.mubr.f32.mxu0 %v5607_v20 }
  0x8a   :  { %1761 = vmatmul.mubr.f32.gmra.mrb[42].mxu1 %v5794_v14 }
  0x8b   :  { %1765 = vmatprep.mubr.f32.mxu1 %v5211_v61  ;;  %4620 = vmatpush1.bf16.msra.mxu1 %v4619_v36  ;;  %v4625_v61 = vpack.c.bf16 %v3790_v30, %v3789_v59  ;;  %v3805_v36 = vld [vmem:[%s7920_s3 + $0x3b0] sm:$0xff]  ;;  %v710_v59 = vld [vmem:[#allocation2 + $0x180] sm:$0xff]  ;;  %v711_v30 = vld [vmem:[#allocation2 + $0x188] sm:$0xff] }
  0x8c   :  { %1056 = vmatmul.mubr.f32.gmra.mrb[28].mxu0 %v5792_v49  ;;  %4621 = vmatprep.subr.bf16.mxu1 %v4715_v0 }
  0x8d   :  { %1060 = vmatprep.mubr.f32.mxu0 %v5614_v63 }
  0x8e   :  { %1766 = vmatmul.mubr.f32.gmra.mrb[44].mxu1 %v5576_v38  ;;  %v3793_v38 = vld [vmem:[%s7920_s3 + $0x350] sm:$0xff] }
  0x8f   :  { %1770 = vmatprep.mubr.f32.mxu1 %v5235_v27  ;;  %4623 = vmatpush1.bf16.msra.mxu1 %v4622_v60  ;;  %v4628_v27 = vpack.c.bf16 %v3792_v11, %v3791_v58  ;;  %v3807_v60 = vld [vmem:[%s7920_s3 + $0x3c0] sm:$0xff]  ;;  %v665_v58 = vld [vmem:[%s7920_s3 + $0x108] sm:$0xff] }
  0x90   :  { %1061 = vmatmul.mubr.f32.gmra.mrb[30].mxu0 %v5807_v34  ;;  %4624 = vmatprep.subr.bf16.mxu1 %v4715_v0  ;;  %v5997_v11 = vld [vmem:[#allocation2 + $0x1e1] sm:$0xff] }
  0x91   :  { %1065 = vmatprep.mubr.f32.mxu0 %v5616_v35 }
  0x92   :  { %1771 = vmatmul.mubr.f32.gmra.mrb[46].mxu1 %v5627_v6  ;;  %v3795_v6 = vld [vmem:[%s7920_s3 + $0x360] sm:$0xff] }
  0x93   :  { %1775 = vmatprep.mubr.f32.mxu1 %v5271_v2  ;;  %4626 = vmatpush1.bf16.msra.mxu1 %v4625_v61  ;;  %v4631_v2 = vpack.c.bf16 %v3794_v13, %v3793_v38  ;;  %v5976_v61 = vld [vmem:[#allocation2 + $0x1c9] sm:$0xff]  ;;  %v6011_v13 = vld [vmem:[#allocation2 + $0x1e0] sm:$0xff] }
  0x94   :  { %1066 = vmatmul.mubr.f32.gmra.mrb[32].mxu0 %v5820_v28  ;;  %4627 = vmatprep.subr.bf16.mxu1 %v4715_v0 }
  0x95   :  { %1070 = vmatprep.mubr.f32.mxu0 %v5639_v9 }
  0x96   :  { %1776 = vmatmul.mubr.f32.gmra.mrb[48].mxu1 %v5663_v23  ;;  %v3797_v23 = vld [vmem:[%s7920_s3 + $0x370] sm:$0xff] }
  0x97   :  { %1780 = vmatprep.mubr.f32.mxu1 %v5306_v26  ;;  %4629 = vmatpush1.bf16.msra.mxu1 %v4628_v27  ;;  %v4634_v26 = vpack.c.bf16 %v3796_v21, %v3795_v6  ;;  %v3810_v27 = vld [vmem:[%s7920_s3 + $0x3d8] sm:$0xff]  ;;  %v6036_v21 = vld [vmem:[#allocation2 + $0x200] sm:$0xff] }
  0x98   :  { %1071 = vmatmul.mubr.f32.gmra.mrb[34].mxu0 %v5833_v8  ;;  %4630 = vmatprep.subr.bf16.mxu1 %v4715_v0  ;;  %v6028_v6 = vld [vmem:[#allocation2 + $0x1f8] sm:$0xff] }
  0x99   :  { %1075 = vmatprep.mubr.f32.mxu0 %v5644_v46 }
  0x9a   :  { %1781 = vmatmul.mubr.f32.gmra.mrb[50].mxu1 %v5688_v47  ;;  %v3799_v47 = vld [vmem:[%s7920_s3 + $0x380] sm:$0xff] }
  0x9b   :  { %1785 = vmatprep.mubr.f32.mxu1 %v5325_v51  ;;  %4632 = vmatpush1.bf16.msra.mxu1 %v4631_v2  ;;  %v4637_v51 = vpack.c.bf16 %v3798_v16, %v3797_v23  ;;  %v6023_v2 = vld [vmem:[#allocation2 + $0x1f9] sm:$0xff]  ;;  %v6050_v23 = vld [vmem:[#allocation2 + $0x210] sm:$0xff] }
  0x9c   :  { %1076 = vmatmul.mubr.f32.gmra.mrb[36].mxu0 %v5846_v17  ;;  %4633 = vmatprep.subr.bf16.mxu1 %v4715_v0  ;;  %v6053_v16 = vld [vmem:[#allocation2 + $0x219] sm:$0xff] }
  0x9d   :  { %1080 = vmatprep.mubr.f32.mxu0 %v5646_v37 }
  0x9e   :  { %1786 = vmatmul.mubr.f32.gmra.mrb[52].mxu1 %v5701_v33  ;;  %v3801_v33 = vld [vmem:[%s7920_s3 + $0x390] sm:$0xff] }
  0x9f   :  { %1790 = vmatprep.mubr.f32.mxu1 %v5372_v10  ;;  %4635 = vmatpush1.bf16.msra.mxu1 %v4634_v26  ;;  %v4640_v10 = vpack.c.bf16 %v3800_v18, %v3799_v47  ;;  %v6070_v47 = vld [vmem:[#allocation2 + $0x231] sm:$0xff]  ;;  %v6078_v18 = vld [vmem:[#allocation2 + $0x241] sm:$0xff] }
  0xa0   :  { %1081 = vmatmul.mubr.f32.gmra.mrb[38].mxu0 %v5859_v32  ;;  %4636 = vmatprep.subr.bf16.mxu1 %v4715_v0 }
  0xa1   :  { %1085 = vmatprep.mubr.f32.mxu0 %v5648_v48 }
  0xa2   :  { %1791 = vmatmul.mubr.f32.gmra.mrb[54].mxu1 %v5714_v7  ;;  %v3803_v7 = vld [vmem:[%s7920_s3 + $0x3a0] sm:$0xff] }
  0xa3   :  { %1795 = vmatprep.mubr.f32.mxu1 %v5405_v12  ;;  %4638 = vmatpush1.bf16.msra.mxu1 %v4637_v51  ;;  %v4643_v12 = vpack.c.bf16 %v3802_v57, %v3801_v33  ;;  %v6067_v51 = vld [vmem:[#allocation2 + $0x228] sm:$0xff]  ;;  %v6089_v57 = vld [vmem:[#allocation2 + $0x240] sm:$0xff] }
  0xa4   :  { %1086 = vmatmul.mubr.f32.gmra.mrb[40].mxu0 %v5872_v22  ;;  %4639 = vmatprep.subr.bf16.mxu1 %v4715_v0 }
  0xa5   :  { %1090 = vmatprep.mubr.f32.mxu0 %v5670_v25 }
  0xa6   :  { %1796 = vmatmul.mubr.f32.gmra.mrb[56].mxu1 %v5727_v41  ;;  %v5905_v41 = vld [vmem:[#allocation2 + $0x128] sm:$0xff] }
  0xa7   :  { %1800 = vmatprep.mubr.f32.mxu1 %v5442_v19  ;;  %4641 = vmatpush1.bf16.msra.mxu1 %v4640_v10  ;;  %v4646_v19 = vpack.c.bf16 %v3804_v24, %v3803_v7  ;;  %v3814_v10 = vld [vmem:[%s7920_s3 + $0x3f8] sm:$0xff] }
  0xa8   :  { %1091 = vmatmul.mubr.f32.gmra.mrb[42].mxu0 %v5885_v39  ;;  %4642 = vmatprep.subr.bf16.mxu1 %v4715_v0  ;;  %v6100_v7 = vld [vmem:[#allocation2 + $0x259] sm:$0xff]  ;;  %v536_v24 = vld [vmem:[#allocation2 + $0x1b1] sm:$0xff] }
  0xa9   :  { %1095 = vmatprep.mubr.f32.mxu0 %v5672_v1 }
  0xaa   :  { %1801 = vmatmul.mubr.f32.gmra.mrb[58].mxu1 %v5740_v55  ;;  %v5917_v55 = vld [vmem:[#allocation2 + $0x141] sm:$0xff] }
  0xab   :  { %1805 = vmatprep.mubr.f32.mxu1 %v5450_v3  ;;  %4644 = vmatpush1.bf16.msra.mxu1 %v4643_v12  ;;  %v5914_v3 = vld [vmem:[#allocation2 + $0x138] sm:$0xff]  ;;  %v6097_v12 = vld [vmem:[#allocation2 + $0x248] sm:$0xff] }
  0xac   :  { %1096 = vmatmul.mubr.f32.gmra.mrb[44].mxu0 %v5898_v52  ;;  %4645 = vmatprep.subr.bf16.mxu1 %v4715_v0 }
  0xad   :  { %1100 = vmatprep.mubr.f32.mxu0 %v5674_v31 }
  0xae   :  { %1806 = vmatmul.mubr.f32.gmra.mrb[60].mxu1 %v5747_v4  ;;  %v5925_v4 = vld [vmem:[#allocation2 + $0x151] sm:$0xff] }
  0xaf   :  { %1810 = vmatprep.mubr.f32.mxu1 %v5488_v43  ;;  %4647 = vmatpush1.bf16.msra.mxu1 %v4646_v19  ;;  %v5922_v43 = vld [vmem:[#allocation2 + $0x140] sm:$0xff] }
  0xb0   :  { %1101 = vmatmul.mubr.f32.gmra.mrb[46].mxu0 %v5905_v41  ;;  %4648 = vmatprep.subr.bf16.mxu1 %v4715_v0  ;;  %v6108_v19 = vld [vmem:[#allocation2 + $0x261] sm:$0xff] }
  0xb1   :  { %1105 = vmatprep.mubr.f32.mxu0 %v5908_v53 }
  0xb2   :  { %1811 = vmatmul.mubr.f32.gmra.mrb[62].mxu1 %v5753_v5  ;;  %v3806_v5 = vld [vmem:[%s7920_s3 + $0x3b8] sm:$0xff] }
  0xb3   :  { %1815 = vmatprep.mubr.f32.mxu1 %v5525_v15  ;;  %v4649_v15 = vpack.c.bf16 %v3806_v5, %v3805_v36  ;;  %v6125_v5 = vld [vmem:[#allocation2 + $0x279] sm:$0xff] }
  0xb4   :  { %1106 = vmatmul.mubr.f32.gmra.mrb[48].mxu0 %v5914_v3 }
  0xb5   :  { %1110 = vmatprep.mubr.f32.mxu0 %v5917_v55  ;;  %4650 = vmatpush1.bf16.msra.mxu1 %v4649_v15 }
  0xb6   :  { %1816 = vmatmul.mubr.f32.gmra.mrb[64].mxu1 %v5757_v29  ;;  %v5939_v29 = vld [vmem:[#allocation2 + $0x159] sm:$0xff]  ;;  %4651 = vmatprep.subr.bf16.mxu1 %v4715_v0 }
  0xb7   :  { %1820 = vmatprep.mubr.f32.mxu1 %v5542_v44  ;;  %v5945_v44 = vld [vmem:[#allocation2 + $0x158] sm:$0xff] }
  0xb8   :  { %1111 = vmatmul.mubr.f32.gmra.mrb[50].mxu0 %v5922_v43 }
  0xb9   :  { %1115 = vmatprep.mubr.f32.mxu0 %v5925_v4 }
  0xba   :  { %1821 = vmatmul.mubr.f32.gmra.mrb[66].mxu1 %v5761_v45  ;;  %v5953_v45 = vld [vmem:[#allocation2 + $0x168] sm:$0xff] }
  0xbb   :  { %1825 = vmatprep.mubr.f32.mxu1 %v5572_v54  ;;  %v5956_v54 = vld [vmem:[#allocation2 + $0x171] sm:$0xff] }
  0xbc   :  { %1116 = vmatmul.mubr.f32.gmra.mrb[52].mxu0 %v5936_v40 }
  0xbd   :  { %1120 = vmatprep.mubr.f32.mxu0 %v5939_v29 }
  0xbe   :  { %1826 = vmatmul.mubr.f32.gmra.mrb[68].mxu1 %v5771_v56  ;;  %v5961_v56 = vld [vmem:[#allocation2 + $0x170] sm:$0xff] }
  0xbf   :  { %1830 = vmatprep.mubr.f32.mxu1 %v5580_v62  ;;  %v774_v62 = vld [vmem:[#allocation2 + $0x181] sm:$0xff] }
  0xc0   :  { %1121 = vmatmul.mubr.f32.gmra.mrb[54].mxu0 %v5945_v44 }
  0xc1   :  { %1125 = vmatprep.mubr.f32.mxu0 %v5948_v42 }
  0xc2   :  { %1831 = vmatmul.mubr.f32.gmra.mrb[70].mxu1 %v5781_v50  ;;  %v3808_v50 = vld [vmem:[%s7920_s3 + $0x3c8] sm:$0xff] }
  0xc3   :  { %1835 = vmatprep.mubr.f32.mxu1 %v5607_v20  ;;  %v4652_v20 = vpack.c.bf16 %v3808_v50, %v3807_v60  ;;  %v6161_v50 = vld [vmem:[#allocation2 + $0x2a1] sm:$0xff] }
  0xc4   :  { %1126 = vmatmul.mubr.f32.gmra.mrb[56].mxu0 %v5953_v45 }
  0xc5   :  { %1130 = vmatprep.mubr.f32.mxu0 %v5956_v54  ;;  %4653 = vmatpush1.bf16.msra.mxu1 %v4652_v20 }
  0xc6   :  { %1836 = vmatmul.mubr.f32.gmra.mrb[72].mxu1 %v5792_v49  ;;  %v775_v49 = vld [vmem:[#allocation2 + $0x189] sm:$0xff]  ;;  %4654 = vmatprep.subr.bf16.mxu1 %v4715_v0 }
  0xc7   :  { %1840 = vmatprep.mubr.f32.mxu1 %v5614_v63  ;;  %v5980_v63 = vld [vmem:[#allocation2 + $0x1c8] sm:$0xff] }
  0xc8   :  { %1131 = vmatmul.mubr.f32.gmra.mrb[58].mxu0 %v5961_v56 }
  0xc9   :  { %1135 = vmatprep.mubr.f32.mxu0 %v774_v62  ;;  %v6156_v62 = vld [vmem:[#allocation2 + $0x290] sm:$0xff] }
  0xca   :  { %1841 = vmatmul.mubr.f32.gmra.mrb[74].mxu1 %v5807_v34  ;;  %v5983_v34 = vld [vmem:[#allocation2 + $0x1d1] sm:$0xff] }
  0xcb   :  { %1845 = vmatprep.mubr.f32.mxu1 %v5616_v35  ;;  %v5988_v35 = vld [vmem:[#allocation2 + $0x1d0] sm:$0xff] }
  0xcc   :  { %1136 = vmatmul.mubr.f32.gmra.mrb[60].mxu0 %v710_v59  ;;  %v6168_v59 = vld [vmem:[#allocation2 + $0x2a0] sm:$0xff] }
  0xcd   :  { %1140 = vmatprep.mubr.f32.mxu0 %v775_v49 }
  0xce   :  { %1846 = vmatmul.mubr.f32.gmra.mrb[76].mxu1 %v5820_v28 }
  0xcf   :  { %1850 = vmatprep.mubr.f32.mxu1 %v5639_v9  ;;  %v664_v9 = vld [vmem:[%s7920_s3 + $0x100] sm:$0xff] }
  0xd0   :  { %1141 = vmatmul.mubr.f32.gmra.mrb[62].mxu0 %v711_v30  ;;  %v5999_v28 = vpack.c.bf16 %v665_v58, %v664_v9  ;;  %v6173_v30 = vld [vmem:[#allocation2 + $0x2a9] sm:$0xff]  ;;  %v6192_v58 = vld [vmem:[#allocation2 + $0x2b8] sm:$0xff] }
  0xd1   :  { %1145 = vmatprep.mubr.f32.mxu0 %v5976_v61 }
  0xd2   :  { %1851 = vmatmul.mubr.f32.gmra.mrb[78].mxu1 %v5833_v8  ;;  %4584 = vmatprep.subr.bf16.mxu0 %v5999_v28  ;;  %v6014_v8 = vld [vmem:[#allocation2 + $0x1e9] sm:$0xff] }
  0xd3   :  { %1855 = vmatprep.mubr.f32.mxu1 %v5644_v46  ;;  %v3809_v46 = vld [vmem:[%s7920_s3 + $0x3d0] sm:$0xff] }
  0xd4   :  { %1146 = vmatmul.mubr.f32.gmra.mrb[64].mxu0 %v5980_v63  ;;  %v4655_v38 = vpack.c.bf16 %v3810_v27, %v3809_v46  ;;  %v6197_v46 = vld [vmem:[#allocation2 + $0x2c1] sm:$0xff] }
  0xd5   :  { %1150 = vmatprep.mubr.f32.mxu0 %v5983_v34 }
  0xd6   :  { %1856 = vmatmul.mubr.f32.gmra.mrb[80].mxu1 %v5846_v17  ;;  %v3811_v17 = vld [vmem:[%s7920_s3 + $0x3e0] sm:$0xff] }
  0xd7   :  { %1860 = vmatprep.mubr.f32.mxu1 %v5646_v37  ;;  %4656 = vmatpush1.bf16.msra.mxu1 %v4655_v38  ;;  %v6020_v37 = vld [vmem:[#allocation2 + $0x1e8] sm:$0xff]  ;;  %v6204_v38 = vld [vmem:[#allocation2 + $0x2c0] sm:$0xff] }
  0xd8   :  { %1151 = vmatmul.mubr.f32.gmra.mrb[66].mxu0 %v5988_v35  ;;  %4657 = vmatprep.subr.bf16.mxu1 %v4715_v0 }
  0xd9   :  { %1155 = vmatprep.mubr.f32.mxu0 %v5997_v11 }
  0xda   :  { %1861 = vmatmul.mubr.f32.gmra.mrb[82].mxu1 %v5859_v32  ;;  %v6062_v32 = vld [vmem:[#allocation2 + $0x229] sm:$0xff] }
  0xdb   :  { %1865 = vmatprep.mubr.f32.mxu1 %v5648_v48  ;;  %v6031_v48 = vld [vmem:[#allocation2 + $0x201] sm:$0xff] }
  0xdc   :  { %1156 = vmatmul.mubr.f32.gmra.mrb[68].mxu0 %v6011_v13 }
  0xdd   :  { %1160 = vmatprep.mubr.f32.mxu0 %v6014_v8 }
  0xde   :  { %1866 = vmatmul.mubr.f32.gmra.mrb[84].mxu1 %v5872_v22  ;;  %v3813_v22 = vld [vmem:[%s7920_s3 + $0x3f0] sm:$0xff] }
  0xdf   :  { %1870 = vmatprep.mubr.f32.mxu1 %v5670_v25  ;;  %v6039_v25 = vld [vmem:[#allocation2 + $0x211] sm:$0xff]  ;;  %v4661_v33 = vpack.c.bf16 %v3814_v10, %v3813_v22 }
  0xe0   :  { %1161 = vmatmul.mubr.f32.gmra.mrb[70].mxu0 %v6020_v37 }
  0xe1   :  { %1165 = vmatprep.mubr.f32.mxu0 %v6023_v2 }
  0xe2   :  { %1871 = vmatmul.mubr.f32.gmra.mrb[86].mxu1 %v5885_v39  ;;  %v6092_v39 = vld [vmem:[#allocation2 + $0x249] sm:$0xff] }
  0xe3   :  { %1875 = vmatprep.mubr.f32.mxu1 %v5672_v1  ;;  %v3812_v1 = vld [vmem:[%s7920_s3 + $0x3e8] sm:$0xff] }
  0xe4   :  { %1166 = vmatmul.mubr.f32.gmra.mrb[72].mxu0 %v6028_v6  ;;  %v4658_v26 = vpack.c.bf16 %v3812_v1, %v3811_v17 }
  0xe5   :  { %1170 = vmatprep.mubr.f32.mxu0 %v6031_v48 }
  0xe6   :  { %1876 = vmatmul.mubr.f32.gmra.mrb[88].mxu1 %v5898_v52  ;;  %v6105_v52 = vld [vmem:[#allocation2 + $0x258] sm:$0xff] }
  0xe7   :  { %1880 = vmatprep.mubr.f32.mxu1 %v5674_v31  ;;  %4659 = vmatpush1.bf16.msra.mxu1 %v4658_v26  ;;  %v6059_v31 = vld [vmem:[#allocation2 + $0x218] sm:$0xff] }
  0xe8   :  { %1171 = vmatmul.mubr.f32.gmra.mrb[74].mxu0 %v6036_v21  ;;  %4660 = vmatprep.subr.bf16.mxu1 %v4715_v0  ;;  %v6075_v0 = vld [vmem:[#allocation2 + $0x230] sm:$0xff] }
  0xe9   :  { %1175 = vmatprep.mubr.f32.mxu0 %v6039_v25 }
  0xea   :  { %1881 = vmatmul.mubr.f32.gmra.mrb[90].mxu1 %v5905_v41  ;;  %v472_v41 = vld [vmem:[#allocation2 + $0x1b0] sm:$0xff] }
  0xeb   :  { %1885 = vmatprep.mubr.f32.mxu1 %v5908_v53  ;;  %4662 = vmatpush1.bf16.msra.mxu1 %v4661_v33  ;;  %v537_v53 = vld [vmem:[#allocation2 + $0x1b9] sm:$0xff]  ;;  %v6246_v33 = vld [vmem:[#allocation2 + $0x2e8] sm:$0xff] }
  0xec   :  { %1176 = vmatmul.mubr.f32.gmra.mrb[76].mxu0 %v6050_v23 }
  0xed   :  { %1180 = vmatprep.mubr.f32.mxu0 %v6053_v16 }
  0xee   :  { %1886 = vmatmul.mubr.f32.gmra.mrb[92].mxu1 %v5914_v3  ;;  %v6112_v3 = vld [vmem:[#allocation2 + $0x260] sm:$0xff] }
  0xef   :  { %1890 = vmatprep.mubr.f32.mxu1 %v5917_v55  ;;  %v6114_v55 = vld [vmem:[#allocation2 + $0x271] sm:$0xff] }
  0xf0   :  { %1181 = vmatmul.mubr.f32.gmra.mrb[78].mxu0 %v6059_v31 }
  0xf1   :  { %1185 = vmatprep.mubr.f32.mxu0 %v6062_v32 }
  0xf2   :  { %1891 = vmatmul.mubr.f32.gmra.mrb[94].mxu1 %v5922_v43 }
  0xf3   :  { %1895 = vmatprep.mubr.f32.mxu1 %v5925_v4  ;;  %v6120_v4 = vld [vmem:[#allocation2 + $0x270] sm:$0xff] }
  0xf4   :  { %1186 = vmatmul.mubr.f32.gmra.mrb[80].mxu0 %v6067_v51 }
  0xf5   :  { %1190 = vmatprep.mubr.f32.mxu0 %v6070_v47 }
  0xf6   :  { %1896 = vmatmul.mubr.f32.gmra.mrb[96].mxu1 %v5936_v40  ;;  %v6132_v40 = vld [vmem:[#allocation2 + $0x278] sm:$0xff] }
  0xf7   :  { %1900 = vmatprep.mubr.f32.mxu1 %v5939_v29 }
  0xf8   :  { %1191 = vmatmul.mubr.f32.gmra.mrb[82].mxu0 %v6075_v0 }
  0xf9   :  { %1195 = vmatprep.mubr.f32.mxu0 %v6078_v18 }
  0xfa   :  { %1901 = vmatmul.mubr.f32.gmra.mrb[98].mxu1 %v5945_v44  ;;  %v6137_v44 = vld [vmem:[#allocation2 + $0x289] sm:$0xff] }
  0xfb   :  { %1905 = vmatprep.mubr.f32.mxu1 %v5948_v42  ;;  %v6144_v42 = vld [vmem:[#allocation2 + $0x288] sm:$0xff] }
  0xfc   :  { %1196 = vmatmul.mubr.f32.gmra.mrb[84].mxu0 %v6089_v57 }
  0xfd   :  { %1200 = vmatprep.mubr.f32.mxu0 %v6092_v39 }
  0xfe   :  { %1906 = vmatmul.mubr.f32.gmra.mrb[100].mxu1 %v5953_v45 }
  0xff   :  { %1910 = vmatprep.mubr.f32.mxu1 %v5956_v54  ;;  %v6149_v54 = vld [vmem:[#allocation2 + $0x291] sm:$0xff] }
 0x100   :  { %1201 = vmatmul.mubr.f32.gmra.mrb[86].mxu0 %v6097_v12 }
 0x101   :  { %1205 = vmatprep.mubr.f32.mxu0 %v6100_v7 }
 0x102   :  { %1911 = vmatmul.mubr.f32.gmra.mrb[102].mxu1 %v5961_v56 }
 0x103   :  { %1915 = vmatprep.mubr.f32.mxu1 %v536_v24 }
 0x104   :  { %1206 = vmatmul.mubr.f32.gmra.mrb[88].mxu0 %v6105_v52 }
 0x105   :  { %1210 = vmatprep.mubr.f32.mxu0 %v6108_v19 }
 0x106   :  { %1916 = vmatmul.mubr.f32.gmra.mrb[104].mxu1 %v472_v41 }
 0x107   :  { %1920 = vmatprep.mubr.f32.mxu1 %v537_v53  ;;  %v6117_v43 = vpop.f32.mrb[0].mxu1 }
 0x108   :  { %1211 = vmatmul.mubr.f32.gmra.mrb[90].mxu0 %v6112_v3  ;;  %v6122_v36 = vpop.f32.mrb[1].mxu1 }
 0x109   :  { %1215 = vmatprep.mubr.f32.mxu0 %v6114_v55 }
 0x10a   :  { %1921 = vmatmul.mubr.f32.gmra.mrb[106].mxu1 %v5794_v14 }
 0x10b   :  { %1925 = vmatprep.mubr.f32.mxu1 %v5976_v61  ;;  %v6129_v15 = vpop.f32.mrb[2].mxu1 }
 0x10c   :  { %1216 = vmatmul.mubr.f32.gmra.mrb[92].mxu0 %v6120_v4  ;;  %v6134_v29 = vpop.f32.mrb[3].mxu1 }
 0x10d   :  { %1220 = vmatprep.mubr.f32.mxu0 %v6125_v5 }
 0x10e   :  { %1926 = vmatmul.mubr.f32.gmra.mrb[108].mxu1 %v5980_v63  ;;  %v6180_v63 = vld [vmem:[#allocation2 + $0x2a8] sm:$0xff] }
 0x10f   :  { %1930 = vmatprep.mubr.f32.mxu1 %v5983_v34 }
 0x110   :  { %1221 = vmatmul.mubr.f32.gmra.mrb[94].mxu0 %v6132_v40  ;;  %v6141_v14 = vpop.f32.mrb[4].mxu1 }
 0x111   :  { %1225 = vmatprep.mubr.f32.mxu0 %v6137_v44  ;;  %v6146_v45 = vpop.f32.mrb[5].mxu1 }
 0x112   :  { %1931 = vmatmul.mubr.f32.gmra.mrb[110].mxu1 %v5988_v35  ;;  %v6185_v35 = vld [vmem:[#allocation2 + $0x2b9] sm:$0xff] }
 0x113   :  { %1935 = vmatprep.mubr.f32.mxu1 %v5997_v11 }
 0x114   :  { %1226 = vmatmul.mubr.f32.gmra.mrb[96].mxu0 %v6144_v42  ;;  %v6153_v56 = vpop.f32.mrb[6].mxu1 }
 0x115   :  { %1230 = vmatprep.mubr.f32.mxu0 %v6149_v54  ;;  %v6158_v60 = vpop.f32.mrb[7].mxu1 }
 0x116   :  { %1936 = vmatmul.mubr.f32.gmra.mrb[112].mxu1 %v6011_v13 }
 0x117   :  { %1940 = vmatprep.mubr.f32.mxu1 %v6014_v8  ;;  %v6209_v8 = vld [vmem:[#allocation2 + $0x2d1] sm:$0xff] }
 0x118   :  { %1231 = vmatmul.mubr.f32.gmra.mrb[98].mxu0 %v6156_v62  ;;  %v6165_v20 = vpop.f32.mrb[8].mxu1 }
 0x119   :  { %1235 = vmatprep.mubr.f32.mxu0 %v6161_v50  ;;  %v6170_v49 = vpop.f32.mrb[9].mxu1 }
 0x11a   :  { %1941 = vmatmul.mubr.f32.gmra.mrb[114].mxu1 %v6020_v37 }
 0x11b   :  { %1945 = vmatprep.mubr.f32.mxu1 %v6023_v2 }
 0x11c   :  { %1236 = vmatmul.mubr.f32.gmra.mrb[100].mxu0 %v6168_v59  ;;  %v6177_v61 = vpop.f32.mrb[10].mxu1 }
 0x11d   :  { %1240 = vmatprep.mubr.f32.mxu0 %v6173_v30  ;;  %v6182_v34 = vpop.f32.mrb[11].mxu1 }
 0x11e   :  { %1946 = vmatmul.mubr.f32.gmra.mrb[116].mxu1 %v6028_v6 }
 0x11f   :  { %1950 = vmatprep.mubr.f32.mxu1 %v6031_v48  ;;  %v6218_v48 = vld [vmem:[#allocation2 + $0x2d0] sm:$0xff] }
 0x120   :  { %1241 = vmatmul.mubr.f32.gmra.mrb[102].mxu0 %v6180_v63  ;;  %v6189_v9 = vpop.f32.mrb[12].mxu1 }
 0x121   :  { %1245 = vmatprep.mubr.f32.mxu0 %v6185_v35  ;;  %v6194_v11 = vpop.f32.mrb[13].mxu1 }
 0x122   :  { %1951 = vmatmul.mubr.f32.gmra.mrb[118].mxu1 %v6036_v21 }
 0x123   :  { %1955 = vmatprep.mubr.f32.mxu1 %v6039_v25  ;;  %v6223_v25 = vld [vmem:[#allocation2 + $0x2d9] sm:$0xff] }
 0x124   :  { %1246 = vmatmul.mubr.f32.gmra.mrb[104].mxu0 %v6192_v58  ;;  %v6201_v27 = vpop.f32.mrb[14].mxu1 }
 0x125   :  { %1250 = vmatprep.mubr.f32.mxu0 %v6197_v46  ;;  %v6206_v13 = vpop.f32.mrb[15].mxu1 }
 0x126   :  { %1956 = vmatmul.mubr.f32.gmra.mrb[120].mxu1 %v6050_v23  ;;  %v6211_v37 = vpop.f32.mrb[0].mxu0  ;;  %v6232_v23 = vld [vmem:[#allocation2 + $0x2d8] sm:$0xff] }
 0x127   :  { %7943 = vst [vmem:[#allocation3_spill] sm:$0xff] %v6211_v37  ;;  %1960 = vmatprep.mubr.f32.mxu1 %v6053_v16  ;;  %v989_v2 = vpop.f32.mrb[1].mxu0 }
 0x128   :  { %1251 = vmatmul.mubr.f32.gmra.mrb[106].mxu0 %v6204_v38  ;;  %v6215_v6 = vpop.f32.mrb[16].mxu1  ;;  %v6260_v2 = vld [vmem:[#allocation2 + $0x2f0] sm:$0xff] }
 0x129   :  { %1255 = vmatprep.mubr.f32.mxu0 %v6209_v8  ;;  %v6220_v21 = vpop.f32.mrb[17].mxu1 }
 0x12a   :  { %1961 = vmatmul.mubr.f32.gmra.mrb[122].mxu1 %v6059_v31  ;;  %v6237_v31 = vld [vmem:[#allocation2 + $0x2e9] sm:$0xff] }
 0x12b   :  { %v6225_v17 = vpop.f32.mrb[2].mxu0  ;;  %1965 = vmatprep.mubr.f32.mxu1 %v6062_v32 }
 0x12c   :  { %7944 = vst [vmem:[#allocation4_spill] sm:$0xff] %v6225_v17  ;;  %v994_v1 = vpop.f32.mrb[3].mxu0  ;;  %1256 = vmatmul.mubr.f32.gmra.mrb[108].mxu0 %v6218_v48 }
 0x12d   :  { %v6229_v26 = vpop.f32.mrb[18].mxu1  ;;  %1260 = vmatprep.mubr.f32.mxu0 %v6223_v25 }
 0x12e   :  { %v6234_v16 = vpop.f32.mrb[19].mxu1  ;;  %1966 = vmatmul.mubr.f32.gmra.mrb[124].mxu1 %v6067_v51  ;;  %v6251_v51 = vld [vmem:[#allocation2 + $0x2f1] sm:$0xff] }
 0x12f   :  { %v6239_v22 = vpop.f32.mrb[4].mxu0  ;;  %1970 = vmatprep.mubr.f32.mxu1 %v6070_v47 }
 0x130   :  { %7945 = vst [vmem:[#allocation5_spill] sm:$0xff] %v6239_v22  ;;  %v999_v32 = vpop.f32.mrb[5].mxu0  ;;  %1261 = vmatmul.mubr.f32.gmra.mrb[110].mxu0 %v6232_v23  ;;  %v6274_v22 = vld [vmem:[#allocation2 + $0x300] sm:$0xff] }
 0x131   :  { %v6243_v10 = vpop.f32.mrb[20].mxu1  ;;  %1265 = vmatprep.mubr.f32.mxu0 %v6237_v31 }
 0x132   :  { %v6248_v24 = vpop.f32.mrb[21].mxu1  ;;  %1971 = vmatmul.mubr.f32.gmra.mrb[126].mxu1 %v6075_v0  ;;  %v6265_v0 = vld [vmem:[#allocation2 + $0x301] sm:$0xff] }
 0x133   :  { %v6253_v41 = vpop.f32.mrb[6].mxu0  ;;  %1975 = vmatprep.mubr.f32.mxu1 %v6078_v18 }
 0x134   :  { %7946 = vst [vmem:[#allocation6_spill] sm:$0xff] %v6253_v41  ;;  %v1004_v47 = vpop.f32.mrb[7].mxu0  ;;  %1266 = vmatmul.mubr.f32.gmra.mrb[112].mxu0 %v6246_v33 }
 0x135   :  { %v6257_v53 = vpop.f32.mrb[22].mxu1  ;;  %1270 = vmatprep.mubr.f32.mxu0 %v6251_v51 }
 0x136   :  { %v6262_v1 = vpop.f32.mrb[23].mxu1  ;;  %1976 = vmatmul.mubr.f32.gmra.mrb[128].mxu1 %v6089_v57  ;;  %v6279_v57 = vld [vmem:[#allocation2 + $0x309] sm:$0xff] }
 0x137   :  { %v6267_v32 = vpop.f32.mrb[8].mxu0  ;;  %1980 = vmatprep.mubr.f32.mxu1 %v6092_v39 }
 0x138   :  { %7947 = vst [vmem:[#allocation7_spill] sm:$0xff] %v6267_v32  ;;  %v1009_v18 = vpop.f32.mrb[9].mxu0  ;;  %1271 = vmatmul.mubr.f32.gmra.mrb[114].mxu0 %v6260_v2  ;;  %v6288_v32 = vld [vmem:[#allocation2 + $0x308] sm:$0xff] }
 0x139   :  { %v6271_v47 = vpop.f32.mrb[24].mxu1  ;;  %1275 = vmatprep.mubr.f32.mxu0 %v6265_v0 }
 0x13a   :  { %7948 = vst [vmem:[#allocation8_spill] sm:$0xff] %v6271_v47  ;;  %v6276_v41 = vpop.f32.mrb[25].mxu1  ;;  %1981 = vmatmul.mubr.f32.gmra.mrb[130].mxu1 %v6097_v12  ;;  %v6293_v12 = vld [vmem:[#allocation2 + $0x319] sm:$0xff] }
 0x13b   :  { %7949 = vst [vmem:[#allocation9_spill] sm:$0xff] %v6276_v41  ;;  %v6281_v37 = vpop.f32.mrb[10].mxu0  ;;  %1985 = vmatprep.mubr.f32.mxu1 %v6100_v7  ;;  %v807_v41 = vld [vmem:[#allocation2 + $0x339] sm:$0xff] }
 0x13c   :  { %7950 = vst [vmem:[#allocation10_spill] sm:$0xff] %v6281_v37  ;;  %v1014_v39 = vpop.f32.mrb[11].mxu0  ;;  %1276 = vmatmul.mubr.f32.gmra.mrb[116].mxu0 %v6274_v22  ;;  %v6302_v37 = vld [vmem:[#allocation2 + $0x318] sm:$0xff] }
 0x13d   :  { %v6285_v18 = vpop.f32.mrb[26].mxu1  ;;  %1280 = vmatprep.mubr.f32.mxu0 %v6279_v57 }
 0x13e   :  { %7951 = vst [vmem:[#allocation11_spill] sm:$0xff] %v6285_v18  ;;  %v6290_v17 = vpop.f32.mrb[27].mxu1  ;;  %1986 = vmatmul.mubr.f32.gmra.mrb[132].mxu1 %v6105_v52  ;;  %v6307_v52 = vld [vmem:[#allocation2 + $0x321] sm:$0xff] }
 0x13f   :  { %7952 = vst [vmem:[#allocation12_spill] sm:$0xff] %v6290_v17  ;;  %v6295_v47 = vpop.f32.mrb[12].mxu0  ;;  %1990 = vmatprep.mubr.f32.mxu1 %v6108_v19 }
 0x140   :  { %7953 = vst [vmem:[#allocation13_spill] sm:$0xff] %v6295_v47  ;;  %v1019_v7 = vpop.f32.mrb[13].mxu0  ;;  %1281 = vmatmul.mubr.f32.gmra.mrb[118].mxu0 %v6288_v32  ;;  %v6316_v47 = vld [vmem:[#allocation2 + $0x320] sm:$0xff] }
 0x141   :  { %v6299_v39 = vpop.f32.mrb[28].mxu1  ;;  %1285 = vmatprep.mubr.f32.mxu0 %v6293_v12 }
 0x142   :  { %7954 = vst [vmem:[#allocation14_spill] sm:$0xff] %v6299_v39  ;;  %v6304_v18 = vpop.f32.mrb[29].mxu1  ;;  %1991 = vmatmul.mubr.f32.gmra.mrb[134].mxu1 %v6112_v3  ;;  %v806_v3 = vld [vmem:[#allocation2 + $0x331] sm:$0xff] }
 0x143   :  { %7955 = vst [vmem:[#allocation15_spill] sm:$0xff] %v6304_v18  ;;  %v6309_v17 = vpop.f32.mrb[14].mxu0  ;;  %1995 = vmatprep.mubr.f32.mxu1 %v6114_v55 }
 0x144   :  { %7956 = vst [vmem:[#allocation16_spill] sm:$0xff] %v6309_v17  ;;  %v1024_v19 = vpop.f32.mrb[15].mxu0  ;;  %1286 = vmatmul.mubr.f32.gmra.mrb[120].mxu0 %v6302_v37 }
 0x145   :  { %v6313_v7 = vpop.f32.mrb[30].mxu1  ;;  %1290 = vmatprep.mubr.f32.mxu0 %v6307_v52  ;;  %v742_v19 = vld [vmem:[#allocation2 + $0x330] sm:$0xff] }
 0x146   :  { %7957 = vst [vmem:[#allocation17_spill] sm:$0xff] %v6313_v7  ;;  %v6318_v39 = vpop.f32.mrb[31].mxu1  ;;  %1996 = vmatmul.mubr.f32.gmra.mrb[136].mxu1 %v6120_v4 }
 0x147   :  { %7958 = vst [vmem:[#allocation18_spill] sm:$0xff] %v6318_v39  ;;  %v6321_v18 = vpop.f32.mrb[16].mxu0  ;;  %2000 = vmatprep.mubr.f32.mxu1 %v6125_v5  ;;  %v743_v5 = vld [vmem:[#allocation2 + $0x338] sm:$0xff] }
 0x148   :  { %7959 = vst [vmem:[#allocation19_spill] sm:$0xff] %v6321_v18  ;;  %v1029_v17 = vpop.f32.mrb[17].mxu0  ;;  %1291 = vmatmul.mubr.f32.gmra.mrb[122].mxu0 %v6316_v47 }
 0x149   :  { %v6325_v55 = vpop.f32.mrb[32].mxu1  ;;  %1295 = vmatprep.mubr.f32.mxu0 %v806_v3  ;;  %v6338_v3 = vld [vmem:[#allocation2 + $0x1a] sm:$0xff] }
 0x14a   :  { %7960 = vst [vmem:[#allocation20_spill] sm:$0xff] %v6325_v55  ;;  %v6327_v7 = vpop.f32.mrb[33].mxu1  ;;  %2001 = vmatmul.mubr.f32.gmra.mrb[138].mxu1 %v6132_v40  ;;  %v666_v40 = vld [vmem:[%s7920_s3 + $0x110] sm:$0xff] }
 0x14b   :  { %v6330_v39 = vpop.f32.mrb[18].mxu0  ;;  %2005 = vmatprep.mubr.f32.mxu1 %v6137_v44  ;;  %v667_v44 = vld [vmem:[%s7920_s3 + $0x118] sm:$0xff] }
 0x14c   :  { %7961 = vst [vmem:[#allocation21_spill] sm:$0xff] %v6330_v39  ;;  %v1034_v4 = vpop.f32.mrb[19].mxu0  ;;  %1296 = vmatmul.mubr.f32.gmra.mrb[124].mxu0 %v742_v19 }
 0x14d   :  { %v6333_v18 = vpop.f32.mrb[34].mxu1  ;;  %1300 = vmatprep.mubr.f32.mxu0 %v807_v41 }
 0x14e   :  { %7962 = vst [vmem:[#allocation22_spill] sm:$0xff] %v6333_v18  ;;  %v6335_v17 = vpop.f32.mrb[35].mxu1  ;;  %2006 = vmatmul.mubr.f32.gmra.mrb[140].mxu1 %v6144_v42  ;;  %v6352_v42 = vld [vmem:[#allocation2 + $0x22] sm:$0xff] }
 0x14f   :  { %7963 = vst [vmem:[#allocation23_spill] sm:$0xff] %v6335_v17  ;;  %v6340_v55 = vpop.f32.mrb[20].mxu0  ;;  %2010 = vmatprep.mubr.f32.mxu1 %v6149_v54  ;;  %v6357_v54 = vld [vmem:[#allocation2 + $0x32] sm:$0xff]  ;;  %v3819_v18 = vld [vmem:[%s7920_s3 + $0x420] sm:$0xff] }
 0x150   :  { %7964 = vst [vmem:[#allocation24_spill] sm:$0xff] %v6340_v55  ;;  %v1039_v41 = vpop.f32.mrb[21].mxu0  ;;  %1301 = vmatmul.mubr.f32.gmra.mrb[126].mxu0 %v743_v5  ;;  %v4587_v55 = vpack.c.bf16 %v667_v44, %v666_v40  ;;  %v668_v5 = vld [vmem:[%s7920_s3 + $0x120] sm:$0xff]  ;;  %v6378_v40 = vld [vmem:[#allocation2 + $0x4a] sm:$0xff] }
 0x151   :  { %v6349_v19 = vpop.f32.mrb[36].mxu1  ;;  %4103 = vmatprep.mubr.f32.mxu0 %v6338_v3  ;;  %v669_v41 = vld [vmem:[%s7920_s3 + $0x128] sm:$0xff] }
 0x152   :  { %7965 = vst [vmem:[#allocation25_spill] sm:$0xff] %v6349_v19  ;;  %v6354_v4 = vpop.f32.mrb[37].mxu1  ;;  %2011 = vmatmul.mubr.f32.gmra.mrb[142].mxu1 %v6156_v62  ;;  %v6373_v62 = vld [vmem:[#allocation2 + $0x3a] sm:$0xff]  ;;  %v4591_v44 = vpack.c.bf16 %v669_v41, %v668_v5  ;;  %v6393_v5 = vld [vmem:[#allocation2 + $0x52] sm:$0xff] }
 0x153   :  { %7966 = vst [vmem:[#allocation26_spill] sm:$0xff] %v6354_v4  ;;  %v6359_v39 = vpop.f32.mrb[22].mxu0  ;;  %2015 = vmatprep.mubr.f32.mxu1 %v6161_v50 }
 0x154   :  { %7967 = vst [vmem:[#allocation27_spill] sm:$0xff] %v6359_v39  ;;  %v1044_v19 = vpop.f32.mrb[23].mxu0  ;;  %4104 = vmatmul.mubr.f32.vlgmr.msra.gmra.mrb[128].mxu0 %v6352_v42 }
 0x155   :  { %v6369_v4 = vpop.f32.mrb[38].mxu1  ;;  %4586 = vmatpush3.bf16.msra.mxu0 %v5999_v28  ;;  %4106 = vmatprep.mubr.f32.mxu0 %v6357_v54  ;;  %v670_v28 = vld [vmem:[%s7920_s3 + $0x130] sm:$0xff]  ;;  %v671_v19 = vld [vmem:[%s7920_s3 + $0x138] sm:$0xff] }
 0x156   :  { %7968 = vst [vmem:[#allocation28_spill] sm:$0xff] %v6369_v4  ;;  %v6375_v50 = vpop.f32.mrb[39].mxu1  ;;  %2016 = vmatmul.mubr.f32.gmra.mrb[144].mxu1 %v6168_v59  ;;  %4588 = vmatprep.subr.bf16.mxu0 %v4587_v55 }
 0x157   :  { %7969 = vst [vmem:[#allocation29_spill] sm:$0xff] %v6375_v50  ;;  %v6380_v39 = vpop.f32.mrb[24].mxu0  ;;  %2020 = vmatprep.mubr.f32.mxu1 %v6173_v30  ;;  %v6396_v30 = vld [vmem:[#allocation2 + $0x62] sm:$0xff] }
 0x158   :  { %7970 = vst [vmem:[#allocation30_spill] sm:$0xff] %v6380_v39  ;;  %v1049_v4 = vpop.f32.mrb[25].mxu0  ;;  %4107 = vmatmul.mubr.f32.gmra.mrb[130].mxu0 %v6373_v62  ;;  %v4595_v39 = vpack.c.bf16 %v671_v19, %v670_v28  ;;  %v6411_v28 = vld [vmem:[#allocation2 + $0x6a] sm:$0xff] }
 0x159   :  { %v6390_v59 = vpop.f32.mrb[40].mxu1  ;;  %4109 = vmatprep.mubr.f32.mxu0 %v6378_v40  ;;  %4590 = vmatpush3.bf16.msra.mxu0 %v4587_v55  ;;  %v672_v4 = vld [vmem:[%s7920_s3 + $0x140] sm:$0xff]  ;;  %v673_v55 = vld [vmem:[%s7920_s3 + $0x148] sm:$0xff] }
 0x15a   :  { %7971 = vst [vmem:[#allocation31_spill] sm:$0xff] %v6390_v59  ;;  %v1759_v41 = vpop.f32.mrb[41].mxu1  ;;  %2021 = vmatmul.mubr.f32.gmra.mrb[146].mxu1 %v6180_v63  ;;  %4592 = vmatprep.subr.bf16.mxu0 %v4591_v44 }
 0x15b   :  { %v6398_v50 = vpop.f32.mrb[26].mxu0  ;;  %2025 = vmatprep.mubr.f32.mxu1 %v6185_v35  ;;  %v6414_v35 = vld [vmem:[#allocation2 + $0x7a] sm:$0xff]  ;;  %v4599_v41 = vpack.c.bf16 %v673_v55, %v672_v4  ;;  %v6429_v4 = vld [vmem:[#allocation2 + $0x82] sm:$0xff] }
 0x15c   :  { %7972 = vst [vmem:[#allocation32_spill] sm:$0xff] %v6398_v50  ;;  %v1054_v59 = vpop.f32.mrb[27].mxu0  ;;  %4110 = vmatmul.mubr.f32.gmra.mrb[132].mxu0 %v6393_v5 }
 0x15d   :  { %v6408_v63 = vpop.f32.mrb[42].mxu1  ;;  %4112 = vmatprep.mubr.f32.mxu0 %v6396_v30  ;;  %4594 = vmatpush3.bf16.msra.mxu0 %v4591_v44  ;;  %v674_v59 = vld [vmem:[%s7920_s3 + $0x150] sm:$0xff] }
 0x15e   :  { %7973 = vst [vmem:[#allocation33_spill] sm:$0xff] %v6408_v63  ;;  %v1764_v19 = vpop.f32.mrb[43].mxu1  ;;  %2026 = vmatmul.mubr.f32.gmra.mrb[148].mxu1 %v6192_v58  ;;  %4596 = vmatprep.subr.bf16.mxu0 %v4595_v39  ;;  %v675_v63 = vld [vmem:[%s7920_s3 + $0x158] sm:$0xff] }
 0x15f   :  { %v6416_v50 = vpop.f32.mrb[28].mxu0  ;;  %2030 = vmatprep.mubr.f32.mxu1 %v6197_v46  ;;  %v6432_v46 = vld [vmem:[#allocation2 + $0x92] sm:$0xff]  ;;  %v4603_v19 = vpack.c.bf16 %v675_v63, %v674_v59  ;;  %v6447_v63 = vld [vmem:[#allocation2 + $0x9a] sm:$0xff] }
 0x160   :  { %7974 = vst [vmem:[#allocation34_spill] sm:$0xff] %v6416_v50  ;;  %v1059_v44 = vpop.f32.mrb[29].mxu0  ;;  %4113 = vmatmul.mubr.f32.gmra.mrb[134].mxu0 %v6411_v28 }
 0x161   :  { %v6426_v58 = vpop.f32.mrb[44].mxu1  ;;  %4115 = vmatprep.mubr.f32.mxu0 %v6414_v35  ;;  %4598 = vmatpush3.bf16.msra.mxu0 %v4595_v39  ;;  %v676_v44 = vld [vmem:[%s7920_s3 + $0x160] sm:$0xff] }
 0x162   :  { %7975 = vst [vmem:[#allocation35_spill] sm:$0xff] %v6426_v58  ;;  %v1769_v55 = vpop.f32.mrb[45].mxu1  ;;  %2031 = vmatmul.mubr.f32.gmra.mrb[150].mxu1 %v6204_v38  ;;  %4600 = vmatprep.subr.bf16.mxu0 %v4599_v41  ;;  %v677_v58 = vld [vmem:[%s7920_s3 + $0x168] sm:$0xff] }
 0x163   :  { %v6434_v50 = vpop.f32.mrb[30].mxu0  ;;  %2035 = vmatprep.mubr.f32.mxu1 %v6209_v8  ;;  %v6450_v8 = vld [vmem:[#allocation2 + $0xaa] sm:$0xff]  ;;  %v4607_v55 = vpack.c.bf16 %v677_v58, %v676_v44  ;;  %v6465_v58 = vld [vmem:[#allocation2 + $0xb2] sm:$0xff] }
 0x164   :  { %7976 = vst [vmem:[#allocation36_spill] sm:$0xff] %v6434_v50  ;;  %v1064_v39 = vpop.f32.mrb[31].mxu0  ;;  %4116 = vmatmul.mubr.f32.gmra.mrb[136].mxu0 %v6429_v4 }
 0x165   :  { %v6444_v38 = vpop.f32.mrb[46].mxu1  ;;  %4118 = vmatprep.mubr.f32.mxu0 %v6432_v46  ;;  %4602 = vmatpush3.bf16.msra.mxu0 %v4599_v41  ;;  %v678_v39 = vld [vmem:[%s7920_s3 + $0x170] sm:$0xff] }
 0x166   :  { %7977 = vst [vmem:[#allocation37_spill] sm:$0xff] %v6444_v38  ;;  %v1774_v59 = vpop.f32.mrb[47].mxu1  ;;  %2036 = vmatmul.mubr.f32.gmra.mrb[152].mxu1 %v6218_v48  ;;  %4604 = vmatprep.subr.bf16.mxu0 %v4603_v19  ;;  %v679_v38 = vld [vmem:[%s7920_s3 + $0x178] sm:$0xff] }
 0x167   :  { %v6452_v50 = vpop.f32.mrb[32].mxu0  ;;  %2040 = vmatprep.mubr.f32.mxu1 %v6223_v25  ;;  %v6468_v25 = vld [vmem:[#allocation2 + $0xc2] sm:$0xff]  ;;  %v4611_v59 = vpack.c.bf16 %v679_v38, %v678_v39  ;;  %v6483_v38 = vld [vmem:[#allocation2 + $0xca] sm:$0xff] }
 0x168   :  { %7978 = vst [vmem:[#allocation38_spill] sm:$0xff] %v6452_v50  ;;  %v1069_v41 = vpop.f32.mrb[33].mxu0  ;;  %4119 = vmatmul.mubr.f32.gmra.mrb[138].mxu0 %v6447_v63 }
 0x169   :  { %v6462_v48 = vpop.f32.mrb[48].mxu1  ;;  %4121 = vmatprep.mubr.f32.mxu0 %v6450_v8  ;;  %4606 = vmatpush3.bf16.msra.mxu0 %v4603_v19  ;;  %v3815_v41 = vld [vmem:[%s7920_s3 + $0x400] sm:$0xff] }
 0x16a   :  { %7979 = vst [vmem:[#allocation39_spill] sm:$0xff] %v6462_v48  ;;  %v1779_v44 = vpop.f32.mrb[49].mxu1  ;;  %2041 = vmatmul.mubr.f32.gmra.mrb[154].mxu1 %v6232_v23  ;;  %4608 = vmatprep.subr.bf16.mxu0 %v4607_v55  ;;  %v3816_v48 = vld [vmem:[%s7920_s3 + $0x408] sm:$0xff] }
 0x16b   :  { %v6470_v50 = vpop.f32.mrb[34].mxu0  ;;  %2045 = vmatprep.mubr.f32.mxu1 %v6237_v31  ;;  %v6486_v31 = vld [vmem:[#allocation2 + $0xda] sm:$0xff]  ;;  %v6488_v44 = vpack.c.bf16 %v3816_v48, %v3815_v41 }
 0x16c   :  { %7980 = vst [vmem:[#allocation40_spill] sm:$0xff] %v6470_v50  ;;  %v1074_v19 = vpop.f32.mrb[35].mxu0  ;;  %4122 = vmatmul.mubr.f32.gmra.mrb[140].mxu0 %v6465_v58 }
 0x16d   :  { %v6480_v23 = vpop.f32.mrb[50].mxu1  ;;  %4124 = vmatprep.mubr.f32.mxu0 %v6468_v25  ;;  %4610 = vmatpush3.bf16.msra.mxu0 %v4607_v55  ;;  %v6497_v55 = vld [vmem:[#allocation2 + $0xe2] sm:$0xff] }
 0x16e   :  { %7981 = vst [vmem:[#allocation41_spill] sm:$0xff] %v6480_v23  ;;  %v1784_v39 = vpop.f32.mrb[51].mxu1  ;;  %2046 = vmatmul.mubr.f32.gmra.mrb[156].mxu1 %v6246_v33  ;;  %4612 = vmatprep.subr.bf16.mxu0 %v4611_v59 }
 0x16f   :  { %v6490_v50 = vpop.f32.mrb[36].mxu0  ;;  %2050 = vmatprep.mubr.f32.mxu1 %v6251_v51  ;;  %v6500_v39 = vld [vmem:[#allocation2 + $0xf2] sm:$0xff] }
 0x170   :  { %7982 = vst [vmem:[#allocation42_spill] sm:$0xff] %v6490_v50  ;;  %v1079_v19 = vpop.f32.mrb[37].mxu0  ;;  %4125 = vmatmul.mubr.f32.gmra.mrb[142].mxu0 %v6483_v38 }
 0x171   :  { %v6494_v23 = vpop.f32.mrb[52].mxu1  ;;  %4127 = vmatprep.mubr.f32.mxu0 %v6486_v31  ;;  %4614 = vmatpush3.bf16.msra.mxu0 %v4611_v59  ;;  %v6510_v19 = vld [vmem:[#allocation2 + $0xfa] sm:$0xff] }
 0x172   :  { %7983 = vst [vmem:[#allocation43_spill] sm:$0xff] %v6494_v23  ;;  %v1789_v33 = vpop.f32.mrb[53].mxu1  ;;  %2051 = vmatmul.mubr.f32.gmra.mrb[158].mxu1 %v6260_v2  ;;  %4664 = vmatprep.subr.bf16.mxu0 %v6488_v44  ;;  %v6513_v2 = vld [vmem:[#allocation2 + $0x10a] sm:$0xff] }
 0x173   :  { %v6503_v48 = vpop.f32.mrb[38].mxu0  ;;  %2055 = vmatprep.mubr.f32.mxu1 %v6265_v0 }
 0x174   :  { %7984 = vst [vmem:[#allocation44_spill] sm:$0xff] %v6503_v48  ;;  %v1084_v51 = vpop.f32.mrb[39].mxu0  ;;  %4128 = vmatmul.mubr.f32.gmra.mrb[144].mxu0 %v6497_v55 }
 0x175   :  { %v6507_v41 = vpop.f32.mrb[54].mxu1  ;;  %4130 = vmatprep.mubr.f32.mxu0 %v6500_v39  ;;  %v6522_v51 = vld [vmem:[#allocation2 + $0x112] sm:$0xff] }
 0x176   :  { %7985 = vst [vmem:[#allocation45_spill] sm:$0xff] %v6507_v41  ;;  %v1794_v59 = vpop.f32.mrb[55].mxu1  ;;  %2056 = vmatmul.mubr.f32.gmra.mrb[160].mxu1 %v6274_v22  ;;  %v2462_v41 = vld [vmem:[#allocation2 + $0x30] sm:$0xff] }
 0x177   :  { %v6515_v33 = vpop.f32.mrb[40].mxu0  ;;  %2060 = vmatprep.mubr.f32.mxu1 %v6279_v57  ;;  %v6525_v59 = vld [vmem:[#allocation2 + $0x122] sm:$0xff] }
 0x178   :  { %7986 = vst [vmem:[#allocation46_spill] sm:$0xff] %v6515_v33  ;;  %v1089_v50 = vpop.f32.mrb[41].mxu0  ;;  %4131 = vmatmul.mubr.f32.gmra.mrb[146].mxu0 %v6510_v19 }
 0x179   :  { %v6519_v0 = vpop.f32.mrb[56].mxu1  ;;  %4133 = vmatprep.mubr.f32.mxu0 %v6513_v2  ;;  %v6534_v50 = vld [vmem:[#allocation2 + $0x12a] sm:$0xff] }
 0x17a   :  { %7987 = vst [vmem:[#allocation47_spill] sm:$0xff] %v6519_v0  ;;  %v1799_v48 = vpop.f32.mrb[57].mxu1  ;;  %2061 = vmatmul.mubr.f32.gmra.mrb[162].mxu1 %v6288_v32 }
 0x17b   :  { %v6527_v22 = vpop.f32.mrb[42].mxu0  ;;  %2065 = vmatprep.mubr.f32.mxu1 %v6293_v12  ;;  %v568_v48 = vld [vmem:[#allocation2 + $0x2] sm:$0xff]  ;;  %v3817_v12 = vld [vmem:[%s7920_s3 + $0x410] sm:$0xff] }
 0x17c   :  { %7988 = vst [vmem:[#allocation48_spill] sm:$0xff] %v6527_v22  ;;  %v1094_v33 = vpop.f32.mrb[43].mxu0  ;;  %4134 = vmatmul.mubr.f32.gmra.mrb[148].mxu0 %v6522_v51 }
 0x17d   :  { %v6531_v57 = vpop.f32.mrb[58].mxu1  ;;  %4136 = vmatprep.mubr.f32.mxu0 %v6525_v59  ;;  %v3818_v33 = vld [vmem:[%s7920_s3 + $0x418] sm:$0xff] }
 0x17e   :  { %7989 = vst [vmem:[#allocation49_spill] sm:$0xff] %v6531_v57  ;;  %v1804_v0 = vpop.f32.mrb[59].mxu1  ;;  %2066 = vmatmul.mubr.f32.gmra.mrb[164].mxu1 %v6302_v37  ;;  %v2526_v57 = vld [vmem:[#allocation2 + $0x31] sm:$0xff] }
 0x17f   :  { %v6537_v32 = vpop.f32.mrb[44].mxu0  ;;  %2070 = vmatprep.mubr.f32.mxu1 %v6307_v52  ;;  %v569_v37 = vld [vmem:[#allocation2 + $0xa] sm:$0xff]  ;;  %v4667_v52 = vpack.c.bf16 %v3818_v33, %v3817_v12  ;;  %v2463_v12 = vld [vmem:[#allocation2 + $0x38] sm:$0xff] }
 0x180   :  { %7990 = vst [vmem:[#allocation50_spill] sm:$0xff] %v6537_v32  ;;  %v1099_v22 = vpop.f32.mrb[45].mxu0  ;;  %4137 = vmatmul.mubr.f32.gmra.mrb[150].mxu0 %v6534_v50  ;;  %v3821_v33 = vld [vmem:[%s7920_s3 + $0x430] sm:$0xff] }
 0x181   :  { %v6547_v0 = vpop.f32.mrb[60].mxu1  ;;  %4231 = vmatprep.mubr.f32.mxu0 %v568_v48  ;;  %v3820_v22 = vld [vmem:[%s7920_s3 + $0x428] sm:$0xff]  ;;  %v2527_v48 = vld [vmem:[#allocation2 + $0x39] sm:$0xff] }
 0x182   :  { %7991 = vst [vmem:[#allocation51_spill] sm:$0xff] %v6547_v0  ;;  %v1809_v23 = vpop.f32.mrb[61].mxu1  ;;  %2071 = vmatmul.mubr.f32.gmra.mrb[166].mxu1 %v6316_v47 }
 0x183   :  { %v6550_v32 = vpop.f32.mrb[46].mxu0  ;;  %2767 = vmatprep.mubr.f32.mxu1 %v2526_v57  ;;  %v4671_v23 = vpack.c.bf16 %v3820_v22, %v3819_v18 }
 0x184   :  { %v1104_v17 = vpop.f32.mrb[47].mxu0  ;;  %4232 = vmatmul.mubr.f32.vlgmr.msra.gmra.mrb[152].mxu0 %v569_v37 }
 0x185   :  { %v6558_v0 = vpop.f32.mrb[62].mxu1  ;;  %4666 = vmatpush3.bf16.msra.mxu0 %v6488_v44  ;;  %4234 = vmatprep.mubr.f32.mxu0 %v6338_v3  ;;  %v3822_v17 = vld [vmem:[%s7920_s3 + $0x438] sm:$0xff]  ;;  %v2528_v3 = vld [vmem:[#allocation2 + $0x49] sm:$0xff] }
 0x186   :  { %v1814_v47 = vpop.f32.mrb[63].mxu1  ;;  %2768 = vmatmul.mubr.f32.vlgmr.msra.gmra.mrb[168].mxu1 %v2462_v41  ;;  %4668 = vmatprep.subr.bf16.mxu0 %v4667_v52  ;;  %v4675_v22 = vpack.c.bf16 %v3822_v17, %v3821_v33 }
 0x187   :  { %v1107_v57 = vpop.f32.mrb[48].mxu0  ;;  %2772 = vmatprep.mubr.f32.mxu1 %v2527_v48  ;;  %v2464_v47 = vld [vmem:[#allocation2 + $0x48] sm:$0xff] }
 0x188   :  { %v6569_v37 = vadd.f32 %v6122_v36, %v1107_v57  ;;  %v1109_v44 = vpop.f32.mrb[49].mxu0  ;;  %4235 = vmatmul.mubr.f32.gmra.mrb[154].mxu0 %v6352_v42  ;;  %v3823_v36 = vld [vmem:[%s7920_s3 + $0x440] sm:$0xff]  ;;  %v3824_v42 = vld [vmem:[%s7920_s3 + $0x448] sm:$0xff] }
 0x189   :  { %v6572_v41 = vpop.f32.mrb[64].mxu1  ;;  %4237 = vmatprep.mubr.f32.mxu0 %v6357_v54  ;;  %4670 = vmatpush3.bf16.msra.mxu0 %v4667_v52  ;;  %v2529_v52 = vld [vmem:[#allocation2 + $0x51] sm:$0xff]  ;;  %v4679_v17 = vpack.c.bf16 %v3824_v42, %v3823_v36 }
 0x18a   :  { %v1819_v18 = vpop.f32.mrb[65].mxu1  ;;  %2773 = vmatmul.mubr.f32.gmra.mrb[170].mxu1 %v2463_v12  ;;  %4672 = vmatprep.subr.bf16.mxu0 %v4671_v23 }
 0x18b   :  { %v1112_v48 = vpop.f32.mrb[50].mxu0  ;;  %2777 = vmatprep.mubr.f32.mxu1 %v2528_v3  ;;  %v2465_v3 = vld [vmem:[#allocation2 + $0x50] sm:$0xff] }
 0x18c   :  { %v6582_v57 = vadd.f32 %v6117_v43, %v1112_v48  ;;  %v1114_v54 = vpop.f32.mrb[51].mxu0  ;;  %4238 = vmatmul.mubr.f32.gmra.mrb[156].mxu0 %v6373_v62  ;;  %v3825_v43 = vld [vmem:[%s7920_s3 + $0x450] sm:$0xff]  ;;  %v3826_v62 = vld [vmem:[%s7920_s3 + $0x458] sm:$0xff] }
 0x18d   :  { %v6585_v12 = vpop.f32.mrb[66].mxu1  ;;  %4240 = vmatprep.mubr.f32.mxu0 %v6378_v40  ;;  %4674 = vmatpush3.bf16.msra.mxu0 %v4671_v23  ;;  %v2530_v23 = vld [vmem:[#allocation2 + $0x61] sm:$0xff]  ;;  %v4683_v36 = vpack.c.bf16 %v3826_v62, %v3825_v43 }
 0x18e   :  { %v1824_v33 = vpop.f32.mrb[67].mxu1  ;;  %2778 = vmatmul.mubr.f32.gmra.mrb[172].mxu1 %v2464_v47  ;;  %4676 = vmatprep.subr.bf16.mxu0 %v4675_v22  ;;  %v2466_v54 = vld [vmem:[#allocation2 + $0x60] sm:$0xff]  ;;  %v2467_v62 = vld [vmem:[#allocation2 + $0x68] sm:$0xff] }
 0x18f   :  { %v1117_v44 = vpop.f32.mrb[52].mxu0  ;;  %2782 = vmatprep.mubr.f32.mxu1 %v2529_v52 }
 0x190   :  { %v6595_v18 = vadd.f32 %v6134_v29, %v1117_v44  ;;  %v1119_v40 = vpop.f32.mrb[53].mxu0  ;;  %4241 = vmatmul.mubr.f32.gmra.mrb[158].mxu0 %v6393_v5  ;;  %v3827_v29 = vld [vmem:[%s7920_s3 + $0x460] sm:$0xff]  ;;  %v3828_v5 = vld [vmem:[%s7920_s3 + $0x468] sm:$0xff] }
 0x191   :  { %v6598_v48 = vpop.f32.mrb[68].mxu1  ;;  %4243 = vmatprep.mubr.f32.mxu0 %v6396_v30  ;;  %4678 = vmatpush3.bf16.msra.mxu0 %v4675_v22  ;;  %v2531_v22 = vld [vmem:[#allocation2 + $0x69] sm:$0xff] }
 0x192   :  { %v1829_v47 = vpop.f32.mrb[69].mxu1  ;;  %2783 = vmatmul.mubr.f32.gmra.mrb[174].mxu1 %v2465_v3  ;;  %4680 = vmatprep.subr.bf16.mxu0 %v4679_v17  ;;  %v4687_v3 = vpack.c.bf16 %v3828_v5, %v3827_v29  ;;  %v2468_v29 = vld [vmem:[#allocation2 + $0x78] sm:$0xff] }
 0x193   :  { %v1122_v42 = vpop.f32.mrb[54].mxu0  ;;  %2787 = vmatprep.mubr.f32.mxu1 %v2530_v23 }
 0x194   :  { %v6608_v52 = vadd.f32 %v6129_v15, %v1122_v42  ;;  %v1124_v30 = vpop.f32.mrb[55].mxu0  ;;  %4244 = vmatmul.mubr.f32.gmra.mrb[160].mxu0 %v6411_v28  ;;  %v3829_v15 = vld [vmem:[%s7920_s3 + $0x470] sm:$0xff]  ;;  %v3830_v28 = vld [vmem:[%s7920_s3 + $0x478] sm:$0xff] }
 0x195   :  { %v6611_v33 = vpop.f32.mrb[70].mxu1  ;;  %4246 = vmatprep.mubr.f32.mxu0 %v6414_v35  ;;  %4682 = vmatpush3.bf16.msra.mxu0 %v4679_v17  ;;  %v2532_v17 = vld [vmem:[#allocation2 + $0x79] sm:$0xff]  ;;  %v4691_v42 = vpack.c.bf16 %v3830_v28, %v3829_v15 }
 0x196   :  { %v1834_v44 = vpop.f32.mrb[71].mxu1  ;;  %2788 = vmatmul.mubr.f32.gmra.mrb[176].mxu1 %v2466_v54  ;;  %4684 = vmatprep.subr.bf16.mxu0 %v4683_v36 }
 0x197   :  { %v1127_v43 = vpop.f32.mrb[56].mxu0  ;;  %2792 = vmatprep.mubr.f32.mxu1 %v2531_v22  ;;  %v2469_v22 = vld [vmem:[#allocation2 + $0x80] sm:$0xff] }
 0x198   :  { %v6621_v40 = vadd.f32 %v6146_v45, %v1127_v43  ;;  %v1129_v35 = vpop.f32.mrb[57].mxu0  ;;  %4247 = vmatmul.mubr.f32.gmra.mrb[162].mxu0 %v6429_v4  ;;  %v2533_v4 = vld [vmem:[#allocation2 + $0x81] sm:$0xff]  ;;  %v2534_v43 = vld [vmem:[#allocation2 + $0x91] sm:$0xff] }
 0x199   :  { %v6624_v23 = vpop.f32.mrb[72].mxu1  ;;  %4249 = vmatprep.mubr.f32.mxu0 %v6432_v46  ;;  %4686 = vmatpush3.bf16.msra.mxu0 %v4683_v36 }
 0x19a   :  { %v1839_v47 = vpop.f32.mrb[73].mxu1  ;;  %2793 = vmatmul.mubr.f32.gmra.mrb[178].mxu1 %v2467_v62  ;;  %4688 = vmatprep.subr.bf16.mxu0 %v4687_v3  ;;  %v2470_v62 = vld [vmem:[#allocation2 + $0x90] sm:$0xff] }
 0x19b   :  { %v1132_v54 = vpop.f32.mrb[58].mxu0  ;;  %2797 = vmatprep.mubr.f32.mxu1 %v2532_v17  ;;  %v2471_v17 = vld [vmem:[#allocation2 + $0x98] sm:$0xff] }
 0x19c   :  { %v6628_v5 = vadd.f32 %v6141_v14, %v1132_v54  ;;  %v1134_v45 = vpop.f32.mrb[59].mxu0  ;;  %4250 = vmatmul.mubr.f32.gmra.mrb[164].mxu0 %v6447_v63 }
 0x19d   :  { %v6631_v30 = vpop.f32.mrb[74].mxu1  ;;  %4252 = vmatprep.mubr.f32.mxu0 %v6450_v8  ;;  %4690 = vmatpush3.bf16.msra.mxu0 %v4687_v3 }
 0x19e   :  { %v1844_v46 = vpop.f32.mrb[75].mxu1  ;;  %2798 = vmatmul.mubr.f32.gmra.mrb[180].mxu1 %v2468_v29  ;;  %4692 = vmatprep.subr.bf16.mxu0 %v4691_v42 }
 0x19f   :  { %v1137_v36 = vpop.f32.mrb[60].mxu0  ;;  %2802 = vmatprep.mubr.f32.mxu1 %v2533_v4 }
 0x1a0   :  { %v6635_v44 = vadd.f32 %v6158_v60, %v1137_v36  ;;  %v1139_v14 = vpop.f32.mrb[61].mxu0  ;;  %4253 = vmatmul.mubr.f32.gmra.mrb[166].mxu0 %v6465_v58  ;;  %v2535_v60 = vld [vmem:[#allocation2 + $0x99] sm:$0xff] }
 0x1a1   :  { %v6638_v63 = vpop.f32.mrb[76].mxu1  ;;  %4255 = vmatprep.mubr.f32.mxu0 %v6468_v25  ;;  %4694 = vmatpush3.bf16.msra.mxu0 %v4691_v42 }
 0x1a2   :  { %v1849_v8 = vpop.f32.mrb[77].mxu1  ;;  %2803 = vmatmul.mubr.f32.gmra.mrb[182].mxu1 %v2469_v22 }
 0x1a3   :  { %v1142_v3 = vpop.f32.mrb[62].mxu0  ;;  %2807 = vmatprep.mubr.f32.mxu1 %v2534_v43  ;;  %v6669_v8 = vld [vmem:[#allocation2 + $0x13a] sm:$0xff] }
 0x1a4   :  { %v6642_v15 = vadd.f32 %v6153_v56, %v1142_v3  ;;  %v1144_v28 = vpop.f32.mrb[63].mxu0  ;;  %4256 = vmatmul.mubr.f32.gmra.mrb[168].mxu0 %v6483_v38  ;;  %v2536_v56 = vld [vmem:[#allocation2 + $0xa9] sm:$0xff]  ;;  %v2474_v3 = vld [vmem:[#allocation2 + $0xc0] sm:$0xff] }
 0x1a5   :  { %v6645_v35 = vpop.f32.mrb[78].mxu1  ;;  %4258 = vmatprep.mubr.f32.mxu0 %v6486_v31  ;;  %v2472_v31 = vld [vmem:[#allocation2 + $0xa8] sm:$0xff] }
 0x1a6   :  { %v1854_v58 = vpop.f32.mrb[79].mxu1  ;;  %2808 = vmatmul.mubr.f32.gmra.mrb[184].mxu1 %v2470_v62  ;;  %v2539_v28 = vld [vmem:[#allocation2 + $0xc9] sm:$0xff] }
 0x1a7   :  { %v1147_v25 = vpop.f32.mrb[64].mxu0  ;;  %2812 = vmatprep.mubr.f32.mxu1 %v2535_v60  ;;  %v6678_v60 = vld [vmem:[#allocation2 + $0x142] sm:$0xff]  ;;  %v6680_v58 = vld [vmem:[#allocation2 + $0x152] sm:$0xff] }
 0x1a8   :  { %v6649_v47 = vadd.f32 %v6170_v49, %v1147_v25  ;;  %v1149_v42 = vpop.f32.mrb[65].mxu0  ;;  %4259 = vmatmul.mubr.f32.gmra.mrb[170].mxu0 %v6497_v55  ;;  %v2537_v49 = vld [vmem:[#allocation2 + $0xb1] sm:$0xff] }
 0x1a9   :  { %v6652_v54 = vpop.f32.mrb[80].mxu1  ;;  %4261 = vmatprep.mubr.f32.mxu0 %v6500_v39  ;;  %v2473_v39 = vld [vmem:[#allocation2 + $0xb0] sm:$0xff] }
 0x1aa   :  { %v1859_v38 = vpop.f32.mrb[81].mxu1  ;;  %2813 = vmatmul.mubr.f32.gmra.mrb[186].mxu1 %v2471_v17  ;;  %v2475_v17 = vld [vmem:[#allocation2 + $0xc8] sm:$0xff] }
 0x1ab   :  { %v1152_v29 = vpop.f32.mrb[66].mxu0  ;;  %2817 = vmatprep.mubr.f32.mxu1 %v2536_v56  ;;  %v6687_v38 = vld [vmem:[#allocation2 + $0x15a] sm:$0xff] }
 0x1ac   :  { %v6656_v45 = vadd.f32 %v6165_v20, %v1152_v29  ;;  %v1154_v4 = vpop.f32.mrb[67].mxu0  ;;  %4262 = vmatmul.mubr.f32.gmra.mrb[172].mxu0 %v6510_v19  ;;  %v2538_v20 = vld [vmem:[#allocation2 + $0xc1] sm:$0xff] }
 0x1ad   :  { %v6659_v46 = vpop.f32.mrb[82].mxu1  ;;  %4264 = vmatprep.mubr.f32.mxu0 %v6513_v2  ;;  %v6692_v4 = vld [vmem:[#allocation2 + $0x16a] sm:$0xff] }
 0x1ae   :  { %v1864_v55 = vpop.f32.mrb[83].mxu1  ;;  %2818 = vmatmul.mubr.f32.gmra.mrb[188].mxu1 %v2472_v31 }
 0x1af   :  { %v1157_v36 = vpop.f32.mrb[68].mxu0  ;;  %2822 = vmatprep.mubr.f32.mxu1 %v2537_v49 }
 0x1b0   :  { %v6663_v22 = vadd.f32 %v6182_v34, %v1157_v36  ;;  %v1159_v14 = vpop.f32.mrb[69].mxu0  ;;  %4265 = vmatmul.mubr.f32.gmra.mrb[174].mxu0 %v6522_v51 }
 0x1b1   :  { %v6666_v43 = vpop.f32.mrb[84].mxu1  ;;  %4267 = vmatprep.mubr.f32.mxu0 %v6525_v59 }
 0x1b2   :  { %v1869_v19 = vpop.f32.mrb[85].mxu1  ;;  %2823 = vmatmul.mubr.f32.gmra.mrb[190].mxu1 %v2473_v39  ;;  %v2541_v39 = vld [vmem:[#allocation2 + $0xe1] sm:$0xff] }
 0x1b3   :  { %v1162_v2 = vpop.f32.mrb[70].mxu0  ;;  %2827 = vmatprep.mubr.f32.mxu1 %v2538_v20  ;;  %v6699_v20 = vld [vmem:[#allocation2 + $0x172] sm:$0xff] }
 0x1b4   :  { %v6672_v62 = vadd.f32 %v6177_v61, %v1162_v2  ;;  %v1164_v34 = vpop.f32.mrb[71].mxu0  ;;  %4268 = vmatmul.mubr.f32.gmra.mrb[176].mxu0 %v6534_v50  ;;  %v2540_v50 = vld [vmem:[#allocation2 + $0xd9] sm:$0xff] }
 0x1b5   :  { %v6675_v51 = vpop.f32.mrb[86].mxu1  ;;  %4270 = vmatprep.mubr.f32.mxu0 %v6669_v8  ;;  %v600_v2 = vld [vmem:[#allocation2 + $0x1b2] sm:$0xff]  ;;  %v2477_v34 = vld [vmem:[#allocation2 + $0xe0] sm:$0xff] }
 0x1b6   :  { %v1874_v59 = vpop.f32.mrb[87].mxu1  ;;  %2828 = vmatmul.mubr.f32.gmra.mrb[192].mxu1 %v2474_v3 }
 0x1b7   :  { %v1167_v25 = vpop.f32.mrb[72].mxu0  ;;  %2832 = vmatprep.mubr.f32.mxu1 %v2539_v28  ;;  %v2542_v59 = vld [vmem:[#allocation2 + $0xf1] sm:$0xff] }
 0x1b8   :  { %v6683_v61 = vadd.f32 %v6194_v11, %v1167_v25  ;;  %v1169_v42 = vpop.f32.mrb[73].mxu0  ;;  %4271 = vmatmul.mubr.f32.gmra.mrb[178].mxu0 %v6678_v60  ;;  %v2476_v11 = vld [vmem:[#allocation2 + $0xd8] sm:$0xff] }
 0x1b9   :  { %v1877_v56 = vpop.f32.mrb[88].mxu1  ;;  %4273 = vmatprep.mubr.f32.mxu0 %v6680_v58 }
 0x1ba   :  { %v6690_v29 = vadd.f32 %v1877_v56, %v6569_v37  ;;  %v1879_v31 = vpop.f32.mrb[89].mxu1  ;;  %2833 = vmatmul.mubr.f32.gmra.mrb[194].mxu1 %v2475_v17  ;;  %v601_v17 = vld [vmem:[#allocation2 + $0x1ba] sm:$0xff] }
 0x1bb   :  { %v1172_v49 = vpop.f32.mrb[74].mxu0  ;;  %2837 = vmatprep.mubr.f32.mxu1 %v2540_v50  ;;  %v602_v50 = vld [vmem:[#allocation2 + $0x1ca] sm:$0xff] }
 0x1bc   :  { %7992 = vst [vmem:[#allocation52_spill] sm:$0xff] %v6690_v29  ;;  %v6695_v55 = vadd.f32 %v6189_v9, %v1172_v49  ;;  %v1174_v36 = vpop.f32.mrb[75].mxu0  ;;  %4274 = vmatmul.mubr.f32.gmra.mrb[180].mxu0 %v6687_v38  ;;  %v2478_v31 = vld [vmem:[#allocation2 + $0xf0] sm:$0xff] }
 0x1bd   :  { %v1882_v14 = vpop.f32.mrb[90].mxu1  ;;  %4276 = vmatprep.mubr.f32.mxu0 %v6692_v4 }
 0x1be   :  { %v6702_v37 = vadd.f32 %v1882_v14, %v6582_v57  ;;  %v1884_v19 = vpop.f32.mrb[91].mxu1  ;;  %2838 = vmatmul.mubr.f32.gmra.mrb[196].mxu1 %v2476_v11  ;;  %v2543_v11 = vld [vmem:[#allocation2 + $0xf9] sm:$0xff] }
 0x1bf   :  { %v1177_v3 = vpop.f32.mrb[76].mxu0  ;;  %2842 = vmatprep.mubr.f32.mxu1 %v2541_v39  ;;  %v603_v39 = vld [vmem:[#allocation2 + $0x1d2] sm:$0xff]  ;;  %v6717_v19 = vld [vmem:[#allocation2 + $0x1e2] sm:$0xff] }
 0x1c0   :  { %7993 = vst [vmem:[#allocation53_spill] sm:$0xff] %v6702_v37  ;;  %v6705_v9 = vadd.f32 %v6206_v13, %v1177_v3  ;;  %v1179_v28 = vpop.f32.mrb[77].mxu0  ;;  %4277 = vmatmul.mubr.f32.gmra.mrb[182].mxu0 %v6699_v20  ;;  %v2479_v3 = vld [vmem:[#allocation2 + $0xf8] sm:$0xff]  ;;  %v6819_v37 = vld [vmem:[#allocation2 + $0x2aa] sm:$0xff] }
 0x1c1   :  { %v1887_v25 = vpop.f32.mrb[92].mxu1  ;;  %4279 = vmatprep.mubr.f32.mxu0 %v600_v2  ;;  %v2544_v28 = vld [vmem:[#allocation2 + $0x109] sm:$0xff] }
 0x1c2   :  { %v6709_v42 = vadd.f32 %v1887_v25, %v6595_v18  ;;  %v1889_v57 = vpop.f32.mrb[93].mxu1  ;;  %2843 = vmatmul.mubr.f32.gmra.mrb[198].mxu1 %v2477_v34  ;;  %v6723_v25 = vld [vmem:[#allocation2 + $0x1ea] sm:$0xff] }
 0x1c3   :  { %v1182_v56 = vpop.f32.mrb[78].mxu0  ;;  %2847 = vmatprep.mubr.f32.mxu1 %v2542_v59  ;;  %v6728_v57 = vld [vmem:[#allocation2 + $0x1fa] sm:$0xff] }
 0x1c4   :  { %7994 = vst [vmem:[#allocation54_spill] sm:$0xff] %v6709_v42  ;;  %v6712_v49 = vadd.f32 %v6201_v27, %v1182_v56  ;;  %v1184_v13 = vpop.f32.mrb[79].mxu0  ;;  %4280 = vmatmul.mubr.f32.gmra.mrb[184].mxu0 %v601_v17  ;;  %v2480_v56 = vld [vmem:[#allocation2 + $0x108] sm:$0xff]  ;;  %v6795_v42 = vld [vmem:[#allocation2 + $0x27a] sm:$0xff] }
 0x1c5   :  { %v1892_v36 = vpop.f32.mrb[94].mxu1  ;;  %4282 = vmatprep.mubr.f32.mxu0 %v602_v50  ;;  %v2545_v13 = vld [vmem:[#allocation2 + $0x111] sm:$0xff]  ;;  %8003 = vst [vmem:[#allocation63_spill] sm:$0xff] %v6795_v42 }
 0x1c6   :  { %v6715_v14 = vadd.f32 %v1892_v36, %v6608_v52  ;;  %v1894_v18 = vpop.f32.mrb[95].mxu1  ;;  %2848 = vmatmul.mubr.f32.gmra.mrb[200].mxu1 %v2478_v31  ;;  %v6735_v36 = vld [vmem:[#allocation2 + $0x202] sm:$0xff] }
 0x1c7   :  { %v1187_v2 = vpop.f32.mrb[80].mxu0  ;;  %2852 = vmatprep.mubr.f32.mxu1 %v2543_v11  ;;  %v6740_v18 = vld [vmem:[#allocation2 + $0x212] sm:$0xff] }
 0x1c8   :  { %7995 = vst [vmem:[#allocation55_spill] sm:$0xff] %v6715_v14  ;;  %v6720_v34 = vadd.f32 %v6220_v21, %v1187_v2  ;;  %v1189_v27 = vpop.f32.mrb[81].mxu0  ;;  %4283 = vmatmul.mubr.f32.gmra.mrb[186].mxu0 %v603_v39  ;;  %v6807_v14 = vld [vmem:[#allocation2 + $0x292] sm:$0xff] }
 0x1c9   :  { %v1897_v59 = vpop.f32.mrb[96].mxu1  ;;  %4285 = vmatprep.mubr.f32.mxu0 %v6717_v19  ;;  %8006 = vst [vmem:[#allocation66_spill] sm:$0xff] %v6807_v14 }
 0x1ca   :  { %v6726_v52 = vadd.f32 %v1897_v59, %v6621_v40  ;;  %v1899_v17 = vpop.f32.mrb[97].mxu1  ;;  %2853 = vmatmul.mubr.f32.gmra.mrb[202].mxu1 %v2479_v3 }
 0x1cb   :  { %v1192_v50 = vpop.f32.mrb[82].mxu0  ;;  %2857 = vmatprep.mubr.f32.mxu1 %v2544_v28  ;;  %v2546_v28 = vld [vmem:[#allocation2 + $0x121] sm:$0xff] }
 0x1cc   :  { %7996 = vst [vmem:[#allocation56_spill] sm:$0xff] %v6726_v52  ;;  %v6731_v21 = vadd.f32 %v6215_v6, %v1192_v50  ;;  %v1194_v31 = vpop.f32.mrb[83].mxu0  ;;  %4286 = vmatmul.mubr.f32.gmra.mrb[188].mxu0 %v6723_v25  ;;  %v2481_v6 = vld [vmem:[#allocation2 + $0x110] sm:$0xff]  ;;  %v6747_v17 = vld [vmem:[#allocation2 + $0x21a] sm:$0xff] }
 0x1cd   :  { %v1902_v11 = vpop.f32.mrb[98].mxu1  ;;  %4288 = vmatprep.mubr.f32.mxu0 %v6728_v57  ;;  %v6771_v52 = vld [vmem:[#allocation2 + $0x24a] sm:$0xff] }
 0x1ce   :  { %v6738_v40 = vadd.f32 %v1902_v11, %v6628_v5  ;;  %v1904_v39 = vpop.f32.mrb[99].mxu1  ;;  %2858 = vmatmul.mubr.f32.gmra.mrb[204].mxu1 %v2480_v56  ;;  %v6752_v56 = vld [vmem:[#allocation2 + $0x22a] sm:$0xff] }
 0x1cf   :  { %v1197_v2 = vpop.f32.mrb[84].mxu0  ;;  %2862 = vmatprep.mubr.f32.mxu1 %v2545_v13  ;;  %v2547_v39 = vld [vmem:[#allocation2 + $0x129] sm:$0xff] }
 0x1d0   :  { %7997 = vst [vmem:[#allocation57_spill] sm:$0xff] %v6738_v40  ;;  %v6743_v3 = vadd.f32 %v6234_v16, %v1197_v2  ;;  %v1199_v27 = vpop.f32.mrb[85].mxu0  ;;  %4289 = vmatmul.mubr.f32.gmra.mrb[190].mxu0 %v6735_v36  ;;  %v2482_v16 = vld [vmem:[#allocation2 + $0x120] sm:$0xff] }
 0x1d1   :  { %v1907_v59 = vpop.f32.mrb[100].mxu1  ;;  %4291 = vmatprep.mubr.f32.mxu0 %v6740_v18  ;;  %v6759_v27 = vld [vmem:[#allocation2 + $0x232] sm:$0xff]  ;;  %v6783_v40 = vld [vmem:[#allocation2 + $0x262] sm:$0xff] }
 0x1d2   :  { %v6750_v5 = vadd.f32 %v1907_v59, %v6635_v44  ;;  %v1909_v50 = vpop.f32.mrb[101].mxu1  ;;  %2863 = vmatmul.mubr.f32.gmra.mrb[206].mxu1 %v2481_v6  ;;  %v6764_v59 = vld [vmem:[#allocation2 + $0x242] sm:$0xff] }
 0x1d3   :  { %v1202_v31 = vpop.f32.mrb[86].mxu0  ;;  %2867 = vmatprep.mubr.f32.mxu1 %v2546_v28 }
 0x1d4   :  { %7998 = vst [vmem:[#allocation58_spill] sm:$0xff] %v6750_v5  ;;  %v6755_v13 = vadd.f32 %v6229_v26, %v1202_v31  ;;  %v1204_v11 = vpop.f32.mrb[87].mxu0  ;;  %4292 = vmatmul.mubr.f32.gmra.mrb[192].mxu0 %v6747_v17  ;;  %v2483_v26 = vld [vmem:[#allocation2 + $0x128] sm:$0xff] }
 0x1d5   :  { %v1912_v2 = vpop.f32.mrb[102].mxu1  ;;  %4294 = vmatprep.mubr.f32.mxu0 %v6752_v56  ;;  %v2548_v11 = vld [vmem:[#allocation2 + $0x139] sm:$0xff] }
 0x1d6   :  { %v6762_v44 = vadd.f32 %v1912_v2, %v6642_v15  ;;  %v1914_v6 = vpop.f32.mrb[103].mxu1  ;;  %2868 = vmatmul.mubr.f32.gmra.mrb[208].mxu1 %v2482_v16  ;;  %v6776_v2 = vld [vmem:[#allocation2 + $0x25a] sm:$0xff] }
 0x1d7   :  { %v1207_v28 = vpop.f32.mrb[88].mxu0  ;;  %2872 = vmatprep.mubr.f32.mxu1 %v2547_v39 }
 0x1d8   :  { %7999 = vst [vmem:[#allocation59_spill] sm:$0xff] %v6762_v44  ;;  %v6767_v50 = vadd.f32 %v6248_v24, %v1207_v28  ;;  %v1209_v31 = vpop.f32.mrb[89].mxu0  ;;  %4295 = vmatmul.mubr.f32.gmra.mrb[194].mxu0 %v6759_v27  ;;  %v2484_v24 = vld [vmem:[#allocation2 + $0x138] sm:$0xff] }
 0x1d9   :  { %v1917_v5 = vpop.f32.mrb[104].mxu1  ;;  %4297 = vmatprep.mubr.f32.mxu0 %v6764_v59  ;;  %v2549_v31 = vld [vmem:[#allocation2 + $0x141] sm:$0xff] }
 0x1da   :  { %v6774_v15 = vadd.f32 %v1917_v5, %v6649_v47  ;;  %v1919_v16 = vpop.f32.mrb[105].mxu1  ;;  %2873 = vmatmul.mubr.f32.gmra.mrb[210].mxu1 %v2483_v26  ;;  %v6788_v26 = vld [vmem:[#allocation2 + $0x272] sm:$0xff] }
 0x1db   :  { %v1212_v39 = vpop.f32.mrb[90].mxu0  ;;  %2877 = vmatprep.mubr.f32.mxu1 %v2548_v11  ;;  %8002 = vst [vmem:[#allocation62_spill] sm:$0xff] %v6788_v26 }
 0x1dc   :  { %8000 = vst [vmem:[#allocation60_spill] sm:$0xff] %v6774_v15  ;;  %v6779_v6 = vadd.f32 %v6243_v10, %v1212_v39  ;;  %v1214_v28 = vpop.f32.mrb[91].mxu0  ;;  %4298 = vmatmul.mubr.f32.gmra.mrb[196].mxu0 %v6771_v52  ;;  %v2485_v10 = vld [vmem:[#allocation2 + $0x140] sm:$0xff] }
 0x1dd   :  { %v1922_v44 = vpop.f32.mrb[106].mxu1  ;;  %4300 = vmatprep.mubr.f32.mxu0 %v6776_v2  ;;  %v2550_v28 = vld [vmem:[#allocation2 + $0x151] sm:$0xff] }
 0x1de   :  { %v6786_v47 = vadd.f32 %v1922_v44, %v6656_v45  ;;  %v1924_v5 = vpop.f32.mrb[107].mxu1  ;;  %2878 = vmatmul.mubr.f32.gmra.mrb[212].mxu1 %v2484_v24  ;;  %v6800_v24 = vld [vmem:[#allocation2 + $0x28a] sm:$0xff] }
 0x1df   :  { %v1217_v11 = vpop.f32.mrb[92].mxu0  ;;  %2882 = vmatprep.mubr.f32.mxu1 %v2549_v31  ;;  %8005 = vst [vmem:[#allocation65_spill] sm:$0xff] %v6800_v24 }
 0x1e0   :  { %8001 = vst [vmem:[#allocation61_spill] sm:$0xff] %v6786_v47  ;;  %v6791_v16 = vadd.f32 %v6262_v1, %v1217_v11  ;;  %v1219_v39 = vpop.f32.mrb[93].mxu0  ;;  %4301 = vmatmul.mubr.f32.gmra.mrb[198].mxu0 %v6783_v40  ;;  %v2486_v1 = vld [vmem:[#allocation2 + $0x150] sm:$0xff] }
 0x1e1   :  { %v1927_v15 = vpop.f32.mrb[108].mxu1  ;;  %4303 = vmatprep.mubr.f32.mxu0 %v6788_v26  ;;  %v2551_v39 = vld [vmem:[#allocation2 + $0x159] sm:$0xff] }
 0x1e2   :  { %v6798_v45 = vadd.f32 %v1927_v15, %v6663_v22  ;;  %v1929_v44 = vpop.f32.mrb[109].mxu1  ;;  %2883 = vmatmul.mubr.f32.gmra.mrb[214].mxu1 %v2485_v10  ;;  %v6812_v10 = vld [vmem:[#allocation2 + $0x2a2] sm:$0xff] }
 0x1e3   :  { %v1222_v31 = vpop.f32.mrb[94].mxu0  ;;  %2887 = vmatprep.mubr.f32.mxu1 %v2550_v28  ;;  %8008 = vst [vmem:[#allocation68_spill] sm:$0xff] %v6812_v10  ;;  %v8009_v44 = vld [vmem:[#allocation9_spill] sm:$0xff] }
 0x1e4   :  { %8004 = vst [vmem:[#allocation64_spill] sm:$0xff] %v6798_v45  ;;  %v6803_v5 = vadd.f32 %v6257_v53, %v1222_v31  ;;  %v1224_v11 = vpop.f32.mrb[95].mxu0  ;;  %4304 = vmatmul.mubr.f32.gmra.mrb[200].mxu0 %v6795_v42  ;;  %v2487_v53 = vld [vmem:[#allocation2 + $0x158] sm:$0xff]  ;;  %v2552_v45 = vld [vmem:[#allocation2 + $0x169] sm:$0xff]  ;;  %8010 = vst [vmem:[#allocation9_spill] sm:$0xff] %v6819_v37 }
 0x1e5   :  { %v1932_v47 = vpop.f32.mrb[110].mxu1  ;;  %4306 = vmatprep.mubr.f32.mxu0 %v6800_v24 }
 0x1e6   :  { %v6810_v22 = vadd.f32 %v1932_v47, %v6672_v62  ;;  %v1934_v15 = vpop.f32.mrb[111].mxu1  ;;  %2888 = vmatmul.mubr.f32.gmra.mrb[216].mxu1 %v2486_v1  ;;  %v6824_v1 = vld [vmem:[#allocation2 + $0x2ba] sm:$0xff] }
 0x1e7   :  { %v1227_v28 = vpop.f32.mrb[96].mxu0  ;;  %2892 = vmatprep.mubr.f32.mxu1 %v2551_v39  ;;  %8012 = vst [vmem:[#allocation70_spill] sm:$0xff] %v6824_v1  ;;  %v2488_v15 = vld [vmem:[#allocation2 + $0x168] sm:$0xff] }
 0x1e8   :  { %8007 = vst [vmem:[#allocation67_spill] sm:$0xff] %v6810_v22  ;;  %v6815_v31 = vadd.f32 %v8009_v44, %v1227_v28  ;;  %v1229_v11 = vpop.f32.mrb[97].mxu0  ;;  %4307 = vmatmul.mubr.f32.gmra.mrb[202].mxu0 %v6807_v14  ;;  %v8013_v28 = vld [vmem:[#allocation8_spill] sm:$0xff]  ;;  %v2553_v22 = vld [vmem:[#allocation2 + $0x171] sm:$0xff] }
 0x1e9   :  { %v1937_v29 = vpop.f32.mrb[112].mxu1  ;;  %4309 = vmatprep.mubr.f32.mxu0 %v6812_v10  ;;  %v6831_v14 = vld [vmem:[#allocation2 + $0x2c2] sm:$0xff] }
 0x1ea   :  { %v6822_v62 = vadd.f32 %v1937_v29, %v6683_v61  ;;  %v1939_v47 = vpop.f32.mrb[113].mxu1  ;;  %2893 = vmatmul.mubr.f32.gmra.mrb[218].mxu1 %v2487_v53  ;;  %8014 = vst [vmem:[#allocation8_spill] sm:$0xff] %v6831_v14  ;;  %v6836_v53 = vld [vmem:[#allocation2 + $0x2d2] sm:$0xff] }
 0x1eb   :  { %v1232_v39 = vpop.f32.mrb[98].mxu0  ;;  %2897 = vmatprep.mubr.f32.mxu1 %v2552_v45  ;;  %8016 = vst [vmem:[#allocation72_spill] sm:$0xff] %v6836_v53  ;;  %v2489_v47 = vld [vmem:[#allocation2 + $0x170] sm:$0xff] }
 0x1ec   :  { %8011 = vst [vmem:[#allocation69_spill] sm:$0xff] %v6822_v62  ;;  %v6827_v44 = vadd.f32 %v8013_v28, %v1232_v39  ;;  %v1234_v11 = vpop.f32.mrb[99].mxu0  ;;  %4310 = vmatmul.mubr.f32.gmra.mrb[204].mxu0 %v6819_v37  ;;  %v8017_v39 = vld [vmem:[#allocation12_spill] sm:$0xff]  ;;  %v6843_v37 = vld [vmem:[#allocation2 + $0x2da] sm:$0xff] }
 0x1ed   :  { %v1942_v10 = vpop.f32.mrb[114].mxu1  ;;  %4312 = vmatprep.mubr.f32.mxu0 %v6824_v1  ;;  %v2554_v62 = vld [vmem:[#allocation2 + $0x181] sm:$0xff]  ;;  %8018 = vst [vmem:[#allocation12_spill] sm:$0xff] %v6843_v37 }
 0x1ee   :  { %v6834_v61 = vadd.f32 %v1942_v10, %v6695_v55  ;;  %v1944_v29 = vpop.f32.mrb[115].mxu1  ;;  %2898 = vmatmul.mubr.f32.gmra.mrb[220].mxu1 %v2488_v15  ;;  %v6848_v15 = vld [vmem:[#allocation2 + $0x2ea] sm:$0xff] }
 0x1ef   :  { %v1237_v45 = vpop.f32.mrb[100].mxu0  ;;  %2902 = vmatprep.mubr.f32.mxu1 %v2553_v22  ;;  %8020 = vst [vmem:[#allocation74_spill] sm:$0xff] %v6848_v15  ;;  %v2490_v29 = vld [vmem:[#allocation2 + $0x180] sm:$0xff] }
 0x1f0   :  { %8015 = vst [vmem:[#allocation71_spill] sm:$0xff] %v6834_v61  ;;  %v6839_v28 = vadd.f32 %v8017_v39, %v1237_v45  ;;  %v1239_v11 = vpop.f32.mrb[101].mxu0  ;;  %4313 = vmatmul.mubr.f32.gmra.mrb[206].mxu0 %v6831_v14  ;;  %v8021_v45 = vld [vmem:[#allocation11_spill] sm:$0xff]  ;;  %v2555_v61 = vld [vmem:[#allocation2 + $0x189] sm:$0xff]  ;;  %v6855_v14 = vld [vmem:[#allocation2 + $0x2f2] sm:$0xff] }
 0x1f1   :  { %v1947_v1 = vpop.f32.mrb[116].mxu1  ;;  %4315 = vmatprep.mubr.f32.mxu0 %v6836_v53  ;;  %8022 = vst [vmem:[#allocation11_spill] sm:$0xff] %v6855_v14 }
 0x1f2   :  { %v6846_v55 = vadd.f32 %v1947_v1, %v6705_v9  ;;  %v1949_v10 = vpop.f32.mrb[117].mxu1  ;;  %2903 = vmatmul.mubr.f32.gmra.mrb[222].mxu1 %v2489_v47  ;;  %v6860_v47 = vld [vmem:[#allocation2 + $0x302] sm:$0xff] }
 0x1f3   :  { %v1242_v22 = vpop.f32.mrb[102].mxu0  ;;  %2907 = vmatprep.mubr.f32.mxu1 %v2554_v62  ;;  %8024 = vst [vmem:[#allocation76_spill] sm:$0xff] %v6860_v47  ;;  %v2491_v10 = vld [vmem:[#allocation2 + $0x188] sm:$0xff] }
 0x1f4   :  { %8019 = vst [vmem:[#allocation73_spill] sm:$0xff] %v6846_v55  ;;  %v6851_v39 = vadd.f32 %v8021_v45, %v1242_v22  ;;  %v1244_v11 = vpop.f32.mrb[103].mxu0  ;;  %4316 = vmatmul.mubr.f32.gmra.mrb[208].mxu0 %v6843_v37  ;;  %v8025_v22 = vld [vmem:[#allocation15_spill] sm:$0xff]  ;;  %v6867_v37 = vld [vmem:[#allocation2 + $0x30a] sm:$0xff] }
 0x1f5   :  { %v1952_v53 = vpop.f32.mrb[118].mxu1  ;;  %4318 = vmatprep.mubr.f32.mxu0 %v6848_v15  ;;  %v2556_v55 = vld [vmem:[#allocation2 + $0x199] sm:$0xff]  ;;  %8026 = vst [vmem:[#allocation15_spill] sm:$0xff] %v6867_v37 }
 0x1f6   :  { %v6858_v9 = vadd.f32 %v1952_v53, %v6712_v49  ;;  %v1954_v1 = vpop.f32.mrb[119].mxu1  ;;  %2908 = vmatmul.mubr.f32.gmra.mrb[224].mxu1 %v2490_v29  ;;  %v6872_v29 = vld [vmem:[#allocation2 + $0x31a] sm:$0xff] }
 0x1f7   :  { %v1247_v62 = vpop.f32.mrb[104].mxu0  ;;  %2912 = vmatprep.mubr.f32.mxu1 %v2555_v61  ;;  %8028 = vst [vmem:[#allocation78_spill] sm:$0xff] %v6872_v29  ;;  %v2492_v1 = vld [vmem:[#allocation2 + $0x198] sm:$0xff] }
 0x1f8   :  { %8023 = vst [vmem:[#allocation75_spill] sm:$0xff] %v6858_v9  ;;  %v6863_v45 = vadd.f32 %v8025_v22, %v1247_v62  ;;  %v1249_v11 = vpop.f32.mrb[105].mxu0  ;;  %4319 = vmatmul.mubr.f32.gmra.mrb[210].mxu0 %v6855_v14  ;;  %v8029_v62 = vld [vmem:[#allocation14_spill] sm:$0xff]  ;;  %v2557_v9 = vld [vmem:[#allocation2 + $0x1a1] sm:$0xff] }
 0x1f9   :  { %v1957_v15 = vpop.f32.mrb[120].mxu1  ;;  %4321 = vmatprep.mubr.f32.mxu0 %v6860_v47  ;;  %v6879_v14 = vld [vmem:[#allocation2 + $0x322] sm:$0xff] }
 0x1fa   :  { %v6870_v49 = vadd.f32 %v1957_v15, %v6720_v34  ;;  %v1959_v53 = vpop.f32.mrb[121].mxu1  ;;  %2913 = vmatmul.mubr.f32.gmra.mrb[226].mxu1 %v2491_v10  ;;  %8030 = vst [vmem:[#allocation14_spill] sm:$0xff] %v6879_v14  ;;  %v2590_v10 = vld [vmem:[#allocation2 + $0x32] sm:$0xff] }
 0x1fb   :  { %v1252_v61 = vpop.f32.mrb[106].mxu0  ;;  %2917 = vmatprep.mubr.f32.mxu1 %v2556_v55  ;;  %v8032_v53 = vld [vmem:[#allocation18_spill] sm:$0xff] }
 0x1fc   :  { %8027 = vst [vmem:[#allocation77_spill] sm:$0xff] %v6870_v49  ;;  %v6875_v22 = vadd.f32 %v8029_v62, %v1252_v61  ;;  %v1254_v11 = vpop.f32.mrb[107].mxu0  ;;  %4322 = vmatmul.mubr.f32.gmra.mrb[212].mxu0 %v6867_v37 }
 0x1fd   :  { %v1962_v47 = vpop.f32.mrb[122].mxu1  ;;  %4324 = vmatprep.mubr.f32.mxu0 %v6872_v29  ;;  %v2558_v11 = vld [vmem:[#allocation2 + $0x1e1] sm:$0xff] }
 0x1fe   :  { %v6882_v34 = vadd.f32 %v1962_v47, %v6731_v21  ;;  %v1964_v15 = vpop.f32.mrb[123].mxu1  ;;  %2918 = vmatmul.mubr.f32.gmra.mrb[228].mxu1 %v2492_v1  ;;  %v2591_v29 = vld [vmem:[#allocation2 + $0x3a] sm:$0xff]  ;;  %v6891_v47 = vld [vmem:[#allocation2 + $0x8] sm:$0xff] }
 0x1ff   :  { %v1257_v55 = vpop.f32.mrb[108].mxu0  ;;  %2922 = vmatprep.mubr.f32.mxu1 %v2557_v9  ;;  %8034 = vst [vmem:[#allocation80_spill] sm:$0xff] %v6891_v47  ;;  %v2592_v1 = vld [vmem:[#allocation2 + $0x4a] sm:$0xff]  ;;  %v2494_v15 = vld [vmem:[#allocation2 + $0x1e0] sm:$0xff] }
 0x200   :  { %8031 = vst [vmem:[#allocation79_spill] sm:$0xff] %v6882_v34  ;;  %v6885_v61 = vadd.f32 %v8032_v53, %v1257_v55  ;;  %v1259_v62 = vpop.f32.mrb[109].mxu0  ;;  %4325 = vmatmul.mubr.f32.gmra.mrb[214].mxu0 %v6879_v14  ;;  %v8035_v55 = vld [vmem:[#allocation17_spill] sm:$0xff] }
 0x201   :  { %v1967_v49 = vpop.f32.mrb[124].mxu1  ;;  %4359 = vmatprep.mubr.f32.mxu0 %v2590_v10  ;;  %v2559_v34 = vld [vmem:[#allocation2 + $0x1e9] sm:$0xff]  ;;  %v2593_v14 = vld [vmem:[#allocation2 + $0x52] sm:$0xff] }
 0x202   :  { %v6889_v37 = vadd.f32 %v1967_v49, %v6743_v3  ;;  %v1969_v21 = vpop.f32.mrb[125].mxu1  ;;  %2923 = vmatmul.mubr.f32.gmra.mrb[230].mxu1 %v6891_v47  ;;  %v2495_v47 = vld [vmem:[#allocation2 + $0x1e8] sm:$0xff] }
 0x203   :  { %v1262_v9 = vpop.f32.mrb[110].mxu0  ;;  %2927 = vmatprep.mubr.f32.mxu1 %v2558_v11  ;;  %v2594_v21 = vld [vmem:[#allocation2 + $0x62] sm:$0xff] }
 0x204   :  { %8033 = vst [vmem:[#allocation18_spill] sm:$0xff] %v6889_v37  ;;  %v6895_v53 = vadd.f32 %v8035_v55, %v1262_v9  ;;  %v1264_v62 = vpop.f32.mrb[111].mxu0  ;;  %4360 = vmatmul.mubr.f32.vlgmr.msra.gmra.mrb[216].mxu0 %v2591_v29  ;;  %v2560_v55 = vld [vmem:[#allocation2 + $0x1f9] sm:$0xff] }
 0x205   :  { %v1972_v10 = vpop.f32.mrb[126].mxu1  ;;  %4362 = vmatprep.mubr.f32.mxu0 %v2592_v1  ;;  %v2595_v62 = vld [vmem:[#allocation2 + $0x6a] sm:$0xff] }
 0x206   :  { %v6898_v3 = vadd.f32 %v1972_v10, %v6755_v13  ;;  %v1974_v49 = vpop.f32.mrb[127].mxu1  ;;  %2928 = vmatmul.mubr.f32.gmra.mrb[232].mxu1 %v2494_v15  ;;  %v2596_v10 = vld [vmem:[#allocation2 + $0x7a] sm:$0xff] }
 0x207   :  { %v1267_v37 = vpop.f32.mrb[112].mxu0  ;;  %2932 = vmatprep.mubr.f32.mxu1 %v2559_v34  ;;  %v2496_v49 = vld [vmem:[#allocation2 + $0x1f8] sm:$0xff]  ;;  %v8038_v34 = vld [vmem:[#allocation20_spill] sm:$0xff] }
 0x208   :  { %8036 = vst [vmem:[#allocation17_spill] sm:$0xff] %v6898_v3  ;;  %v6901_v11 = vadd.f32 %v6327_v7, %v1267_v37  ;;  %v1269_v9 = vpop.f32.mrb[113].mxu0  ;;  %4363 = vmatmul.mubr.f32.gmra.mrb[218].mxu0 %v2593_v14  ;;  %v2561_v37 = vld [vmem:[#allocation2 + $0x201] sm:$0xff] }
 0x209   :  { %v1977_v29 = vpop.f32.mrb[128].mxu1  ;;  %4365 = vmatprep.mubr.f32.mxu0 %v2594_v21  ;;  %v2597_v9 = vld [vmem:[#allocation2 + $0x82] sm:$0xff] }
 0x20a   :  { %v6904_v1 = vadd.f32 %v1977_v29, %v6767_v50  ;;  %v1979_v13 = vpop.f32.mrb[129].mxu1  ;;  %2933 = vmatmul.mubr.f32.gmra.mrb[234].mxu1 %v2495_v47  ;;  %v2598_v29 = vld [vmem:[#allocation2 + $0x92] sm:$0xff] }
 0x20b   :  { %v1272_v15 = vpop.f32.mrb[114].mxu0  ;;  %2937 = vmatprep.mubr.f32.mxu1 %v2560_v55  ;;  %v2497_v13 = vld [vmem:[#allocation2 + $0x200] sm:$0xff] }
 0x20c   :  { %8037 = vst [vmem:[#allocation81_spill] sm:$0xff] %v6904_v1  ;;  %v6907_v3 = vadd.f32 %v8038_v34, %v1272_v15  ;;  %v1274_v7 = vpop.f32.mrb[115].mxu0  ;;  %4366 = vmatmul.mubr.f32.gmra.mrb[220].mxu0 %v2595_v62  ;;  %v8040_v55 = vld [vmem:[#allocation23_spill] sm:$0xff]  ;;  %v2562_v34 = vld [vmem:[#allocation2 + $0x211] sm:$0xff] }
 0x20d   :  { %v1982_v14 = vpop.f32.mrb[130].mxu1  ;;  %4368 = vmatprep.mubr.f32.mxu0 %v2596_v10  ;;  %v2599_v7 = vld [vmem:[#allocation2 + $0x9a] sm:$0xff] }
 0x20e   :  { %v6910_v21 = vadd.f32 %v1982_v14, %v6779_v6  ;;  %v1984_v50 = vpop.f32.mrb[131].mxu1  ;;  %2938 = vmatmul.mubr.f32.gmra.mrb[236].mxu1 %v2496_v49  ;;  %v2600_v14 = vld [vmem:[#allocation2 + $0xaa] sm:$0xff] }
 0x20f   :  { %v1277_v47 = vpop.f32.mrb[116].mxu0  ;;  %2942 = vmatprep.mubr.f32.mxu1 %v2561_v37  ;;  %v2498_v50 = vld [vmem:[#allocation2 + $0x210] sm:$0xff]  ;;  %v8042_v37 = vld [vmem:[#allocation22_spill] sm:$0xff] }
 0x210   :  { %8039 = vst [vmem:[#allocation20_spill] sm:$0xff] %v6910_v21  ;;  %v6913_v1 = vadd.f32 %v8040_v55, %v1277_v47  ;;  %v1279_v15 = vpop.f32.mrb[117].mxu0  ;;  %4369 = vmatmul.mubr.f32.gmra.mrb[222].mxu0 %v2597_v9  ;;  %v2563_v55 = vld [vmem:[#allocation2 + $0x219] sm:$0xff] }
 0x211   :  { %v1987_v62 = vpop.f32.mrb[132].mxu1  ;;  %4371 = vmatprep.mubr.f32.mxu0 %v2598_v29  ;;  %v2601_v15 = vld [vmem:[#allocation2 + $0xb2] sm:$0xff] }
 0x212   :  { %v6916_v10 = vadd.f32 %v1987_v62, %v6791_v16  ;;  %v1989_v6 = vpop.f32.mrb[133].mxu1  ;;  %2943 = vmatmul.mubr.f32.gmra.mrb[238].mxu1 %v2497_v13  ;;  %v2602_v62 = vld [vmem:[#allocation2 + $0xc2] sm:$0xff] }
 0x213   :  { %v1282_v49 = vpop.f32.mrb[118].mxu0  ;;  %2947 = vmatprep.mubr.f32.mxu1 %v2562_v34  ;;  %v2499_v6 = vld [vmem:[#allocation2 + $0x218] sm:$0xff] }
 0x214   :  { %8041 = vst [vmem:[#allocation23_spill] sm:$0xff] %v6916_v10  ;;  %v6919_v21 = vadd.f32 %v8042_v37, %v1282_v49  ;;  %v1284_v47 = vpop.f32.mrb[119].mxu0  ;;  %4372 = vmatmul.mubr.f32.gmra.mrb[224].mxu0 %v2599_v7  ;;  %v8044_v34 = vld [vmem:[#allocation26_spill] sm:$0xff]  ;;  %v2564_v37 = vld [vmem:[#allocation2 + $0x229] sm:$0xff] }
 0x215   :  { %v1992_v9 = vpop.f32.mrb[134].mxu1  ;;  %4374 = vmatprep.mubr.f32.mxu0 %v2600_v14  ;;  %v2603_v47 = vld [vmem:[#allocation2 + $0xca] sm:$0xff] }
 0x216   :  { %v6922_v29 = vadd.f32 %v1992_v9, %v6803_v5  ;;  %v1994_v16 = vpop.f32.mrb[135].mxu1  ;;  %2948 = vmatmul.mubr.f32.gmra.mrb[240].mxu1 %v2498_v50  ;;  %v2604_v9 = vld [vmem:[#allocation2 + $0xda] sm:$0xff] }
 0x217   :  { %v1287_v13 = vpop.f32.mrb[120].mxu0  ;;  %2952 = vmatprep.mubr.f32.mxu1 %v2563_v55  ;;  %v2500_v16 = vld [vmem:[#allocation2 + $0x228] sm:$0xff]  ;;  %v8046_v55 = vld [vmem:[#allocation25_spill] sm:$0xff] }
 0x218   :  { %8043 = vst [vmem:[#allocation22_spill] sm:$0xff] %v6922_v29  ;;  %v6925_v10 = vadd.f32 %v8044_v34, %v1287_v13  ;;  %v1289_v49 = vpop.f32.mrb[121].mxu0  ;;  %4375 = vmatmul.mubr.f32.gmra.mrb[226].mxu0 %v2601_v15  ;;  %v2565_v34 = vld [vmem:[#allocation2 + $0x231] sm:$0xff] }
 0x219   :  { %v1997_v7 = vpop.f32.mrb[136].mxu1  ;;  %4377 = vmatprep.mubr.f32.mxu0 %v2602_v62  ;;  %v2605_v49 = vld [vmem:[#allocation2 + $0xe2] sm:$0xff] }
 0x21a   :  { %v6928_v14 = vadd.f32 %v1997_v7, %v6815_v31  ;;  %v1999_v5 = vpop.f32.mrb[137].mxu1  ;;  %2953 = vmatmul.mubr.f32.gmra.mrb[242].mxu1 %v2499_v6  ;;  %v2606_v7 = vld [vmem:[#allocation2 + $0xf2] sm:$0xff] }
 0x21b   :  { %v1292_v50 = vpop.f32.mrb[122].mxu0  ;;  %2957 = vmatprep.mubr.f32.mxu1 %v2564_v37  ;;  %v2501_v5 = vld [vmem:[#allocation2 + $0x230] sm:$0xff] }
 0x21c   :  { %8045 = vst [vmem:[#allocation26_spill] sm:$0xff] %v6928_v14  ;;  %v6931_v29 = vadd.f32 %v8046_v55, %v1292_v50  ;;  %v1294_v13 = vpop.f32.mrb[123].mxu0  ;;  %4378 = vmatmul.mubr.f32.gmra.mrb[228].mxu0 %v2603_v47  ;;  %v8048_v37 = vld [vmem:[#allocation29_spill] sm:$0xff]  ;;  %v2566_v55 = vld [vmem:[#allocation2 + $0x241] sm:$0xff] }
 0x21d   :  { %v2002_v15 = vpop.f32.mrb[138].mxu1  ;;  %4380 = vmatprep.mubr.f32.mxu0 %v2604_v9  ;;  %v2607_v13 = vld [vmem:[#allocation2 + $0xfa] sm:$0xff] }
 0x21e   :  { %v6934_v62 = vadd.f32 %v2002_v15, %v6827_v44  ;;  %v2004_v31 = vpop.f32.mrb[139].mxu1  ;;  %2958 = vmatmul.mubr.f32.gmra.mrb[244].mxu1 %v2500_v16  ;;  %v2608_v15 = vld [vmem:[#allocation2 + $0x10a] sm:$0xff] }
 0x21f   :  { %v1297_v6 = vpop.f32.mrb[124].mxu0  ;;  %2962 = vmatprep.mubr.f32.mxu1 %v2565_v34  ;;  %v2502_v31 = vld [vmem:[#allocation2 + $0x240] sm:$0xff]  ;;  %v8050_v34 = vld [vmem:[#allocation28_spill] sm:$0xff] }
 0x220   :  { %8047 = vst [vmem:[#allocation25_spill] sm:$0xff] %v6934_v62  ;;  %v6937_v14 = vadd.f32 %v8048_v37, %v1297_v6  ;;  %v1299_v50 = vpop.f32.mrb[125].mxu0  ;;  %4381 = vmatmul.mubr.f32.gmra.mrb[230].mxu0 %v2605_v49  ;;  %v2567_v37 = vld [vmem:[#allocation2 + $0x249] sm:$0xff] }
 0x221   :  { %v2007_v47 = vpop.f32.mrb[140].mxu1  ;;  %4383 = vmatprep.mubr.f32.mxu0 %v2606_v7  ;;  %v2609_v50 = vld [vmem:[#allocation2 + $0x112] sm:$0xff] }
 0x222   :  { %v6940_v9 = vadd.f32 %v2007_v47, %v6839_v28  ;;  %v2009_v44 = vpop.f32.mrb[141].mxu1  ;;  %2963 = vmatmul.mubr.f32.gmra.mrb[246].mxu1 %v2501_v5  ;;  %v2610_v47 = vld [vmem:[#allocation2 + $0x122] sm:$0xff] }
 0x223   :  { %v1302_v16 = vpop.f32.mrb[126].mxu0  ;;  %2967 = vmatprep.mubr.f32.mxu1 %v2566_v55  ;;  %v2503_v44 = vld [vmem:[#allocation2 + $0x248] sm:$0xff] }
 0x224   :  { %8049 = vst [vmem:[#allocation29_spill] sm:$0xff] %v6940_v9  ;;  %v6943_v62 = vadd.f32 %v8050_v34, %v1302_v16  ;;  %v1304_v6 = vpop.f32.mrb[127].mxu0  ;;  %4384 = vmatmul.mubr.f32.gmra.mrb[232].mxu0 %v2607_v13  ;;  %v8052_v55 = vld [vmem:[#allocation4_spill] sm:$0xff]  ;;  %v2568_v16 = vld [vmem:[#allocation2 + $0x259] sm:$0xff] }
 0x225   :  { %v2012_v49 = vpop.f32.mrb[142].mxu1  ;;  %4386 = vmatprep.mubr.f32.mxu0 %v2608_v15  ;;  %v8053_v34 = vld [vmem:[#allocation3_spill] sm:$0xff]  ;;  %v2611_v15 = vld [vmem:[#allocation2 + $0x12a] sm:$0xff] }
 0x226   :  { %v6946_v7 = vadd.f32 %v2012_v49, %v6851_v39  ;;  %v2014_v28 = vpop.f32.mrb[143].mxu1  ;;  %2968 = vmatmul.mubr.f32.gmra.mrb[248].mxu1 %v2502_v31  ;;  %v8054_v31 = vld [vmem:[#allocation33_spill] sm:$0xff] }
 0x227   :  { %v4105_v5 = vpop.f32.mrb[128].mxu0  ;;  %2972 = vmatprep.mubr.f32.mxu1 %v2567_v37  ;;  %v2504_v28 = vld [vmem:[#allocation2 + $0x258] sm:$0xff] }
 0x228   :  { %8051 = vst [vmem:[#allocation28_spill] sm:$0xff] %v6946_v7  ;;  %v1378_v9 = vadd.f32 %v4105_v5, %v8052_v55  ;;  %v1372_v24 = vpop.f32.mrb[129].mxu0  ;;  %4387 = vmatmul.mubr.f32.gmra.mrb[234].mxu0 %v2609_v50  ;;  %v8055_v5 = vld [vmem:[#allocation31_spill] sm:$0xff]  ;;  %v8056_v50 = vld [vmem:[#allocation6_spill] sm:$0xff] }
 0x229   :  { %v1373_v13 = vadd.f32 %v1372_v24, %v8053_v34  ;;  %v2017_v6 = vpop.f32.mrb[144].mxu1  ;;  %4389 = vmatprep.mubr.f32.mxu0 %v2610_v47  ;;  %v2569_v47 = vld [vmem:[#allocation2 + $0x261] sm:$0xff]  ;;  %v8057_v34 = vld [vmem:[#allocation5_spill] sm:$0xff] }
 0x22a   :  { %v6951_v42 = vadd.f32 %v2017_v6, %v6863_v45  ;;  %v2019_v39 = vpop.f32.mrb[145].mxu1  ;;  %2973 = vmatmul.mubr.f32.gmra.mrb[250].mxu1 %v2503_v44  ;;  %v6954_v49 = vadd.f32 %v8054_v31, %v1378_v9  ;;  %v8059_v31 = vld [vmem:[#allocation35_spill] sm:$0xff] }
 0x22b   :  { %v4108_v37 = vpop.f32.mrb[130].mxu0  ;;  %2977 = vmatprep.mubr.f32.mxu1 %v2568_v16  ;;  %v6957_v55 = vadd.f32 %v8055_v5, %v1373_v13  ;;  %v8058_v16 = vld [vmem:[#allocation37_spill] sm:$0xff]  ;;  %v2505_v39 = vld [vmem:[#allocation2 + $0x260] sm:$0xff] }
 0x22c   :  { %v1388_v7 = vadd.f32 %v4108_v37, %v8056_v50  ;;  %v1382_v24 = vpop.f32.mrb[131].mxu0  ;;  %4390 = vmatmul.mubr.f32.gmra.mrb[236].mxu0 %v2611_v15  ;;  %v8060_v15 = vld [vmem:[#allocation10_spill] sm:$0xff] }
 0x22d   :  { %v1383_v26 = vadd.f32 %v1382_v24, %v8057_v34  ;;  %v2022_v45 = vpop.f32.mrb[146].mxu1  ;;  %4392 = vmatprep.mubr.f32.mxu0 %v6669_v8  ;;  %v2570_v8 = vld [vmem:[#allocation2 + $0x271] sm:$0xff]  ;;  %v8061_v24 = vld [vmem:[#allocation7_spill] sm:$0xff] }
 0x22e   :  { %v6963_v44 = vadd.f32 %v2022_v45, %v6875_v22  ;;  %v2024_v9 = vpop.f32.mrb[147].mxu1  ;;  %2978 = vmatmul.mubr.f32.gmra.mrb[252].mxu1 %v2504_v28  ;;  %v6966_v6 = vadd.f32 %v8058_v16, %v1388_v7  ;;  %v8064_v16 = vld [vmem:[#allocation39_spill] sm:$0xff] }
 0x22f   :  { %v4111_v13 = vpop.f32.mrb[132].mxu0  ;;  %2982 = vmatprep.mubr.f32.mxu1 %v2569_v47  ;;  %v6969_v37 = vadd.f32 %v8059_v31, %v1383_v26  ;;  %v8063_v47 = vld [vmem:[#allocation41_spill] sm:$0xff] }
 0x230   :  { %v1398_v5 = vadd.f32 %v4111_v13, %v8060_v15  ;;  %v1392_v50 = vpop.f32.mrb[133].mxu0  ;;  %4393 = vmatmul.mubr.f32.gmra.mrb[238].mxu0 %v6678_v60  ;;  %v2506_v9 = vld [vmem:[#allocation2 + $0x270] sm:$0xff]  ;;  %v8065_v60 = vld [vmem:[#allocation16_spill] sm:$0xff] }
 0x231   :  { %v1393_v22 = vadd.f32 %v1392_v50, %v8061_v24  ;;  %v2027_v34 = vpop.f32.mrb[148].mxu1  ;;  %4395 = vmatprep.mubr.f32.mxu0 %v6680_v58  ;;  %v2571_v58 = vld [vmem:[#allocation2 + $0x279] sm:$0xff]  ;;  %v8066_v50 = vld [vmem:[#allocation13_spill] sm:$0xff] }
 0x232   :  { %v6976_v7 = vadd.f32 %v2027_v34, %v6885_v61  ;;  %v2029_v28 = vpop.f32.mrb[149].mxu1  ;;  %2983 = vmatmul.mubr.f32.gmra.mrb[254].mxu1 %v2505_v39  ;;  %v6979_v45 = vadd.f32 %v8063_v47, %v1398_v5  ;;  %v8068_v34 = vld [vmem:[#allocation45_spill] sm:$0xff]  ;;  %v2507_v47 = vld [vmem:[#allocation2 + $0x278] sm:$0xff] }
 0x233   :  { %v4114_v26 = vpop.f32.mrb[134].mxu0  ;;  %2987 = vmatprep.mubr.f32.mxu1 %v2570_v8  ;;  %v6982_v13 = vadd.f32 %v8064_v16, %v1393_v22  ;;  %v2618_v8 = vld [vmem:[#allocation2 + $0x182] sm:$0xff]  ;;  %v8070_v16 = vld [vmem:[#allocation21_spill] sm:$0xff] }
 0x234   :  { %8062 = vst [vmem:[#allocation4_spill] sm:$0xff] %v6976_v7  ;;  %v1408_v31 = vadd.f32 %v4114_v26, %v8065_v60  ;;  %v1402_v15 = vpop.f32.mrb[135].mxu0  ;;  %4396 = vmatmul.mubr.f32.gmra.mrb[240].mxu0 %v6687_v38  ;;  %v8069_v26 = vld [vmem:[#allocation43_spill] sm:$0xff] }
 0x235   :  { %v1403_v61 = vadd.f32 %v1402_v15, %v8066_v50  ;;  %v2032_v24 = vpop.f32.mrb[150].mxu1  ;;  %4398 = vmatprep.mubr.f32.mxu0 %v6692_v4  ;;  %v2572_v4 = vld [vmem:[#allocation2 + $0x289] sm:$0xff]  ;;  %v8075_v7 = vld [vmem:[#allocation27_spill] sm:$0xff] }
 0x236   :  { %v6989_v39 = vadd.f32 %v2032_v24, %v6895_v53  ;;  %v2034_v5 = vpop.f32.mrb[151].mxu1  ;;  %2988 = vmatmul.mubr.f32.gmra.mrb[0].mxu1 %v2506_v9  ;;  %v6992_v22 = vadd.f32 %v8068_v34, %v1408_v31  ;;  %v8071_v53 = vld [vmem:[#allocation19_spill] sm:$0xff]  ;;  %v2619_v9 = vld [vmem:[#allocation2 + $0x18a] sm:$0xff] }
 0x237   :  { %v4117_v28 = vpop.f32.mrb[136].mxu0  ;;  %2992 = vmatprep.mubr.f32.mxu1 %v2571_v58  ;;  %v6995_v38 = vadd.f32 %v8069_v26, %v1403_v61  ;;  %v2620_v58 = vld [vmem:[#allocation2 + $0x19a] sm:$0xff]  ;;  %v8073_v34 = vld [vmem:[#allocation49_spill] sm:$0xff] }
 0x238   :  { %8067 = vst [vmem:[#allocation3_spill] sm:$0xff] %v6989_v39  ;;  %v1418_v60 = vadd.f32 %v4117_v28, %v8070_v16  ;;  %v1412_v15 = vpop.f32.mrb[137].mxu0  ;;  %4399 = vmatmul.mubr.f32.gmra.mrb[242].mxu0 %v6699_v20  ;;  %v2508_v28 = vld [vmem:[#allocation2 + $0x288] sm:$0xff]  ;;  %v8074_v16 = vld [vmem:[#allocation47_spill] sm:$0xff] }
 0x239   :  { %v1413_v50 = vadd.f32 %v1412_v15, %v8071_v53  ;;  %v2037_v24 = vpop.f32.mrb[152].mxu1  ;;  %4401 = vmatprep.mubr.f32.mxu0 %v2618_v8  ;;  %v2573_v8 = vld [vmem:[#allocation2 + $0x291] sm:$0xff]  ;;  %v8076_v39 = vld [vmem:[#allocation24_spill] sm:$0xff] }
 0x23a   :  { %v7001_v31 = vadd.f32 %v2037_v24, %v6901_v11  ;;  %v2039_v5 = vpop.f32.mrb[153].mxu1  ;;  %2993 = vmatmul.mubr.f32.gmra.mrb[2].mxu1 %v2507_v47  ;;  %v7004_v61 = vadd.f32 %v8073_v34, %v1418_v60  ;;  %v2621_v47 = vld [vmem:[#allocation2 + $0x1a2] sm:$0xff]  ;;  %v2509_v34 = vld [vmem:[#allocation2 + $0x290] sm:$0xff] }
 0x23b   :  { %v4120_v26 = vpop.f32.mrb[138].mxu0  ;;  %2997 = vmatprep.mubr.f32.mxu1 %v2572_v4  ;;  %v7007_v20 = vadd.f32 %v8074_v16, %v1413_v50 }
 0x23c   :  { %8072 = vst [vmem:[#allocation33_spill] sm:$0xff] %v7001_v31  ;;  %v1428_v15 = vadd.f32 %v4120_v26, %v8075_v7  ;;  %v1422_v53 = vpop.f32.mrb[139].mxu0  ;;  %4402 = vmatmul.mubr.f32.gmra.mrb[244].mxu0 %v2619_v9  ;;  %v8077_v7 = vld [vmem:[#allocation51_spill] sm:$0xff]  ;;  %v8078_v9 = vld [vmem:[#allocation32_spill] sm:$0xff] }
 0x23d   :  { %v1423_v11 = vadd.f32 %v1422_v53, %v8076_v39  ;;  %v2042_v24 = vpop.f32.mrb[154].mxu1  ;;  %4404 = vmatprep.mubr.f32.mxu0 %v2620_v58  ;;  %v2574_v58 = vld [vmem:[#allocation2 + $0x2a1] sm:$0xff]  ;;  %v8079_v53 = vld [vmem:[#allocation30_spill] sm:$0xff] }
 0x23e   :  { %v7012_v5 = vadd.f32 %v2042_v24, %v6907_v3  ;;  %v2044_v60 = vpop.f32.mrb[155].mxu1  ;;  %2998 = vmatmul.mubr.f32.gmra.mrb[4].mxu1 %v2508_v28  ;;  %v7015_v4 = vadd.f32 %v6558_v0, %v1428_v15 }
 0x23f   :  { %v4123_v50 = vpop.f32.mrb[140].mxu0  ;;  %3002 = vmatprep.mubr.f32.mxu1 %v2573_v8  ;;  %v7018_v26 = vadd.f32 %v8077_v7, %v1423_v11  ;;  %v2510_v11 = vld [vmem:[#allocation2 + $0x2a0] sm:$0xff]  ;;  %v8081_v7 = vld [vmem:[#allocation34_spill] sm:$0xff] }
 0x240   :  { %v1438_v16 = vadd.f32 %v4123_v50, %v8078_v9  ;;  %v1432_v39 = vpop.f32.mrb[141].mxu0  ;;  %4405 = vmatmul.mubr.f32.gmra.mrb[246].mxu0 %v2621_v47  ;;  %v8080_v47 = vld [vmem:[#allocation36_spill] sm:$0xff] }
 0x241   :  { %v1433_v31 = vadd.f32 %v1432_v39, %v8079_v53  ;;  %v2047_v3 = vpop.f32.mrb[156].mxu1  ;;  %4407 = vmatprep.mubr.f32.mxu0 %v6717_v19  ;;  %v2575_v19 = vld [vmem:[#allocation2 + $0x2a9] sm:$0xff] }
 0x242   :  { %v7024_v28 = vadd.f32 %v2047_v3, %v6913_v1  ;;  %v2049_v0 = vpop.f32.mrb[157].mxu1  ;;  %3003 = vmatmul.mubr.f32.gmra.mrb[6].mxu1 %v2509_v34  ;;  %v7027_v15 = vadd.f32 %v6585_v12, %v1438_v16  ;;  %v8083_v3 = vld [vmem:[#allocation38_spill] sm:$0xff] }
 0x243   :  { %v4126_v8 = vpop.f32.mrb[142].mxu0  ;;  %3007 = vmatprep.mubr.f32.mxu1 %v2574_v58  ;;  %v7030_v24 = vadd.f32 %v6572_v41, %v1433_v31  ;;  %v2511_v31 = vld [vmem:[#allocation2 + $0x2a8] sm:$0xff] }
 0x244   :  { %v1448_v60 = vadd.f32 %v4126_v8, %v8080_v47  ;;  %v1442_v50 = vpop.f32.mrb[143].mxu0  ;;  %4408 = vmatmul.mubr.f32.gmra.mrb[248].mxu0 %v6723_v25  ;;  %v8082_v25 = vld [vmem:[#allocation40_spill] sm:$0xff]  ;;  %v2512_v47 = vld [vmem:[#allocation2 + $0x2b8] sm:$0xff] }
 0x245   :  { %v1443_v1 = vadd.f32 %v1442_v50, %v8081_v7  ;;  %v2052_v9 = vpop.f32.mrb[158].mxu1  ;;  %4410 = vmatprep.mubr.f32.mxu0 %v6728_v57  ;;  %v2576_v57 = vld [vmem:[#allocation2 + $0x2b9] sm:$0xff] }
 0x246   :  { %v7037_v12 = vadd.f32 %v2052_v9, %v6919_v21  ;;  %v2054_v34 = vpop.f32.mrb[159].mxu1  ;;  %3008 = vmatmul.mubr.f32.gmra.mrb[8].mxu1 %v2510_v11  ;;  %v7040_v16 = vadd.f32 %v6611_v33, %v1448_v60  ;;  %v8085_v7 = vld [vmem:[#allocation42_spill] sm:$0xff] }
 0x247   :  { %v4129_v41 = vpop.f32.mrb[144].mxu0  ;;  %3012 = vmatprep.mubr.f32.mxu1 %v2575_v19  ;;  %v7043_v39 = vadd.f32 %v6598_v48, %v1443_v1 }
 0x248   :  { %v1458_v58 = vadd.f32 %v4129_v41, %v8082_v25  ;;  %v1452_v53 = vpop.f32.mrb[145].mxu0  ;;  %4411 = vmatmul.mubr.f32.gmra.mrb[250].mxu0 %v6735_v36  ;;  %v8084_v36 = vld [vmem:[#allocation44_spill] sm:$0xff]  ;;  %v2513_v41 = vld [vmem:[#allocation2 + $0x2c0] sm:$0xff] }
 0x249   :  { %v1453_v21 = vadd.f32 %v1452_v53, %v8083_v3  ;;  %v2057_v0 = vpop.f32.mrb[160].mxu1  ;;  %4413 = vmatprep.mubr.f32.mxu0 %v6740_v18  ;;  %v2577_v18 = vld [vmem:[#allocation2 + $0x2c1] sm:$0xff]  ;;  %v8087_v53 = vld [vmem:[#allocation46_spill] sm:$0xff] }
 0x24a   :  { %v7050_v33 = vadd.f32 %v2057_v0, %v6925_v10  ;;  %v2059_v8 = vpop.f32.mrb[161].mxu1  ;;  %3013 = vmatmul.mubr.f32.gmra.mrb[10].mxu1 %v2511_v31  ;;  %v7053_v11 = vadd.f32 %v6631_v30, %v1458_v58  ;;  %v2514_v0 = vld [vmem:[#allocation2 + $0x2d0] sm:$0xff] }
 0x24b   :  { %v4132_v48 = vpop.f32.mrb[146].mxu0  ;;  %3017 = vmatprep.mubr.f32.mxu1 %v2576_v57  ;;  %v7056_v60 = vadd.f32 %v6624_v23, %v1453_v21 }
 0x24c   :  { %v1468_v50 = vadd.f32 %v4132_v48, %v8084_v36  ;;  %v1462_v19 = vpop.f32.mrb[147].mxu0  ;;  %4414 = vmatmul.mubr.f32.gmra.mrb[252].mxu0 %v6747_v17  ;;  %v8086_v17 = vld [vmem:[#allocation48_spill] sm:$0xff] }
 0x24d   :  { %v1463_v10 = vadd.f32 %v1462_v19, %v8085_v7  ;;  %v2062_v1 = vpop.f32.mrb[162].mxu1  ;;  %4416 = vmatprep.mubr.f32.mxu0 %v6752_v56  ;;  %v2578_v56 = vld [vmem:[#allocation2 + $0x2d1] sm:$0xff] }
 0x24e   :  { %v7063_v30 = vadd.f32 %v2062_v1, %v6931_v29  ;;  %v2064_v9 = vpop.f32.mrb[163].mxu1  ;;  %3018 = vmatmul.mubr.f32.gmra.mrb[12].mxu1 %v2512_v47  ;;  %v7066_v34 = vadd.f32 %v6645_v35, %v1468_v50  ;;  %v8088_v47 = vld [vmem:[#allocation50_spill] sm:$0xff] }
 0x24f   :  { %v4135_v23 = vpop.f32.mrb[148].mxu0  ;;  %3022 = vmatprep.mubr.f32.mxu1 %v2577_v18  ;;  %v7069_v31 = vadd.f32 %v6638_v63, %v1463_v10 }
 0x250   :  { %v1478_v25 = vadd.f32 %v4135_v23, %v8086_v17  ;;  %v1472_v58 = vpop.f32.mrb[149].mxu0  ;;  %4417 = vmatmul.mubr.f32.gmra.mrb[254].mxu0 %v6759_v27 }
 0x251   :  { %v1473_v29 = vadd.f32 %v1472_v58, %v8087_v53  ;;  %v2067_v57 = vpop.f32.mrb[164].mxu1  ;;  %4419 = vmatprep.mubr.f32.mxu0 %v6764_v59  ;;  %v2579_v59 = vld [vmem:[#allocation2 + $0x2d9] sm:$0xff]  ;;  %v2517_v53 = vld [vmem:[#allocation2 + $0x2f0] sm:$0xff] }
 0x252   :  { %v7076_v35 = vadd.f32 %v2067_v57, %v6937_v14  ;;  %v2069_v3 = vpop.f32.mrb[165].mxu1  ;;  %3023 = vmatmul.mubr.f32.gmra.mrb[14].mxu1 %v2513_v41  ;;  %v7079_v21 = vadd.f32 %v6659_v46, %v1478_v25  ;;  %v8090_v41 = vld [vmem:[#allocation63_spill] sm:$0xff]  ;;  %v8091_v25 = vld [vmem:[#allocation65_spill] sm:$0xff]  ;;  %v8092_v57 = vld [vmem:[#allocation66_spill] sm:$0xff] }
 0x253   :  { %v4138_v63 = vpop.f32.mrb[150].mxu0  ;;  %3027 = vmatprep.mubr.f32.mxu1 %v2578_v56  ;;  %v7082_v8 = vadd.f32 %v6652_v54, %v1473_v29  ;;  %v2582_v3 = vld [vmem:[#allocation2 + $0x301] sm:$0xff] }
 0x254   :  { %v1488_v27 = vadd.f32 %v4138_v63, %v6550_v32  ;;  %v1482_v48 = vpop.f32.mrb[151].mxu0  ;;  %4420 = vmatmul.mubr.f32.gmra.mrb[0].mxu0 %v6771_v52  ;;  %v2515_v32 = vld [vmem:[#allocation2 + $0x2d8] sm:$0xff] }
 0x255   :  { %v1483_v14 = vadd.f32 %v1482_v48, %v8088_v47  ;;  %v2072_v36 = vpop.f32.mrb[166].mxu1  ;;  %4422 = vmatprep.mubr.f32.mxu0 %v6776_v2  ;;  %v2580_v2 = vld [vmem:[#allocation2 + $0x2e9] sm:$0xff] }
 0x256   :  { %v7089_v46 = vadd.f32 %v2072_v36, %v6943_v62  ;;  %v2074_v50 = vpop.f32.mrb[167].mxu1  ;;  %3028 = vmatmul.mubr.f32.gmra.mrb[16].mxu1 %v2514_v0  ;;  %v7092_v19 = vadd.f32 %v6675_v51, %v1488_v27  ;;  %v8089_v51 = vld [vmem:[#allocation62_spill] sm:$0xff]  ;;  %v8093_v0 = vld [vmem:[#allocation68_spill] sm:$0xff] }
 0x257   :  { %v4233_v54 = vpop.f32.mrb[152].mxu0  ;;  %3032 = vmatprep.mubr.f32.mxu1 %v2579_v59  ;;  %v7095_v18 = vadd.f32 %v6666_v43, %v1483_v14  ;;  %v2516_v43 = vld [vmem:[#allocation2 + $0x2e8] sm:$0xff]  ;;  %v2518_v59 = vld [vmem:[#allocation2 + $0x300] sm:$0xff]  ;;  %v8094_v14 = vld [vmem:[#allocation9_spill] sm:$0xff] }
 0x258   :  { %v7098_v52 = vadd.f32 %v4233_v54, %v6954_v49  ;;  %v2142_v7 = vpop.f32.mrb[153].mxu0  ;;  %4423 = vmatmul.mubr.f32.gmra.mrb[2].mxu0 %v6783_v40  ;;  %v2581_v40 = vld [vmem:[#allocation2 + $0x2f1] sm:$0xff]  ;;  %v2583_v36 = vld [vmem:[#allocation2 + $0x309] sm:$0xff] }
 0x259   :  { %v7102_v62 = vadd.f32 %v2142_v7, %v6957_v55  ;;  %v7104_v10 = vpop.f32.mrb[168].mxu1  ;;  %4425 = vmatprep.mubr.f32.mxu0 %v8089_v51  ;;  %v8095_v54 = vld [vmem:[#allocation70_spill] sm:$0xff] }
 0x25a   :  { %v2771_v1 = vpop.f32.mrb[169].mxu1  ;;  %3033 = vmatmul.mubr.f32.gmra.mrb[18].mxu1 %v2515_v32 }
 0x25b   :  { %v4236_v9 = vpop.f32.mrb[154].mxu0  ;;  %3037 = vmatprep.mubr.f32.mxu1 %v2580_v2  ;;  %v2519_v2 = vld [vmem:[#allocation2 + $0x308] sm:$0xff] }
 0x25c   :  { %v7108_v23 = vadd.f32 %v4236_v9, %v6966_v6  ;;  %v2152_v49 = vpop.f32.mrb[155].mxu0  ;;  %4426 = vmatmul.mubr.f32.gmra.mrb[4].mxu0 %v8090_v41  ;;  %v8096_v1 = vld [vmem:[#allocation8_spill] sm:$0xff]  ;;  %v2584_v9 = vld [vmem:[#allocation2 + $0x319] sm:$0xff] }
 0x25d   :  { %v7112_v17 = vadd.f32 %v2152_v49, %v6969_v37  ;;  %v7114_v55 = vpop.f32.mrb[170].mxu1  ;;  %4428 = vmatprep.mubr.f32.mxu0 %v8091_v25  ;;  %v8097_v49 = vld [vmem:[#allocation72_spill] sm:$0xff]  ;;  %v2520_v25 = vld [vmem:[#allocation2 + $0x318] sm:$0xff] }
 0x25e   :  { %v2776_v58 = vpop.f32.mrb[171].mxu1  ;;  %3038 = vmatmul.mubr.f32.gmra.mrb[20].mxu1 %v2516_v43 }
 0x25f   :  { %v4239_v56 = vpop.f32.mrb[156].mxu0  ;;  %3042 = vmatprep.mubr.f32.mxu1 %v2581_v40 }
 0x260   :  { %v7118_v29 = vadd.f32 %v4239_v56, %v6979_v45  ;;  %v2162_v6 = vpop.f32.mrb[157].mxu0  ;;  %4429 = vmatmul.mubr.f32.gmra.mrb[6].mxu0 %v8092_v57  ;;  %v8098_v56 = vld [vmem:[#allocation12_spill] sm:$0xff]  ;;  %v8099_v57 = vld [vmem:[#allocation74_spill] sm:$0xff] }
 0x261   :  { %v7122_v63 = vadd.f32 %v2162_v6, %v6982_v13  ;;  %v7124_v37 = vpop.f32.mrb[172].mxu1  ;;  %4431 = vmatprep.mubr.f32.mxu0 %v8093_v0 }
 0x262   :  { %v2781_v27 = vpop.f32.mrb[173].mxu1  ;;  %3043 = vmatmul.mubr.f32.gmra.mrb[22].mxu1 %v2517_v53  ;;  %v2585_v53 = vld [vmem:[#allocation2 + $0x321] sm:$0xff] }
 0x263   :  { %v4242_v48 = vpop.f32.mrb[158].mxu0  ;;  %3047 = vmatprep.mubr.f32.mxu1 %v2582_v3  ;;  %v2521_v27 = vld [vmem:[#allocation2 + $0x320] sm:$0xff] }
 0x264   :  { %v7128_v47 = vadd.f32 %v4242_v48, %v6992_v22  ;;  %v2172_v45 = vpop.f32.mrb[159].mxu0  ;;  %4432 = vmatmul.mubr.f32.gmra.mrb[8].mxu0 %v8094_v14 }
 0x265   :  { %v7132_v50 = vadd.f32 %v2172_v45, %v6995_v38  ;;  %v7134_v13 = vpop.f32.mrb[174].mxu1  ;;  %4434 = vmatprep.mubr.f32.mxu0 %v8095_v54  ;;  %v2586_v45 = vld [vmem:[#allocation2 + $0x331] sm:$0xff] }
 0x266   :  { %v2786_v32 = vpop.f32.mrb[175].mxu1  ;;  %3048 = vmatmul.mubr.f32.gmra.mrb[24].mxu1 %v2518_v59  ;;  %v8100_v59 = vld [vmem:[#allocation11_spill] sm:$0xff] }
 0x267   :  { %v4245_v7 = vpop.f32.mrb[160].mxu0  ;;  %3052 = vmatprep.mubr.f32.mxu1 %v2583_v36  ;;  %v8101_v36 = vld [vmem:[#allocation76_spill] sm:$0xff] }
 0x268   :  { %v7138_v51 = vadd.f32 %v4245_v7, %v7004_v61  ;;  %v2182_v22 = vpop.f32.mrb[161].mxu0  ;;  %4435 = vmatmul.mubr.f32.gmra.mrb[10].mxu0 %v8096_v1  ;;  %v2522_v7 = vld [vmem:[#allocation2 + $0x330] sm:$0xff]  ;;  %v2587_v1 = vld [vmem:[#allocation2 + $0x339] sm:$0xff] }
 0x269   :  { %v7142_v43 = vadd.f32 %v2182_v22, %v7007_v20  ;;  %v7144_v38 = vpop.f32.mrb[176].mxu1  ;;  %4437 = vmatprep.mubr.f32.mxu0 %v8097_v49  ;;  %v8102_v22 = vld [vmem:[#allocation15_spill] sm:$0xff]  ;;  %v8103_v49 = vld [vmem:[#allocation78_spill] sm:$0xff] }
 0x26a   :  { %v2791_v41 = vpop.f32.mrb[177].mxu1  ;;  %3053 = vmatmul.mubr.f32.gmra.mrb[26].mxu1 %v2519_v2 }
 0x26b   :  { %v4248_v40 = vpop.f32.mrb[162].mxu0  ;;  %3057 = vmatprep.mubr.f32.mxu1 %v2584_v9 }
 0x26c   :  { %v7148_v58 = vadd.f32 %v4248_v40, %v7015_v4  ;;  %v2192_v61 = vpop.f32.mrb[163].mxu0  ;;  %4438 = vmatmul.mubr.f32.gmra.mrb[12].mxu0 %v8098_v56  ;;  %v2650_v40 = vld [vmem:[#allocation2 + $0x332] sm:$0xff] }
 0x26d   :  { %v7152_v6 = vadd.f32 %v2192_v61, %v7018_v26  ;;  %v7154_v20 = vpop.f32.mrb[178].mxu1  ;;  %4440 = vmatprep.mubr.f32.mxu0 %v8099_v57  ;;  %v2523_v61 = vld [vmem:[#allocation2 + $0x338] sm:$0xff]  ;;  %v2588_v57 = vld [vmem:[#allocation2 + $0x349] sm:$0xff] }
 0x26e   :  { %v2796_v3 = vpop.f32.mrb[179].mxu1  ;;  %3058 = vmatmul.mubr.f32.gmra.mrb[28].mxu1 %v2520_v25 }
 0x26f   :  { %v4251_v0 = vpop.f32.mrb[164].mxu0  ;;  %3062 = vmatprep.mubr.f32.mxu1 %v2585_v53  ;;  %v8104_v53 = vld [vmem:[#allocation14_spill] sm:$0xff] }
 0x270   :  { %v7158_v48 = vadd.f32 %v4251_v0, %v7027_v15  ;;  %v2202_v4 = vpop.f32.mrb[165].mxu0  ;;  %4441 = vmatmul.mubr.f32.gmra.mrb[14].mxu0 %v8100_v59  ;;  %v2651_v0 = vld [vmem:[#allocation2 + $0x33a] sm:$0xff] }
 0x271   :  { %v7162_v14 = vadd.f32 %v2202_v4, %v7030_v24  ;;  %v7164_v26 = vpop.f32.mrb[180].mxu1  ;;  %4443 = vmatprep.mubr.f32.mxu0 %v8101_v36  ;;  %v2652_v4 = vld [vmem:[#allocation2 + $0x34a] sm:$0xff] }
 0x272   :  { %v2801_v54 = vpop.f32.mrb[181].mxu1  ;;  %3063 = vmatmul.mubr.f32.gmra.mrb[30].mxu1 %v2521_v27 }
 0x273   :  { %v4254_v32 = vpop.f32.mrb[166].mxu0  ;;  %3067 = vmatprep.mubr.f32.mxu1 %v2586_v45  ;;  %v2524_v45 = vld [vmem:[#allocation2 + $0x348] sm:$0xff]  ;;  %v2589_v54 = vld [vmem:[#allocation2 + $0x351] sm:$0xff] }
 0x274   :  { %v7168_v2 = vadd.f32 %v4254_v32, %v7040_v16  ;;  %v2212_v15 = vpop.f32.mrb[167].mxu0  ;;  %4444 = vmatmul.mubr.f32.gmra.mrb[16].mxu0 %v8102_v22 }
 0x275   :  { %v7172_v9 = vadd.f32 %v2212_v15, %v7043_v39  ;;  %v7174_v24 = vpop.f32.mrb[182].mxu1  ;;  %4446 = vmatprep.mubr.f32.mxu0 %v8103_v49 }
 0x276   :  { %v2806_v41 = vpop.f32.mrb[183].mxu1  ;;  %3068 = vmatmul.mubr.f32.gmra.mrb[32].mxu1 %v2522_v7  ;;  %v2653_v7 = vld [vmem:[#allocation2 + $0x352] sm:$0xff] }
 0x277   :  { %v4257_v25 = vpop.f32.mrb[168].mxu0  ;;  %3072 = vmatprep.mubr.f32.mxu1 %v2587_v1 }
 0x278   :  { %v7178_v16 = vadd.f32 %v4257_v25, %v7053_v11  ;;  %v2222_v56 = vpop.f32.mrb[169].mxu0  ;;  %4447 = vmatmul.mubr.f32.gmra.mrb[18].mxu0 %v8104_v53 }
 0x279   :  { %v7182_v39 = vadd.f32 %v2222_v56, %v7056_v60  ;;  %v7184_v3 = vpop.f32.mrb[184].mxu1  ;;  %4449 = vmatprep.mubr.f32.mxu0 %v2650_v40  ;;  %v8108_v40 = vld [vmem:[#allocation80_spill] sm:$0xff] }
 0x27a   :  { %v2811_v27 = vpop.f32.mrb[185].mxu1  ;;  %3073 = vmatmul.mubr.f32.gmra.mrb[34].mxu1 %v2523_v61 }
 0x27b   :  { %v4260_v59 = vpop.f32.mrb[170].mxu0  ;;  %3077 = vmatprep.mubr.f32.mxu1 %v2588_v57  ;;  %v8111_v27 = vld [vmem:[#allocation53_spill] sm:$0xff] }
 0x27c   :  { %v7187_v11 = vadd.f32 %v4260_v59, %v7066_v34  ;;  %v2232_v36 = vpop.f32.mrb[171].mxu0  ;;  %4450 = vmatmul.mubr.f32.gmra.mrb[20].mxu0 %v2651_v0  ;;  %v8113_v59 = vld [vmem:[#allocation52_spill] sm:$0xff] }
 0x27d   :  { %v7190_v32 = vadd.f32 %v2232_v36, %v7069_v31  ;;  %v7192_v60 = vpop.f32.mrb[186].mxu1  ;;  %4452 = vmatprep.mubr.f32.mxu0 %v2652_v4 }
 0x27e   :  { %v2816_v15 = vpop.f32.mrb[187].mxu1  ;;  %3078 = vmatmul.mubr.f32.gmra.mrb[36].mxu1 %v2524_v45 }
 0x27f   :  { %8105 = vst [vmem:[#allocation31_spill] sm:$0xff] %v7190_v32  ;;  %v4263_v22 = vpop.f32.mrb[172].mxu0  ;;  %3082 = vmatprep.mubr.f32.mxu1 %v2589_v54 }
 0x280   :  { %v7195_v1 = vadd.f32 %v4263_v22, %v7079_v21  ;;  %v2242_v49 = vpop.f32.mrb[173].mxu0  ;;  %4453 = vmatmul.mubr.f32.gmra.mrb[22].mxu0 %v2653_v7  ;;  %v8115_v7 = vld [vmem:[#allocation55_spill] sm:$0xff]  ;;  %v8117_v22 = vld [vmem:[#allocation54_spill] sm:$0xff] }
 0x281   :  { %v7198_v34 = vadd.f32 %v2242_v49, %v7082_v8  ;;  %v7200_v41 = vpop.f32.mrb[188].mxu1 }
 0x282   :  { %8106 = vst [vmem:[#allocation6_spill] sm:$0xff] %v7195_v1  ;;  %v2821_v31 = vpop.f32.mrb[189].mxu1  ;;  %3083 = vmatmul.mubr.f32.gmra.mrb[38].mxu1 %v8108_v40 }
 0x283   :  { %8107 = vst [vmem:[#allocation5_spill] sm:$0xff] %v7198_v34  ;;  %v4266_v25 = vpop.f32.mrb[174].mxu0 }
 0x284   :  { %v7204_v61 = vadd.f32 %v4266_v25, %v7092_v19  ;;  %v2252_v56 = vpop.f32.mrb[175].mxu0 }
 0x285   :  { %v7207_v53 = vadd.f32 %v2252_v56, %v7095_v18  ;;  %v7209_v21 = vpop.f32.mrb[190].mxu1  ;;  %v8119_v56 = vld [vmem:[#allocation57_spill] sm:$0xff] }
 0x286   :  { %8109 = vst [vmem:[#allocation37_spill] sm:$0xff] %v7204_v61  ;;  %v2826_v57 = vpop.f32.mrb[191].mxu1 }
 0x287   :  { %8110 = vst [vmem:[#allocation35_spill] sm:$0xff] %v7207_v53  ;;  %v4269_v0 = vpop.f32.mrb[176].mxu0 }
 0x288   :  { %v7212_v8 = vadd.f32 %v4269_v0, %v8111_v27  ;;  %v2262_v4 = vpop.f32.mrb[177].mxu0  ;;  %v8121_v27 = vld [vmem:[#allocation56_spill] sm:$0xff] }
 0x289   :  { %v7215_v45 = vadd.f32 %v2262_v4, %v8113_v59  ;;  %v7217_v36 = vpop.f32.mrb[192].mxu1 }
 0x28a   :  { %8112 = vst [vmem:[#allocation10_spill] sm:$0xff] %v7212_v8  ;;  %v2831_v54 = vpop.f32.mrb[193].mxu1 }
 0x28b   :  { %8114 = vst [vmem:[#allocation7_spill] sm:$0xff] %v7215_v45  ;;  %v4272_v19 = vpop.f32.mrb[178].mxu0 }
 0x28c   :  { %v7220_v15 = vadd.f32 %v4272_v19, %v8115_v7  ;;  %v2272_v18 = vpop.f32.mrb[179].mxu0  ;;  %v8123_v7 = vld [vmem:[#allocation59_spill] sm:$0xff] }
 0x28d   :  { %v7223_v49 = vadd.f32 %v2272_v18, %v8117_v22  ;;  %v7225_v31 = vpop.f32.mrb[194].mxu1  ;;  %v8125_v22 = vld [vmem:[#allocation58_spill] sm:$0xff] }
 0x28e   :  { %8116 = vst [vmem:[#allocation41_spill] sm:$0xff] %v7220_v15  ;;  %v2836_v40 = vpop.f32.mrb[195].mxu1 }
 0x28f   :  { %8118 = vst [vmem:[#allocation39_spill] sm:$0xff] %v7223_v49  ;;  %v4275_v25 = vpop.f32.mrb[180].mxu0 }
 0x290   :  { %v7228_v57 = vadd.f32 %v4275_v25, %v8119_v56  ;;  %v2282_v0 = vpop.f32.mrb[181].mxu0  ;;  %v8127_v56 = vld [vmem:[#allocation61_spill] sm:$0xff] }
 0x291   :  { %v7231_v4 = vadd.f32 %v2282_v0, %v8121_v27  ;;  %v7233_v59 = vpop.f32.mrb[196].mxu1  ;;  %v8129_v27 = vld [vmem:[#allocation60_spill] sm:$0xff] }
 0x292   :  { %8120 = vst [vmem:[#allocation16_spill] sm:$0xff] %v7228_v57  ;;  %v2841_v54 = vpop.f32.mrb[197].mxu1 }
 0x293   :  { %8122 = vst [vmem:[#allocation13_spill] sm:$0xff] %v7231_v4  ;;  %v4278_v19 = vpop.f32.mrb[182].mxu0 }
 0x294   :  { %v7236_v15 = vadd.f32 %v4278_v19, %v8123_v7  ;;  %v2292_v18 = vpop.f32.mrb[183].mxu0  ;;  %v8131_v7 = vld [vmem:[#allocation67_spill] sm:$0xff] }
 0x295   :  { %v7239_v49 = vadd.f32 %v2292_v18, %v8125_v22  ;;  %v7241_v40 = vpop.f32.mrb[198].mxu1  ;;  %v8133_v22 = vld [vmem:[#allocation64_spill] sm:$0xff] }
 0x296   :  { %8124 = vst [vmem:[#allocation45_spill] sm:$0xff] %v7236_v15  ;;  %v2846_v45 = vpop.f32.mrb[199].mxu1 }
 0x297   :  { %8126 = vst [vmem:[#allocation43_spill] sm:$0xff] %v7239_v49  ;;  %v4281_v25 = vpop.f32.mrb[184].mxu0 }
 0x298   :  { %v7244_v57 = vadd.f32 %v4281_v25, %v8127_v56  ;;  %v2302_v0 = vpop.f32.mrb[185].mxu0  ;;  %v8135_v56 = vld [vmem:[#allocation71_spill] sm:$0xff] }
 0x299   :  { %v7247_v4 = vadd.f32 %v2302_v0, %v8129_v27  ;;  %v7249_v54 = vpop.f32.mrb[200].mxu1  ;;  %v8137_v27 = vld [vmem:[#allocation69_spill] sm:$0xff] }
 0x29a   :  { %8128 = vst [vmem:[#allocation21_spill] sm:$0xff] %v7244_v57  ;;  %v2851_v8 = vpop.f32.mrb[201].mxu1 }
 0x29b   :  { %8130 = vst [vmem:[#allocation19_spill] sm:$0xff] %v7247_v4  ;;  %v4284_v19 = vpop.f32.mrb[186].mxu0 }
 0x29c   :  { %v7252_v15 = vadd.f32 %v4284_v19, %v8131_v7  ;;  %v2312_v18 = vpop.f32.mrb[187].mxu0  ;;  %v8139_v7 = vld [vmem:[#allocation75_spill] sm:$0xff] }
 0x29d   :  { %v7255_v49 = vadd.f32 %v2312_v18, %v8133_v22  ;;  %v7257_v45 = vpop.f32.mrb[202].mxu1  ;;  %v8141_v22 = vld [vmem:[#allocation73_spill] sm:$0xff] }
 0x29e   :  { %8132 = vst [vmem:[#allocation49_spill] sm:$0xff] %v7252_v15  ;;  %v2856_v53 = vpop.f32.mrb[203].mxu1 }
 0x29f   :  { %8134 = vst [vmem:[#allocation47_spill] sm:$0xff] %v7255_v49  ;;  %v4287_v25 = vpop.f32.mrb[188].mxu0 }
 0x2a0   :  { %v7260_v57 = vadd.f32 %v4287_v25, %v8135_v56  ;;  %v2322_v0 = vpop.f32.mrb[189].mxu0  ;;  %v8143_v56 = vld [vmem:[#allocation79_spill] sm:$0xff] }
 0x2a1   :  { %v7263_v4 = vadd.f32 %v2322_v0, %v8137_v27  ;;  %v7265_v8 = vpop.f32.mrb[204].mxu1  ;;  %v8145_v27 = vld [vmem:[#allocation77_spill] sm:$0xff] }
 0x2a2   :  { %8136 = vst [vmem:[#allocation27_spill] sm:$0xff] %v7260_v57  ;;  %v2861_v61 = vpop.f32.mrb[205].mxu1 }
 0x2a3   :  { %8138 = vst [vmem:[#allocation24_spill] sm:$0xff] %v7263_v4  ;;  %v4290_v19 = vpop.f32.mrb[190].mxu0 }
 0x2a4   :  { %v7268_v15 = vadd.f32 %v4290_v19, %v8139_v7  ;;  %v2332_v18 = vpop.f32.mrb[191].mxu0  ;;  %v8148_v7 = vld [vmem:[#allocation17_spill] sm:$0xff] }
 0x2a5   :  { %v7271_v49 = vadd.f32 %v2332_v18, %v8141_v22  ;;  %v7273_v53 = vpop.f32.mrb[206].mxu1  ;;  %v8150_v22 = vld [vmem:[#allocation18_spill] sm:$0xff] }
 0x2a6   :  { %8140 = vst [vmem:[#allocation51_spill] sm:$0xff] %v7268_v15  ;;  %v2866_v34 = vpop.f32.mrb[207].mxu1 }
 0x2a7   :  { %8142 = vst [vmem:[#allocation32_spill] sm:$0xff] %v7271_v49  ;;  %v4293_v25 = vpop.f32.mrb[192].mxu0 }
 0x2a8   :  { %v7276_v57 = vadd.f32 %v4293_v25, %v8143_v56  ;;  %v2342_v0 = vpop.f32.mrb[193].mxu0  ;;  %v8153_v56 = vld [vmem:[#allocation20_spill] sm:$0xff] }
 0x2a9   :  { %v7279_v4 = vadd.f32 %v2342_v0, %v8145_v27  ;;  %v7281_v61 = vpop.f32.mrb[208].mxu1  ;;  %v8155_v27 = vld [vmem:[#allocation81_spill] sm:$0xff] }
 0x2aa   :  { %8144 = vst [vmem:[#allocation30_spill] sm:$0xff] %v7276_v57  ;;  %8147 = vst [vmem:[#allocation34_spill] sm:$0xff] %v7281_v61  ;;  %v2871_v1 = vpop.f32.mrb[209].mxu1 }
 0x2ab   :  { %8146 = vst [vmem:[#allocation36_spill] sm:$0xff] %v7279_v4  ;;  %v4296_v19 = vpop.f32.mrb[194].mxu0 }
 0x2ac   :  { %v7284_v15 = vadd.f32 %v4296_v19, %v8148_v7  ;;  %v2352_v18 = vpop.f32.mrb[195].mxu0  ;;  %v8158_v7 = vld [vmem:[#allocation22_spill] sm:$0xff] }
 0x2ad   :  { %v7287_v49 = vadd.f32 %v2352_v18, %v8150_v22  ;;  %v7289_v34 = vpop.f32.mrb[210].mxu1  ;;  %v8160_v22 = vld [vmem:[#allocation23_spill] sm:$0xff] }
 0x2ae   :  { %8149 = vst [vmem:[#allocation40_spill] sm:$0xff] %v7284_v15  ;;  %8152 = vst [vmem:[#allocation44_spill] sm:$0xff] %v7289_v34  ;;  %v2876_v32 = vpop.f32.mrb[211].mxu1 }
 0x2af   :  { %8151 = vst [vmem:[#allocation38_spill] sm:$0xff] %v7287_v49  ;;  %v4299_v25 = vpop.f32.mrb[196].mxu0 }
 0x2b0   :  { %v7292_v57 = vadd.f32 %v4299_v25, %v8153_v56  ;;  %v2362_v0 = vpop.f32.mrb[197].mxu0  ;;  %v8163_v56 = vld [vmem:[#allocation25_spill] sm:$0xff] }
 0x2b1   :  { %v7295_v4 = vadd.f32 %v2362_v0, %v8155_v27  ;;  %v7297_v1 = vpop.f32.mrb[212].mxu1  ;;  %v8165_v27 = vld [vmem:[#allocation26_spill] sm:$0xff] }
 0x2b2   :  { %8154 = vst [vmem:[#allocation42_spill] sm:$0xff] %v7292_v57  ;;  %8157 = vst [vmem:[#allocation46_spill] sm:$0xff] %v7297_v1  ;;  %v2881_v61 = vpop.f32.mrb[213].mxu1 }
 0x2b3   :  { %8156 = vst [vmem:[#allocation48_spill] sm:$0xff] %v7295_v4  ;;  %v4302_v19 = vpop.f32.mrb[198].mxu0 }
 0x2b4   :  { %v7300_v15 = vadd.f32 %v4302_v19, %v8158_v7  ;;  %v2372_v18 = vpop.f32.mrb[199].mxu0  ;;  %v8167_v7 = vld [vmem:[#allocation28_spill] sm:$0xff] }
 0x2b5   :  { %v7303_v49 = vadd.f32 %v2372_v18, %v8160_v22  ;;  %v7305_v32 = vpop.f32.mrb[214].mxu1  ;;  %v8169_v22 = vld [vmem:[#allocation29_spill] sm:$0xff] }
 0x2b6   :  { %8159 = vst [vmem:[#allocation50_spill] sm:$0xff] %v7300_v15  ;;  %8162 = vst [vmem:[#allocation63_spill] sm:$0xff] %v7305_v32  ;;  %v2886_v34 = vpop.f32.mrb[215].mxu1 }
 0x2b7   :  { %8161 = vst [vmem:[#allocation62_spill] sm:$0xff] %v7303_v49  ;;  %v4305_v25 = vpop.f32.mrb[200].mxu0 }
 0x2b8   :  { %v7308_v57 = vadd.f32 %v4305_v25, %v8163_v56  ;;  %v2382_v0 = vpop.f32.mrb[201].mxu0 }
 0x2b9   :  { %v7311_v4 = vadd.f32 %v2382_v0, %v8165_v27  ;;  %v7313_v61 = vpop.f32.mrb[216].mxu1 }
 0x2ba   :  { %8164 = vst [vmem:[#allocation65_spill] sm:$0xff] %v7308_v57  ;;  %v2891_v1 = vpop.f32.mrb[217].mxu1 }
 0x2bb   :  { %8166 = vst [vmem:[#allocation66_spill] sm:$0xff] %v7311_v4  ;;  %v4308_v19 = vpop.f32.mrb[202].mxu0 }
 0x2bc   :  { %v7316_v15 = vadd.f32 %v4308_v19, %v8167_v7  ;;  %v2392_v18 = vpop.f32.mrb[203].mxu0  ;;  %v8173_v7 = vld [vmem:[#allocation3_spill] sm:$0xff] }
 0x2bd   :  { %v7319_v49 = vadd.f32 %v2392_v18, %v8169_v22  ;;  %v7321_v34 = vpop.f32.mrb[218].mxu1  ;;  %v8174_v22 = vld [vmem:[#allocation4_spill] sm:$0xff] }
 0x2be   :  { %8168 = vst [vmem:[#allocation68_spill] sm:$0xff] %v7316_v15  ;;  %v2896_v32 = vpop.f32.mrb[219].mxu1 }
 0x2bf   :  { %8170 = vst [vmem:[#allocation9_spill] sm:$0xff] %v7319_v49  ;;  %v4311_v25 = vpop.f32.mrb[204].mxu0 }
 0x2c0   :  { %v7324_v56 = vadd.f32 %v4311_v25, %v6963_v44  ;;  %v2402_v0 = vpop.f32.mrb[205].mxu0 }
 0x2c1   :  { %v7327_v27 = vadd.f32 %v2402_v0, %v6951_v42  ;;  %v7329_v1 = vpop.f32.mrb[220].mxu1  ;;  %v8176_v0 = vld [vmem:[#allocation33_spill] sm:$0xff] }
 0x2c2   :  { %8171 = vst [vmem:[#allocation70_spill] sm:$0xff] %v7324_v56  ;;  %v2901_v4 = vpop.f32.mrb[221].mxu1 }
 0x2c3   :  { %8172 = vst [vmem:[#allocation8_spill] sm:$0xff] %v7327_v27  ;;  %v4314_v19 = vpop.f32.mrb[206].mxu0 }
 0x2c4   :  { %v7332_v15 = vadd.f32 %v4314_v19, %v8173_v7  ;;  %v2412_v18 = vpop.f32.mrb[207].mxu0 }
 0x2c5   :  { %v7335_v49 = vadd.f32 %v2412_v18, %v8174_v22  ;;  %v7337_v32 = vpop.f32.mrb[222].mxu1 }
 0x2c6   :  { %v2906_v57 = vpop.f32.mrb[223].mxu1 }
 0x2c7   :  { %8175 = vst [vmem:[#allocation72_spill] sm:$0xff] %v7335_v49  ;;  %v4317_v44 = vpop.f32.mrb[208].mxu0 }
 0x2c8   :  { %v7340_v25 = vadd.f32 %v4317_v44, %v7012_v5  ;;  %v2422_v42 = vpop.f32.mrb[209].mxu0 }
 0x2c9   :  { %v7343_v27 = vadd.f32 %v2422_v42, %v8176_v0  ;;  %v7345_v4 = vpop.f32.mrb[224].mxu1 }
 0x2ca   :  { %v2911_v56 = vpop.f32.mrb[225].mxu1 }
 0x2cb   :  { %8177 = vst [vmem:[#allocation12_spill] sm:$0xff] %v7343_v27  ;;  %v4320_v19 = vpop.f32.mrb[210].mxu0 }
 0x2cc   :  { %v7348_v7 = vadd.f32 %v4320_v19, %v7037_v12  ;;  %v2432_v18 = vpop.f32.mrb[211].mxu0 }
 0x2cd   :  { %v7351_v22 = vadd.f32 %v2432_v18, %v7024_v28  ;;  %v7353_v57 = vpop.f32.mrb[226].mxu1 }
 0x2ce   :  { %v2916_v49 = vpop.f32.mrb[227].mxu1 }
 0x2cf   :  { %8178 = vst [vmem:[#allocation74_spill] sm:$0xff] %v7351_v22  ;;  %v4323_v5 = vpop.f32.mrb[212].mxu0 }
 0x2d0   :  { %v7356_v44 = vadd.f32 %v4323_v5, %v7063_v30  ;;  %v2442_v42 = vpop.f32.mrb[213].mxu0 }
 0x2d1   :  { %v7359_v0 = vadd.f32 %v2442_v42, %v7050_v33  ;;  %v7361_v56 = vpop.f32.mrb[228].mxu1  ;;  %v3538_v33 = vld [vmem:[%s7924_s4 + $0x8] sm:$0xff] }
 0x2d2   :  { %8179 = vst [vmem:[#allocation11_spill] sm:$0xff] %v7356_v44  ;;  %v2921_v27 = vpop.f32.mrb[229].mxu1 }
 0x2d3   :  { %8180 = vst [vmem:[#allocation76_spill] sm:$0xff] %v7359_v0  ;;  %v4326_v12 = vpop.f32.mrb[214].mxu0  ;;  %v3540_v0 = vld [vmem:[%s7924_s4 + $0x18] sm:$0xff] }
 0x2d4   :  { %v7364_v19 = vadd.f32 %v4326_v12, %v7089_v46  ;;  %v2452_v28 = vpop.f32.mrb[215].mxu0 }
 0x2d5   :  { %v7367_v18 = vadd.f32 %v2452_v28, %v7076_v35  ;;  %v7369_v49 = vpop.f32.mrb[230].mxu1  ;;  %v3537_v35 = vld [vmem:[%s7924_s4] sm:$0xff] }
 0x2d6   :  { %8181 = vst [vmem:[#allocation15_spill] sm:$0xff] %v7364_v19  ;;  %v2926_v22 = vpop.f32.mrb[231].mxu1 }
 0x2d7   :  { %8182 = vst [vmem:[#allocation78_spill] sm:$0xff] %v7367_v18  ;;  %v4361_v30 = vpop.f32.mrb[216].mxu0 }
 0x2d8   :  { %v3160_v5 = vadd.f32 %v4361_v30, %v7114_v55  ;;  %v3154_v44 = vpop.f32.mrb[217].mxu0 }
 0x2d9   :  { %v7375_v27 = vpop.f32.mrb[232].mxu1  ;;  %v3155_v46 = vadd.f32 %v3154_v44, %v7104_v10 }
 0x2da   :  { %v3474_v42 = vadd.f32 %v3160_v5, %v7098_v52  ;;  %v2931_v12 = vpop.f32.mrb[233].mxu1 }
 0x2db   :  { %v3473_v22 = vadd.f32 %v3155_v46, %v7102_v62  ;;  %v4364_v28 = vpop.f32.mrb[218].mxu0 }
 0x2dc   :  { %v3602_v55 = vadd.f32 %v3538_v33, %v3474_v42  ;;  %v3170_v30 = vadd.f32 %v4364_v28, %v7134_v13  ;;  %v3164_v19 = vpop.f32.mrb[219].mxu0  ;;  %v3539_v13 = vld [vmem:[%s7924_s4 + $0x10] sm:$0xff] }
 0x2dd   :  { %v3601_v18 = vadd.f32 %v3537_v35, %v3473_v22  ;;  %v7387_v10 = vpop.f32.mrb[234].mxu1  ;;  %v3165_v52 = vadd.f32 %v3164_v19, %v7124_v37 }
 0x2de   :  { %3666 = vst [vmem:[%s7925_s5 + $0x8] sm:$0xff] %v3602_v55  ;;  %v3476_v62 = vadd.f32 %v3170_v30, %v7108_v23  ;;  %v2936_v44 = vpop.f32.mrb[235].mxu1  ;;  %v3542_v23 = vld [vmem:[%s7924_s4 + $0x28] sm:$0xff] }
 0x2df   :  { %3665 = vst [vmem:[%s7925_s5] sm:$0xff] %v3601_v18  ;;  %v3475_v5 = vadd.f32 %v3165_v52, %v7112_v17  ;;  %v4367_v33 = vpop.f32.mrb[220].mxu0 }
 0x2e0   :  { %v3604_v46 = vadd.f32 %v3540_v0, %v3476_v62  ;;  %v3180_v37 = vadd.f32 %v4367_v33, %v7154_v20  ;;  %v3174_v19 = vpop.f32.mrb[221].mxu0  ;;  %v3541_v20 = vld [vmem:[%s7924_s4 + $0x20] sm:$0xff] }
 0x2e1   :  { %v3603_v42 = vadd.f32 %v3539_v13, %v3475_v5  ;;  %v7405_v35 = vpop.f32.mrb[236].mxu1  ;;  %v3175_v12 = vadd.f32 %v3174_v19, %v7144_v38 }
 0x2e2   :  { %3668 = vst [vmem:[%s7925_s5 + $0x18] sm:$0xff] %v3604_v46  ;;  %v3478_v17 = vadd.f32 %v3180_v37, %v7118_v29  ;;  %v2941_v0 = vpop.f32.mrb[237].mxu1  ;;  %v3544_v29 = vld [vmem:[%s7924_s4 + $0x38] sm:$0xff] }
 0x2e3   :  { %3667 = vst [vmem:[%s7925_s5 + $0x10] sm:$0xff] %v3603_v42  ;;  %v3477_v18 = vadd.f32 %v3175_v12, %v7122_v63  ;;  %v4370_v22 = vpop.f32.mrb[222].mxu0 }
 0x2e4   :  { %v3606_v28 = vadd.f32 %v3542_v23, %v3478_v17  ;;  %v3190_v38 = vadd.f32 %v4370_v22, %v7174_v24  ;;  %v3184_v55 = vpop.f32.mrb[223].mxu0  ;;  %v3543_v24 = vld [vmem:[%s7924_s4 + $0x30] sm:$0xff] }
 0x2e5   :  { %v3605_v30 = vadd.f32 %v3541_v20, %v3477_v18  ;;  %v7423_v52 = vpop.f32.mrb[238].mxu1  ;;  %v3185_v62 = vadd.f32 %v3184_v55, %v7164_v26 }
 0x2e6   :  { %3670 = vst [vmem:[%s7925_s5 + $0x28] sm:$0xff] %v3606_v28  ;;  %v3480_v63 = vadd.f32 %v3190_v38, %v7128_v47  ;;  %v2946_v13 = vpop.f32.mrb[239].mxu1  ;;  %v3546_v47 = vld [vmem:[%s7924_s4 + $0x48] sm:$0xff] }
 0x2e7   :  { %3669 = vst [vmem:[%s7925_s5 + $0x20] sm:$0xff] %v3605_v30  ;;  %v3479_v44 = vadd.f32 %v3185_v62, %v7132_v50  ;;  %v4373_v5 = vpop.f32.mrb[224].mxu0 }
 0x2e8   :  { %v3608_v33 = vadd.f32 %v3544_v29, %v3480_v63  ;;  %v3200_v26 = vadd.f32 %v4373_v5, %v7192_v60  ;;  %v3194_v46 = vpop.f32.mrb[225].mxu0  ;;  %v3545_v60 = vld [vmem:[%s7924_s4 + $0x40] sm:$0xff] }
 0x2e9   :  { %v3607_v37 = vadd.f32 %v3543_v24, %v3479_v44  ;;  %v7441_v19 = vpop.f32.mrb[240].mxu1  ;;  %v3195_v42 = vadd.f32 %v3194_v46, %v7184_v3 }
 0x2ea   :  { %3672 = vst [vmem:[%s7925_s5 + $0x38] sm:$0xff] %v3608_v33  ;;  %v3482_v50 = vadd.f32 %v3200_v26, %v7138_v51  ;;  %v2951_v23 = vpop.f32.mrb[241].mxu1  ;;  %v3548_v51 = vld [vmem:[%s7924_s4 + $0x58] sm:$0xff] }
 0x2eb   :  { %3671 = vst [vmem:[%s7925_s5 + $0x30] sm:$0xff] %v3607_v37  ;;  %v3481_v12 = vadd.f32 %v3195_v42, %v7142_v43  ;;  %v4376_v17 = vpop.f32.mrb[226].mxu0 }
 0x2ec   :  { %v3610_v20 = vadd.f32 %v3546_v47, %v3482_v50  ;;  %v3210_v3 = vadd.f32 %v4376_v17, %v7209_v21  ;;  %v3204_v0 = vpop.f32.mrb[227].mxu0  ;;  %v3547_v21 = vld [vmem:[%s7924_s4 + $0x50] sm:$0xff] }
 0x2ed   :  { %v3609_v18 = vadd.f32 %v3545_v60, %v3481_v12  ;;  %v7459_v22 = vpop.f32.mrb[242].mxu1  ;;  %v3205_v28 = vadd.f32 %v3204_v0, %v7200_v41 }
 0x2ee   :  { %3674 = vst [vmem:[%s7925_s5 + $0x48] sm:$0xff] %v3610_v20  ;;  %v3484_v43 = vadd.f32 %v3210_v3, %v7148_v58  ;;  %v2956_v38 = vpop.f32.mrb[243].mxu1  ;;  %v3550_v58 = vld [vmem:[%s7924_s4 + $0x68] sm:$0xff] }
 0x2ef   :  { %3673 = vst [vmem:[%s7925_s5 + $0x40] sm:$0xff] %v3609_v18  ;;  %v3483_v55 = vadd.f32 %v3205_v28, %v7152_v6  ;;  %v4379_v30 = vpop.f32.mrb[228].mxu0 }
 0x2f0   :  { %v3612_v29 = vadd.f32 %v3548_v51, %v3484_v43  ;;  %v3220_v41 = vadd.f32 %v4379_v30, %v7225_v31  ;;  %v3214_v62 = vpop.f32.mrb[229].mxu0  ;;  %v3549_v31 = vld [vmem:[%s7924_s4 + $0x60] sm:$0xff] }
 0x2f1   :  { %v3611_v63 = vadd.f32 %v3547_v21, %v3483_v55  ;;  %v7477_v24 = vpop.f32.mrb[244].mxu1  ;;  %v3215_v13 = vadd.f32 %v3214_v62, %v7217_v36 }
 0x2f2   :  { %3676 = vst [vmem:[%s7925_s5 + $0x58] sm:$0xff] %v3612_v29  ;;  %v3486_v6 = vadd.f32 %v3220_v41, %v7158_v48  ;;  %v2961_v44 = vpop.f32.mrb[245].mxu1  ;;  %v3552_v48 = vld [vmem:[%s7924_s4 + $0x78] sm:$0xff]  ;;  %v8183_v41 = vld [vmem:[#allocation31_spill] sm:$0xff] }
 0x2f3   :  { %3675 = vst [vmem:[%s7925_s5 + $0x50] sm:$0xff] %v3611_v63  ;;  %v3485_v5 = vadd.f32 %v3215_v13, %v7162_v14  ;;  %v4382_v33 = vpop.f32.mrb[230].mxu0 }
 0x2f4   :  { %v3614_v26 = vadd.f32 %v3550_v58, %v3486_v6  ;;  %v3230_v36 = vadd.f32 %v4382_v33, %v7241_v40  ;;  %v3224_v46 = vpop.f32.mrb[231].mxu0  ;;  %v3551_v40 = vld [vmem:[%s7924_s4 + $0x70] sm:$0xff] }
 0x2f5   :  { %v3613_v37 = vadd.f32 %v3549_v31, %v3485_v5  ;;  %v7495_v47 = vpop.f32.mrb[246].mxu1  ;;  %v3225_v42 = vadd.f32 %v3224_v46, %v7233_v59  ;;  %v8185_v5 = vld [vmem:[#allocation34_spill] sm:$0xff]  ;;  %v3557_v46 = vld [vmem:[%s7924_s4 + $0xa0] sm:$0xff] }
 0x2f6   :  { %3678 = vst [vmem:[%s7925_s5 + $0x68] sm:$0xff] %v3614_v26  ;;  %v3488_v14 = vadd.f32 %v3230_v36, %v7168_v2  ;;  %v2966_v50 = vpop.f32.mrb[247].mxu1  ;;  %v3554_v2 = vld [vmem:[%s7924_s4 + $0x88] sm:$0xff]  ;;  %v8186_v26 = vld [vmem:[#allocation6_spill] sm:$0xff] }
 0x2f7   :  { %3677 = vst [vmem:[%s7925_s5 + $0x60] sm:$0xff] %v3613_v37  ;;  %v3487_v60 = vadd.f32 %v3225_v42, %v7172_v9  ;;  %v4385_v23 = vpop.f32.mrb[232].mxu0  ;;  %v8188_v50 = vld [vmem:[#allocation63_spill] sm:$0xff] }
 0x2f8   :  { %v3616_v12 = vadd.f32 %v3552_v48, %v3488_v14  ;;  %v3240_v59 = vadd.f32 %v4385_v23, %v7257_v45  ;;  %v3234_v17 = vpop.f32.mrb[233].mxu0  ;;  %v3553_v45 = vld [vmem:[%s7924_s4 + $0x80] sm:$0xff]  ;;  %v8187_v48 = vld [vmem:[#allocation5_spill] sm:$0xff] }
 0x2f9   :  { %v3615_v20 = vadd.f32 %v3551_v40, %v3487_v60  ;;  %v7513_v3 = vpop.f32.mrb[248].mxu1  ;;  %v3235_v0 = vadd.f32 %v3234_v17, %v7249_v54 }
 0x2fa   :  { %3680 = vst [vmem:[%s7925_s5 + $0x78] sm:$0xff] %v3616_v12  ;;  %v3490_v9 = vadd.f32 %v3240_v59, %v7178_v16  ;;  %v2971_v18 = vpop.f32.mrb[249].mxu1  ;;  %v3556_v16 = vld [vmem:[%s7924_s4 + $0x98] sm:$0xff] }
 0x2fb   :  { %3679 = vst [vmem:[%s7925_s5 + $0x70] sm:$0xff] %v3615_v20  ;;  %v3489_v51 = vadd.f32 %v3235_v0, %v7182_v39  ;;  %v4388_v28 = vpop.f32.mrb[234].mxu0  ;;  %v3560_v59 = vld [vmem:[%s7924_s4 + $0xb8] sm:$0xff]  ;;  %v8190_v0 = vld [vmem:[#allocation37_spill] sm:$0xff] }
 0x2fc   :  { %v3618_v43 = vadd.f32 %v3554_v2, %v3490_v9  ;;  %v3250_v54 = vadd.f32 %v4388_v28, %v7273_v53  ;;  %v3244_v21 = vpop.f32.mrb[235].mxu0  ;;  %v3555_v53 = vld [vmem:[%s7924_s4 + $0x90] sm:$0xff]  ;;  %v8189_v20 = vld [vmem:[#allocation46_spill] sm:$0xff] }
 0x2fd   :  { %v3617_v38 = vadd.f32 %v3553_v45, %v3489_v51  ;;  %v7531_v55 = vpop.f32.mrb[250].mxu1  ;;  %v3245_v30 = vadd.f32 %v3244_v21, %v7265_v8  ;;  %v8184_v8 = vld [vmem:[#allocation44_spill] sm:$0xff]  ;;  %v3559_v45 = vld [vmem:[%s7924_s4 + $0xb0] sm:$0xff]  ;;  %v8191_v51 = vld [vmem:[#allocation35_spill] sm:$0xff] }
 0x2fe   :  { %3682 = vst [vmem:[%s7925_s5 + $0x88] sm:$0xff] %v3618_v43  ;;  %v3492_v39 = vadd.f32 %v3250_v54, %v7187_v11  ;;  %v2976_v29 = vpop.f32.mrb[251].mxu1  ;;  %v3558_v11 = vld [vmem:[%s7924_s4 + $0xa8] sm:$0xff] }
 0x2ff   :  { %3681 = vst [vmem:[%s7925_s5 + $0x80] sm:$0xff] %v3617_v38  ;;  %v3491_v62 = vadd.f32 %v3245_v30, %v8183_v41  ;;  %v4391_v63 = vpop.f32.mrb[236].mxu0  ;;  %v3562_v30 = vld [vmem:[%s7924_s4 + $0xc8] sm:$0xff]  ;;  %v8192_v29 = vld [vmem:[#allocation10_spill] sm:$0xff] }
 0x300   :  { %v3620_v58 = vadd.f32 %v3556_v16, %v3492_v39  ;;  %v3260_v13 = vadd.f32 %v4391_v63, %v8184_v8  ;;  %v3254_v6 = vpop.f32.mrb[237].mxu0  ;;  %v8193_v63 = vld [vmem:[#allocation7_spill] sm:$0xff] }
 0x301   :  { %v3619_v31 = vadd.f32 %v3555_v53, %v3491_v62  ;;  %v7549_v44 = vpop.f32.mrb[252].mxu1  ;;  %v3255_v33 = vadd.f32 %v3254_v6, %v8185_v5 }
 0x302   :  { %3684 = vst [vmem:[%s7925_s5 + $0x98] sm:$0xff] %v3620_v58  ;;  %v3494_v36 = vadd.f32 %v3260_v13, %v8186_v26  ;;  %v2981_v37 = vpop.f32.mrb[253].mxu1  ;;  %v8194_v26 = vld [vmem:[#allocation41_spill] sm:$0xff] }
 0x303   :  { %3683 = vst [vmem:[%s7925_s5 + $0x90] sm:$0xff] %v3619_v31  ;;  %v3493_v42 = vadd.f32 %v3255_v33, %v8187_v48  ;;  %v4394_v14 = vpop.f32.mrb[238].mxu0  ;;  %v8195_v37 = vld [vmem:[#allocation39_spill] sm:$0xff] }
 0x304   :  { %v3622_v40 = vadd.f32 %v3558_v11, %v3494_v36  ;;  %v3270_v60 = vadd.f32 %v4394_v14, %v8188_v50  ;;  %v3264_v23 = vpop.f32.mrb[239].mxu0  ;;  %v3564_v11 = vld [vmem:[%s7924_s4 + $0xd8] sm:$0xff] }
 0x305   :  { %v3621_v12 = vadd.f32 %v3557_v46, %v3493_v42  ;;  %v7567_v17 = vpop.f32.mrb[254].mxu1  ;;  %v3265_v2 = vadd.f32 %v3264_v23, %v8189_v20 }
 0x306   :  { %3686 = vst [vmem:[%s7925_s5 + $0xa8] sm:$0xff] %v3622_v40  ;;  %v3496_v9 = vadd.f32 %v3270_v60, %v8190_v0  ;;  %v2986_v18 = vpop.f32.mrb[255].mxu1  ;;  %v3566_v60 = vld [vmem:[%s7924_s4 + $0xe8] sm:$0xff]  ;;  %v8197_v0 = vld [vmem:[#allocation13_spill] sm:$0xff] }
 0x307   :  { %3685 = vst [vmem:[%s7925_s5 + $0xa0] sm:$0xff] %v3621_v12  ;;  %v3495_v28 = vadd.f32 %v3265_v2, %v8191_v51  ;;  %v4397_v43 = vpop.f32.mrb[240].mxu0 }
 0x308   :  { %v3624_v54 = vadd.f32 %v3560_v59, %v3496_v9  ;;  %v3280_v21 = vadd.f32 %v4397_v43, %v7321_v34  ;;  %v3274_v38 = vpop.f32.mrb[241].mxu0  ;;  %v3561_v34 = vld [vmem:[%s7924_s4 + $0xc0] sm:$0xff]  ;;  %v8196_v59 = vld [vmem:[#allocation16_spill] sm:$0xff]  ;;  %v3568_v43 = vld [vmem:[%s7924_s4 + $0xf8] sm:$0xff] }
 0x309   :  { %v3623_v16 = vadd.f32 %v3559_v45, %v3495_v28  ;;  %v7585_v39 = vpop.f32.mrb[0].mxu1  ;;  %v3275_v53 = vadd.f32 %v3274_v38, %v7313_v61  ;;  %v8198_v38 = vld [vmem:[#allocation45_spill] sm:$0xff] }
 0x30a   :  { %3688 = vst [vmem:[%s7925_s5 + $0xb8] sm:$0xff] %v3624_v54  ;;  %v3498_v41 = vadd.f32 %v3280_v21, %v8192_v29  ;;  %v2991_v62 = vpop.f32.mrb[1].mxu1 }
 0x30b   :  { %3687 = vst [vmem:[%s7925_s5 + $0xb0] sm:$0xff] %v3623_v16  ;;  %v3497_v58 = vadd.f32 %v3275_v53, %v8193_v63  ;;  %v4400_v8 = vpop.f32.mrb[242].mxu0  ;;  %v8199_v53 = vld [vmem:[#allocation43_spill] sm:$0xff] }
 0x30c   :  { %v3626_v13 = vadd.f32 %v3562_v30, %v3498_v41  ;;  %v3290_v61 = vadd.f32 %v4400_v8, %v7337_v32  ;;  %v3284_v6 = vpop.f32.mrb[243].mxu0  ;;  %v3563_v32 = vld [vmem:[%s7924_s4 + $0xd0] sm:$0xff] }
 0x30d   :  { %v3625_v31 = vadd.f32 %v3561_v34, %v3497_v58  ;;  %v7603_v5 = vpop.f32.mrb[2].mxu1  ;;  %v3285_v33 = vadd.f32 %v3284_v6, %v7329_v1  ;;  %v3570_v58 = vld [vmem:[%s7924_s4 + $0x108] sm:$0xff] }
 0x30e   :  { %3690 = vst [vmem:[%s7925_s5 + $0xc8] sm:$0xff] %v3626_v13  ;;  %v3500_v36 = vadd.f32 %v3290_v61, %v8194_v26  ;;  %v2996_v46 = vpop.f32.mrb[3].mxu1  ;;  %v8200_v61 = vld [vmem:[#allocation21_spill] sm:$0xff] }
 0x30f   :  { %3689 = vst [vmem:[%s7925_s5 + $0xc0] sm:$0xff] %v3625_v31  ;;  %v3499_v48 = vadd.f32 %v3285_v33, %v8195_v37  ;;  %v4403_v42 = vpop.f32.mrb[244].mxu0  ;;  %v3572_v37 = vld [vmem:[%s7924_s4 + $0x118] sm:$0xff] }
 0x310   :  { %v3628_v14 = vadd.f32 %v3564_v11, %v3500_v36  ;;  %v3300_v1 = vadd.f32 %v4403_v42, %v7353_v57  ;;  %v3294_v40 = vpop.f32.mrb[245].mxu0  ;;  %v3565_v57 = vld [vmem:[%s7924_s4 + $0xe0] sm:$0xff] }
 0x311   :  { %v3627_v50 = vadd.f32 %v3563_v32, %v3499_v48  ;;  %v7621_v23 = vpop.f32.mrb[4].mxu1  ;;  %v3295_v12 = vadd.f32 %v3294_v40, %v7345_v4  ;;  %v8201_v11 = vld [vmem:[#allocation19_spill] sm:$0xff] }
 0x312   :  { %3692 = vst [vmem:[%s7925_s5 + $0xd8] sm:$0xff] %v3628_v14  ;;  %v3502_v20 = vadd.f32 %v3300_v1, %v8196_v59  ;;  %v3001_v2 = vpop.f32.mrb[5].mxu1  ;;  %v8202_v14 = vld [vmem:[#allocation49_spill] sm:$0xff] }
 0x313   :  { %3691 = vst [vmem:[%s7925_s5 + $0xd0] sm:$0xff] %v3627_v50  ;;  %v3501_v9 = vadd.f32 %v3295_v12, %v8197_v0  ;;  %v4406_v45 = vpop.f32.mrb[246].mxu0  ;;  %v8203_v50 = vld [vmem:[#allocation47_spill] sm:$0xff]  ;;  %v3574_v2 = vld [vmem:[%s7924_s4 + $0x128] sm:$0xff] }
 0x314   :  { %v3630_v18 = vadd.f32 %v3566_v60, %v3502_v20  ;;  %v3310_v4 = vadd.f32 %v4406_v45, %v7369_v49  ;;  %v3304_v51 = vpop.f32.mrb[247].mxu0  ;;  %v3567_v49 = vld [vmem:[%s7924_s4 + $0xf0] sm:$0xff]  ;;  %v8204_v45 = vld [vmem:[#allocation27_spill] sm:$0xff] }
 0x315   :  { %v3629_v28 = vadd.f32 %v3565_v57, %v3501_v9  ;;  %v7639_v54 = vpop.f32.mrb[6].mxu1  ;;  %v3305_v21 = vadd.f32 %v3304_v51, %v7361_v56  ;;  %v8205_v51 = vld [vmem:[#allocation24_spill] sm:$0xff] }
 0x316   :  { %3694 = vst [vmem:[%s7925_s5 + $0xe8] sm:$0xff] %v3630_v18  ;;  %v3504_v16 = vadd.f32 %v3310_v4, %v8198_v38  ;;  %v3006_v30 = vpop.f32.mrb[7].mxu1 }
 0x317   :  { %3693 = vst [vmem:[%s7925_s5 + $0xe0] sm:$0xff] %v3629_v28  ;;  %v3503_v29 = vadd.f32 %v3305_v21, %v8199_v53  ;;  %v4409_v41 = vpop.f32.mrb[248].mxu0 }
 0x318   :  { %v3632_v34 = vadd.f32 %v3568_v43, %v3504_v16  ;;  %v3320_v56 = vadd.f32 %v4409_v41, %v7387_v10  ;;  %v3314_v62 = vpop.f32.mrb[249].mxu0  ;;  %v3569_v10 = vld [vmem:[%s7924_s4 + $0x100] sm:$0xff] }
 0x319   :  { %v3631_v63 = vadd.f32 %v3567_v49, %v3503_v29  ;;  %v7657_v8 = vpop.f32.mrb[8].mxu1  ;;  %v3315_v13 = vadd.f32 %v3314_v62, %v7375_v27  ;;  %v3576_v49 = vld [vmem:[%s7924_s4 + $0x138] sm:$0xff]  ;;  %v8206_v29 = vld [vmem:[#allocation51_spill] sm:$0xff] }
 0x31a   :  { %3696 = vst [vmem:[%s7925_s5 + $0xf8] sm:$0xff] %v3632_v34  ;;  %v3506_v6 = vadd.f32 %v3320_v56, %v8200_v61  ;;  %v3011_v31 = vpop.f32.mrb[9].mxu1  ;;  %v8207_v56 = vld [vmem:[#allocation32_spill] sm:$0xff] }
 0x31b   :  { %3695 = vst [vmem:[%s7925_s5 + $0xf0] sm:$0xff] %v3631_v63  ;;  %v3505_v33 = vadd.f32 %v3315_v13, %v8201_v11  ;;  %v4412_v26 = vpop.f32.mrb[250].mxu0  ;;  %v8208_v11 = vld [vmem:[#allocation30_spill] sm:$0xff] }
 0x31c   :  { %v3634_v36 = vadd.f32 %v3570_v58, %v3506_v6  ;;  %v3330_v27 = vadd.f32 %v4412_v26, %v7423_v52  ;;  %v3324_v32 = vpop.f32.mrb[251].mxu0  ;;  %v3571_v52 = vld [vmem:[%s7924_s4 + $0x110] sm:$0xff]  ;;  %v3578_v6 = vld [vmem:[%s7924_s4 + $0x148] sm:$0xff] }
 0x31d   :  { %v3633_v46 = vadd.f32 %v3569_v10, %v3505_v33  ;;  %v7675_v48 = vpop.f32.mrb[10].mxu1  ;;  %v3325_v42 = vadd.f32 %v3324_v32, %v7405_v35 }
 0x31e   :  { %3698 = vst [vmem:[%s7925_s5 + $0x108] sm:$0xff] %v3634_v36  ;;  %v3508_v1 = vadd.f32 %v3330_v27, %v8202_v14  ;;  %v3016_v40 = vpop.f32.mrb[11].mxu1  ;;  %v8209_v36 = vld [vmem:[#allocation36_spill] sm:$0xff]  ;;  %v3580_v14 = vld [vmem:[%s7924_s4 + $0x158] sm:$0xff] }
 0x31f   :  { %3697 = vst [vmem:[%s7925_s5 + $0x100] sm:$0xff] %v3633_v46  ;;  %v3507_v60 = vadd.f32 %v3325_v42, %v8203_v50  ;;  %v4415_v12 = vpop.f32.mrb[252].mxu0  ;;  %v8210_v40 = vld [vmem:[#allocation40_spill] sm:$0xff] }
 0x320   :  { %v3636_v59 = vadd.f32 %v3572_v37, %v3508_v1  ;;  %v3340_v35 = vadd.f32 %v4415_v12, %v7459_v22  ;;  %v3334_v20 = vpop.f32.mrb[253].mxu0  ;;  %v3573_v22 = vld [vmem:[%s7924_s4 + $0x120] sm:$0xff]  ;;  %v8211_v12 = vld [vmem:[#allocation38_spill] sm:$0xff] }
 0x321   :  { %v3635_v57 = vadd.f32 %v3571_v52, %v3507_v60  ;;  %v7693_v0 = vpop.f32.mrb[12].mxu1  ;;  %v3335_v9 = vadd.f32 %v3334_v20, %v7441_v19 }
 0x322   :  { %3700 = vst [vmem:[%s7925_s5 + $0x118] sm:$0xff] %v3636_v59  ;;  %v3510_v18 = vadd.f32 %v3340_v35, %v8204_v45  ;;  %v3021_v4 = vpop.f32.mrb[13].mxu1 }
 0x323   :  { %3699 = vst [vmem:[%s7925_s5 + $0x110] sm:$0xff] %v3635_v57  ;;  %v3509_v28 = vadd.f32 %v3335_v9, %v8205_v51  ;;  %v4418_v43 = vpop.f32.mrb[254].mxu0  ;;  %v3582_v9 = vld [vmem:[%s7924_s4 + $0x168] sm:$0xff] }
 0x324   :  { %v3638_v21 = vadd.f32 %v3574_v2, %v3510_v18  ;;  %v3350_v19 = vadd.f32 %v4418_v43, %v7495_v47  ;;  %v3344_v38 = vpop.f32.mrb[255].mxu0  ;;  %v3575_v47 = vld [vmem:[%s7924_s4 + $0x130] sm:$0xff] }
 0x325   :  { %v3637_v16 = vadd.f32 %v3573_v22, %v3509_v28  ;;  %v7711_v30 = vpop.f32.mrb[14].mxu1  ;;  %v3345_v53 = vadd.f32 %v3344_v38, %v7477_v24  ;;  %v8212_v22 = vld [vmem:[#allocation42_spill] sm:$0xff]  ;;  %v8213_v28 = vld [vmem:[#allocation48_spill] sm:$0xff] }
 0x326   :  { %3702 = vst [vmem:[%s7925_s5 + $0x128] sm:$0xff] %v3638_v21  ;;  %v3512_v41 = vadd.f32 %v3350_v19, %v8206_v29  ;;  %v3026_v34 = vpop.f32.mrb[15].mxu1 }
 0x327   :  { %3701 = vst [vmem:[%s7925_s5 + $0x120] sm:$0xff] %v3637_v16  ;;  %v3511_v62 = vadd.f32 %v3345_v53, %v8207_v56  ;;  %v4421_v63 = vpop.f32.mrb[0].mxu0  ;;  %v3583_v34 = vld [vmem:[%s7924_s4 + $0x170] sm:$0xff]  ;;  %v8215_v56 = vld [vmem:[#allocation62_spill] sm:$0xff] }
 0x328   :  { %v3640_v58 = vadd.f32 %v3576_v49, %v3512_v41  ;;  %v3360_v24 = vadd.f32 %v4421_v63, %v7531_v55  ;;  %v3354_v13 = vpop.f32.mrb[1].mxu0  ;;  %v3577_v55 = vld [vmem:[%s7924_s4 + $0x140] sm:$0xff]  ;;  %v3584_v49 = vld [vmem:[%s7924_s4 + $0x178] sm:$0xff] }
 0x329   :  { %v3639_v61 = vadd.f32 %v3575_v47, %v3511_v62  ;;  %v7729_v10 = vpop.f32.mrb[16].mxu1  ;;  %v3355_v31 = vadd.f32 %v3354_v13, %v7513_v3  ;;  %v8214_v41 = vld [vmem:[#allocation50_spill] sm:$0xff] }
 0x32a   :  { %3704 = vst [vmem:[%s7925_s5 + $0x138] sm:$0xff] %v3640_v58  ;;  %v3514_v33 = vadd.f32 %v3360_v24, %v8208_v11  ;;  %v3031_v26 = vpop.f32.mrb[17].mxu1  ;;  %v8216_v11 = vld [vmem:[#allocation65_spill] sm:$0xff] }
 0x32b   :  { %3703 = vst [vmem:[%s7925_s5 + $0x130] sm:$0xff] %v3639_v61  ;;  %v3513_v27 = vadd.f32 %v3355_v31, %v8209_v36  ;;  %v4424_v32 = vpop.f32.mrb[2].mxu0  ;;  %v3586_v61 = vld [vmem:[%s7924_s4 + $0x188] sm:$0xff]  ;;  %v8217_v26 = vld [vmem:[#allocation66_spill] sm:$0xff] }
 0x32c   :  { %v3642_v46 = vadd.f32 %v3578_v6, %v3514_v33  ;;  %v3370_v3 = vadd.f32 %v4424_v32, %v7567_v17  ;;  %v3364_v37 = vpop.f32.mrb[3].mxu0  ;;  %v3579_v17 = vld [vmem:[%s7924_s4 + $0x150] sm:$0xff] }
 0x32d   :  { %v3641_v42 = vadd.f32 %v3577_v55, %v3513_v27  ;;  %v7747_v1 = vpop.f32.mrb[18].mxu1  ;;  %v3365_v52 = vadd.f32 %v3364_v37, %v7549_v44  ;;  %v3585_v55 = vld [vmem:[%s7924_s4 + $0x180] sm:$0xff]  ;;  %v3588_v37 = vld [vmem:[%s7924_s4 + $0x198] sm:$0xff] }
 0x32e   :  { %3706 = vst [vmem:[%s7925_s5 + $0x148] sm:$0xff] %v3642_v46  ;;  %v3516_v50 = vadd.f32 %v3370_v3, %v8210_v40  ;;  %v3036_v60 = vpop.f32.mrb[19].mxu1 }
 0x32f   :  { %3705 = vst [vmem:[%s7925_s5 + $0x140] sm:$0xff] %v3641_v42  ;;  %v3515_v59 = vadd.f32 %v3365_v52, %v8211_v12  ;;  %v4427_v35 = vpop.f32.mrb[4].mxu0  ;;  %v8218_v52 = vld [vmem:[#allocation68_spill] sm:$0xff] }
 0x330   :  { %v3644_v20 = vadd.f32 %v3580_v14, %v3516_v50  ;;  %v3380_v44 = vadd.f32 %v4427_v35, %v7603_v5  ;;  %v3374_v57 = vpop.f32.mrb[5].mxu0  ;;  %v3581_v5 = vld [vmem:[%s7924_s4 + $0x160] sm:$0xff]  ;;  %v3587_v50 = vld [vmem:[%s7924_s4 + $0x190] sm:$0xff] }
 0x331   :  { %v3643_v2 = vadd.f32 %v3579_v17, %v3515_v59  ;;  %v7765_v45 = vpop.f32.mrb[20].mxu1  ;;  %v3375_v18 = vadd.f32 %v3374_v57, %v7585_v39  ;;  %v8219_v17 = vld [vmem:[#allocation9_spill] sm:$0xff] }
 0x332   :  { %3708 = vst [vmem:[%s7925_s5 + $0x158] sm:$0xff] %v3644_v20  ;;  %v3518_v4 = vadd.f32 %v3380_v44, %v8212_v22  ;;  %v3041_v51 = vpop.f32.mrb[21].mxu1  ;;  %v3590_v44 = vld [vmem:[%s7924_s4 + $0x1a8] sm:$0xff]  ;;  %v3589_v22 = vld [vmem:[%s7924_s4 + $0x1a0] sm:$0xff] }
 0x333   :  { %3707 = vst [vmem:[%s7925_s5 + $0x150] sm:$0xff] %v3643_v2  ;;  %v3517_v43 = vadd.f32 %v3375_v18, %v8213_v28  ;;  %v4430_v21 = vpop.f32.mrb[6].mxu0 }
 0x334   :  { %v3646_v19 = vadd.f32 %v3582_v9, %v3518_v4  ;;  %v3390_v39 = vadd.f32 %v4430_v21, %v7639_v54  ;;  %v3384_v38 = vpop.f32.mrb[7].mxu0  ;;  %v8220_v9 = vld [vmem:[#allocation70_spill] sm:$0xff]  ;;  %v8221_v4 = vld [vmem:[#allocation8_spill] sm:$0xff] }
 0x335   :  { %v3645_v16 = vadd.f32 %v3581_v5, %v3517_v43  ;;  %v3044_v53 = vpop.f32.mrb[22].mxu1  ;;  %v3385_v29 = vadd.f32 %v3384_v38, %v7621_v23 }
 0x336   :  { %3710 = vst [vmem:[%s7925_s5 + $0x168] sm:$0xff] %v3646_v19  ;;  %v3520_v47 = vadd.f32 %v3390_v39, %v8214_v41  ;;  %v3046_v54 = vpop.f32.mrb[23].mxu1  ;;  %v3592_v19 = vld [vmem:[%s7924_s4 + $0x1b8] sm:$0xff] }
 0x337   :  { %3709 = vst [vmem:[%s7925_s5 + $0x160] sm:$0xff] %v3645_v16  ;;  %v3519_v62 = vadd.f32 %v3385_v29, %v8215_v56  ;;  %v4433_v63 = vpop.f32.mrb[8].mxu0  ;;  %v8222_v29 = vld [vmem:[#allocation72_spill] sm:$0xff] }
 0x338   :  { %v3648_v58 = vadd.f32 %v3584_v49, %v3520_v47  ;;  %v3400_v23 = vadd.f32 %v4433_v63, %v7675_v48  ;;  %v3394_v24 = vpop.f32.mrb[9].mxu0  ;;  %v3591_v49 = vld [vmem:[%s7924_s4 + $0x1b0] sm:$0xff] }
 0x339   :  { %v3647_v13 = vadd.f32 %v3583_v34, %v3519_v62  ;;  %v3049_v6 = vpop.f32.mrb[24].mxu1  ;;  %v3395_v31 = vadd.f32 %v3394_v24, %v7657_v8 }
 0x33a   :  { %3712 = vst [vmem:[%s7925_s5 + $0x178] sm:$0xff] %v3648_v58  ;;  %v3522_v33 = vadd.f32 %v3400_v23, %v8216_v11  ;;  %v3051_v48 = vpop.f32.mrb[25].mxu1  ;;  %v3593_v23 = vld [vmem:[%s7924_s4 + $0x1c0] sm:$0xff] }
 0x33b   :  { %3711 = vst [vmem:[%s7925_s5 + $0x170] sm:$0xff] %v3647_v13  ;;  %v3521_v36 = vadd.f32 %v3395_v31, %v8217_v26  ;;  %v4436_v27 = vpop.f32.mrb[10].mxu0  ;;  %v8223_v13 = vld [vmem:[#allocation12_spill] sm:$0xff] }
 0x33c   :  { %v3650_v32 = vadd.f32 %v3586_v61, %v3522_v33  ;;  %v3410_v8 = vadd.f32 %v4436_v27, %v7711_v30  ;;  %v3404_v46 = vpop.f32.mrb[11].mxu0  ;;  %v3595_v27 = vld [vmem:[%s7924_s4 + $0x1d0] sm:$0xff] }
 0x33d   :  { %v3649_v3 = vadd.f32 %v3585_v55, %v3521_v36  ;;  %v3054_v42 = vpop.f32.mrb[26].mxu1  ;;  %v3405_v14 = vadd.f32 %v3404_v46, %v7693_v0 }
 0x33e   :  { %3714 = vst [vmem:[%s7925_s5 + $0x188] sm:$0xff] %v3650_v32  ;;  %v3524_v40 = vadd.f32 %v3410_v8, %v8218_v52  ;;  %v3056_v30 = vpop.f32.mrb[27].mxu1  ;;  %v8224_v8 = vld [vmem:[#allocation74_spill] sm:$0xff] }
 0x33f   :  { %3713 = vst [vmem:[%s7925_s5 + $0x180] sm:$0xff] %v3649_v3  ;;  %v3523_v60 = vadd.f32 %v3405_v14, %v8219_v17  ;;  %v4439_v12 = vpop.f32.mrb[12].mxu0  ;;  %v8225_v30 = vld [vmem:[#allocation11_spill] sm:$0xff] }
 0x340   :  { %v3652_v59 = vadd.f32 %v3588_v37, %v3524_v40  ;;  %v3420_v0 = vadd.f32 %v4439_v12, %v7747_v1  ;;  %v3414_v35 = vpop.f32.mrb[13].mxu0 }
 0x341   :  { %v3651_v20 = vadd.f32 %v3587_v50, %v3523_v60  ;;  %v3059_v57 = vpop.f32.mrb[28].mxu1  ;;  %v3415_v2 = vadd.f32 %v3414_v35, %v7729_v10  ;;  %v3597_v60 = vld [vmem:[%s7924_s4 + $0x1e0] sm:$0xff] }
 0x342   :  { %3716 = vst [vmem:[%s7925_s5 + $0x198] sm:$0xff] %v3652_v59  ;;  %v3526_v18 = vadd.f32 %v3420_v0, %v8220_v9  ;;  %v3061_v1 = vpop.f32.mrb[29].mxu1  ;;  %v8226_v59 = vld [vmem:[#allocation76_spill] sm:$0xff] }
 0x343   :  { %3715 = vst [vmem:[%s7925_s5 + $0x190] sm:$0xff] %v3651_v20  ;;  %v3525_v5 = vadd.f32 %v3415_v2, %v8221_v4  ;;  %v4442_v51 = vpop.f32.mrb[14].mxu0  ;;  %v3600_v4 = vld [vmem:[%s7924_s4 + $0x1f8] sm:$0xff] }
 0x344   :  { %v3654_v28 = vadd.f32 %v3590_v44, %v3526_v18  ;;  %v3430_v10 = vadd.f32 %v4442_v51, %v3044_v53  ;;  %v3424_v43 = vpop.f32.mrb[15].mxu0 }
 0x345   :  { %v3653_v21 = vadd.f32 %v3589_v22, %v3525_v5  ;;  %v3064_v39 = vpop.f32.mrb[30].mxu1  ;;  %v3425_v38 = vadd.f32 %v3424_v43, %v7765_v45  ;;  %v3599_v22 = vld [vmem:[%s7924_s4 + $0x1f0] sm:$0xff]  ;;  %v8227_v5 = vld [vmem:[#allocation78_spill] sm:$0xff] }
 0x346   :  { %3718 = vst [vmem:[%s7925_s5 + $0x1a8] sm:$0xff] %v3654_v28  ;;  %v3528_v16 = vadd.f32 %v3430_v10, %v7332_v15  ;;  %v3066_v53 = vpop.f32.mrb[31].mxu1  ;;  %v3594_v15 = vld [vmem:[%s7924_s4 + $0x1c8] sm:$0xff]  ;;  %v8228_v28 = vld [vmem:[#allocation15_spill] sm:$0xff] }
 0x347   :  { %3717 = vst [vmem:[%s7925_s5 + $0x1a0] sm:$0xff] %v3653_v21  ;;  %v3527_v41 = vadd.f32 %v3425_v38, %v8222_v29  ;;  %v4445_v47 = vpop.f32.mrb[16].mxu0 }
 0x348   :  { %v3656_v34 = vadd.f32 %v3592_v19, %v3528_v16  ;;  %v3440_v45 = vadd.f32 %v4445_v47, %v3054_v42  ;;  %v3434_v54 = vpop.f32.mrb[17].mxu0 }
 0x349   :  { %v3655_v56 = vadd.f32 %v3591_v49, %v3527_v41  ;;  %v3069_v62 = vpop.f32.mrb[32].mxu1  ;;  %v3435_v63 = vadd.f32 %v3434_v54, %v3049_v6 }
 0x34a   :  { %3720 = vst [vmem:[%s7925_s5 + $0x1b8] sm:$0xff] %v3656_v34  ;;  %v3530_v58 = vadd.f32 %v3440_v45, %v7340_v25  ;;  %v3071_v24 = vpop.f32.mrb[33].mxu1  ;;  %v3596_v25 = vld [vmem:[%s7924_s4 + $0x1d8] sm:$0xff] }
 0x34b   :  { %3719 = vst [vmem:[%s7925_s5 + $0x1b0] sm:$0xff] %v3655_v56  ;;  %v3529_v61 = vadd.f32 %v3435_v63, %v8223_v13  ;;  %v4448_v31 = vpop.f32.mrb[18].mxu0 }
 0x34c   :  { %v3658_v11 = vadd.f32 %v3594_v15, %v3530_v58  ;;  %v3450_v6 = vadd.f32 %v4448_v31, %v3064_v39  ;;  %v3444_v33 = vpop.f32.mrb[19].mxu0 }
 0x34d   :  { %v3657_v55 = vadd.f32 %v3593_v23, %v3529_v61  ;;  %v3074_v48 = vpop.f32.mrb[34].mxu1  ;;  %v3445_v26 = vadd.f32 %v3444_v33, %v3059_v57 }
 0x34e   :  { %3722 = vst [vmem:[%s7925_s5 + $0x1c8] sm:$0xff] %v3658_v11  ;;  %v3532_v36 = vadd.f32 %v3450_v6, %v7348_v7  ;;  %v3076_v32 = vpop.f32.mrb[35].mxu1  ;;  %v3598_v7 = vld [vmem:[%s7924_s4 + $0x1e8] sm:$0xff] }
 0x34f   :  { %3721 = vst [vmem:[%s7925_s5 + $0x1c0] sm:$0xff] %v3657_v55  ;;  %v3531_v46 = vadd.f32 %v3445_v26, %v8224_v8  ;;  %v4451_v3 = vpop.f32.mrb[20].mxu0 }
 0x350   :  { %v3660_v37 = vadd.f32 %v3596_v25, %v3532_v36  ;;  %v3460_v42 = vadd.f32 %v4451_v3, %v3074_v48  ;;  %v3454_v14 = vpop.f32.mrb[21].mxu0 }
 0x351   :  { %v3659_v52 = vadd.f32 %v3595_v27, %v3531_v46  ;;  %v3079_v40 = vpop.f32.mrb[36].mxu1  ;;  %v3455_v50 = vadd.f32 %v3454_v14, %v3069_v62 }
 0x352   :  { %3724 = vst [vmem:[%s7925_s5 + $0x1d8] sm:$0xff] %v3660_v37  ;;  %v3534_v17 = vadd.f32 %v3460_v42, %v8225_v30  ;;  %v3081_v12 = vpop.f32.mrb[37].mxu1 }
 0x353   :  { %3723 = vst [vmem:[%s7925_s5 + $0x1d0] sm:$0xff] %v3659_v52  ;;  %v3533_v0 = vadd.f32 %v3455_v50, %v8226_v59  ;;  %v4454_v35 = vpop.f32.mrb[22].mxu0 }
 0x354   :  { %v3662_v20 = vadd.f32 %v3598_v7, %v3534_v17  ;;  %v3464_v44 = vpop.f32.mrb[23].mxu0 }
 0x355   :  { %v3661_v57 = vadd.f32 %v3597_v60, %v3533_v0  ;;  %v3084_v2 = vpop.f32.mrb[38].mxu1  ;;  %v3465_v9 = vadd.f32 %v3464_v44, %v3079_v40 }
 0x356   :  { %3726 = vst [vmem:[%s7925_s5 + $0x1e8] sm:$0xff] %v3662_v20  ;;  %v3470_v18 = vadd.f32 %v4454_v35, %v3084_v2  ;;  %v3086_v1 = vpop.f32.mrb[39].mxu1 }
 0x357   :  { %3725 = vst [vmem:[%s7925_s5 + $0x1e0] sm:$0xff] %v3661_v57  ;;  %v3535_v51 = vadd.f32 %v3465_v9, %v8227_v5 }
 0x358   :  { %v3536_v10 = vadd.f32 %v3470_v18, %v8228_v28 }
 0x359   :  { %v3663_v43 = vadd.f32 %v3599_v22, %v3535_v51 }
 0x35a   :  { %v3664_v21 = vadd.f32 %v3600_v4, %v3536_v10 }
 0x35b   :  { %3727 = vst [vmem:[%s7925_s5 + $0x1f0] sm:$0xff] %v3663_v43 }
 0x35c   :  { %3728 = vst [vmem:[%s7925_s5 + $0x1f8] sm:$0xff] %v3664_v21 }

// kernel: preact_block_pallas.2
= control target key start
LH: loop header
LB: loop body
LE: loop exit
PB: predicated region body
PF: predicated region fallthrough
CT: control target
= control target key end

     0   :  { %v5610_v0 = vmov 0.0|0.0   ;;  %v5611_v4 = vmov 0.0   ;;  %vm3742_vm0 = vcmask 1040384   ;;  %vm3744_vm1 = vcmask 1041408   ;;  %s8538_s3 = inlined_call_operand.vmem [shape: f32[3,384,128], index: 3, kind: input, shape index: {}]   ;;  %s8539_s1 = inlined_call_operand.vmem [shape: f32[1,128], index: 1, kind: input, shape index: {}]   ;;  %s8540_s0 = inlined_call_operand.vmem [shape: f32[2,16,16,128], index: 0, kind: input, shape index: {}]   ;;  %s8541_s2 = inlined_call_operand.vmem [shape: f32[1,128], index: 2, kind: input, shape index: {}]   ;;  %s8542_s4 = inlined_call_operand.vmem [shape: f32[128,128], index: 4, kind: input, shape index: {}]   ;;  %s8543_s5 = inlined_call_operand.vmem [shape: f32[2,16,16,128], index: 5, kind: output, shape index: {0}]   ;;  %s8544_s7 = inlined_call_operand.vmem [shape: f32[2,16,16,128], index: 7, kind: output, shape index: {2}]   ;;  %s8545_s6 = inlined_call_operand.vmem [shape: f32[1,8,128], index: 6, kind: output, shape index: {1}]  }
   0x1   :  { %5218 = vmatprep.subr.bf16.mxu0 %v5610_v0  ;;  %v5656_v1 = vld [vmem:[%s8538_s3 + $0x180] sm:$0xff]  ;;  %v5661_v2 = vld [vmem:[%s8538_s3 + $0x188] sm:$0xff]  ;;  %343 = vst [vmem:[#allocation2 + $0x29] sm:$0x1] %v5611_v4  ;;  %293 = vst [vmem:[#allocation2] sm:$0xff] %v5611_v4 }
   0x2   :  { %v5666_v3 = vld [vmem:[%s8538_s3 + $0x280] sm:$0xff]  ;;  %294 = vst [vmem:[#allocation2 + $0x8] sm:$0xff] %v5611_v4  ;;  %295 = vst [vmem:[#allocation2 + $0x10] sm:$0x3] %v5611_v4  ;;  %v5219_v5 = vpack.c.bf16 %v5661_v2, %v5656_v1  ;;  %v4323_v6 = vld [vmem:[%s8538_s3 + $0x288] sm:$0xff] }
   0x3   :  { %296 = vst [vmem:[#allocation2 + $0x1b0] sm:$0xff] %v5611_v4  ;;  %297 = vst [vmem:[#allocation2 + $0x1b8] sm:$0xff] %v5611_v4  ;;  %v4292_v7 = vld [vmem:[%s8538_s3 + $0x190] sm:$0xff]  ;;  %v4293_v8 = vld [vmem:[%s8538_s3 + $0x198] sm:$0xff]  ;;  %v5266_v9 = vpack.c.bf16 %v4323_v6, %v5666_v3 }
   0x4   :  { %298 = vst [vmem:[#allocation2 + $0x1c0] sm:$0x3] %v5611_v4  ;;  %300 = vst [vmem:[#allocation2 + $0x198] sm:$0xff] %v5611_v4  ;;  %v4324_v10 = vld [vmem:[%s8538_s3 + $0x290] sm:$0xff]  ;;  %v4325_v11 = vld [vmem:[%s8538_s3 + $0x298] sm:$0xff]  ;;  %5220 = vmatpush1.bf16.msra.mxu0 %v5219_v5  ;;  %v5222_v12 = vpack.c.bf16 %v4293_v8, %v4292_v7 }
   0x5   :  { %301 = vst [vmem:[#allocation2 + $0x1a0] sm:$0xff] %v5611_v4  ;;  %302 = vst [vmem:[#allocation2 + $0x1a8] sm:$0x3] %v5611_v4  ;;  %v5270_v13 = vpack.c.bf16 %v4325_v11, %v4324_v10  ;;  %v4326_v14 = vld [vmem:[%s8538_s3 + $0x2a0] sm:$0xff]  ;;  %v4327_v15 = vld [vmem:[%s8538_s3 + $0x2a8] sm:$0xff]  ;;  %5267 = vmatprep.subr.bf16.mxu1 %v5266_v9  ;;  %5221 = vmatprep.subr.bf16.mxu0 %v5610_v0 }
   0x6   :  { %303 = vst [vmem:[#allocation2 + $0x348] sm:$0xff] %v5611_v4  ;;  %304 = vst [vmem:[#allocation2 + $0x350] sm:$0xff] %v5611_v4  ;;  %v4294_v16 = vld [vmem:[%s8538_s3 + $0x1a0] sm:$0xff]  ;;  %v4295_v17 = vld [vmem:[%s8538_s3 + $0x1a8] sm:$0xff]  ;;  %5269 = vmatpush3.bf16.msra.mxu1 %v5266_v9  ;;  %v5274_v18 = vpack.c.bf16 %v4327_v15, %v4326_v14 }
   0x7   :  { %305 = vst [vmem:[#allocation2 + $0x358] sm:$0x3] %v5611_v4  ;;  %307 = vst [vmem:[#allocation2 + $0x18] sm:$0x1] %v5611_v4  ;;  %5271 = vmatprep.subr.bf16.mxu1 %v5270_v13  ;;  %v5225_v19 = vpack.c.bf16 %v4295_v17, %v4294_v16  ;;  %v4328_v20 = vld [vmem:[%s8538_s3 + $0x2b0] sm:$0xff]  ;;  %v4329_v21 = vld [vmem:[%s8538_s3 + $0x2b8] sm:$0xff] }
   0x8   :  { %308 = vst [vmem:[#allocation2 + $0x30] sm:$0x1] %v5611_v4  ;;  %309 = vst [vmem:[#allocation2 + $0x48] sm:$0x1] %v5611_v4  ;;  %5223 = vmatpush1.bf16.msra.mxu0 %v5222_v12  ;;  %v4296_v22 = vld [vmem:[%s8538_s3 + $0x1b0] sm:$0xff]  ;;  %v4297_v23 = vld [vmem:[%s8538_s3 + $0x1b8] sm:$0xff]  ;;  %v5278_v24 = vpack.c.bf16 %v4329_v21, %v4328_v20 }
   0x9   :  { %310 = vst [vmem:[#allocation2 + $0x60] sm:$0x1] %v5611_v4  ;;  %311 = vst [vmem:[#allocation2 + $0x78] sm:$0x1] %v5611_v4  ;;  %5224 = vmatprep.subr.bf16.mxu0 %v5610_v0  ;;  %v4330_v25 = vld [vmem:[%s8538_s3 + $0x2c0] sm:$0xff]  ;;  %v4331_v26 = vld [vmem:[%s8538_s3 + $0x2c8] sm:$0xff]  ;;  %v5228_v28 = vpack.c.bf16 %v4297_v23, %v4296_v22 }
   0xa   :  { %312 = vst [vmem:[#allocation2 + $0x90] sm:$0x1] %v5611_v4  ;;  %313 = vst [vmem:[#allocation2 + $0xa8] sm:$0x1] %v5611_v4  ;;  %5273 = vmatpush3.bf16.msra.mxu1 %v5270_v13  ;;  %v5805_v27 = vld [vmem:[%s8539_s1] ss:$0 sm:$0xff]  ;;  %v5282_v38 = vpack.c.bf16 %v4331_v26, %v4330_v25 }
   0xb   :  { %314 = vst [vmem:[#allocation2 + $0xc0] sm:$0x1] %v5611_v4  ;;  %315 = vst [vmem:[#allocation2 + $0xd8] sm:$0x1] %v5611_v4  ;;  %5275 = vmatprep.subr.bf16.mxu1 %v5274_v18  ;;  %v5810_v29 = vld [vmem:[%s8541_s2] ss:$0 sm:$0xff] }
   0xc   :  { %316 = vst [vmem:[#allocation2 + $0xf0] sm:$0x1] %v5611_v4  ;;  %317 = vst [vmem:[#allocation2 + $0x108] sm:$0x1] %v5611_v4  ;;  %5226 = vmatpush1.bf16.msra.mxu0 %v5225_v19  ;;  %v25_v30 = vld [vmem:[%s8540_s0] sm:$0xff]  ;;  %v26_v31 = vld [vmem:[%s8540_s0 + $0x8] sm:$0xff] }
   0xd   :  { %318 = vst [vmem:[#allocation2 + $0x120] sm:$0x1] %v5611_v4  ;;  %319 = vst [vmem:[#allocation2 + $0x138] sm:$0x1] %v5611_v4  ;;  %5227 = vmatprep.subr.bf16.mxu0 %v5610_v0  ;;  %v4298_v32 = vld [vmem:[%s8538_s3 + $0x1c0] sm:$0xff]  ;;  %v4299_v33 = vld [vmem:[%s8538_s3 + $0x1c8] sm:$0xff]  ;;  %v95_v34 = vmul.f32 %v5805_v27, %v25_v30  ;;  %v96_v35 = vmul.f32 %v5805_v27, %v26_v31 }
   0xe   :  { %320 = vst [vmem:[#allocation2 + $0x150] sm:$0x1] %v5611_v4  ;;  %321 = vst [vmem:[#allocation2 + $0x168] sm:$0x1] %v5611_v4  ;;  %5277 = vmatpush3.bf16.msra.mxu1 %v5274_v18  ;;  %v27_v36 = vld [vmem:[%s8540_s0 + $0x10] sm:$0xff]  ;;  %v28_v37 = vld [vmem:[%s8540_s0 + $0x18] sm:$0xff]  ;;  %v5231_v45 = vpack.c.bf16 %v4299_v33, %v4298_v32 }
   0xf   :  { %322 = vst [vmem:[#allocation2 + $0x180] sm:$0x1] %v5611_v4  ;;  %325 = vst [vmem:[#allocation2 + $0x1c8] sm:$0x1] %v5611_v4  ;;  %5279 = vmatprep.subr.bf16.mxu1 %v5278_v24  ;;  %v4332_v39 = vld [vmem:[%s8538_s3 + $0x2d0] sm:$0xff]  ;;  %v4333_v40 = vld [vmem:[%s8538_s3 + $0x2d8] sm:$0xff]  ;;  %v165_v41 = vadd.f32 %v5810_v29, %v95_v34  ;;  %v5841_v42 = vadd.f32 %v5810_v29, %v96_v35  ;;  %v97_v43 = vmul.f32 %v5805_v27, %v27_v36 }
  0x10   :  { %326 = vst [vmem:[#allocation2 + $0x1e0] sm:$0x1] %v5611_v4  ;;  %327 = vst [vmem:[#allocation2 + $0x1f8] sm:$0x1] %v5611_v4  ;;  %v29_v44 = vld [vmem:[%s8540_s0 + $0x20] sm:$0xff]  ;;  %5229 = vmatpush1.bf16.msra.mxu0 %v5228_v28  ;;  %v98_v46 = vmul.f32 %v5805_v27, %v28_v37  ;;  %v30_v47 = vld [vmem:[%s8540_s0 + $0x28] sm:$0xff]  ;;  %v5286_v56 = vpack.c.bf16 %v4333_v40, %v4332_v39 }
  0x11   :  { %328 = vst [vmem:[#allocation2 + $0x210] sm:$0x1] %v5611_v4  ;;  %329 = vst [vmem:[#allocation2 + $0x228] sm:$0x1] %v5611_v4  ;;  %v99_v48 = vmul.f32 %v5805_v27, %v29_v44  ;;  %5230 = vmatprep.subr.bf16.mxu0 %v5610_v0  ;;  %v4300_v49 = vld [vmem:[%s8538_s3 + $0x1d0] sm:$0xff]  ;;  %v4301_v50 = vld [vmem:[%s8538_s3 + $0x1d8] sm:$0xff]  ;;  %v5861_v53 = vadd.f32 %v5810_v29, %v97_v43  ;;  %v100_v54 = vmul.f32 %v5805_v27, %v30_v47 }
  0x12   :  { %330 = vst [vmem:[#allocation2 + $0x240] sm:$0x1] %v5611_v4  ;;  %331 = vst [vmem:[#allocation2 + $0x258] sm:$0x1] %v5611_v4  ;;  %v229_v51 = vmax.f32 %v165_v41, 0.0  ;;  %v230_v52 = vmax.f32 %v5841_v42, 0.0  ;;  %5281 = vmatpush3.bf16.msra.mxu1 %v5278_v24  ;;  %v5871_v58 = vadd.f32 %v5810_v29, %v98_v46  ;;  %v5234_v5 = vpack.c.bf16 %v4301_v50, %v4300_v49 }
  0x13   :  { %332 = vst [vmem:[#allocation2 + $0x270] sm:$0x1] %v5611_v4  ;;  %333 = vst [vmem:[#allocation2 + $0x288] sm:$0x1] %v5611_v4  ;;  %v31_v55 = vld [vmem:[%s8540_s0 + $0x30] sm:$0xff]  ;;  %v4334_v57 = vld [vmem:[%s8538_s3 + $0x2e0] sm:$0xff]  ;;  %v5874_v59 = vadd.f32 %v5810_v29, %v99_v48  ;;  %5283 = vmatprep.subr.bf16.mxu1 %v5282_v38  ;;  %v5886_v63 = vadd.f32 %v5810_v29, %v100_v54 }
  0x14   :  { %334 = vst [vmem:[#allocation2 + $0x2a0] sm:$0x1] %v5611_v4  ;;  %335 = vst [vmem:[#allocation2 + $0x2b8] sm:$0x1] %v5611_v4  ;;  %v32_v60 = vld [vmem:[%s8540_s0 + $0x38] sm:$0xff]  ;;  %v4335_v61 = vld [vmem:[%s8538_s3 + $0x2e8] sm:$0xff]  ;;  %v101_v1 = vmul.f32 %v5805_v27, %v31_v55  ;;  %1181 = vmatprep.mubr.f32.mxu0 %v229_v51  ;;  %5232 = vmatpush1.bf16.msra.mxu0 %v5231_v45 }
  0x15   :  { %336 = vst [vmem:[#allocation2 + $0x2d0] sm:$0x1] %v5611_v4  ;;  %337 = vst [vmem:[#allocation2 + $0x2e8] sm:$0x1] %v5611_v4  ;;  %v231_v62 = vmax.f32 %v5861_v53, 0.0  ;;  %v102_v2 = vmul.f32 %v5805_v27, %v32_v60  ;;  %v33_v3 = vld [vmem:[%s8540_s0 + $0x40] sm:$0xff]  ;;  %5233 = vmatprep.subr.bf16.mxu0 %v5610_v0  ;;  %v5290_v17 = vpack.c.bf16 %v4335_v61, %v4334_v57 }
  0x16   :  { %338 = vst [vmem:[#allocation2 + $0x300] sm:$0x1] %v5611_v4  ;;  %339 = vst [vmem:[#allocation2 + $0x318] sm:$0x1] %v5611_v4  ;;  %v4302_v6 = vld [vmem:[%s8538_s3 + $0x1e0] sm:$0xff]  ;;  %v232_v7 = vmax.f32 %v5871_v58, 0.0  ;;  %v103_v9 = vmul.f32 %v5805_v27, %v33_v3  ;;  %v5910_v12 = vadd.f32 %v5810_v29, %v101_v1  ;;  %5285 = vmatpush3.bf16.msra.mxu1 %v5282_v38 }
  0x17   :  { %340 = vst [vmem:[#allocation2 + $0x330] sm:$0x1] %v5611_v4  ;;  %344 = vst [vmem:[#allocation2 + $0x41] sm:$0x1] %v5611_v4  ;;  %v233_v8 = vmax.f32 %v5874_v59, 0.0  ;;  %v4303_v10 = vld [vmem:[%s8538_s3 + $0x1e8] sm:$0xff]  ;;  %v5913_v13 = vadd.f32 %v5810_v29, %v102_v2  ;;  %5287 = vmatprep.subr.bf16.mxu1 %v5286_v56 }
  0x18   :  { %345 = vst [vmem:[#allocation2 + $0x59] sm:$0x1] %v5611_v4  ;;  %346 = vst [vmem:[#allocation2 + $0x71] sm:$0x1] %v5611_v4  ;;  %v234_v11 = vmax.f32 %v5886_v63, 0.0  ;;  %v35_v15 = vld [vmem:[%s8540_s0 + $0x50] sm:$0xff]  ;;  %v5927_v18 = vadd.f32 %v5810_v29, %v103_v9  ;;  %5235 = vmatpush1.bf16.msra.mxu0 %v5234_v5  ;;  %v5237_v31 = vpack.c.bf16 %v4303_v10, %v4302_v6 }
  0x19   :  { %347 = vst [vmem:[#allocation2 + $0x89] sm:$0x1] %v5611_v4  ;;  %348 = vst [vmem:[#allocation2 + $0xa1] sm:$0x1] %v5611_v4  ;;  %v36_v16 = vld [vmem:[%s8540_s0 + $0x58] sm:$0xff]  ;;  %v105_v19 = vmul.f32 %v5805_v27, %v35_v15  ;;  %v37_v20 = vld [vmem:[%s8540_s0 + $0x60] sm:$0xff]  ;;  %5236 = vmatprep.subr.bf16.mxu0 %v5610_v0 }
  0x1a   :  { %349 = vst [vmem:[#allocation2 + $0xb9] sm:$0x1] %v5611_v4  ;;  %350 = vst [vmem:[#allocation2 + $0xd1] sm:$0x1] %v5611_v4  ;;  %v38_v21 = vld [vmem:[%s8540_s0 + $0x68] sm:$0xff]  ;;  %v5939_v22 = vld [vmem:[%s8538_s3 + $0x1f0] sm:$0xff]  ;;  %v106_v30 = vmul.f32 %v5805_v27, %v36_v16  ;;  %v107_v35 = vmul.f32 %v5805_v27, %v37_v20  ;;  %5289 = vmatpush3.bf16.msra.mxu1 %v5286_v56 }
  0x1b   :  { %351 = vst [vmem:[#allocation2 + $0xe9] sm:$0x1] %v5611_v4  ;;  %352 = vst [vmem:[#allocation2 + $0x101] sm:$0x1] %v5611_v4  ;;  %v5944_v23 = vld [vmem:[%s8538_s3 + $0x1f8] sm:$0xff]  ;;  %v4336_v24 = vld [vmem:[%s8538_s3 + $0x2f0] sm:$0xff]  ;;  %v5962_v34 = vadd.f32 %v5810_v29, %v105_v19  ;;  %v108_v40 = vmul.f32 %v5805_v27, %v38_v21  ;;  %5291 = vmatprep.subr.bf16.mxu1 %v5290_v17 }
  0x1c   :  { %353 = vst [vmem:[#allocation2 + $0x119] sm:$0x1] %v5611_v4  ;;  %354 = vst [vmem:[#allocation2 + $0x131] sm:$0x1] %v5611_v4  ;;  %v235_v25 = vmax.f32 %v5910_v12, 0.0  ;;  %v236_v26 = vmax.f32 %v5913_v13, 0.0  ;;  %v5978_v39 = vadd.f32 %v5810_v29, %v106_v30  ;;  %v5240_v43 = vpack.c.bf16 %v5944_v23, %v5939_v22  ;;  %5238 = vmatpush1.bf16.msra.mxu0 %v5237_v31 }
  0x1d   :  { %355 = vst [vmem:[#allocation2 + $0x149] sm:$0x1] %v5611_v4  ;;  %356 = vst [vmem:[#allocation2 + $0x161] sm:$0x1] %v5611_v4  ;;  %v4337_v32 = vld [vmem:[%s8538_s3 + $0x2f8] sm:$0xff]  ;;  %v8565_v33 = vmax.f32 %v5927_v18, 0.0  ;;  %v5990_v46 = vadd.f32 %v5810_v29, %v107_v35  ;;  %5239 = vmatprep.subr.bf16.mxu0 %v5610_v0 }
  0x1e   :  { %357 = vst [vmem:[#allocation2 + $0x179] sm:$0x1] %v5611_v4  ;;  %358 = vst [vmem:[#allocation2 + $0x191] sm:$0x1] %v5611_v4  ;;  %v39_v36 = vld [vmem:[%s8540_s0 + $0x70] sm:$0xff]  ;;  %v40_v37 = vld [vmem:[%s8540_s0 + $0x78] sm:$0xff]  ;;  %v5294_v48 = vpack.c.bf16 %v4337_v32, %v4336_v24  ;;  %5293 = vmatpush3.bf16.msra.mxu1 %v5290_v17 }
  0x1f   :  { %361 = vst [vmem:[#allocation2 + $0x1d9] sm:$0x1] %v5611_v4  ;;  %362 = vst [vmem:[#allocation2 + $0x1f1] sm:$0x1] %v5611_v4  ;;  %v41_v41 = vld [vmem:[%s8540_s0 + $0x80] sm:$0xff]  ;;  %v8563_v45 = vmax.f32 %v5962_v34, 0.0  ;;  %v109_v47 = vmul.f32 %v5805_v27, %v39_v36  ;;  %v110_v54 = vmul.f32 %v5805_v27, %v40_v37 }
  0x20   :  { %363 = vst [vmem:[#allocation2 + $0x209] sm:$0x1] %v5611_v4  ;;  %364 = vst [vmem:[#allocation2 + $0x221] sm:$0x1] %v5611_v4  ;;  %v5996_v49 = vld [vmem:[%s8538_s3 + $0x200] sm:$0xff]  ;;  %v8562_v50 = vmax.f32 %v5978_v39, 0.0  ;;  %v111_v61 = vmul.f32 %v5805_v27, %v41_v41  ;;  %5295 = vmatprep.subr.bf16.mxu1 %v5294_v48  ;;  %5241 = vmatpush1.bf16.msra.mxu0 %v5240_v43 }
  0x21   :  { %365 = vst [vmem:[#allocation2 + $0x239] sm:$0x1] %v5611_v4  ;;  %366 = vst [vmem:[#allocation2 + $0x251] sm:$0x1] %v5611_v4  ;;  %v42_v55 = vld [vmem:[%s8540_s0 + $0x88] sm:$0xff]  ;;  %v8560_v57 = vmax.f32 %v5990_v46, 0.0  ;;  %v6015_v60 = vadd.f32 %v5810_v29, %v109_v47  ;;  %v6030_v5 = vadd.f32 %v5810_v29, %v110_v54  ;;  %5242 = vmatprep.subr.bf16.mxu0 %v5610_v0 }
  0x22   :  { %367 = vst [vmem:[#allocation2 + $0x269] sm:$0x1] %v5611_v4  ;;  %368 = vst [vmem:[#allocation2 + $0x281] sm:$0x1] %v5611_v4  ;;  %v4307_v56 = vld [vmem:[%s8538_s3 + $0x208] sm:$0xff]  ;;  %v112_v1 = vmul.f32 %v5805_v27, %v42_v55  ;;  %v43_v2 = vld [vmem:[%s8540_s0 + $0x90] sm:$0xff]  ;;  %v6045_v15 = vadd.f32 %v5810_v29, %v111_v61  ;;  %5297 = vmatpush3.bf16.msra.mxu1 %v5294_v48 }
  0x23   :  { %369 = vst [vmem:[#allocation2 + $0x299] sm:$0x1] %v5611_v4  ;;  %370 = vst [vmem:[#allocation2 + $0x2b1] sm:$0x1] %v5611_v4  ;;  %v44_v3 = vld [vmem:[%s8540_s0 + $0x98] sm:$0xff]  ;;  %v113_v6 = vmul.f32 %v5805_v27, %v43_v2  ;;  %v6036_v9 = vld [vmem:[%s8538_s3] sm:$0xff]  ;;  %v5243_v20 = vpack.c.bf16 %v4307_v56, %v5996_v49  ;;  %5298 = vmatprep.subr.bf16.mxu1 %v5610_v0 }
  0x24   :  { %371 = vst [vmem:[#allocation2 + $0x2c9] sm:$0x1] %v5611_v4  ;;  %372 = vst [vmem:[#allocation2 + $0x2e1] sm:$0x1] %v5611_v4  ;;  %v1021_v10 = vld [vmem:[%s8538_s3 + $0x8] sm:$0xff]  ;;  %v6048_v16 = vadd.f32 %v5810_v29, %v112_v1  ;;  %v114_v17 = vmul.f32 %v5805_v27, %v44_v3  ;;  %v45_v19 = vld [vmem:[%s8540_s0 + $0xa0] sm:$0xff] }
  0x25   :  { %373 = vst [vmem:[#allocation2 + $0x2f9] sm:$0x1] %v5611_v4  ;;  %374 = vst [vmem:[#allocation2 + $0x311] sm:$0x1] %v5611_v4  ;;  %v8556_v21 = vmax.f32 %v6030_v5, 0.0  ;;  %v6059_v22 = vadd.f32 %v5810_v29, %v113_v6  ;;  %v46_v23 = vld [vmem:[%s8540_s0 + $0xa8] sm:$0xff]  ;;  %v115_v24 = vmul.f32 %v5805_v27, %v45_v19  ;;  %5244 = vmatpush1.bf16.msra.mxu0 %v5243_v20 }
  0x26   :  { %375 = vst [vmem:[#allocation2 + $0x329] sm:$0x1] %v5611_v4  ;;  %376 = vst [vmem:[#allocation2 + $0x341] sm:$0x1] %v5611_v4  ;;  %v6068_v30 = vld [vmem:[%s8538_s3 + $0x210] sm:$0xff]  ;;  %v6073_v31 = vld [vmem:[%s8538_s3 + $0x218] sm:$0xff]  ;;  %v6080_v36 = vadd.f32 %v5810_v29, %v114_v17  ;;  %v116_v37 = vmul.f32 %v5805_v27, %v46_v23  ;;  %5245 = vmatprep.subr.bf16.mxu0 %v5610_v0 }
  0x27   :  { %306 = vst [vmem:[#allocation2] sm:$0x1] %v5611_v4  ;;  %323 = vst [vmem:[#allocation2 + $0x198] sm:$0x1] %v5611_v4  ;;  %v8555_v32 = vmax.f32 %v6045_v15, 0.0  ;;  %v8550_v35 = vmax.f32 %v6048_v16, 0.0  ;;  %v5246_v6 = vpack.c.bf16 %v6073_v31, %v6068_v30 }
  0x28   :  { %324 = vst [vmem:[#allocation2 + $0x1b0] sm:$0x1] %v5611_v4  ;;  %341 = vst [vmem:[#allocation2 + $0x348] sm:$0x1] %v5611_v4  ;;  %v6088_v41 = vld [vmem:[%s8538_s3 + $0x10] sm:$0xff]  ;;  %v8549_v43 = vmax.f32 %v6059_v22, 0.0  ;;  %v6113_v61 = vadd.f32 %v5810_v29, %v116_v37 }
  0x29   :  { %342 = vst [vmem:[#allocation2 + $0x11] sm:$0x1] %v5611_v4  ;;  %359 = vst [vmem:[#allocation2 + $0x1a9] sm:$0x1] %v5611_v4  ;;  %v47_v47 = vld [vmem:[%s8540_s0 + $0xb0] sm:$0xff]  ;;  %v48_v49 = vld [vmem:[%s8540_s0 + $0xb8] sm:$0xff]  ;;  %5247 = vmatpush1.bf16.msra.mxu0 %v5246_v6 }
  0x2a   :  { %360 = vst [vmem:[#allocation2 + $0x1c1] sm:$0x1] %v5611_v4  ;;  %377 = vst [vmem:[#allocation2 + $0x359] sm:$0x1] %v5611_v4  ;;  %v34_v4 = vld [vmem:[%s8540_s0 + $0x48] sm:$0xff]  ;;  %v6105_v55 = vld [vmem:[%s8538_s3 + $0x18] sm:$0xff]  ;;  %v117_v1 = vmul.f32 %v5805_v27, %v47_v47  ;;  %v118_v48 = vmul.f32 %v5805_v27, %v48_v49  ;;  %5248 = vmatprep.subr.bf16.mxu0 %v5610_v0 }
  0x2b   :  { %379 = vst [vmem:[#allocation2 + $0x19] sm:$0xff] %v229_v51  ;;  %380 = vst [vmem:[#allocation2 + $0x21] sm:$0xff] %v230_v52  ;;  %v104_v14 = vmul.f32 %v5805_v27, %v34_v4  ;;  %v6002_v51 = vadd.f32 %v5810_v29, %v108_v40  ;;  %v5299_v40 = vpack.c.bf16 %v1021_v10, %v6036_v9  ;;  %v8548_v56 = vmax.f32 %v6080_v36, 0.0  ;;  %v49_v2 = vld [vmem:[%s8540_s0 + $0xc0] sm:$0xff]  ;;  %v50_v10 = vld [vmem:[%s8540_s0 + $0xc8] sm:$0xff] }
  0x2c   :  { %381 = vst [vmem:[#allocation2 + $0x31] sm:$0xff] %v231_v62  ;;  %382 = vst [vmem:[#allocation2 + $0x39] sm:$0xff] %v232_v7  ;;  %v119_v17 = vmul.f32 %v5805_v27, %v49_v2  ;;  %v4310_v19 = vld [vmem:[%s8538_s3 + $0x220] sm:$0xff]  ;;  %v8546_v23 = vmax.f32 %v6113_v61, 0.0  ;;  %v6140_v30 = vadd.f32 %v5810_v29, %v118_v48  ;;  %v120_v31 = vmul.f32 %v5805_v27, %v50_v10  ;;  %v4311_v20 = vld [vmem:[%s8538_s3 + $0x228] sm:$0xff] }
  0x2d   :  { %383 = vst [vmem:[#allocation2 + $0x49] sm:$0xff] %v233_v8  ;;  %384 = vst [vmem:[#allocation2 + $0x51] sm:$0xff] %v234_v11  ;;  %v5954_v28 = vadd.f32 %v5810_v29, %v104_v14  ;;  %v8559_v4 = vmax.f32 %v6002_v51, 0.0  ;;  %v8557_v14 = vmax.f32 %v6015_v60, 0.0  ;;  %v5302_v37 = vpack.c.bf16 %v6105_v55, %v6088_v41  ;;  %v51_v49 = vld [vmem:[%s8540_s0 + $0xd0] sm:$0xff]  ;;  %v6163_v41 = vld [vmem:[%s8538_s3 + $0x20] sm:$0xff] }
  0x2e   :  { %385 = vst [vmem:[#allocation2 + $0x61] sm:$0xff] %v235_v25  ;;  %386 = vst [vmem:[#allocation2 + $0x69] sm:$0xff] %v236_v26  ;;  %v6152_v47 = vadd.f32 %v5810_v29, %v119_v17  ;;  %v8551_v48 = vmax.f32 %v6140_v30, 0.0  ;;  %v6170_v2 = vadd.f32 %v5810_v29, %v120_v31  ;;  %v121_v10 = vmul.f32 %v5805_v27, %v51_v49  ;;  %v1025_v17 = vld [vmem:[%s8538_s3 + $0x28] sm:$0xff]  ;;  %v4312_v6 = vld [vmem:[%s8538_s3 + $0x230] sm:$0xff] }
  0x2f   :  { %v8564_v38 = vmax.f32 %v5954_v28, 0.0  ;;  %387 = vst [vmem:[#allocation2 + $0x79] sm:$0xff] %v8565_v33  ;;  %389 = vst [vmem:[#allocation2 + $0x91] sm:$0xff] %v8563_v45  ;;  %v54_v31 = vld [vmem:[%s8540_s0 + $0xe8] sm:$0xff]  ;;  %v1056_v53 = vld [vmem:[%s8538_s3 + $0x120] sm:$0xff] }
  0x30   :  { %390 = vst [vmem:[#allocation2 + $0x99] sm:$0xff] %v8562_v50  ;;  %391 = vst [vmem:[#allocation2 + $0xa9] sm:$0xff] %v8560_v57  ;;  %v59_v57 = vld [vmem:[%s8540_s0 + $0x110] sm:$0xff]  ;;  %v61_v50 = vld [vmem:[%s8540_s0 + $0x120] sm:$0xff] }
  0x31   :  { %388 = vst [vmem:[#allocation2 + $0x81] sm:$0xff] %v8564_v38  ;;  %392 = vst [vmem:[#allocation2 + $0xb1] sm:$0xff] %v8559_v4  ;;  %v62_v45 = vld [vmem:[%s8540_s0 + $0x128] sm:$0xff]  ;;  %v1046_v59 = vld [vmem:[%s8538_s3 + $0xd0] sm:$0xff] }
  0x32   :  { %v763_v44 = vld [vmem:[#allocation2 + $0x1a] sm:$0xff]  ;;  %393 = vst [vmem:[#allocation2 + $0xc1] sm:$0xff] %v8557_v14  ;;  %394 = vst [vmem:[#allocation2 + $0xc9] sm:$0xff] %v8556_v21  ;;  %v764_v54 = vld [vmem:[#allocation2 + $0x22] sm:$0xff] }
  0x33   :  { %4738 = vmatprep.mubr.f32.mxu1 %v763_v44  ;;  %v6094_v44 = vadd.f32 %v5810_v29, %v115_v24  ;;  %395 = vst [vmem:[#allocation2 + $0xd9] sm:$0xff] %v8555_v32  ;;  %396 = vst [vmem:[#allocation2 + $0xe1] sm:$0xff] %v8550_v35  ;;  %v765_v3 = vld [vmem:[#allocation2 + $0x32] sm:$0xff]  ;;  %v6137_v24 = vadd.f32 %v5810_v29, %v117_v1  ;;  %v766_v1 = vld [vmem:[#allocation2 + $0x3a] sm:$0xff]  ;;  %v6192_v35 = vadd.f32 %v5810_v29, %v121_v10 }
  0x34   :  { %397 = vst [vmem:[#allocation2 + $0xf1] sm:$0xff] %v8549_v43  ;;  %398 = vst [vmem:[#allocation2 + $0xf9] sm:$0xff] %v8548_v56  ;;  %4739 = vmatmul.mubr.f32.vlgmr.msra.gmra.mrb[0].mxu1 %v764_v54  ;;  %v52_v54 = vld [vmem:[%s8540_s0 + $0xd8] sm:$0xff]  ;;  %v5249_v56 = vpack.c.bf16 %v4311_v20, %v4310_v19  ;;  %v8553_v43 = vmax.f32 %v6170_v2, 0.0  ;;  %v6232_v32 = vld [vmem:[%s8538_s3 + $0x240] sm:$0xff] }
  0x35   :  { %v8547_v9 = vmax.f32 %v6094_v44, 0.0  ;;  %5300 = vmatpush1.bf16.msra.mxu1 %v5299_v40  ;;  %4741 = vmatprep.mubr.f32.mxu1 %v765_v3  ;;  %400 = vst [vmem:[#allocation2 + $0x111] sm:$0xff] %v8546_v23  ;;  %v8554_v55 = vmax.f32 %v6137_v24, 0.0  ;;  %v53_v40 = vld [vmem:[%s8540_s0 + $0xe0] sm:$0xff]  ;;  %v767_v3 = vld [vmem:[#allocation2 + $0x4a] sm:$0xff]  ;;  %v8552_v23 = vmax.f32 %v6152_v47, 0.0 }
  0x36   :  { %5301 = vmatprep.subr.bf16.mxu1 %v5610_v0  ;;  %v123_v49 = vmul.f32 %v5805_v27, %v53_v40  ;;  %402 = vst [vmem:[#allocation2 + $0x129] sm:$0xff] %v8551_v48  ;;  %v4313_v19 = vld [vmem:[%s8538_s3 + $0x238] sm:$0xff]  ;;  %v5305_v40 = vpack.c.bf16 %v1025_v17, %v6163_v41  ;;  %404 = vst [vmem:[#allocation2 + $0x141] sm:$0xff] %v8553_v43  ;;  %5250 = vmatpush1.bf16.msra.mxu0 %v5249_v56  ;;  %v57_v14 = vld [vmem:[%s8540_s0 + $0x100] sm:$0xff] }
  0x37   :  { %399 = vst [vmem:[#allocation2 + $0x109] sm:$0xff] %v8547_v9  ;;  %v122_v9 = vmul.f32 %v5805_v27, %v52_v54  ;;  %401 = vst [vmem:[#allocation2 + $0x121] sm:$0xff] %v8554_v55  ;;  %v124_v54 = vmul.f32 %v5805_v27, %v54_v31  ;;  %v8558_v31 = vmax.f32 %v6192_v35, 0.0  ;;  %v1027_v41 = vld [vmem:[%s8538_s3 + $0x38] sm:$0xff]  ;;  %v5252_v55 = vpack.c.bf16 %v4313_v19, %v4312_v6  ;;  %v4315_v56 = vld [vmem:[%s8538_s3 + $0x248] sm:$0xff] }
  0x38   :  { %4742 = vmatmul.mubr.f32.gmra.mrb[2].mxu1 %v766_v1  ;;  %403 = vst [vmem:[#allocation2 + $0x139] sm:$0xff] %v8552_v23  ;;  %v193_v10 = vadd.f32 %v5810_v29, %v123_v49  ;;  %v768_v1 = vld [vmem:[#allocation2 + $0x52] sm:$0xff]  ;;  %5251 = vmatprep.subr.bf16.mxu0 %v5610_v0  ;;  %v1049_v63 = vld [vmem:[%s8538_s3 + $0xe8] sm:$0xff] }
  0x39   :  { %v6205_v20 = vadd.f32 %v5810_v29, %v122_v9  ;;  %4744 = vmatprep.mubr.f32.mxu1 %v767_v3  ;;  %5303 = vmatpush1.bf16.msra.mxu1 %v5302_v37  ;;  %v194_v48 = vadd.f32 %v5810_v29, %v124_v54  ;;  %v55_v23 = vld [vmem:[%s8540_s0 + $0xf0] sm:$0xff]  ;;  %v56_v9 = vld [vmem:[%s8540_s0 + $0xf8] sm:$0xff]  ;;  %v769_v3 = vld [vmem:[#allocation2 + $0x62] sm:$0xff]  ;;  %405 = vst [vmem:[#allocation2 + $0x151] sm:$0xff] %v8558_v31 }
  0x3a   :  { %5304 = vmatprep.subr.bf16.mxu1 %v5610_v0  ;;  %v1026_v37 = vld [vmem:[%s8538_s3 + $0x30] sm:$0xff]  ;;  %v257_v49 = vmax.f32 %v193_v10, 0.0  ;;  %v125_v54 = vmul.f32 %v5805_v27, %v55_v23  ;;  %v126_v43 = vmul.f32 %v5805_v27, %v56_v9  ;;  %v58_v23 = vld [vmem:[%s8540_s0 + $0x108] sm:$0xff]  ;;  %5253 = vmatpush1.bf16.msra.mxu0 %v5252_v55  ;;  %v1051_v12 = vld [vmem:[%s8538_s3 + $0xf8] sm:$0xff] }
  0x3b   :  { %v8561_v17 = vmax.f32 %v6205_v20, 0.0  ;;  %v258_v21 = vmax.f32 %v194_v48, 0.0  ;;  %v6249_v6 = vld [vmem:[%s8538_s3 + $0x250] sm:$0xff]  ;;  %v6254_v48 = vld [vmem:[%s8538_s3 + $0x258] sm:$0xff]  ;;  %v5308_v31 = vpack.c.bf16 %v1027_v41, %v1026_v37  ;;  %v128_v4 = vmul.f32 %v5805_v27, %v58_v23  ;;  %5254 = vmatprep.subr.bf16.mxu0 %v5610_v0  ;;  %v1061_v13 = vld [vmem:[%s8538_s3 + $0x148] sm:$0xff] }
  0x3c   :  { %4745 = vmatmul.mubr.f32.gmra.mrb[4].mxu1 %v768_v1  ;;  %407 = vst [vmem:[#allocation2 + $0x169] sm:$0xff] %v257_v49  ;;  %v6259_v19 = vadd.f32 %v5810_v29, %v125_v54  ;;  %v196_v10 = vadd.f32 %v5810_v29, %v126_v43  ;;  %v127_v1 = vmul.f32 %v5805_v27, %v57_v14  ;;  %v770_v9 = vld [vmem:[#allocation2 + $0x6a] sm:$0xff]  ;;  %v60_v49 = vld [vmem:[%s8540_s0 + $0x118] sm:$0xff]  ;;  %v1028_v14 = vld [vmem:[%s8538_s3 + $0x40] sm:$0xff] }
  0x3d   :  { %406 = vst [vmem:[#allocation2 + $0x159] sm:$0xff] %v8561_v17  ;;  %4747 = vmatprep.mubr.f32.mxu1 %v769_v3  ;;  %5306 = vmatpush1.bf16.msra.mxu1 %v5305_v40  ;;  %408 = vst [vmem:[#allocation2 + $0x171] sm:$0xff] %v258_v21  ;;  %v771_v54 = vld [vmem:[#allocation2 + $0x7a] sm:$0xff]  ;;  %v1029_v21 = vld [vmem:[%s8538_s3 + $0x48] sm:$0xff]  ;;  %v129_v37 = vmul.f32 %v5805_v27, %v59_v57  ;;  %v5255_v41 = vpack.c.bf16 %v4315_v56, %v6232_v32 }
  0x3e   :  { %5307 = vmatprep.subr.bf16.mxu1 %v5610_v0  ;;  %v259_v43 = vmax.f32 %v6259_v19, 0.0  ;;  %v260_v40 = vmax.f32 %v196_v10, 0.0  ;;  %v197_v3 = vadd.f32 %v5810_v29, %v127_v1  ;;  %v198_v23 = vadd.f32 %v5810_v29, %v128_v4  ;;  %v6293_v57 = vld [vmem:[%s8538_s3 + $0x50] sm:$0xff]  ;;  %v6298_v4 = vld [vmem:[%s8538_s3 + $0x58] sm:$0xff]  ;;  %v772_v1 = vld [vmem:[#allocation2 + $0x82] sm:$0xff] }
  0x3f   :  { %v130_v17 = vmul.f32 %v5805_v27, %v60_v49  ;;  %v199_v55 = vadd.f32 %v5810_v29, %v129_v37  ;;  %v131_v56 = vmul.f32 %v5805_v27, %v61_v50  ;;  %v132_v10 = vmul.f32 %v5805_v27, %v62_v45  ;;  %v64_v50 = vld [vmem:[%s8540_s0 + $0x138] sm:$0xff]  ;;  %5256 = vmatpush1.bf16.msra.mxu0 %v5255_v41 }
  0x40   :  { %4748 = vmatmul.mubr.f32.gmra.mrb[6].mxu1 %v770_v9  ;;  %409 = vst [vmem:[#allocation2 + $0x181] sm:$0xff] %v259_v43  ;;  %410 = vst [vmem:[#allocation2 + $0x189] sm:$0xff] %v260_v40  ;;  %v261_v32 = vmax.f32 %v197_v3, 0.0  ;;  %v5258_v9 = vpack.c.bf16 %v6254_v48, %v6249_v6  ;;  %v5311_v49 = vpack.c.bf16 %v1029_v21, %v1028_v14  ;;  %v262_v38 = vmax.f32 %v198_v23, 0.0  ;;  %v63_v40 = vld [vmem:[%s8540_s0 + $0x130] sm:$0xff]  ;;  %v6327_v14 = vld [vmem:[%s8538_s3 + $0x260] sm:$0xff] }
  0x41   :  { %4750 = vmatprep.mubr.f32.mxu1 %v771_v54  ;;  %5309 = vmatpush1.bf16.msra.mxu1 %v5308_v31  ;;  %v200_v33 = vadd.f32 %v5810_v29, %v130_v17  ;;  %v773_v3 = vld [vmem:[#allocation2 + $0x92] sm:$0xff]  ;;  %v263_v45 = vmax.f32 %v199_v55, 0.0  ;;  %v201_v6 = vadd.f32 %v5810_v29, %v131_v56  ;;  %v202_v31 = vadd.f32 %v5810_v29, %v132_v10  ;;  %v65_v17 = vld [vmem:[%s8540_s0 + $0x140] sm:$0xff]  ;;  %v66_v54 = vld [vmem:[%s8540_s0 + $0x148] sm:$0xff] }
  0x42   :  { %5310 = vmatprep.subr.bf16.mxu1 %v5610_v0  ;;  %411 = vst [vmem:[#allocation2 + $0x1c9] sm:$0xff] %v261_v32  ;;  %v133_v48 = vmul.f32 %v5805_v27, %v63_v40  ;;  %v6332_v21 = vld [vmem:[%s8538_s3 + $0x268] sm:$0xff]  ;;  %412 = vst [vmem:[#allocation2 + $0x1d1] sm:$0xff] %v262_v38  ;;  %v134_v23 = vmul.f32 %v5805_v27, %v64_v50  ;;  %v135_v32 = vmul.f32 %v5805_v27, %v65_v17  ;;  %v6343_v56 = vld [vmem:[%s8538_s3 + $0x60] sm:$0xff] }
  0x43   :  { %v264_v37 = vmax.f32 %v200_v33, 0.0  ;;  %v136_v55 = vmul.f32 %v5805_v27, %v66_v54  ;;  %5257 = vmatprep.subr.bf16.mxu0 %v5610_v0  ;;  %v5314_v41 = vpack.c.bf16 %v6298_v4, %v6293_v57  ;;  %v6348_v33 = vld [vmem:[%s8538_s3 + $0x68] sm:$0xff]  ;;  %413 = vst [vmem:[#allocation2 + $0x1e1] sm:$0xff] %v263_v45  ;;  %v265_v38 = vmax.f32 %v201_v6, 0.0  ;;  %v774_v40 = vld [vmem:[#allocation2 + $0x9a] sm:$0xff]  ;;  %v67_v17 = vld [vmem:[%s8540_s0 + $0x150] sm:$0xff] }
  0x44   :  { %4751 = vmatmul.mubr.f32.gmra.mrb[8].mxu1 %v772_v1  ;;  %v266_v10 = vmax.f32 %v202_v31, 0.0  ;;  %v203_v1 = vadd.f32 %v5810_v29, %v133_v48  ;;  %v204_v57 = vadd.f32 %v5810_v29, %v134_v23  ;;  %v205_v4 = vadd.f32 %v5810_v29, %v135_v32  ;;  %v68_v45 = vld [vmem:[%s8540_s0 + $0x158] sm:$0xff]  ;;  %v775_v6 = vld [vmem:[#allocation2 + $0xaa] sm:$0xff]  ;;  %v69_v54 = vld [vmem:[%s8540_s0 + $0x160] sm:$0xff]  ;;  %5259 = vmatpush1.bf16.msra.mxu0 %v5258_v9 }
  0x45   :  { %4753 = vmatprep.mubr.f32.mxu1 %v773_v3  ;;  %5312 = vmatpush1.bf16.msra.mxu1 %v5311_v49  ;;  %414 = vst [vmem:[#allocation2 + $0x1e9] sm:$0xff] %v264_v37  ;;  %v206_v50 = vadd.f32 %v5810_v29, %v136_v55  ;;  %v5261_v3 = vpack.c.bf16 %v6332_v21, %v6327_v14  ;;  %415 = vst [vmem:[#allocation2 + $0x1f9] sm:$0xff] %v265_v38  ;;  %v70_v37 = vld [vmem:[%s8540_s0 + $0x168] sm:$0xff]  ;;  %v6374_v14 = vld [vmem:[%s8538_s3 + $0x270] sm:$0xff] }
  0x46   :  { %5313 = vmatprep.subr.bf16.mxu1 %v5610_v0  ;;  %416 = vst [vmem:[#allocation2 + $0x201] sm:$0xff] %v266_v10  ;;  %v267_v49 = vmax.f32 %v203_v1, 0.0  ;;  %v137_v31 = vmul.f32 %v5805_v27, %v67_v17  ;;  %v138_v48 = vmul.f32 %v5805_v27, %v68_v45  ;;  %v268_v21 = vmax.f32 %v204_v57, 0.0  ;;  %5260 = vmatprep.subr.bf16.mxu0 %v5610_v0  ;;  %v4321_v38 = vld [vmem:[%s8538_s3 + $0x278] sm:$0xff]  ;;  %v1052_v9 = vld [vmem:[%s8538_s3 + $0x100] sm:$0xff]  ;;  %v1053_v10 = vld [vmem:[%s8538_s3 + $0x108] sm:$0xff] }
  0x47   :  { %v269_v23 = vmax.f32 %v205_v4, 0.0  ;;  %v270_v32 = vmax.f32 %v206_v50, 0.0  ;;  %v139_v55 = vmul.f32 %v5805_v27, %v69_v54  ;;  %v776_v4 = vld [vmem:[#allocation2 + $0xb2] sm:$0xff]  ;;  %v5317_v50 = vpack.c.bf16 %v6348_v33, %v6343_v56  ;;  %v5513_v19 = vld [vmem:[#allocation2 + $0x189] sm:$0xff] }
  0x48   :  { %4754 = vmatmul.mubr.f32.gmra.mrb[10].mxu1 %v774_v40  ;;  %417 = vst [vmem:[#allocation2 + $0x211] sm:$0xff] %v267_v49  ;;  %v207_v1 = vadd.f32 %v5810_v29, %v137_v31  ;;  %v208_v57 = vadd.f32 %v5810_v29, %v138_v48  ;;  %v140_v40 = vmul.f32 %v5805_v27, %v70_v37  ;;  %418 = vst [vmem:[#allocation2 + $0x219] sm:$0xff] %v268_v21  ;;  %v71_v45 = vld [vmem:[%s8540_s0 + $0x170] sm:$0xff]  ;;  %v72_v49 = vld [vmem:[%s8540_s0 + $0x178] sm:$0xff] }
  0x49   :  { %4756 = vmatprep.mubr.f32.mxu1 %v775_v6  ;;  %5315 = vmatpush1.bf16.msra.mxu1 %v5314_v41  ;;  %419 = vst [vmem:[#allocation2 + $0x229] sm:$0xff] %v269_v23  ;;  %420 = vst [vmem:[#allocation2 + $0x231] sm:$0xff] %v270_v32  ;;  %v209_v17 = vadd.f32 %v5810_v29, %v139_v55  ;;  %v777_v31 = vld [vmem:[#allocation2 + $0xc2] sm:$0xff]  ;;  %v1034_v41 = vld [vmem:[%s8538_s3 + $0x70] sm:$0xff]  ;;  %v141_v54 = vmul.f32 %v5805_v27, %v71_v45 }
  0x4a   :  { %5316 = vmatprep.subr.bf16.mxu1 %v5610_v0  ;;  %v1035_v56 = vld [vmem:[%s8538_s3 + $0x78] sm:$0xff]  ;;  %v271_v33 = vmax.f32 %v207_v1, 0.0  ;;  %v272_v6 = vmax.f32 %v208_v57, 0.0  ;;  %v210_v48 = vadd.f32 %v5810_v29, %v140_v40  ;;  %5262 = vmatpush1.bf16.msra.mxu0 %v5261_v3  ;;  %v5264_v37 = vpack.c.bf16 %v4321_v38, %v6374_v14  ;;  %v73_v55 = vld [vmem:[%s8540_s0 + $0x180] sm:$0xff]  ;;  %v74_v1 = vld [vmem:[%s8540_s0 + $0x188] sm:$0xff] }
  0x4b   :  { %v6409_v21 = vpack.c.bf16 %v1053_v10, %v1052_v9  ;;  %v273_v23 = vmax.f32 %v209_v17, 0.0  ;;  %v142_v32 = vmul.f32 %v5805_v27, %v72_v49  ;;  %5263 = vmatprep.subr.bf16.mxu0 %v5610_v0  ;;  %v1054_v14 = vld [vmem:[%s8538_s3 + $0x110] sm:$0xff]  ;;  %v1055_v38 = vld [vmem:[%s8538_s3 + $0x118] sm:$0xff]  ;;  %v211_v9 = vadd.f32 %v5810_v29, %v141_v54  ;;  %v6431_v45 = vld [vmem:[%s8538_s3 + $0x80] sm:$0xff] }
  0x4c   :  { %4757 = vmatmul.mubr.f32.gmra.mrb[12].mxu1 %v776_v4  ;;  %421 = vst [vmem:[#allocation2 + $0x241] sm:$0xff] %v271_v33  ;;  %422 = vst [vmem:[#allocation2 + $0x249] sm:$0xff] %v272_v6  ;;  %v274_v3 = vmax.f32 %v210_v48, 0.0  ;;  %v143_v10 = vmul.f32 %v5805_v27, %v73_v55  ;;  %v144_v57 = vmul.f32 %v5805_v27, %v74_v1  ;;  %v778_v40 = vld [vmem:[#allocation2 + $0xca] sm:$0xff]  ;;  %v779_v4 = vld [vmem:[#allocation2 + $0xda] sm:$0xff] }
  0x4d   :  { %4759 = vmatprep.mubr.f32.mxu1 %v777_v31  ;;  %5318 = vmatpush1.bf16.msra.mxu1 %v5317_v50  ;;  %v5320_v17 = vpack.c.bf16 %v1035_v56, %v1034_v41  ;;  %423 = vst [vmem:[#allocation2 + $0x259] sm:$0xff] %v273_v23  ;;  %v212_v49 = vadd.f32 %v5810_v29, %v142_v32  ;;  %v1037_v33 = vld [vmem:[%s8538_s3 + $0x88] sm:$0xff]  ;;  %v275_v31 = vmax.f32 %v211_v9, 0.0  ;;  %v75_v41 = vld [vmem:[%s8540_s0 + $0x190] sm:$0xff]  ;;  %v76_v56 = vld [vmem:[%s8540_s0 + $0x198] sm:$0xff] }
  0x4e   :  { %5319 = vmatprep.subr.bf16.mxu1 %v5610_v0  ;;  %424 = vst [vmem:[#allocation2 + $0x261] sm:$0xff] %v274_v3  ;;  %v213_v6 = vadd.f32 %v5810_v29, %v143_v10  ;;  %v214_v50 = vadd.f32 %v5810_v29, %v144_v57  ;;  %5265 = vmatpush1.bf16.msra.mxu0 %v5264_v37  ;;  %v635_v48 = vld [vmem:[#allocation2 + $0x18] sm:$0xff]  ;;  %v77_v1 = vld [vmem:[%s8540_s0 + $0x1a0] sm:$0xff]  ;;  %v78_v3 = vld [vmem:[%s8540_s0 + $0x1a8] sm:$0xff] }
  0x4f   :  { %v6446_v54 = vpack.c.bf16 %v1055_v38, %v1054_v14  ;;  %v276_v23 = vmax.f32 %v212_v49, 0.0  ;;  %v145_v32 = vmul.f32 %v5805_v27, %v75_v41  ;;  %v146_v55 = vmul.f32 %v5805_v27, %v76_v56  ;;  %5347 = vmatprep.subr.bf16.mxu0 %v6409_v21  ;;  %425 = vst [vmem:[#allocation2 + $0x271] sm:$0xff] %v275_v31  ;;  %v780_v10 = vld [vmem:[#allocation2 + $0xe2] sm:$0xff]  ;;  %v6463_v49 = vld [vmem:[%s8538_s3 + $0x90] sm:$0xff] }
  0x50   :  { %4760 = vmatmul.mubr.f32.gmra.mrb[14].mxu1 %v778_v40  ;;  %v277_v37 = vmax.f32 %v213_v6, 0.0  ;;  %v278_v14 = vmax.f32 %v214_v50, 0.0  ;;  %v147_v38 = vmul.f32 %v5805_v27, %v77_v1  ;;  %v148_v9 = vmul.f32 %v5805_v27, %v78_v3  ;;  %v6468_v40 = vld [vmem:[%s8538_s3 + $0x98] sm:$0xff]  ;;  %v79_v6 = vld [vmem:[%s8540_s0 + $0x1b0] sm:$0xff]  ;;  %v636_v41 = vld [vmem:[#allocation2 + $0x20] sm:$0xff] }
  0x51   :  { %4762 = vmatprep.mubr.f32.mxu1 %v779_v4  ;;  %5321 = vmatpush1.bf16.msra.mxu1 %v5320_v17  ;;  %v5323_v57 = vpack.c.bf16 %v1037_v33, %v6431_v45  ;;  %426 = vst [vmem:[#allocation2 + $0x279] sm:$0xff] %v276_v23  ;;  %v6471_v31 = vadd.f32 %v5810_v29, %v145_v32  ;;  %v781_v17 = vld [vmem:[#allocation2 + $0xf2] sm:$0xff] }
  0x52   :  { %v216_v4 = vadd.f32 %v5810_v29, %v146_v55  ;;  %1182 = vmatmul.mubr.f32.vlgmr.msra.gmra.mrb[0].mxu0 %v635_v48  ;;  %5322 = vmatprep.subr.bf16.mxu1 %v5610_v0  ;;  %427 = vst [vmem:[#allocation2 + $0x289] sm:$0xff] %v277_v37  ;;  %428 = vst [vmem:[#allocation2 + $0x291] sm:$0xff] %v278_v14  ;;  %v217_v45 = vadd.f32 %v5810_v29, %v147_v38  ;;  %v80_v50 = vld [vmem:[%s8540_s0 + $0x1b8] sm:$0xff]  ;;  %v81_v55 = vld [vmem:[%s8540_s0 + $0x1c0] sm:$0xff] }
  0x53   :  { %v218_v33 = vadd.f32 %v5810_v29, %v148_v9  ;;  %1186 = vmatprep.mubr.f32.mxu0 %v230_v52  ;;  %5349 = vmatpush3.bf16.msra.mxu0 %v6409_v21  ;;  %v279_v56 = vmax.f32 %v6471_v31, 0.0  ;;  %v149_v23 = vmul.f32 %v5805_v27, %v79_v6  ;;  %v150_v32 = vmul.f32 %v5805_v27, %v80_v50  ;;  %v82_v21 = vld [vmem:[%s8540_s0 + $0x1c8] sm:$0xff]  ;;  %v782_v37 = vld [vmem:[#allocation2 + $0xfa] sm:$0xff]  ;;  %v6499_v14 = vld [vmem:[#allocation2 + $0x30] sm:$0xff] }
  0x54   :  { %v280_v48 = vmax.f32 %v216_v4, 0.0  ;;  %4763 = vmatmul.mubr.f32.gmra.mrb[16].mxu1 %v780_v10  ;;  %v5326_v1 = vpack.c.bf16 %v6468_v40, %v6463_v49  ;;  %5351 = vmatprep.subr.bf16.mxu0 %v6446_v54  ;;  %v281_v42 = vmax.f32 %v217_v45, 0.0  ;;  %v151_v3 = vmul.f32 %v5805_v27, %v81_v55  ;;  %v783_v38 = vld [vmem:[#allocation2 + $0x10a] sm:$0xff]  ;;  %v6504_v9 = vld [vmem:[%s8538_s3 + $0xa0] sm:$0xff]  ;;  %v84_v45 = vld [vmem:[%s8540_s0 + $0x1d8] sm:$0xff] }
  0x55   :  { %v282_v52 = vmax.f32 %v218_v33, 0.0  ;;  %4765 = vmatprep.mubr.f32.mxu1 %v781_v17  ;;  %5324 = vmatpush1.bf16.msra.mxu1 %v5323_v57  ;;  %429 = vst [vmem:[#allocation2 + $0x2a1] sm:$0xff] %v279_v56  ;;  %v219_v10 = vadd.f32 %v5810_v29, %v149_v23  ;;  %v220_v49 = vadd.f32 %v5810_v29, %v150_v32  ;;  %v1041_v57 = vld [vmem:[%s8538_s3 + $0xa8] sm:$0xff]  ;;  %v83_v17 = vld [vmem:[%s8540_s0 + $0x1d0] sm:$0xff] }
  0x56   :  { %430 = vst [vmem:[#allocation2 + $0x2a9] sm:$0xff] %v280_v48  ;;  %v152_v40 = vmul.f32 %v5805_v27, %v82_v21  ;;  %1187 = vmatmul.mubr.f32.gmra.mrb[2].mxu0 %v636_v41  ;;  %5325 = vmatprep.subr.bf16.mxu1 %v5610_v0  ;;  %431 = vst [vmem:[#allocation2 + $0x2b9] sm:$0xff] %v281_v42  ;;  %v221_v4 = vadd.f32 %v5810_v29, %v151_v3  ;;  %v85_v48 = vld [vmem:[%s8540_s0 + $0x1e0] sm:$0xff]  ;;  %v86_v23 = vld [vmem:[%s8540_s0 + $0x1e8] sm:$0xff] }
  0x57   :  { %432 = vst [vmem:[#allocation2 + $0x2c1] sm:$0xff] %v282_v52  ;;  %1191 = vmatprep.mubr.f32.mxu0 %v231_v62  ;;  %5353 = vmatpush3.bf16.msra.mxu0 %v6446_v54  ;;  %v283_v33 = vmax.f32 %v219_v10, 0.0  ;;  %v284_v6 = vmax.f32 %v220_v49, 0.0  ;;  %v153_v41 = vmul.f32 %v5805_v27, %v83_v17  ;;  %v154_v54 = vmul.f32 %v5805_v27, %v84_v45  ;;  %v1057_v42 = vld [vmem:[%s8538_s3 + $0x128] sm:$0xff]  ;;  %v784_v52 = vld [vmem:[#allocation2 + $0x112] sm:$0xff] }
  0x58   :  { %v222_v50 = vadd.f32 %v5810_v29, %v152_v40  ;;  %4766 = vmatmul.mubr.f32.gmra.mrb[18].mxu1 %v782_v37  ;;  %v285_v62 = vmax.f32 %v221_v4, 0.0  ;;  %v155_v32 = vmul.f32 %v5805_v27, %v85_v48  ;;  %v156_v55 = vmul.f32 %v5805_v27, %v86_v23  ;;  %v785_v21 = vld [vmem:[#allocation2 + $0x122] sm:$0xff]  ;;  %v1042_v27 = vld [vmem:[%s8538_s3 + $0xb0] sm:$0xff]  ;;  %v6560_v4 = vld [vmem:[#allocation2 + $0x38] sm:$0xff] }
  0x59   :  { %4768 = vmatprep.mubr.f32.mxu1 %v783_v38  ;;  %5327 = vmatpush1.bf16.msra.mxu1 %v5326_v1  ;;  %v5329_v3 = vpack.c.bf16 %v1041_v57, %v6504_v9  ;;  %433 = vst [vmem:[#allocation2 + $0x2d1] sm:$0xff] %v283_v33  ;;  %434 = vst [vmem:[#allocation2 + $0x2d9] sm:$0xff] %v284_v6  ;;  %v223_v10 = vadd.f32 %v5810_v29, %v153_v41  ;;  %v1043_v1 = vld [vmem:[%s8538_s3 + $0xb8] sm:$0xff]  ;;  %v87_v57 = vld [vmem:[%s8540_s0 + $0x1f0] sm:$0xff] }
  0x5a   :  { %v286_v37 = vmax.f32 %v222_v50, 0.0  ;;  %v5354_v49 = vpack.c.bf16 %v1057_v42, %v1056_v53  ;;  %1192 = vmatmul.mubr.f32.gmra.mrb[4].mxu0 %v6499_v14  ;;  %5328 = vmatprep.subr.bf16.mxu1 %v5610_v0  ;;  %435 = vst [vmem:[#allocation2 + $0x2e9] sm:$0xff] %v285_v62  ;;  %v224_v38 = vadd.f32 %v5810_v29, %v154_v54  ;;  %v88_v45 = vld [vmem:[%s8540_s0 + $0x1f8] sm:$0xff]  ;;  %v5509_v23 = vld [vmem:[%s8541_s2] ss:$0 sm:$0xff]  ;;  %v6581_v42 = vld [vmem:[#allocation2 + $0x48] sm:$0xff] }
  0x5b   :  { %v225_v9 = vadd.f32 %v5810_v29, %v155_v32  ;;  %v226_v40 = vadd.f32 %v5810_v29, %v156_v55  ;;  %1196 = vmatprep.mubr.f32.mxu0 %v232_v7  ;;  %v287_v17 = vmax.f32 %v223_v10, 0.0  ;;  %v5508_v29 = vld [vmem:[%s8539_s1] ss:$0 sm:$0xff]  ;;  %v786_v7 = vld [vmem:[#allocation2 + $0x12a] sm:$0xff]  ;;  %v5332_v48 = vpack.c.bf16 %v1043_v1, %v1042_v27  ;;  %v789_v10 = vld [vmem:[#allocation2 + $0x152] sm:$0xff] }
  0x5c   :  { %436 = vst [vmem:[#allocation2 + $0x2f1] sm:$0xff] %v286_v37  ;;  %5355 = vmatprep.subr.bf16.mxu0 %v5354_v49  ;;  %v157_v33 = vmul.f32 %v5508_v29, %v87_v57  ;;  %4769 = vmatmul.mubr.f32.gmra.mrb[20].mxu1 %v784_v52  ;;  %v288_v6 = vmax.f32 %v224_v38, 0.0  ;;  %v158_v58 = vmul.f32 %v5508_v29, %v88_v45  ;;  %v787_v62 = vld [vmem:[#allocation2 + $0x13a] sm:$0xff]  ;;  %v1045_v32 = vld [vmem:[%s8538_s3 + $0xc8] sm:$0xff]  ;;  %v792_v45 = vld [vmem:[#allocation2 + $0x172] sm:$0xff] }
  0x5d   :  { %v289_v50 = vmax.f32 %v225_v9, 0.0  ;;  %v290_v41 = vmax.f32 %v226_v40, 0.0  ;;  %5357 = vmatpush3.bf16.msra.mxu0 %v5354_v49  ;;  %4771 = vmatprep.mubr.f32.mxu1 %v785_v21  ;;  %437 = vst [vmem:[#allocation2 + $0x301] sm:$0xff] %v287_v17  ;;  %v1044_v54 = vld [vmem:[%s8538_s3 + $0xc0] sm:$0xff]  ;;  %v6593_v49 = vld [vmem:[#allocation2 + $0x50] sm:$0xff]  ;;  %v1059_v40 = vld [vmem:[%s8538_s3 + $0x138] sm:$0xff] }
  0x5e   :  { %5330 = vmatpush1.bf16.msra.mxu1 %v5329_v3  ;;  %v227_v53 = vadd.f32 %v5509_v23, %v157_v33  ;;  %1197 = vmatmul.mubr.f32.gmra.mrb[6].mxu0 %v6560_v4  ;;  %438 = vst [vmem:[#allocation2 + $0x309] sm:$0xff] %v288_v6  ;;  %v228_v55 = vadd.f32 %v5509_v23, %v158_v58  ;;  %v788_v3 = vld [vmem:[#allocation2 + $0x142] sm:$0xff]  ;;  %v790_v27 = vld [vmem:[#allocation2 + $0x15a] sm:$0xff]  ;;  %v791_v1 = vld [vmem:[#allocation2 + $0x16a] sm:$0xff] }
  0x5f   :  { %5331 = vmatprep.subr.bf16.mxu1 %v5610_v0  ;;  %439 = vst [vmem:[#allocation2 + $0x319] sm:$0xff] %v289_v50  ;;  %440 = vst [vmem:[#allocation2 + $0x321] sm:$0xff] %v290_v41  ;;  %1201 = vmatprep.mubr.f32.mxu0 %v233_v8  ;;  %v5335_v37 = vpack.c.bf16 %v1045_v32, %v1044_v54  ;;  %v1047_v8 = vld [vmem:[%s8538_s3 + $0xd8] sm:$0xff]  ;;  %v1048_v9 = vld [vmem:[%s8538_s3 + $0xe0] sm:$0xff]  ;;  %v8590_v54 = vmax.f32 %v5954_v28, 0.0 }
  0x60   :  { %v291_v52 = vmax.f32 %v227_v53, 0.0  ;;  %4772 = vmatmul.mubr.f32.gmra.mrb[22].mxu1 %v786_v7  ;;  %v292_v21 = vmax.f32 %v228_v55, 0.0  ;;  %v5338_v38 = vpack.c.bf16 %v1047_v8, %v1046_v59  ;;  %v6611_v57 = vld [vmem:[#allocation2 + $0x60] sm:$0xff]  ;;  %v5341_v29 = vpack.c.bf16 %v1049_v63, %v1048_v9  ;;  %v1050_v6 = vld [vmem:[%s8538_s3 + $0xf0] sm:$0xff] }
  0x61   :  { %4774 = vmatprep.mubr.f32.mxu1 %v787_v62  ;;  %v793_v33 = vld [vmem:[#allocation2 + $0x182] sm:$0xff]  ;;  %v794_v50 = vld [vmem:[#allocation2 + $0x18a] sm:$0xff]  ;;  %v5344_v41 = vpack.c.bf16 %v1051_v12, %v1050_v6  ;;  %v796_v53 = vld [vmem:[#allocation2 + $0x1d2] sm:$0xff]  ;;  %v8593_v8 = vmax.f32 %v5990_v46, 0.0 }
  0x62   :  { %5333 = vmatpush1.bf16.msra.mxu1 %v5332_v48  ;;  %441 = vst [vmem:[#allocation2 + $0x331] sm:$0xff] %v291_v52  ;;  %1202 = vmatmul.mubr.f32.gmra.mrb[8].mxu0 %v6581_v42  ;;  %442 = vst [vmem:[#allocation2 + $0x339] sm:$0xff] %v292_v21  ;;  %v795_v58 = vld [vmem:[#allocation2 + $0x1ca] sm:$0xff]  ;;  %v1060_v7 = vld [vmem:[%s8538_s3 + $0x140] sm:$0xff]  ;;  %v8591_v52 = vmax.f32 %v5962_v34, 0.0 }
  0x63   :  { %5334 = vmatprep.subr.bf16.mxu1 %v5610_v0  ;;  %1206 = vmatprep.mubr.f32.mxu0 %v234_v11  ;;  %v1058_v11 = vld [vmem:[%s8538_s3 + $0x130] sm:$0xff]  ;;  %v6635_v48 = vld [vmem:[#allocation2 + $0x78] sm:$0xff]  ;;  %v5362_v23 = vpack.c.bf16 %v1061_v13, %v1060_v7  ;;  %v797_v62 = vld [vmem:[#allocation2 + $0x1e2] sm:$0xff]  ;;  %v8598_v13 = vmax.f32 %v6048_v16, 0.0 }
  0x64   :  { %4775 = vmatmul.mubr.f32.gmra.mrb[24].mxu1 %v788_v3  ;;  %v5358_v17 = vpack.c.bf16 %v1059_v40, %v1058_v11  ;;  %v6641_v32 = vld [vmem:[#allocation2 + $0x80] sm:$0xff]  ;;  %v6646_v21 = vld [vmem:[#allocation2 + $0x90] sm:$0xff]  ;;  %v8595_v11 = vmax.f32 %v6015_v60, 0.0  ;;  %v1063_v60 = vld [vmem:[%s8538_s3 + $0x158] sm:$0xff] }
  0x65   :  { %4777 = vmatprep.mubr.f32.mxu1 %v789_v10  ;;  %v799_v55 = vld [vmem:[#allocation2 + $0x1fa] sm:$0xff]  ;;  %v800_v3 = vld [vmem:[#allocation2 + $0x202] sm:$0xff]  ;;  %v801_v28 = vld [vmem:[#allocation2 + $0x212] sm:$0xff] }
  0x66   :  { %5336 = vmatpush1.bf16.msra.mxu1 %v5335_v37  ;;  %1207 = vmatmul.mubr.f32.gmra.mrb[10].mxu0 %v6593_v49  ;;  %v8592_v37 = vmax.f32 %v5978_v39, 0.0  ;;  %v6651_v10 = vld [vmem:[#allocation2 + $0x98] sm:$0xff]  ;;  %v803_v34 = vld [vmem:[#allocation2 + $0x22a] sm:$0xff]  ;;  %v805_v39 = vld [vmem:[#allocation2 + $0x242] sm:$0xff] }
  0x67   :  { %5337 = vmatprep.subr.bf16.mxu1 %v5610_v0  ;;  %1211 = vmatprep.mubr.f32.mxu0 %v235_v25  ;;  %v6623_v25 = vld [vmem:[#allocation2 + $0x68] sm:$0xff]  ;;  %v802_v59 = vld [vmem:[#allocation2 + $0x21a] sm:$0xff]  ;;  %v6661_v9 = vld [vmem:[#allocation2 + $0xb0] sm:$0xff] }
  0x68   :  { %4778 = vmatmul.mubr.f32.gmra.mrb[26].mxu1 %v790_v27  ;;  %5359 = vmatprep.subr.bf16.mxu0 %v5358_v17  ;;  %v6656_v27 = vld [vmem:[#allocation2 + $0xa8] sm:$0xff]  ;;  %v807_v46 = vld [vmem:[#allocation2 + $0x25a] sm:$0xff]  ;;  %v817_v16 = vld [vmem:[#allocation2 + $0x2d2] sm:$0xff] }
  0x69   :  { %4780 = vmatprep.mubr.f32.mxu1 %v791_v1  ;;  %5361 = vmatpush3.bf16.msra.mxu0 %v5358_v17  ;;  %v804_v1 = vld [vmem:[#allocation2 + $0x232] sm:$0xff]  ;;  %v806_v63 = vld [vmem:[#allocation2 + $0x24a] sm:$0xff]  ;;  %v6666_v40 = vld [vmem:[#allocation2 + $0xc0] sm:$0xff] }
  0x6a   :  { %5339 = vmatpush1.bf16.msra.mxu1 %v5338_v38  ;;  %1212 = vmatmul.mubr.f32.gmra.mrb[12].mxu0 %v6611_v57  ;;  %v8594_v38 = vmax.f32 %v6002_v51, 0.0  ;;  %v808_v17 = vld [vmem:[#allocation2 + $0x262] sm:$0xff]  ;;  %v809_v51 = vld [vmem:[#allocation2 + $0x272] sm:$0xff]  ;;  %v810_v6 = vld [vmem:[#allocation2 + $0x27a] sm:$0xff] }
  0x6b   :  { %5340 = vmatprep.subr.bf16.mxu1 %v5610_v0  ;;  %1216 = vmatprep.mubr.f32.mxu0 %v236_v26  ;;  %v8589_v26 = vmax.f32 %v5927_v18, 0.0  ;;  %v798_v18 = vld [vmem:[#allocation2 + $0x1ea] sm:$0xff]  ;;  %v813_v7 = vld [vmem:[#allocation2 + $0x2a2] sm:$0xff] }
  0x6c   :  { %4781 = vmatmul.mubr.f32.gmra.mrb[28].mxu1 %v792_v45  ;;  %5363 = vmatprep.subr.bf16.mxu0 %v5362_v23  ;;  %v8596_v45 = vmax.f32 %v6030_v5, 0.0  ;;  %v8597_v5 = vmax.f32 %v6045_v15, 0.0  ;;  %v815_v15 = vld [vmem:[#allocation2 + $0x2ba] sm:$0xff] }
  0x6d   :  { %4783 = vmatprep.mubr.f32.mxu1 %v793_v33  ;;  %5365 = vmatpush3.bf16.msra.mxu0 %v5362_v23  ;;  %v1062_v33 = vld [vmem:[%s8538_s3 + $0x150] sm:$0xff] }
  0x6e   :  { %5342 = vmatpush1.bf16.msra.mxu1 %v5341_v29  ;;  %1217 = vmatmul.mubr.f32.gmra.mrb[14].mxu0 %v6623_v25  ;;  %v6671_v29 = vld [vmem:[#allocation2 + $0xc8] sm:$0xff]  ;;  %v5366_v12 = vpack.c.bf16 %v1063_v60, %v1062_v33  ;;  %v8605_v60 = vmax.f32 %v6152_v47, 0.0  ;;  %v4341_v47 = vld [vmem:[%s8538_s3 + $0x318] sm:$0xff] }
  0x6f   :  { %5343 = vmatprep.subr.bf16.mxu1 %v5610_v0  ;;  %1221 = vmatprep.mubr.f32.mxu0 %v8589_v26  ;;  %v6687_v26 = vld [vmem:[#allocation2 + $0xe0] sm:$0xff]  ;;  %v814_v23 = vld [vmem:[#allocation2 + $0x2aa] sm:$0xff] }
  0x70   :  { %4784 = vmatmul.mubr.f32.gmra.mrb[30].mxu1 %v794_v50  ;;  %v811_v50 = vld [vmem:[#allocation2 + $0x28a] sm:$0xff]  ;;  %5367 = vmatprep.subr.bf16.mxu0 %v5366_v12 }
  0x71   :  { %4786 = vmatprep.mubr.f32.mxu1 %v795_v58  ;;  %5369 = vmatpush3.bf16.msra.mxu0 %v5366_v12  ;;  %v812_v58 = vld [vmem:[#allocation2 + $0x292] sm:$0xff]  ;;  %v4339_v33 = vld [vmem:[%s8538_s3 + $0x308] sm:$0xff]  ;;  %v443_v12 = vld [vmem:[#allocation2] sm:$0xff] }
  0x72   :  { %5345 = vmatpush1.bf16.msra.mxu1 %v5344_v41  ;;  %1222 = vmatmul.mubr.f32.gmra.mrb[16].mxu0 %v6635_v48  ;;  %v6682_v41 = vld [vmem:[#allocation2 + $0xd8] sm:$0xff] }
  0x73   :  { %5378 = vmatprep.subr.bf16.mxu1 %v5610_v0  ;;  %1226 = vmatprep.mubr.f32.mxu0 %v8590_v54  ;;  %v816_v54 = vld [vmem:[#allocation2 + $0x2c2] sm:$0xff] }
  0x74   :  { %4787 = vmatmul.mubr.f32.gmra.mrb[32].mxu1 %v796_v53  ;;  %v8599_v53 = vmax.f32 %v6059_v22, 0.0  ;;  %v819_v22 = vld [vmem:[#allocation2 + $0x2ea] sm:$0xff] }
  0x75   :  { %4789 = vmatprep.mubr.f32.mxu1 %v797_v62  ;;  %v6692_v62 = vld [vmem:[#allocation2 + $0xf0] sm:$0xff] }
  0x76   :  { %1227 = vmatmul.mubr.f32.gmra.mrb[18].mxu0 %v6641_v32 }
  0x77   :  { %1231 = vmatprep.mubr.f32.mxu0 %v8591_v52  ;;  %v818_v52 = vld [vmem:[#allocation2 + $0x2da] sm:$0xff] }
  0x78   :  { %4790 = vmatmul.mubr.f32.gmra.mrb[34].mxu1 %v798_v18  ;;  %v8600_v18 = vmax.f32 %v6080_v36, 0.0  ;;  %v821_v36 = vld [vmem:[#allocation2 + $0x302] sm:$0xff] }
  0x79   :  { %4792 = vmatprep.mubr.f32.mxu1 %v799_v55  ;;  %v6697_v55 = vld [vmem:[#allocation2 + $0xf8] sm:$0xff] }
  0x7a   :  { %1232 = vmatmul.mubr.f32.gmra.mrb[20].mxu0 %v6646_v21 }
  0x7b   :  { %1236 = vmatprep.mubr.f32.mxu0 %v8592_v37  ;;  %v820_v37 = vld [vmem:[#allocation2 + $0x2f2] sm:$0xff] }
  0x7c   :  { %4793 = vmatmul.mubr.f32.gmra.mrb[36].mxu1 %v800_v3  ;;  %v8601_v3 = vmax.f32 %v6094_v44, 0.0  ;;  %v823_v44 = vld [vmem:[#allocation2 + $0x31a] sm:$0xff] }
  0x7d   :  { %4795 = vmatprep.mubr.f32.mxu1 %v801_v28  ;;  %v6702_v28 = vld [vmem:[#allocation2 + $0x108] sm:$0xff] }
  0x7e   :  { %1237 = vmatmul.mubr.f32.gmra.mrb[22].mxu0 %v6651_v10 }
  0x7f   :  { %1241 = vmatprep.mubr.f32.mxu0 %v8593_v8  ;;  %v822_v8 = vld [vmem:[#allocation2 + $0x30a] sm:$0xff] }
  0x80   :  { %4796 = vmatmul.mubr.f32.gmra.mrb[38].mxu1 %v802_v59  ;;  %v8602_v59 = vmax.f32 %v6113_v61, 0.0  ;;  %v825_v61 = vld [vmem:[#allocation2 + $0x332] sm:$0xff] }
  0x81   :  { %4798 = vmatprep.mubr.f32.mxu1 %v803_v34  ;;  %v6707_v34 = vld [vmem:[#allocation2 + $0x110] sm:$0xff] }
  0x82   :  { %1242 = vmatmul.mubr.f32.gmra.mrb[24].mxu0 %v6656_v27 }
  0x83   :  { %1246 = vmatprep.mubr.f32.mxu0 %v8594_v38  ;;  %v824_v38 = vld [vmem:[#allocation2 + $0x322] sm:$0xff] }
  0x84   :  { %4799 = vmatmul.mubr.f32.gmra.mrb[40].mxu1 %v804_v1  ;;  %v8603_v1 = vmax.f32 %v6137_v24, 0.0  ;;  %v1065_v24 = vld [vmem:[%s8538_s3 + $0x168] sm:$0xff] }
  0x85   :  { %4801 = vmatprep.mubr.f32.mxu1 %v805_v39  ;;  %v6712_v39 = vld [vmem:[#allocation2 + $0x120] sm:$0xff] }
  0x86   :  { %1247 = vmatmul.mubr.f32.gmra.mrb[26].mxu0 %v6661_v9 }
  0x87   :  { %1251 = vmatprep.mubr.f32.mxu0 %v8595_v11  ;;  %v1064_v11 = vld [vmem:[%s8538_s3 + $0x160] sm:$0xff] }
  0x88   :  { %4802 = vmatmul.mubr.f32.gmra.mrb[42].mxu1 %v806_v63  ;;  %v8604_v63 = vmax.f32 %v6140_v30, 0.0  ;;  %v4338_v30 = vld [vmem:[%s8538_s3 + $0x300] sm:$0xff] }
  0x89   :  { %4804 = vmatprep.mubr.f32.mxu1 %v807_v46  ;;  %v6717_v46 = vld [vmem:[#allocation2 + $0x128] sm:$0xff] }
  0x8a   :  { %1252 = vmatmul.mubr.f32.gmra.mrb[28].mxu0 %v6666_v40 }
  0x8b   :  { %1256 = vmatprep.mubr.f32.mxu0 %v8596_v45  ;;  %v507_v45 = vld [vmem:[#allocation2 + $0x1] sm:$0xff] }
  0x8c   :  { %4805 = vmatmul.mubr.f32.gmra.mrb[44].mxu1 %v808_v17  ;;  %v826_v17 = vld [vmem:[#allocation2 + $0x33a] sm:$0xff] }
  0x8d   :  { %4807 = vmatprep.mubr.f32.mxu1 %v809_v51  ;;  %v5370_v51 = vpack.c.bf16 %v1065_v24, %v1064_v11  ;;  %v512_v24 = vld [vmem:[#allocation2 + $0x39] sm:$0xff] }
  0x8e   :  { %1257 = vmatmul.mubr.f32.gmra.mrb[30].mxu0 %v6671_v29 }
  0x8f   :  { %1261 = vmatprep.mubr.f32.mxu0 %v8597_v5  ;;  %5371 = vmatprep.subr.bf16.mxu0 %v5370_v51  ;;  %v508_v5 = vld [vmem:[#allocation2 + $0x9] sm:$0xff] }
  0x90   :  { %4808 = vmatmul.mubr.f32.gmra.mrb[46].mxu1 %v810_v6  ;;  %v6734_v6 = vld [vmem:[#allocation2 + $0x138] sm:$0xff]  ;;  %5373 = vmatpush3.bf16.msra.mxu0 %v5370_v51 }
  0x91   :  { %4810 = vmatprep.mubr.f32.mxu1 %v811_v50  ;;  %v5379_v50 = vpack.c.bf16 %v4339_v33, %v4338_v30  ;;  %v4349_v51 = vld [vmem:[%s8538_s3 + $0x358] sm:$0xff]  ;;  %v6792_v30 = vld [vmem:[#allocation2 + $0x170] sm:$0xff] }
  0x92   :  { %1262 = vmatmul.mubr.f32.gmra.mrb[32].mxu0 %v6682_v41 }
  0x93   :  { %1266 = vmatprep.mubr.f32.mxu0 %v8598_v13  ;;  %v6745_v13 = vld [vmem:[#allocation2 + $0x140] sm:$0xff] }
  0x94   :  { %4811 = vmatmul.mubr.f32.gmra.mrb[48].mxu1 %v812_v58  ;;  %v4340_v58 = vld [vmem:[%s8538_s3 + $0x310] sm:$0xff] }
  0x95   :  { %4813 = vmatprep.mubr.f32.mxu1 %v813_v7  ;;  %v8606_v7 = vmax.f32 %v6170_v2, 0.0  ;;  %v4343_v2 = vld [vmem:[%s8538_s3 + $0x328] sm:$0xff] }
  0x96   :  { %1267 = vmatmul.mubr.f32.gmra.mrb[34].mxu0 %v6687_v26 }
  0x97   :  { %1271 = vmatprep.mubr.f32.mxu0 %v8599_v53  ;;  %v4342_v53 = vld [vmem:[%s8538_s3 + $0x320] sm:$0xff] }
  0x98   :  { %4814 = vmatmul.mubr.f32.gmra.mrb[50].mxu1 %v814_v23  ;;  %v5382_v23 = vpack.c.bf16 %v4341_v47, %v4340_v58  ;;  %v514_v58 = vld [vmem:[#allocation2 + $0x51] sm:$0xff] }
  0x99   :  { %4816 = vmatprep.mubr.f32.mxu1 %v815_v15  ;;  %v509_v15 = vld [vmem:[#allocation2 + $0x19] sm:$0xff]  ;;  %v4352_v47 = vld [vmem:[%s8538_s3 + $0x370] sm:$0xff] }
  0x9a   :  { %1272 = vmatmul.mubr.f32.gmra.mrb[36].mxu0 %v6692_v62 }
  0x9b   :  { %1276 = vmatprep.mubr.f32.mxu0 %v8600_v18  ;;  %v6759_v18 = vld [vmem:[#allocation2 + $0x8] sm:$0xff] }
  0x9c   :  { %4817 = vmatmul.mubr.f32.gmra.mrb[52].mxu1 %v816_v54  ;;  %v8607_v54 = vmax.f32 %v6192_v35, 0.0  ;;  %v4344_v35 = vld [vmem:[%s8538_s3 + $0x330] sm:$0xff] }
  0x9d   :  { %4819 = vmatprep.mubr.f32.mxu1 %v817_v16  ;;  %v6757_v16 = vld [vmem:[#allocation2 + $0x150] sm:$0xff] }
  0x9e   :  { %1277 = vmatmul.mubr.f32.gmra.mrb[38].mxu0 %v6697_v55 }
  0x9f   :  { %1281 = vmatprep.mubr.f32.mxu0 %v8601_v3  ;;  %v510_v3 = vld [vmem:[#allocation2 + $0x21] sm:$0xff] }
  0xa0   :  { %4820 = vmatmul.mubr.f32.gmra.mrb[54].mxu1 %v818_v52  ;;  %v445_v52 = vld [vmem:[#allocation2 + $0x18] sm:$0xff] }
  0xa1   :  { %4822 = vmatprep.mubr.f32.mxu1 %v819_v22  ;;  %v5385_v22 = vpack.c.bf16 %v4343_v2, %v4342_v53  ;;  %v515_v2 = vld [vmem:[#allocation2 + $0x61] sm:$0xff] }
  0xa2   :  { %1282 = vmatmul.mubr.f32.gmra.mrb[40].mxu0 %v6702_v28 }
  0xa3   :  { %1286 = vmatprep.mubr.f32.mxu0 %v8602_v59  ;;  %v6772_v59 = vld [vmem:[#allocation2 + $0x158] sm:$0xff] }
  0xa4   :  { %4823 = vmatmul.mubr.f32.gmra.mrb[56].mxu1 %v820_v37  ;;  %v4345_v37 = vld [vmem:[%s8538_s3 + $0x338] sm:$0xff] }
  0xa5   :  { %4825 = vmatprep.mubr.f32.mxu1 %v821_v36  ;;  %v8608_v36 = vmax.f32 %v6205_v20, 0.0  ;;  %v4347_v20 = vld [vmem:[%s8538_s3 + $0x348] sm:$0xff] }
  0xa6   :  { %1287 = vmatmul.mubr.f32.gmra.mrb[42].mxu0 %v6707_v34 }
  0xa7   :  { %1291 = vmatprep.mubr.f32.mxu0 %v8603_v1  ;;  %v511_v1 = vld [vmem:[#allocation2 + $0x31] sm:$0xff] }
  0xa8   :  { %4826 = vmatmul.mubr.f32.gmra.mrb[58].mxu1 %v822_v8  ;;  %v446_v8 = vld [vmem:[#allocation2 + $0x20] sm:$0xff] }
  0xa9   :  { %4828 = vmatprep.mubr.f32.mxu1 %v823_v44  ;;  %v5388_v44 = vpack.c.bf16 %v4345_v37, %v4344_v35  ;;  %v516_v35 = vld [vmem:[#allocation2 + $0x69] sm:$0xff] }
  0xaa   :  { %1292 = vmatmul.mubr.f32.gmra.mrb[44].mxu0 %v6712_v39  ;;  %v4356_v37 = vld [vmem:[%s8538_s3 + $0x390] sm:$0xff] }
  0xab   :  { %1296 = vmatprep.mubr.f32.mxu0 %v8604_v63  ;;  %v6782_v63 = vld [vmem:[#allocation2 + $0x168] sm:$0xff] }
  0xac   :  { %4829 = vmatmul.mubr.f32.gmra.mrb[60].mxu1 %v824_v38  ;;  %v4346_v38 = vld [vmem:[%s8538_s3 + $0x340] sm:$0xff] }
  0xad   :  { %4831 = vmatprep.mubr.f32.mxu1 %v825_v61  ;;  %v5511_v61 = vld [vmem:[#allocation2 + $0x169] sm:$0xff]  ;;  %v5391_v11 = vpack.c.bf16 %v4347_v20, %v4346_v38  ;;  %v4358_v38 = vld [vmem:[%s8538_s3 + $0x3a0] sm:$0xff] }
  0xae   :  { %1297 = vmatmul.mubr.f32.gmra.mrb[46].mxu0 %v6717_v46  ;;  %v4359_v20 = vld [vmem:[%s8538_s3 + $0x3a8] sm:$0xff] }
  0xaf   :  { %1301 = vmatprep.mubr.f32.mxu0 %v8605_v60  ;;  %v513_v60 = vld [vmem:[#allocation2 + $0x49] sm:$0xff] }
  0xb0   :  { %4832 = vmatmul.mubr.f32.gmra.mrb[62].mxu1 %v826_v17  ;;  %v4348_v17 = vld [vmem:[%s8538_s3 + $0x350] sm:$0xff] }
  0xb1   :  { %1951 = vmatprep.mubr.f32.mxu1 %v507_v45  ;;  %v5512_v45 = vld [vmem:[#allocation2 + $0x171] sm:$0xff]  ;;  %v5394_v33 = vpack.c.bf16 %v4349_v51, %v4348_v17  ;;  %v5517_v17 = vld [vmem:[#allocation2 + $0x1e9] sm:$0xff] }
  0xb2   :  { %1302 = vmatmul.mubr.f32.gmra.mrb[48].mxu0 %v6734_v6  ;;  %v6854_v51 = vld [vmem:[#allocation2 + $0x1e8] sm:$0xff] }
  0xb3   :  { %1306 = vmatprep.mubr.f32.mxu0 %v8606_v7  ;;  %v4353_v7 = vld [vmem:[%s8538_s3 + $0x378] sm:$0xff] }
  0xb4   :  { %1952 = vmatmul.mubr.f32.vlgmr.msra.gmra.mrb[64].mxu1 %v443_v12  ;;  %v4350_v12 = vld [vmem:[%s8538_s3 + $0x360] sm:$0xff] }
  0xb5   :  { %5380 = vmatpush1.bf16.msra.mxu1 %v5379_v50  ;;  %1956 = vmatprep.mubr.f32.mxu1 %v508_v5  ;;  %v4351_v50 = vld [vmem:[%s8538_s3 + $0x368] sm:$0xff] }
  0xb6   :  { %1307 = vmatmul.mubr.f32.gmra.mrb[50].mxu0 %v6745_v13  ;;  %5381 = vmatprep.subr.bf16.mxu1 %v5610_v0  ;;  %v5397_v5 = vpack.c.bf16 %v4351_v50, %v4350_v12  ;;  %v5519_v12 = vld [vmem:[#allocation2 + $0x201] sm:$0xff]  ;;  %v4360_v50 = vld [vmem:[%s8538_s3 + $0x3b0] sm:$0xff] }
  0xb7   :  { %1311 = vmatprep.mubr.f32.mxu0 %v8607_v54  ;;  %v4355_v54 = vld [vmem:[%s8538_s3 + $0x388] sm:$0xff] }
  0xb8   :  { %1957 = vmatmul.mubr.f32.gmra.mrb[66].mxu1 %v6759_v18 }
  0xb9   :  { %1961 = vmatprep.mubr.f32.mxu1 %v509_v15  ;;  %5383 = vmatpush1.bf16.msra.mxu1 %v5382_v23  ;;  %v1067_v23 = vld [vmem:[%s8538_s3 + $0x178] sm:$0xff]  ;;  %v5400_v15 = vpack.c.bf16 %v4353_v7, %v4352_v47  ;;  %v6873_v47 = vld [vmem:[#allocation2 + $0x210] sm:$0xff] }
  0xba   :  { %1312 = vmatmul.mubr.f32.gmra.mrb[52].mxu0 %v6757_v16  ;;  %5384 = vmatprep.subr.bf16.mxu1 %v5610_v0  ;;  %v5521_v7 = vld [vmem:[#allocation2 + $0x219] sm:$0xff] }
  0xbb   :  { %1316 = vmatprep.mubr.f32.mxu0 %v8608_v36  ;;  %v4357_v36 = vld [vmem:[%s8538_s3 + $0x398] sm:$0xff] }
  0xbc   :  { %1962 = vmatmul.mubr.f32.gmra.mrb[68].mxu1 %v445_v52  ;;  %v5514_v52 = vld [vmem:[#allocation2 + $0x1c9] sm:$0xff] }
  0xbd   :  { %1966 = vmatprep.mubr.f32.mxu1 %v510_v3  ;;  %5386 = vmatpush1.bf16.msra.mxu1 %v5385_v22  ;;  %v6827_v22 = vld [vmem:[#allocation2 + $0x1c8] sm:$0xff] }
  0xbe   :  { %1317 = vmatmul.mubr.f32.gmra.mrb[54].mxu0 %v6772_v59  ;;  %5387 = vmatprep.subr.bf16.mxu1 %v5610_v0 }
  0xbf   :  { %1321 = vmatprep.mubr.f32.mxu0 %v5511_v61  ;;  %v5516_v61 = vld [vmem:[#allocation2 + $0x1e1] sm:$0xff] }
  0xc0   :  { %1967 = vmatmul.mubr.f32.gmra.mrb[70].mxu1 %v446_v8  ;;  %v5515_v8 = vld [vmem:[#allocation2 + $0x1d1] sm:$0xff] }
  0xc1   :  { %1971 = vmatprep.mubr.f32.mxu1 %v511_v1  ;;  %5389 = vmatpush1.bf16.msra.mxu1 %v5388_v44  ;;  %v5406_v44 = vpack.c.bf16 %v4357_v36, %v4356_v37  ;;  %v517_v1 = vld [vmem:[#allocation2 + $0x79] sm:$0xff]  ;;  %v5525_v36 = vld [vmem:[#allocation2 + $0x249] sm:$0xff] }
  0xc2   :  { %1322 = vmatmul.mubr.f32.gmra.mrb[56].mxu0 %v6782_v63  ;;  %5390 = vmatprep.subr.bf16.mxu1 %v5610_v0  ;;  %v6905_v37 = vld [vmem:[#allocation2 + $0x240] sm:$0xff] }
  0xc3   :  { %1326 = vmatprep.mubr.f32.mxu0 %v5512_v45  ;;  %v519_v45 = vld [vmem:[#allocation2 + $0x91] sm:$0xff] }
  0xc4   :  { %1972 = vmatmul.mubr.f32.gmra.mrb[72].mxu1 %v6499_v14  ;;  %v665_v14 = vld [vmem:[#allocation2 + $0x180] sm:$0xff] }
  0xc5   :  { %1976 = vmatprep.mubr.f32.mxu1 %v512_v24  ;;  %5392 = vmatpush1.bf16.msra.mxu1 %v5391_v11  ;;  %v6849_v11 = vld [vmem:[#allocation2 + $0x1e0] sm:$0xff] }
  0xc6   :  { %1327 = vmatmul.mubr.f32.gmra.mrb[58].mxu0 %v6792_v30  ;;  %5393 = vmatprep.subr.bf16.mxu1 %v5610_v0  ;;  %v518_v24 = vld [vmem:[#allocation2 + $0x81] sm:$0xff] }
  0xc7   :  { %1331 = vmatprep.mubr.f32.mxu0 %v259_v43  ;;  %v666_v43 = vld [vmem:[#allocation2 + $0x188] sm:$0xff] }
  0xc8   :  { %1977 = vmatmul.mubr.f32.gmra.mrb[74].mxu1 %v6560_v4  ;;  %v1066_v4 = vld [vmem:[%s8538_s3 + $0x170] sm:$0xff] }
  0xc9   :  { %1981 = vmatprep.mubr.f32.mxu1 %v513_v60  ;;  %5395 = vmatpush1.bf16.msra.mxu1 %v5394_v33  ;;  %v5374_v53 = vpack.c.bf16 %v1067_v23, %v1066_v4  ;;  %v6859_v33 = vld [vmem:[#allocation2 + $0x1f8] sm:$0xff]  ;;  %v523_v23 = vld [vmem:[#allocation2 + $0xc1] sm:$0xff] }
  0xca   :  { %1332 = vmatmul.mubr.f32.gmra.mrb[60].mxu0 %v665_v14  ;;  %5396 = vmatprep.subr.bf16.mxu1 %v5610_v0  ;;  %v520_v60 = vld [vmem:[#allocation2 + $0x99] sm:$0xff] }
  0xcb   :  { %1336 = vmatprep.mubr.f32.mxu0 %v5513_v19  ;;  %5375 = vmatprep.subr.bf16.mxu0 %v5374_v53  ;;  %v4361_v14 = vld [vmem:[%s8538_s3 + $0x3b8] sm:$0xff] }
  0xcc   :  { %1982 = vmatmul.mubr.f32.gmra.mrb[76].mxu1 %v6581_v42  ;;  %v4354_v42 = vld [vmem:[%s8538_s3 + $0x380] sm:$0xff]  ;;  %5377 = vmatpush3.bf16.msra.mxu0 %v5374_v53  ;;  %v6878_v19 = vld [vmem:[#allocation2 + $0x218] sm:$0xff]  ;;  %v6890_v53 = vld [vmem:[#allocation2 + $0x228] sm:$0xff] }
  0xcd   :  { %1986 = vmatprep.mubr.f32.mxu1 %v514_v58  ;;  %5398 = vmatpush1.bf16.msra.mxu1 %v5397_v5  ;;  %v5403_v3 = vpack.c.bf16 %v4355_v54, %v4354_v42  ;;  %v521_v5 = vld [vmem:[#allocation2 + $0xa9] sm:$0xff]  ;;  %v5520_v58 = vld [vmem:[#allocation2 + $0x211] sm:$0xff]  ;;  %v4362_v54 = vld [vmem:[%s8538_s3 + $0x3c0] sm:$0xff] }
  0xce   :  { %1337 = vmatmul.mubr.f32.gmra.mrb[62].mxu0 %v666_v43  ;;  %5399 = vmatprep.subr.bf16.mxu1 %v5610_v0  ;;  %v4370_v43 = vld [vmem:[%s8538_s3 + $0x400] sm:$0xff]  ;;  %v6895_v42 = vld [vmem:[#allocation2 + $0x230] sm:$0xff] }
  0xcf   :  { %1341 = vmatprep.mubr.f32.mxu0 %v5514_v52  ;;  %v4363_v52 = vld [vmem:[%s8538_s3 + $0x3c8] sm:$0xff] }
  0xd0   :  { %1987 = vmatmul.mubr.f32.gmra.mrb[78].mxu1 %v6593_v49  ;;  %v6838_v49 = vld [vmem:[#allocation2 + $0x1d0] sm:$0xff] }
  0xd1   :  { %1991 = vmatprep.mubr.f32.mxu1 %v515_v2  ;;  %5401 = vmatpush1.bf16.msra.mxu1 %v5400_v15  ;;  %v5522_v15 = vld [vmem:[#allocation2 + $0x229] sm:$0xff]  ;;  %v5523_v2 = vld [vmem:[#allocation2 + $0x231] sm:$0xff] }
  0xd2   :  { %1342 = vmatmul.mubr.f32.gmra.mrb[64].mxu0 %v6827_v22  ;;  %5402 = vmatprep.subr.bf16.mxu1 %v5610_v0 }
  0xd3   :  { %1346 = vmatprep.mubr.f32.mxu0 %v5515_v8  ;;  %v6910_v8 = vld [vmem:[#allocation2 + $0x248] sm:$0xff] }
  0xd4   :  { %1992 = vmatmul.mubr.f32.gmra.mrb[80].mxu1 %v6611_v57  ;;  %v5409_v57 = vpack.c.bf16 %v4359_v20, %v4358_v38  ;;  %v6914_v38 = vld [vmem:[#allocation2 + $0x258] sm:$0xff]  ;;  %v5527_v20 = vld [vmem:[#allocation2 + $0x261] sm:$0xff] }
  0xd5   :  { %1996 = vmatprep.mubr.f32.mxu1 %v516_v35  ;;  %5404 = vmatpush1.bf16.msra.mxu1 %v5403_v3  ;;  %v525_v3 = vld [vmem:[#allocation2 + $0xd9] sm:$0xff]  ;;  %v5524_v35 = vld [vmem:[#allocation2 + $0x241] sm:$0xff] }
  0xd6   :  { %1347 = vmatmul.mubr.f32.gmra.mrb[66].mxu0 %v6838_v49  ;;  %5405 = vmatprep.subr.bf16.mxu1 %v5610_v0 }
  0xd7   :  { %1351 = vmatprep.mubr.f32.mxu0 %v5516_v61  ;;  %v6918_v61 = vld [vmem:[#allocation2 + $0x260] sm:$0xff] }
  0xd8   :  { %1997 = vmatmul.mubr.f32.gmra.mrb[82].mxu1 %v6623_v25  ;;  %v5518_v25 = vld [vmem:[#allocation2 + $0x1f9] sm:$0xff] }
  0xd9   :  { %2001 = vmatprep.mubr.f32.mxu1 %v517_v1  ;;  %5407 = vmatpush1.bf16.msra.mxu1 %v5406_v44  ;;  %v527_v44 = vld [vmem:[#allocation2 + $0xf1] sm:$0xff]  ;;  %v5526_v1 = vld [vmem:[#allocation2 + $0x259] sm:$0xff] }
  0xda   :  { %1352 = vmatmul.mubr.f32.gmra.mrb[68].mxu0 %v6849_v11  ;;  %5408 = vmatprep.subr.bf16.mxu1 %v5610_v0 }
  0xdb   :  { %1356 = vmatprep.mubr.f32.mxu0 %v5517_v17 }
  0xdc   :  { %2002 = vmatmul.mubr.f32.gmra.mrb[84].mxu1 %v6635_v48  ;;  %v6863_v48 = vld [vmem:[#allocation2 + $0x200] sm:$0xff] }
  0xdd   :  { %2006 = vmatprep.mubr.f32.mxu1 %v518_v24  ;;  %5410 = vmatpush1.bf16.msra.mxu1 %v5409_v57  ;;  %v4365_v57 = vld [vmem:[%s8538_s3 + $0x3d8] sm:$0xff]  ;;  %v529_v24 = vld [vmem:[#allocation2 + $0x109] sm:$0xff] }
  0xde   :  { %1357 = vmatmul.mubr.f32.gmra.mrb[70].mxu0 %v6854_v51  ;;  %5411 = vmatprep.subr.bf16.mxu1 %v5610_v0 }
  0xdf   :  { %1361 = vmatprep.mubr.f32.mxu0 %v5518_v25  ;;  %v6930_v25 = vld [vmem:[#allocation2 + $0x270] sm:$0xff] }
  0xe0   :  { %2007 = vmatmul.mubr.f32.gmra.mrb[86].mxu1 %v6641_v32  ;;  %v5412_v32 = vpack.c.bf16 %v4361_v14, %v4360_v50  ;;  %v5529_v50 = vld [vmem:[#allocation2 + $0x279] sm:$0xff] }
  0xe1   :  { %2011 = vmatprep.mubr.f32.mxu1 %v519_v45  ;;  %v5528_v45 = vld [vmem:[#allocation2 + $0x271] sm:$0xff] }
  0xe2   :  { %1362 = vmatmul.mubr.f32.gmra.mrb[72].mxu0 %v6859_v33  ;;  %5413 = vmatpush1.bf16.msra.mxu1 %v5412_v32  ;;  %v6939_v14 = vld [vmem:[#allocation2 + $0x278] sm:$0xff] }
  0xe3   :  { %1366 = vmatprep.mubr.f32.mxu0 %v5519_v12  ;;  %5414 = vmatprep.subr.bf16.mxu1 %v5610_v0 }
  0xe4   :  { %2012 = vmatmul.mubr.f32.gmra.mrb[88].mxu1 %v6646_v21  ;;  %v522_v21 = vld [vmem:[#allocation2 + $0xb1] sm:$0xff] }
  0xe5   :  { %2016 = vmatprep.mubr.f32.mxu1 %v520_v60  ;;  %v530_v60 = vld [vmem:[#allocation2 + $0x111] sm:$0xff] }
  0xe6   :  { %1367 = vmatmul.mubr.f32.gmra.mrb[74].mxu0 %v6863_v48 }
  0xe7   :  { %1371 = vmatprep.mubr.f32.mxu0 %v5520_v58  ;;  %v5530_v58 = vld [vmem:[#allocation2 + $0x289] sm:$0xff] }
  0xe8   :  { %2017 = vmatmul.mubr.f32.gmra.mrb[90].mxu1 %v6651_v10  ;;  %v4371_v10 = vld [vmem:[%s8538_s3 + $0x408] sm:$0xff] }
  0xe9   :  { %2021 = vmatprep.mubr.f32.mxu1 %v521_v5  ;;  %v6887_v4 = vpack.c.bf16 %v4371_v10, %v4370_v43  ;;  %v532_v43 = vld [vmem:[#allocation2 + $0x129] sm:$0xff] }
  0xea   :  { %1372 = vmatmul.mubr.f32.gmra.mrb[76].mxu0 %v6873_v47 }
  0xeb   :  { %1376 = vmatprep.mubr.f32.mxu0 %v5521_v7  ;;  %5427 = vmatprep.subr.bf16.mxu0 %v6887_v4 }
  0xec   :  { %2022 = vmatmul.mubr.f32.gmra.mrb[92].mxu1 %v6656_v27  ;;  %v524_v27 = vld [vmem:[#allocation2 + $0xc9] sm:$0xff] }
  0xed   :  { %2026 = vmatprep.mubr.f32.mxu1 %v522_v21  ;;  %v6947_v21 = vld [vmem:[#allocation2 + $0x288] sm:$0xff] }
  0xee   :  { %1377 = vmatmul.mubr.f32.gmra.mrb[78].mxu0 %v6878_v19 }
  0xef   :  { %1381 = vmatprep.mubr.f32.mxu0 %v5522_v15 }
  0xf0   :  { %2027 = vmatmul.mubr.f32.gmra.mrb[94].mxu1 %v6661_v9  ;;  %v5415_v9 = vpack.c.bf16 %v4363_v52, %v4362_v54  ;;  %v533_v54 = vld [vmem:[#allocation2 + $0x139] sm:$0xff] }
  0xf1   :  { %2031 = vmatprep.mubr.f32.mxu1 %v523_v23  ;;  %v6955_v23 = vld [vmem:[#allocation2 + $0x290] sm:$0xff] }
  0xf2   :  { %1382 = vmatmul.mubr.f32.gmra.mrb[80].mxu0 %v6890_v53  ;;  %5416 = vmatpush1.bf16.msra.mxu1 %v5415_v9  ;;  %v6971_v9 = vld [vmem:[#allocation2 + $0x2a0] sm:$0xff] }
  0xf3   :  { %1386 = vmatprep.mubr.f32.mxu0 %v5523_v2  ;;  %5417 = vmatprep.subr.bf16.mxu1 %v5610_v0 }
  0xf4   :  { %2032 = vmatmul.mubr.f32.gmra.mrb[96].mxu1 %v6666_v40  ;;  %v526_v40 = vld [vmem:[#allocation2 + $0xe1] sm:$0xff] }
  0xf5   :  { %2036 = vmatprep.mubr.f32.mxu1 %v524_v27  ;;  %v4366_v27 = vld [vmem:[%s8538_s3 + $0x3e0] sm:$0xff] }
  0xf6   :  { %1387 = vmatmul.mubr.f32.gmra.mrb[82].mxu0 %v6895_v42 }
  0xf7   :  { %1391 = vmatprep.mubr.f32.mxu0 %v5524_v35 }
  0xf8   :  { %2037 = vmatmul.mubr.f32.gmra.mrb[98].mxu1 %v6671_v29  ;;  %v528_v29 = vld [vmem:[#allocation2 + $0xf9] sm:$0xff] }
  0xf9   :  { %2041 = vmatprep.mubr.f32.mxu1 %v525_v3  ;;  %v534_v3 = vld [vmem:[#allocation2 + $0x141] sm:$0xff] }
  0xfa   :  { %1392 = vmatmul.mubr.f32.gmra.mrb[84].mxu0 %v6905_v37 }
  0xfb   :  { %1396 = vmatprep.mubr.f32.mxu0 %v5525_v36  ;;  %v6980_v36 = vld [vmem:[#allocation2 + $0x2a8] sm:$0xff] }
  0xfc   :  { %2042 = vmatmul.mubr.f32.gmra.mrb[100].mxu1 %v6682_v41  ;;  %v4364_v41 = vld [vmem:[%s8538_s3 + $0x3d0] sm:$0xff] }
  0xfd   :  { %2046 = vmatprep.mubr.f32.mxu1 %v526_v40  ;;  %v5532_v40 = vld [vmem:[#allocation2 + $0x2a9] sm:$0xff] }
  0xfe   :  { %1397 = vmatmul.mubr.f32.gmra.mrb[86].mxu0 %v6910_v8 }
  0xff   :  { %1401 = vmatprep.mubr.f32.mxu0 %v5526_v1 }
 0x100   :  { %2047 = vmatmul.mubr.f32.gmra.mrb[102].mxu1 %v6687_v26  ;;  %v5418_v26 = vpack.c.bf16 %v4365_v57, %v4364_v41  ;;  %v6996_v41 = vld [vmem:[#allocation2 + $0x2c0] sm:$0xff] }
 0x101   :  { %2051 = vmatprep.mubr.f32.mxu1 %v527_v44  ;;  %v6988_v44 = vld [vmem:[#allocation2 + $0x2b8] sm:$0xff] }
 0x102   :  { %1402 = vmatmul.mubr.f32.gmra.mrb[88].mxu0 %v6914_v38  ;;  %5419 = vmatpush1.bf16.msra.mxu1 %v5418_v26  ;;  %v4368_v26 = vld [vmem:[%s8538_s3 + $0x3f0] sm:$0xff] }
 0x103   :  { %1406 = vmatprep.mubr.f32.mxu0 %v5527_v20  ;;  %5420 = vmatprep.subr.bf16.mxu1 %v5610_v0 }
 0x104   :  { %2052 = vmatmul.mubr.f32.gmra.mrb[104].mxu1 %v6692_v62 }
 0x105   :  { %2056 = vmatprep.mubr.f32.mxu1 %v528_v29  ;;  %v536_v29 = vld [vmem:[#allocation2 + $0x159] sm:$0xff] }
 0x106   :  { %1407 = vmatmul.mubr.f32.gmra.mrb[90].mxu0 %v6918_v61 }
 0x107   :  { %v6928_v17 = vpop.f32.mrb[0].mxu1  ;;  %1411 = vmatprep.mubr.f32.mxu0 %v5528_v45 }
 0x108   :  { %v6932_v62 = vpop.f32.mrb[1].mxu1  ;;  %2057 = vmatmul.mubr.f32.gmra.mrb[106].mxu1 %v6697_v55  ;;  %v531_v55 = vld [vmem:[#allocation2 + $0x121] sm:$0xff] }
 0x109   :  { %2061 = vmatprep.mubr.f32.mxu1 %v529_v24 }
 0x10a   :  { %1412 = vmatmul.mubr.f32.gmra.mrb[92].mxu0 %v6930_v25 }
 0x10b   :  { %v6937_v12 = vpop.f32.mrb[2].mxu1  ;;  %1416 = vmatprep.mubr.f32.mxu0 %v5529_v50 }
 0x10c   :  { %v6941_v32 = vpop.f32.mrb[3].mxu1  ;;  %2062 = vmatmul.mubr.f32.gmra.mrb[108].mxu1 %v6702_v28  ;;  %v5531_v28 = vld [vmem:[#allocation2 + $0x291] sm:$0xff] }
 0x10d   :  { %2066 = vmatprep.mubr.f32.mxu1 %v530_v60 }
 0x10e   :  { %1417 = vmatmul.mubr.f32.gmra.mrb[94].mxu0 %v6939_v14 }
 0x10f   :  { %v6945_v5 = vpop.f32.mrb[4].mxu1  ;;  %1421 = vmatprep.mubr.f32.mxu0 %v5530_v58 }
 0x110   :  { %v6949_v7 = vpop.f32.mrb[5].mxu1  ;;  %2067 = vmatmul.mubr.f32.gmra.mrb[110].mxu1 %v6707_v34  ;;  %v4367_v34 = vld [vmem:[%s8538_s3 + $0x3e8] sm:$0xff] }
 0x111   :  { %2071 = vmatprep.mubr.f32.mxu1 %v531_v55  ;;  %v5421_v2 = vpack.c.bf16 %v4367_v34, %v4366_v27  ;;  %v537_v55 = vld [vmem:[#allocation2 + $0x169] sm:$0xff] }
 0x112   :  { %1422 = vmatmul.mubr.f32.gmra.mrb[96].mxu0 %v6947_v21 }
 0x113   :  { %v6953_v10 = vpop.f32.mrb[6].mxu1  ;;  %1426 = vmatprep.mubr.f32.mxu0 %v5531_v28  ;;  %5422 = vmatpush1.bf16.msra.mxu1 %v5421_v2  ;;  %v538_v2 = vld [vmem:[#allocation2 + $0x171] sm:$0xff] }
 0x114   :  { %v6957_v15 = vpop.f32.mrb[7].mxu1  ;;  %2072 = vmatmul.mubr.f32.gmra.mrb[112].mxu1 %v6712_v39  ;;  %5423 = vmatprep.subr.bf16.mxu1 %v5610_v0  ;;  %v5533_v0 = vld [vmem:[#allocation2 + $0x2b9] sm:$0xff] }
 0x115   :  { %2076 = vmatprep.mubr.f32.mxu1 %v532_v43  ;;  %v7013_v43 = vld [vmem:[#allocation2 + $0x2d0] sm:$0xff] }
 0x116   :  { %1427 = vmatmul.mubr.f32.gmra.mrb[98].mxu0 %v6955_v23 }
 0x117   :  { %v6967_v52 = vpop.f32.mrb[8].mxu1  ;;  %1431 = vmatprep.mubr.f32.mxu0 %v279_v56  ;;  %v535_v56 = vld [vmem:[#allocation2 + $0x151] sm:$0xff] }
 0x118   :  { %v6973_v39 = vpop.f32.mrb[9].mxu1  ;;  %2077 = vmatmul.mubr.f32.gmra.mrb[114].mxu1 %v6717_v46 }
 0x119   :  { %2081 = vmatprep.mubr.f32.mxu1 %v533_v54 }
 0x11a   :  { %1432 = vmatmul.mubr.f32.gmra.mrb[100].mxu0 %v6971_v9 }
 0x11b   :  { %v6978_v35 = vpop.f32.mrb[10].mxu1  ;;  %1436 = vmatprep.mubr.f32.mxu0 %v5532_v40  ;;  %v7025_v40 = vld [vmem:[#allocation2 + $0x2d8] sm:$0xff] }
 0x11c   :  { %v6982_v31 = vpop.f32.mrb[11].mxu1  ;;  %2082 = vmatmul.mubr.f32.gmra.mrb[116].mxu1 %v6734_v6  ;;  %v5534_v6 = vld [vmem:[#allocation2 + $0x2c1] sm:$0xff] }
 0x11d   :  { %2086 = vmatprep.mubr.f32.mxu1 %v534_v3  ;;  %v5536_v3 = vld [vmem:[#allocation2 + $0x2d9] sm:$0xff] }
 0x11e   :  { %1437 = vmatmul.mubr.f32.gmra.mrb[102].mxu0 %v6980_v36 }
 0x11f   :  { %v6986_v46 = vpop.f32.mrb[12].mxu1  ;;  %1441 = vmatprep.mubr.f32.mxu0 %v5533_v0 }
 0x120   :  { %v6990_v1 = vpop.f32.mrb[13].mxu1  ;;  %2087 = vmatmul.mubr.f32.gmra.mrb[118].mxu1 %v6745_v13  ;;  %v4369_v13 = vld [vmem:[%s8538_s3 + $0x3f8] sm:$0xff] }
 0x121   :  { %2091 = vmatprep.mubr.f32.mxu1 %v535_v56  ;;  %v5424_v45 = vpack.c.bf16 %v4369_v13, %v4368_v26  ;;  %v5537_v26 = vld [vmem:[#allocation2 + $0x2e9] sm:$0xff] }
 0x122   :  { %1442 = vmatmul.mubr.f32.gmra.mrb[104].mxu0 %v6988_v44  ;;  %v7036_v13 = vld [vmem:[#allocation2 + $0x2e8] sm:$0xff] }
 0x123   :  { %v6994_v20 = vpop.f32.mrb[14].mxu1  ;;  %1446 = vmatprep.mubr.f32.mxu0 %v5534_v6  ;;  %5425 = vmatpush1.bf16.msra.mxu1 %v5424_v45  ;;  %v475_v45 = vld [vmem:[#allocation2 + $0x1b0] sm:$0xff] }
 0x124   :  { %v6998_v57 = vpop.f32.mrb[15].mxu1  ;;  %2092 = vmatmul.mubr.f32.gmra.mrb[120].mxu1 %v6757_v16  ;;  %v5535_v16 = vld [vmem:[#allocation2 + $0x2d1] sm:$0xff]  ;;  %5490 = vmatprep.subr.bf16.mxu1 %v6887_v4 }
 0x125   :  { %v1183_v24 = vpop.f32.mrb[0].mxu0  ;;  %2096 = vmatprep.mubr.f32.mxu1 %v536_v29  ;;  %v539_v29 = vld [vmem:[#allocation2 + $0x1b1] sm:$0xff] }
 0x126   :  { %v7008_v60 = vadd.f32 %v6932_v62, %v1183_v24  ;;  %1447 = vmatmul.mubr.f32.gmra.mrb[106].mxu0 %v6996_v41  ;;  %v1185_v50 = vpop.f32.mrb[1].mxu0 }
 0x127   :  { %v7011_v58 = vpop.f32.mrb[16].mxu1  ;;  %1451 = vmatprep.mubr.f32.mxu0 %v5535_v16 }
 0x128   :  { %v7015_v28 = vpop.f32.mrb[17].mxu1  ;;  %2097 = vmatmul.mubr.f32.gmra.mrb[122].mxu1 %v6772_v59 }
 0x129   :  { %v1188_v27 = vpop.f32.mrb[2].mxu0  ;;  %2101 = vmatprep.mubr.f32.mxu1 %v537_v55  ;;  %v540_v55 = vld [vmem:[#allocation2 + $0x1b9] sm:$0xff] }
 0x12a   :  { %v7020_v62 = vadd.f32 %v6928_v17, %v1188_v27  ;;  %1452 = vmatmul.mubr.f32.gmra.mrb[108].mxu0 %v7013_v43  ;;  %v1190_v34 = vpop.f32.mrb[3].mxu0  ;;  %v5538_v27 = vld [vmem:[#allocation2 + $0x2f1] sm:$0xff] }
 0x12b   :  { %v7023_v54 = vpop.f32.mrb[18].mxu1  ;;  %1456 = vmatprep.mubr.f32.mxu0 %v5536_v3  ;;  %v7047_v34 = vld [vmem:[#allocation2 + $0x2f0] sm:$0xff] }
 0x12c   :  { %v7027_v56 = vpop.f32.mrb[19].mxu1  ;;  %2102 = vmatmul.mubr.f32.gmra.mrb[124].mxu1 %v6782_v63  ;;  %8609 = vst [vmem:[#allocation3_spill] sm:$0xff] %v7047_v34 }
 0x12d   :  { %v1193_v59 = vpop.f32.mrb[4].mxu0  ;;  %2106 = vmatprep.mubr.f32.mxu1 %v538_v2 }
 0x12e   :  { %v7031_v0 = vadd.f32 %v6941_v32, %v1193_v59  ;;  %1457 = vmatmul.mubr.f32.gmra.mrb[110].mxu0 %v7025_v40  ;;  %v1195_v17 = vpop.f32.mrb[5].mxu0 }
 0x12f   :  { %v7034_v6 = vpop.f32.mrb[20].mxu1  ;;  %1461 = vmatprep.mubr.f32.mxu0 %v5537_v26  ;;  %v7057_v26 = vld [vmem:[#allocation2 + $0x300] sm:$0xff] }
 0x130   :  { %v7038_v24 = vpop.f32.mrb[21].mxu1  ;;  %2107 = vmatmul.mubr.f32.gmra.mrb[126].mxu1 %v6792_v30  ;;  %8610 = vst [vmem:[#allocation4_spill] sm:$0xff] %v7057_v26 }
 0x131   :  { %v1198_v63 = vpop.f32.mrb[6].mxu0  ;;  %2111 = vmatprep.mubr.f32.mxu1 %v539_v29  ;;  %v5539_v29 = vld [vmem:[#allocation2 + $0x301] sm:$0xff] }
 0x132   :  { %v7042_v32 = vadd.f32 %v6937_v12, %v1198_v63  ;;  %1462 = vmatmul.mubr.f32.gmra.mrb[112].mxu0 %v7036_v13  ;;  %v1200_v50 = vpop.f32.mrb[7].mxu0  ;;  %v541_v12 = vld [vmem:[#allocation2 + $0x1c9] sm:$0xff] }
 0x133   :  { %v7045_v16 = vpop.f32.mrb[22].mxu1  ;;  %1466 = vmatprep.mubr.f32.mxu0 %v5538_v27 }
 0x134   :  { %v7049_v2 = vpop.f32.mrb[23].mxu1  ;;  %2112 = vmatmul.mubr.f32.gmra.mrb[128].mxu1 %v475_v45 }
 0x135   :  { %v1203_v30 = vpop.f32.mrb[8].mxu0  ;;  %2116 = vmatprep.mubr.f32.mxu1 %v540_v55  ;;  %v542_v55 = vld [vmem:[#allocation2 + $0x1d1] sm:$0xff] }
 0x136   :  { %1467 = vmatmul.mubr.f32.gmra.mrb[114].mxu0 %v7047_v34  ;;  %v1205_v3 = vpop.f32.mrb[9].mxu0  ;;  %v7053_v59 = vadd.f32 %v6949_v7, %v1203_v30  ;;  %v5540_v30 = vld [vmem:[#allocation2 + $0x309] sm:$0xff] }
 0x137   :  { %v7055_v17 = vpop.f32.mrb[24].mxu1  ;;  %1471 = vmatprep.mubr.f32.mxu0 %v5539_v29  ;;  %v7068_v3 = vld [vmem:[#allocation2 + $0x308] sm:$0xff] }
 0x138   :  { %v7059_v63 = vpop.f32.mrb[25].mxu1  ;;  %2117 = vmatmul.mubr.f32.gmra.mrb[130].mxu1 %v6759_v18  ;;  %8611 = vst [vmem:[#allocation5_spill] sm:$0xff] %v7068_v3 }
 0x139   :  { %v1208_v45 = vpop.f32.mrb[10].mxu0  ;;  %2121 = vmatprep.mubr.f32.mxu1 %v541_v12 }
 0x13a   :  { %1472 = vmatmul.mubr.f32.gmra.mrb[116].mxu0 %v7057_v26  ;;  %v1210_v50 = vpop.f32.mrb[11].mxu0  ;;  %v7064_v27 = vadd.f32 %v6945_v5, %v1208_v45  ;;  %v5541_v45 = vld [vmem:[#allocation2 + $0x319] sm:$0xff] }
 0x13b   :  { %v7066_v7 = vpop.f32.mrb[26].mxu1  ;;  %1476 = vmatprep.mubr.f32.mxu0 %v5540_v30  ;;  %v543_v50 = vld [vmem:[#allocation2 + $0x1e1] sm:$0xff]  ;;  %v7079_v30 = vld [vmem:[#allocation2 + $0x318] sm:$0xff] }
 0x13c   :  { %v7070_v29 = vpop.f32.mrb[27].mxu1  ;;  %2122 = vmatmul.mubr.f32.gmra.mrb[132].mxu1 %v6827_v22  ;;  %8613 = vst [vmem:[#allocation7_spill] sm:$0xff] %v7079_v30 }
 0x13d   :  { %v1213_v18 = vpop.f32.mrb[12].mxu0  ;;  %2126 = vmatprep.mubr.f32.mxu1 %v542_v55 }
 0x13e   :  { %1477 = vmatmul.mubr.f32.gmra.mrb[118].mxu0 %v7068_v3  ;;  %v1215_v12 = vpop.f32.mrb[13].mxu0  ;;  %v7075_v26 = vadd.f32 %v6957_v15, %v1213_v18  ;;  %v5542_v18 = vld [vmem:[#allocation2 + $0x321] sm:$0xff] }
 0x13f   :  { %v7077_v5 = vpop.f32.mrb[28].mxu1  ;;  %1481 = vmatprep.mubr.f32.mxu0 %v5541_v45  ;;  %v544_v12 = vld [vmem:[#allocation2 + $0x1e9] sm:$0xff]  ;;  %v7090_v45 = vld [vmem:[#allocation2 + $0x320] sm:$0xff] }
 0x140   :  { %8612 = vst [vmem:[#allocation6_spill] sm:$0xff] %v7075_v26  ;;  %v7081_v34 = vpop.f32.mrb[29].mxu1  ;;  %2127 = vmatmul.mubr.f32.gmra.mrb[134].mxu1 %v6838_v49  ;;  %8616 = vst [vmem:[#allocation10_spill] sm:$0xff] %v7090_v45 }
 0x141   :  { %v1218_v22 = vpop.f32.mrb[14].mxu0  ;;  %2131 = vmatprep.mubr.f32.mxu1 %v543_v50 }
 0x142   :  { %1482 = vmatmul.mubr.f32.gmra.mrb[120].mxu0 %v7079_v30  ;;  %v1220_v55 = vpop.f32.mrb[15].mxu0  ;;  %v7086_v3 = vadd.f32 %v6953_v10, %v1218_v22  ;;  %v5543_v22 = vld [vmem:[#allocation2 + $0x331] sm:$0xff] }
 0x143   :  { %v7088_v15 = vpop.f32.mrb[30].mxu1  ;;  %1486 = vmatprep.mubr.f32.mxu0 %v5542_v18  ;;  %v545_v55 = vld [vmem:[#allocation2 + $0x1f9] sm:$0xff]  ;;  %v697_v18 = vld [vmem:[#allocation2 + $0x330] sm:$0xff] }
 0x144   :  { %8614 = vst [vmem:[#allocation8_spill] sm:$0xff] %v7086_v3  ;;  %8615 = vst [vmem:[#allocation9_spill] sm:$0xff] %v7088_v15  ;;  %v7092_v26 = vpop.f32.mrb[31].mxu1  ;;  %2132 = vmatmul.mubr.f32.gmra.mrb[136].mxu1 %v6849_v11 }
 0x145   :  { %v1223_v49 = vpop.f32.mrb[16].mxu0  ;;  %2136 = vmatprep.mubr.f32.mxu1 %v544_v12  ;;  %v546_v12 = vld [vmem:[#allocation2 + $0x201] sm:$0xff] }
 0x146   :  { %1487 = vmatmul.mubr.f32.gmra.mrb[122].mxu0 %v7090_v45  ;;  %v1225_v50 = vpop.f32.mrb[17].mxu0  ;;  %v7097_v30 = vadd.f32 %v6973_v39, %v1223_v49  ;;  %v5544_v39 = vld [vmem:[#allocation2 + $0x339] sm:$0xff] }
 0x147   :  { %v7099_v10 = vpop.f32.mrb[32].mxu1  ;;  %1491 = vmatprep.mubr.f32.mxu0 %v5543_v22  ;;  %v698_v49 = vld [vmem:[#allocation2 + $0x338] sm:$0xff]  ;;  %v571_v22 = vld [vmem:[#allocation2 + $0x2] sm:$0xff] }
 0x148   :  { %8617 = vst [vmem:[#allocation11_spill] sm:$0xff] %v7097_v30  ;;  %8618 = vst [vmem:[#allocation12_spill] sm:$0xff] %v7099_v10  ;;  %v7101_v3 = vpop.f32.mrb[33].mxu1  ;;  %2137 = vmatmul.mubr.f32.gmra.mrb[138].mxu1 %v6854_v51  ;;  %v4372_v51 = vld [vmem:[%s8538_s3 + $0x410] sm:$0xff] }
 0x149   :  { %v1228_v15 = vpop.f32.mrb[18].mxu0  ;;  %2141 = vmatprep.mubr.f32.mxu1 %v545_v55  ;;  %v547_v55 = vld [vmem:[#allocation2 + $0x211] sm:$0xff] }
 0x14a   :  { %1492 = vmatmul.mubr.f32.gmra.mrb[124].mxu0 %v697_v18  ;;  %v1230_v11 = vpop.f32.mrb[19].mxu0  ;;  %v7105_v50 = vadd.f32 %v6967_v52, %v1228_v15  ;;  %v4373_v52 = vld [vmem:[%s8538_s3 + $0x418] sm:$0xff] }
 0x14b   :  { %v7107_v45 = vpop.f32.mrb[34].mxu1  ;;  %1496 = vmatprep.mubr.f32.mxu0 %v5544_v39 }
 0x14c   :  { %8619 = vst [vmem:[#allocation13_spill] sm:$0xff] %v7107_v45  ;;  %v7109_v10 = vpop.f32.mrb[35].mxu1  ;;  %2142 = vmatmul.mubr.f32.gmra.mrb[140].mxu1 %v6859_v33  ;;  %v572_v33 = vld [vmem:[#allocation2 + $0xa] sm:$0xff]  ;;  %v7126_v45 = vpack.c.bf16 %v4373_v52, %v4372_v51  ;;  %v574_v51 = vld [vmem:[#allocation2 + $0x22] sm:$0xff] }
 0x14d   :  { %8620 = vst [vmem:[#allocation14_spill] sm:$0xff] %v7109_v10  ;;  %v1233_v30 = vpop.f32.mrb[20].mxu0  ;;  %2146 = vmatprep.mubr.f32.mxu1 %v546_v12  ;;  %v573_v12 = vld [vmem:[#allocation2 + $0x1a] sm:$0xff] }
 0x14e   :  { %1497 = vmatmul.mubr.f32.gmra.mrb[126].mxu0 %v698_v49  ;;  %v1235_v15 = vpop.f32.mrb[21].mxu0  ;;  %v7119_v18 = vadd.f32 %v6982_v31, %v1233_v30  ;;  %v4374_v49 = vld [vmem:[%s8538_s3 + $0x420] sm:$0xff]  ;;  %v4375_v31 = vld [vmem:[%s8538_s3 + $0x428] sm:$0xff] }
 0x14f   :  { %v7121_v11 = vpop.f32.mrb[36].mxu1  ;;  %4866 = vmatprep.mubr.f32.mxu0 %v571_v22  ;;  %v548_v22 = vld [vmem:[#allocation2 + $0x219] sm:$0xff] }
 0x150   :  { %v7123_v39 = vpop.f32.mrb[37].mxu1  ;;  %2147 = vmatmul.mubr.f32.gmra.mrb[142].mxu1 %v6863_v48 }
 0x151   :  { %v1238_v10 = vpop.f32.mrb[22].mxu0  ;;  %2151 = vmatprep.mubr.f32.mxu1 %v547_v55  ;;  %v7143_v55 = vld [vmem:[#allocation2 + $0x32] sm:$0xff] }
 0x152   :  { %4867 = vmatmul.mubr.f32.vlgmr.msra.gmra.mrb[128].mxu0 %v572_v33  ;;  %v1240_v30 = vpop.f32.mrb[23].mxu0  ;;  %v7135_v15 = vadd.f32 %v6978_v35, %v1238_v10  ;;  %8623 = vst [vmem:[#allocation17_spill] sm:$0xff] %v7143_v55  ;;  %v7146_v33 = vpack.c.bf16 %v4375_v31, %v4374_v49  ;;  %v4376_v35 = vld [vmem:[%s8538_s3 + $0x430] sm:$0xff]  ;;  %v4377_v10 = vld [vmem:[%s8538_s3 + $0x438] sm:$0xff] }
 0x153   :  { %v7137_v48 = vpop.f32.mrb[38].mxu1  ;;  %4869 = vmatprep.mubr.f32.mxu0 %v573_v12  ;;  %5429 = vmatpush3.bf16.msra.mxu0 %v6887_v4  ;;  %v7160_v49 = vld [vmem:[#allocation2 + $0x3a] sm:$0xff] }
 0x154   :  { %8621 = vst [vmem:[#allocation15_spill] sm:$0xff] %v7137_v48  ;;  %v7140_v52 = vpop.f32.mrb[39].mxu1  ;;  %2152 = vmatmul.mubr.f32.gmra.mrb[144].mxu1 %v6873_v47  ;;  %5431 = vmatprep.subr.bf16.mxu0 %v7126_v45  ;;  %v549_v48 = vld [vmem:[#allocation2 + $0x229] sm:$0xff]  ;;  %8625 = vst [vmem:[#allocation19_spill] sm:$0xff] %v7160_v49 }
 0x155   :  { %8622 = vst [vmem:[#allocation16_spill] sm:$0xff] %v7140_v52  ;;  %v1243_v30 = vpop.f32.mrb[24].mxu0  ;;  %2156 = vmatprep.mubr.f32.mxu1 %v548_v22  ;;  %v7166_v22 = vld [vmem:[#allocation2 + $0x4a] sm:$0xff] }
 0x156   :  { %4870 = vmatmul.mubr.f32.gmra.mrb[130].mxu0 %v574_v51  ;;  %v1245_v12 = vpop.f32.mrb[25].mxu0  ;;  %v7155_v47 = vadd.f32 %v6990_v1, %v1243_v30  ;;  %8627 = vst [vmem:[#allocation21_spill] sm:$0xff] %v7166_v22  ;;  %v7169_v51 = vpack.c.bf16 %v4377_v10, %v4376_v35  ;;  %v4378_v30 = vld [vmem:[%s8538_s3 + $0x440] sm:$0xff] }
 0x157   :  { %v7157_v52 = vpop.f32.mrb[40].mxu1  ;;  %4872 = vmatprep.mubr.f32.mxu0 %v7143_v55  ;;  %5433 = vmatpush3.bf16.msra.mxu0 %v7126_v45  ;;  %v4379_v12 = vld [vmem:[%s8538_s3 + $0x448] sm:$0xff] }
 0x158   :  { %8624 = vst [vmem:[#allocation18_spill] sm:$0xff] %v7157_v52  ;;  %v7163_v31 = vpop.f32.mrb[41].mxu1  ;;  %2157 = vmatmul.mubr.f32.gmra.mrb[146].mxu1 %v6878_v19  ;;  %5435 = vmatprep.subr.bf16.mxu0 %v7146_v33  ;;  %v550_v19 = vld [vmem:[#allocation2 + $0x231] sm:$0xff]  ;;  %v7190_v10 = vld [vmem:[#allocation2 + $0x62] sm:$0xff] }
 0x159   :  { %8626 = vst [vmem:[#allocation20_spill] sm:$0xff] %v7163_v31  ;;  %v1248_v1 = vpop.f32.mrb[26].mxu0  ;;  %2161 = vmatprep.mubr.f32.mxu1 %v549_v48  ;;  %v7184_v48 = vld [vmem:[#allocation2 + $0x52] sm:$0xff]  ;;  %8631 = vst [vmem:[#allocation25_spill] sm:$0xff] %v7190_v10 }
 0x15a   :  { %4873 = vmatmul.mubr.f32.gmra.mrb[132].mxu0 %v7160_v49  ;;  %v1250_v55 = vpop.f32.mrb[27].mxu0  ;;  %v7179_v52 = vadd.f32 %v6986_v46, %v1248_v1  ;;  %8629 = vst [vmem:[#allocation23_spill] sm:$0xff] %v7184_v48  ;;  %v4380_v1 = vld [vmem:[%s8538_s3 + $0x450] sm:$0xff] }
 0x15b   :  { %v7181_v31 = vpop.f32.mrb[42].mxu1  ;;  %4875 = vmatprep.mubr.f32.mxu0 %v7166_v22  ;;  %5437 = vmatpush3.bf16.msra.mxu0 %v7146_v33  ;;  %v7193_v55 = vpack.c.bf16 %v4379_v12, %v4378_v30  ;;  %v4381_v22 = vld [vmem:[%s8538_s3 + $0x458] sm:$0xff]  ;;  %v7208_v30 = vld [vmem:[#allocation2 + $0x6a] sm:$0xff] }
 0x15c   :  { %8628 = vst [vmem:[#allocation22_spill] sm:$0xff] %v7181_v31  ;;  %v7187_v35 = vpop.f32.mrb[43].mxu1  ;;  %2162 = vmatmul.mubr.f32.gmra.mrb[148].mxu1 %v6890_v53  ;;  %5439 = vmatprep.subr.bf16.mxu0 %v7169_v51  ;;  %v551_v53 = vld [vmem:[#allocation2 + $0x241] sm:$0xff]  ;;  %8633 = vst [vmem:[#allocation27_spill] sm:$0xff] %v7208_v30 }
 0x15d   :  { %8630 = vst [vmem:[#allocation24_spill] sm:$0xff] %v7187_v35  ;;  %v1253_v46 = vpop.f32.mrb[28].mxu0  ;;  %2166 = vmatprep.mubr.f32.mxu1 %v550_v19  ;;  %v7214_v19 = vld [vmem:[#allocation2 + $0x7a] sm:$0xff] }
 0x15e   :  { %4876 = vmatmul.mubr.f32.gmra.mrb[134].mxu0 %v7184_v48  ;;  %v1255_v49 = vpop.f32.mrb[29].mxu0  ;;  %v7203_v31 = vadd.f32 %v6998_v57, %v1253_v46  ;;  %8635 = vst [vmem:[#allocation29_spill] sm:$0xff] %v7214_v19  ;;  %v4382_v46 = vld [vmem:[%s8538_s3 + $0x460] sm:$0xff] }
 0x15f   :  { %v7205_v35 = vpop.f32.mrb[44].mxu1  ;;  %4878 = vmatprep.mubr.f32.mxu0 %v7190_v10  ;;  %5441 = vmatpush3.bf16.msra.mxu0 %v7169_v51  ;;  %v7217_v49 = vpack.c.bf16 %v4381_v22, %v4380_v1  ;;  %v7232_v22 = vld [vmem:[#allocation2 + $0x82] sm:$0xff] }
 0x160   :  { %8632 = vst [vmem:[#allocation26_spill] sm:$0xff] %v7205_v35  ;;  %v7211_v12 = vpop.f32.mrb[45].mxu1  ;;  %2167 = vmatmul.mubr.f32.gmra.mrb[150].mxu1 %v6895_v42  ;;  %5443 = vmatprep.subr.bf16.mxu0 %v7193_v55  ;;  %v4383_v35 = vld [vmem:[%s8538_s3 + $0x468] sm:$0xff]  ;;  %8637 = vst [vmem:[#allocation31_spill] sm:$0xff] %v7232_v22 }
 0x161   :  { %8634 = vst [vmem:[#allocation28_spill] sm:$0xff] %v7211_v12  ;;  %v1258_v57 = vpop.f32.mrb[30].mxu0  ;;  %2171 = vmatprep.mubr.f32.mxu1 %v551_v53  ;;  %v552_v42 = vld [vmem:[#allocation2 + $0x249] sm:$0xff]  ;;  %v7238_v53 = vld [vmem:[#allocation2 + $0x92] sm:$0xff] }
 0x162   :  { %4879 = vmatmul.mubr.f32.gmra.mrb[136].mxu0 %v7208_v30  ;;  %v1260_v10 = vpop.f32.mrb[31].mxu0  ;;  %v7227_v48 = vadd.f32 %v6994_v20, %v1258_v57  ;;  %8639 = vst [vmem:[#allocation33_spill] sm:$0xff] %v7238_v53  ;;  %v4384_v57 = vld [vmem:[%s8538_s3 + $0x470] sm:$0xff] }
 0x163   :  { %v7229_v12 = vpop.f32.mrb[46].mxu1  ;;  %4881 = vmatprep.mubr.f32.mxu0 %v7214_v19  ;;  %5445 = vmatpush3.bf16.msra.mxu0 %v7193_v55  ;;  %v7241_v10 = vpack.c.bf16 %v4383_v35, %v4382_v46  ;;  %v7256_v35 = vld [vmem:[#allocation2 + $0x9a] sm:$0xff] }
 0x164   :  { %8636 = vst [vmem:[#allocation30_spill] sm:$0xff] %v7229_v12  ;;  %v7235_v1 = vpop.f32.mrb[47].mxu1  ;;  %2172 = vmatmul.mubr.f32.gmra.mrb[152].mxu1 %v6905_v37  ;;  %5447 = vmatprep.subr.bf16.mxu0 %v7217_v49  ;;  %v4385_v12 = vld [vmem:[%s8538_s3 + $0x478] sm:$0xff] }
 0x165   :  { %8638 = vst [vmem:[#allocation32_spill] sm:$0xff] %v7235_v1  ;;  %v1263_v20 = vpop.f32.mrb[32].mxu0  ;;  %2176 = vmatprep.mubr.f32.mxu1 %v552_v42  ;;  %v553_v37 = vld [vmem:[#allocation2 + $0x259] sm:$0xff]  ;;  %v7262_v42 = vld [vmem:[#allocation2 + $0xaa] sm:$0xff] }
 0x166   :  { %4882 = vmatmul.mubr.f32.gmra.mrb[138].mxu0 %v7232_v22  ;;  %v1265_v1 = vpop.f32.mrb[33].mxu0  ;;  %v7251_v19 = vadd.f32 %v7015_v28, %v1263_v20  ;;  %8642 = vst [vmem:[#allocation36_spill] sm:$0xff] %v7262_v42 }
 0x167   :  { %v7253_v30 = vpop.f32.mrb[48].mxu1  ;;  %4884 = vmatprep.mubr.f32.mxu0 %v7238_v53  ;;  %5449 = vmatpush3.bf16.msra.mxu0 %v7217_v49  ;;  %v7265_v1 = vpack.c.bf16 %v4385_v12, %v4384_v57  ;;  %v7280_v12 = vld [vmem:[#allocation2 + $0xc2] sm:$0xff] }
 0x168   :  { %8640 = vst [vmem:[#allocation34_spill] sm:$0xff] %v7253_v30  ;;  %v7259_v46 = vpop.f32.mrb[49].mxu1  ;;  %2177 = vmatmul.mubr.f32.gmra.mrb[154].mxu1 %v6910_v8  ;;  %5451 = vmatprep.subr.bf16.mxu0 %v7241_v10  ;;  %v554_v30 = vld [vmem:[#allocation2 + $0x261] sm:$0xff]  ;;  %v7274_v8 = vld [vmem:[#allocation2 + $0xb2] sm:$0xff] }
 0x169   :  { %8641 = vst [vmem:[#allocation35_spill] sm:$0xff] %v7259_v46  ;;  %v1268_v28 = vpop.f32.mrb[34].mxu0  ;;  %2181 = vmatprep.mubr.f32.mxu1 %v553_v37  ;;  %8644 = vst [vmem:[#allocation38_spill] sm:$0xff] %v7274_v8  ;;  %v3812_v37 = vld [vmem:[%s8542_s4 + $0x8] sm:$0xff] }
 0x16a   :  { %4885 = vmatmul.mubr.f32.gmra.mrb[140].mxu0 %v7256_v35  ;;  %v1270_v20 = vpop.f32.mrb[35].mxu0  ;;  %v7269_v53 = vadd.f32 %v7011_v58, %v1268_v28  ;;  %v3811_v58 = vld [vmem:[%s8542_s4] sm:$0xff] }
 0x16b   :  { %v7271_v22 = vpop.f32.mrb[50].mxu1  ;;  %4887 = vmatprep.mubr.f32.mxu0 %v7262_v42  ;;  %5453 = vmatpush3.bf16.msra.mxu0 %v7241_v10  ;;  %v555_v20 = vld [vmem:[#allocation2 + $0x271] sm:$0xff] }
 0x16c   :  { %8643 = vst [vmem:[#allocation37_spill] sm:$0xff] %v7271_v22  ;;  %v7277_v46 = vpop.f32.mrb[51].mxu1  ;;  %2182 = vmatmul.mubr.f32.gmra.mrb[156].mxu1 %v6914_v38  ;;  %5455 = vmatprep.subr.bf16.mxu0 %v7265_v1  ;;  %v7293_v22 = vpack.c.bf16 %v3812_v37, %v3811_v58  ;;  %v556_v58 = vld [vmem:[#allocation2 + $0x279] sm:$0xff] }
 0x16d   :  { %8645 = vst [vmem:[#allocation39_spill] sm:$0xff] %v7277_v46  ;;  %v1273_v57 = vpop.f32.mrb[36].mxu0  ;;  %2186 = vmatprep.mubr.f32.mxu1 %v554_v30  ;;  %v7298_v30 = vld [vmem:[#allocation2 + $0xca] sm:$0xff] }
 0x16e   :  { %4888 = vmatmul.mubr.f32.gmra.mrb[142].mxu0 %v7274_v8  ;;  %v1275_v28 = vpop.f32.mrb[37].mxu0  ;;  %v7291_v38 = vadd.f32 %v7027_v56, %v1273_v57  ;;  %8647 = vst [vmem:[#allocation41_spill] sm:$0xff] %v7298_v30  ;;  %v7304_v8 = vld [vmem:[#allocation2 + $0xda] sm:$0xff] }
 0x16f   :  { %v7295_v46 = vpop.f32.mrb[52].mxu1  ;;  %4890 = vmatprep.mubr.f32.mxu0 %v7280_v12  ;;  %5457 = vmatpush3.bf16.msra.mxu0 %v7265_v1 }
 0x170   :  { %8646 = vst [vmem:[#allocation40_spill] sm:$0xff] %v7295_v46  ;;  %v7301_v42 = vpop.f32.mrb[53].mxu1  ;;  %2187 = vmatmul.mubr.f32.gmra.mrb[158].mxu1 %v6918_v61  ;;  %5459 = vmatprep.subr.bf16.mxu0 %v7293_v22  ;;  %v7314_v46 = vld [vmem:[#allocation2 + $0xe2] sm:$0xff] }
 0x171   :  { %8648 = vst [vmem:[#allocation42_spill] sm:$0xff] %v7301_v42  ;;  %v1278_v56 = vpop.f32.mrb[38].mxu0  ;;  %2191 = vmatprep.mubr.f32.mxu1 %v555_v20  ;;  %8650 = vst [vmem:[#allocation44_spill] sm:$0xff] %v7314_v46  ;;  %v7319_v42 = vld [vmem:[#allocation2 + $0xf2] sm:$0xff] }
 0x172   :  { %4891 = vmatmul.mubr.f32.gmra.mrb[144].mxu0 %v7298_v30  ;;  %v1280_v57 = vpop.f32.mrb[39].mxu0  ;;  %v7309_v37 = vadd.f32 %v7023_v54, %v1278_v56  ;;  %8652 = vst [vmem:[#allocation46_spill] sm:$0xff] %v7319_v42  ;;  %v557_v30 = vld [vmem:[#allocation2 + $0x289] sm:$0xff] }
 0x173   :  { %v7311_v28 = vpop.f32.mrb[54].mxu1  ;;  %4893 = vmatprep.mubr.f32.mxu0 %v7304_v8 }
 0x174   :  { %8649 = vst [vmem:[#allocation43_spill] sm:$0xff] %v7311_v28  ;;  %v7316_v61 = vpop.f32.mrb[55].mxu1  ;;  %2192 = vmatmul.mubr.f32.gmra.mrb[160].mxu1 %v6930_v25  ;;  %v7328_v28 = vld [vmem:[#allocation2 + $0xfa] sm:$0xff]  ;;  %v7333_v25 = vld [vmem:[#allocation2 + $0x10a] sm:$0xff] }
 0x175   :  { %8651 = vst [vmem:[#allocation45_spill] sm:$0xff] %v7316_v61  ;;  %v1283_v20 = vpop.f32.mrb[40].mxu0  ;;  %2196 = vmatprep.mubr.f32.mxu1 %v556_v58  ;;  %8654 = vst [vmem:[#allocation48_spill] sm:$0xff] %v7328_v28 }
 0x176   :  { %4894 = vmatmul.mubr.f32.gmra.mrb[146].mxu0 %v7314_v46  ;;  %v1285_v57 = vpop.f32.mrb[41].mxu0  ;;  %v7323_v54 = vadd.f32 %v7038_v24, %v1283_v20  ;;  %8656 = vst [vmem:[#allocation50_spill] sm:$0xff] %v7333_v25  ;;  %v558_v46 = vld [vmem:[#allocation2 + $0x291] sm:$0xff] }
 0x177   :  { %v7325_v56 = vpop.f32.mrb[56].mxu1  ;;  %4896 = vmatprep.mubr.f32.mxu0 %v7319_v42 }
 0x178   :  { %8653 = vst [vmem:[#allocation47_spill] sm:$0xff] %v7325_v56  ;;  %v7330_v61 = vpop.f32.mrb[57].mxu1  ;;  %2197 = vmatmul.mubr.f32.gmra.mrb[162].mxu1 %v6939_v14  ;;  %v7342_v56 = vld [vmem:[#allocation2 + $0x112] sm:$0xff]  ;;  %v595_v14 = vld [vmem:[#allocation2 + $0x122] sm:$0xff] }
 0x179   :  { %8655 = vst [vmem:[#allocation49_spill] sm:$0xff] %v7330_v61  ;;  %v1288_v58 = vpop.f32.mrb[42].mxu0  ;;  %2201 = vmatprep.mubr.f32.mxu1 %v557_v30  ;;  %8658 = vst [vmem:[#allocation52_spill] sm:$0xff] %v7342_v56 }
 0x17a   :  { %4897 = vmatmul.mubr.f32.gmra.mrb[148].mxu0 %v7328_v28  ;;  %v1290_v57 = vpop.f32.mrb[43].mxu0  ;;  %v7337_v24 = vadd.f32 %v7034_v6, %v1288_v58  ;;  %v560_v28 = vld [vmem:[#allocation2 + $0x2a9] sm:$0xff] }
 0x17b   :  { %v7339_v20 = vpop.f32.mrb[58].mxu1  ;;  %4899 = vmatprep.mubr.f32.mxu0 %v7333_v25  ;;  %v559_v57 = vld [vmem:[#allocation2 + $0x2a1] sm:$0xff] }
 0x17c   :  { %8657 = vst [vmem:[#allocation51_spill] sm:$0xff] %v7339_v20  ;;  %v7344_v61 = vpop.f32.mrb[59].mxu1  ;;  %2202 = vmatmul.mubr.f32.gmra.mrb[164].mxu1 %v6947_v21  ;;  %v596_v20 = vld [vmem:[#allocation2 + $0x12a] sm:$0xff] }
 0x17d   :  { %8659 = vst [vmem:[#allocation53_spill] sm:$0xff] %v7344_v61  ;;  %v1293_v42 = vpop.f32.mrb[44].mxu0  ;;  %2206 = vmatprep.mubr.f32.mxu1 %v558_v46  ;;  %v597_v61 = vld [vmem:[#allocation2 + $0x13a] sm:$0xff] }
 0x17e   :  { %4900 = vmatmul.mubr.f32.gmra.mrb[150].mxu0 %v7342_v56  ;;  %v1295_v30 = vpop.f32.mrb[45].mxu0  ;;  %v7349_v6 = vadd.f32 %v7049_v2, %v1293_v42  ;;  %v598_v2 = vld [vmem:[#allocation2 + $0x142] sm:$0xff] }
 0x17f   :  { %v7351_v58 = vpop.f32.mrb[60].mxu1  ;;  %4902 = vmatprep.mubr.f32.mxu0 %v595_v14  ;;  %v599_v14 = vld [vmem:[#allocation2 + $0x152] sm:$0xff] }
 0x180   :  { %8660 = vst [vmem:[#allocation54_spill] sm:$0xff] %v7351_v58  ;;  %v7353_v25 = vpop.f32.mrb[61].mxu1  ;;  %2207 = vmatmul.mubr.f32.gmra.mrb[166].mxu1 %v6955_v23 }
 0x181   :  { %v1298_v21 = vpop.f32.mrb[46].mxu0  ;;  %2211 = vmatprep.mubr.f32.mxu1 %v559_v57  ;;  %v561_v57 = vld [vmem:[#allocation2 + $0x2b9] sm:$0xff] }
 0x182   :  { %4903 = vmatmul.mubr.f32.gmra.mrb[152].mxu0 %v596_v20  ;;  %v1300_v46 = vpop.f32.mrb[47].mxu0  ;;  %v7357_v30 = vadd.f32 %v7045_v16, %v1298_v21  ;;  %v600_v16 = vld [vmem:[#allocation2 + $0x15a] sm:$0xff] }
 0x183   :  { %v7359_v56 = vpop.f32.mrb[62].mxu1  ;;  %4905 = vmatprep.mubr.f32.mxu0 %v597_v61  ;;  %v601_v61 = vld [vmem:[#allocation2 + $0x16a] sm:$0xff] }
 0x184   :  { %8661 = vst [vmem:[#allocation55_spill] sm:$0xff] %v7359_v56  ;;  %v7361_v42 = vpop.f32.mrb[63].mxu1  ;;  %2212 = vmatmul.mubr.f32.gmra.mrb[168].mxu1 %v6971_v9 }
 0x185   :  { %v1303_v58 = vpop.f32.mrb[48].mxu0  ;;  %2216 = vmatprep.mubr.f32.mxu1 %v560_v28 }
 0x186   :  { %4906 = vmatmul.mubr.f32.gmra.mrb[154].mxu0 %v598_v2  ;;  %v1305_v23 = vpop.f32.mrb[49].mxu0  ;;  %v7365_v20 = vadd.f32 %v7059_v63, %v1303_v58  ;;  %v562_v2 = vld [vmem:[#allocation2 + $0x2c1] sm:$0xff]  ;;  %v602_v58 = vld [vmem:[#allocation2 + $0x172] sm:$0xff] }
 0x187   :  { %v1953_v46 = vpop.f32.mrb[64].mxu1  ;;  %4908 = vmatprep.mubr.f32.mxu0 %v599_v14 }
 0x188   :  { %v1955_v21 = vpop.f32.mrb[65].mxu1  ;;  %2217 = vmatmul.mubr.f32.gmra.mrb[170].mxu1 %v6980_v36  ;;  %v7369_v56 = vadd.f32 %v1953_v46, %v7008_v60  ;;  %v563_v46 = vld [vmem:[#allocation2 + $0x2d1] sm:$0xff] }
 0x189   :  { %v1308_v9 = vpop.f32.mrb[50].mxu0  ;;  %2221 = vmatprep.mubr.f32.mxu1 %v561_v57  ;;  %v603_v21 = vld [vmem:[#allocation2 + $0x1b2] sm:$0xff] }
 0x18a   :  { %4909 = vmatmul.mubr.f32.gmra.mrb[156].mxu0 %v600_v16  ;;  %v1310_v28 = vpop.f32.mrb[51].mxu0  ;;  %v7372_v23 = vadd.f32 %v7055_v17, %v1308_v9  ;;  %v604_v9 = vld [vmem:[#allocation2 + $0x1ba] sm:$0xff] }
 0x18b   :  { %v1958_v63 = vpop.f32.mrb[66].mxu1  ;;  %4911 = vmatprep.mubr.f32.mxu0 %v601_v61  ;;  %v605_v28 = vld [vmem:[#allocation2 + $0x1ca] sm:$0xff] }
 0x18c   :  { %v1960_v14 = vpop.f32.mrb[67].mxu1  ;;  %2222 = vmatmul.mubr.f32.gmra.mrb[172].mxu1 %v6988_v44  ;;  %v7376_v36 = vadd.f32 %v1958_v63, %v7020_v62  ;;  %v564_v63 = vld [vmem:[#allocation2 + $0x2d9] sm:$0xff] }
 0x18d   :  { %v1313_v60 = vpop.f32.mrb[52].mxu0  ;;  %2226 = vmatprep.mubr.f32.mxu1 %v562_v2  ;;  %v606_v14 = vld [vmem:[#allocation2 + $0x1d2] sm:$0xff] }
 0x18e   :  { %4912 = vmatmul.mubr.f32.gmra.mrb[158].mxu0 %v602_v58  ;;  %v1315_v57 = vpop.f32.mrb[53].mxu0  ;;  %v7379_v16 = vadd.f32 %v7070_v29, %v1313_v60  ;;  %v607_v60 = vld [vmem:[#allocation2 + $0x1e2] sm:$0xff] }
 0x18f   :  { %v1963_v17 = vpop.f32.mrb[68].mxu1  ;;  %4914 = vmatprep.mubr.f32.mxu0 %v603_v21 }
 0x190   :  { %v1965_v61 = vpop.f32.mrb[69].mxu1  ;;  %2227 = vmatmul.mubr.f32.gmra.mrb[174].mxu1 %v6996_v41  ;;  %v7383_v44 = vadd.f32 %v1963_v17, %v7031_v0  ;;  %v565_v17 = vld [vmem:[#allocation2 + $0x2e9] sm:$0xff] }
 0x191   :  { %v1318_v62 = vpop.f32.mrb[54].mxu0  ;;  %2231 = vmatprep.mubr.f32.mxu1 %v563_v46 }
 0x192   :  { %4915 = vmatmul.mubr.f32.gmra.mrb[160].mxu0 %v604_v9  ;;  %v1320_v2 = vpop.f32.mrb[55].mxu0  ;;  %v7386_v58 = vadd.f32 %v7066_v7, %v1318_v62  ;;  %v608_v9 = vld [vmem:[#allocation2 + $0x1ea] sm:$0xff] }
 0x193   :  { %v1968_v29 = vpop.f32.mrb[70].mxu1  ;;  %4917 = vmatprep.mubr.f32.mxu0 %v605_v28  ;;  %v566_v2 = vld [vmem:[#allocation2 + $0x2f1] sm:$0xff] }
 0x194   :  { %v1970_v21 = vpop.f32.mrb[71].mxu1  ;;  %2232 = vmatmul.mubr.f32.gmra.mrb[176].mxu1 %v7013_v43  ;;  %v7390_v41 = vadd.f32 %v1968_v29, %v7042_v32  ;;  %v609_v43 = vld [vmem:[#allocation2 + $0x1fa] sm:$0xff]  ;;  %v610_v29 = vld [vmem:[#allocation2 + $0x202] sm:$0xff] }
 0x195   :  { %v1323_v0 = vpop.f32.mrb[56].mxu0  ;;  %2236 = vmatprep.mubr.f32.mxu1 %v564_v63  ;;  %v611_v21 = vld [vmem:[#allocation2 + $0x212] sm:$0xff] }
 0x196   :  { %v7393_v57 = vadd.f32 %v7081_v34, %v1323_v0  ;;  %4918 = vmatmul.mubr.f32.gmra.mrb[162].mxu0 %v606_v14  ;;  %v1325_v46 = vpop.f32.mrb[57].mxu0  ;;  %v567_v0 = vld [vmem:[#allocation2 + $0x301] sm:$0xff] }
 0x197   :  { %v1973_v7 = vpop.f32.mrb[72].mxu1  ;;  %4920 = vmatprep.mubr.f32.mxu0 %v607_v60 }
 0x198   :  { %v7396_v61 = vadd.f32 %v1973_v7, %v7053_v59  ;;  %v1975_v28 = vpop.f32.mrb[73].mxu1  ;;  %2237 = vmatmul.mubr.f32.gmra.mrb[178].mxu1 %v7025_v40  ;;  %v8662_v7 = vld [vmem:[#allocation6_spill] sm:$0xff] }
 0x199   :  { %v1328_v32 = vpop.f32.mrb[58].mxu0  ;;  %2241 = vmatprep.mubr.f32.mxu1 %v565_v17  ;;  %v612_v17 = vld [vmem:[#allocation2 + $0x21a] sm:$0xff] }
 0x19a   :  { %v7400_v62 = vadd.f32 %v7077_v5, %v1328_v32  ;;  %4921 = vmatmul.mubr.f32.gmra.mrb[164].mxu0 %v608_v9  ;;  %v1330_v34 = vpop.f32.mrb[59].mxu0  ;;  %v8664_v28 = vld [vmem:[#allocation3_spill] sm:$0xff]  ;;  %v8665_v32 = vld [vmem:[#allocation9_spill] sm:$0xff] }
 0x19b   :  { %v1978_v63 = vpop.f32.mrb[74].mxu1  ;;  %4923 = vmatprep.mubr.f32.mxu0 %v609_v43  ;;  %v613_v43 = vld [vmem:[#allocation2 + $0x22a] sm:$0xff] }
 0x19c   :  { %v7403_v14 = vadd.f32 %v1978_v63, %v7064_v27  ;;  %v1980_v59 = vpop.f32.mrb[75].mxu1  ;;  %2242 = vmatmul.mubr.f32.gmra.mrb[180].mxu1 %v7036_v13 }
 0x19d   :  { %v1333_v40 = vpop.f32.mrb[60].mxu0  ;;  %2246 = vmatprep.mubr.f32.mxu1 %v566_v2  ;;  %v568_v2 = vld [vmem:[#allocation2 + $0x309] sm:$0xff] }
 0x19e   :  { %v7407_v60 = vadd.f32 %v7092_v26, %v1333_v40  ;;  %4924 = vmatmul.mubr.f32.gmra.mrb[166].mxu0 %v610_v29  ;;  %v1335_v5 = vpop.f32.mrb[61].mxu0  ;;  %v614_v29 = vld [vmem:[#allocation2 + $0x232] sm:$0xff]  ;;  %v8666_v59 = vld [vmem:[#allocation8_spill] sm:$0xff] }
 0x19f   :  { %v1983_v46 = vpop.f32.mrb[76].mxu1  ;;  %4926 = vmatprep.mubr.f32.mxu0 %v611_v21  ;;  %v8667_v5 = vld [vmem:[#allocation4_spill] sm:$0xff] }
 0x1a0   :  { %v7410_v9 = vadd.f32 %v1983_v46, %v8662_v7  ;;  %v1985_v27 = vpop.f32.mrb[77].mxu1  ;;  %2247 = vmatmul.mubr.f32.gmra.mrb[182].mxu1 %v8664_v28  ;;  %v615_v46 = vld [vmem:[#allocation2 + $0x242] sm:$0xff] }
 0x1a1   :  { %v1338_v13 = vpop.f32.mrb[62].mxu0  ;;  %2251 = vmatprep.mubr.f32.mxu1 %v567_v0 }
 0x1a2   :  { %8663 = vst [vmem:[#allocation6_spill] sm:$0xff] %v7410_v9  ;;  %v7414_v34 = vadd.f32 %v8665_v32, %v1338_v13  ;;  %4927 = vmatmul.mubr.f32.gmra.mrb[168].mxu0 %v612_v17  ;;  %v1340_v26 = vpop.f32.mrb[63].mxu0  ;;  %v569_v17 = vld [vmem:[#allocation2 + $0x319] sm:$0xff]  ;;  %v616_v13 = vld [vmem:[#allocation2 + $0x24a] sm:$0xff] }
 0x1a3   :  { %v1988_v63 = vpop.f32.mrb[78].mxu1  ;;  %4929 = vmatprep.mubr.f32.mxu0 %v613_v43  ;;  %v8668_v43 = vld [vmem:[#allocation11_spill] sm:$0xff] }
 0x1a4   :  { %v7417_v21 = vadd.f32 %v1988_v63, %v8666_v59  ;;  %v1990_v40 = vpop.f32.mrb[79].mxu1  ;;  %2252 = vmatmul.mubr.f32.gmra.mrb[184].mxu1 %v8667_v5  ;;  %v8670_v63 = vld [vmem:[#allocation5_spill] sm:$0xff]  ;;  %v617_v59 = vld [vmem:[#allocation2 + $0x25a] sm:$0xff]  ;;  %v8671_v5 = vld [vmem:[#allocation12_spill] sm:$0xff] }
 0x1a5   :  { %v1343_v7 = vpop.f32.mrb[64].mxu0  ;;  %2256 = vmatprep.mubr.f32.mxu1 %v568_v2 }
 0x1a6   :  { %v7421_v0 = vadd.f32 %v7101_v3, %v1343_v7  ;;  %4930 = vmatmul.mubr.f32.gmra.mrb[170].mxu0 %v614_v29  ;;  %v1345_v27 = vpop.f32.mrb[65].mxu0  ;;  %v570_v29 = vld [vmem:[#allocation2 + $0x321] sm:$0xff] }
 0x1a7   :  { %v1993_v28 = vpop.f32.mrb[80].mxu1  ;;  %4932 = vmatprep.mubr.f32.mxu0 %v615_v46  ;;  %v618_v27 = vld [vmem:[#allocation2 + $0x262] sm:$0xff] }
 0x1a8   :  { %v7424_v32 = vadd.f32 %v1993_v28, %v8668_v43  ;;  %v1995_v26 = vpop.f32.mrb[81].mxu1  ;;  %2257 = vmatmul.mubr.f32.gmra.mrb[186].mxu1 %v8670_v63  ;;  %v8673_v43 = vld [vmem:[#allocation7_spill] sm:$0xff] }
 0x1a9   :  { %v1348_v40 = vpop.f32.mrb[66].mxu0  ;;  %2261 = vmatprep.mubr.f32.mxu1 %v569_v17  ;;  %v619_v26 = vld [vmem:[#allocation2 + $0x272] sm:$0xff] }
 0x1aa   :  { %8669 = vst [vmem:[#allocation3_spill] sm:$0xff] %v7424_v32  ;;  %v7428_v2 = vadd.f32 %v8671_v5, %v1348_v40  ;;  %4933 = vmatmul.mubr.f32.gmra.mrb[172].mxu0 %v616_v13  ;;  %v1350_v3 = vpop.f32.mrb[67].mxu0  ;;  %v8674_v32 = vld [vmem:[#allocation14_spill] sm:$0xff] }
 0x1ab   :  { %v1998_v7 = vpop.f32.mrb[82].mxu1  ;;  %4935 = vmatprep.mubr.f32.mxu0 %v617_v59  ;;  %v892_v13 = vld [vmem:[#allocation2 + $0x31] sm:$0xff]  ;;  %v620_v3 = vld [vmem:[#allocation2 + $0x27a] sm:$0xff] }
 0x1ac   :  { %v7431_v46 = vadd.f32 %v1998_v7, %v7105_v50  ;;  %v2000_v28 = vpop.f32.mrb[83].mxu1  ;;  %2262 = vmatmul.mubr.f32.gmra.mrb[188].mxu1 %v8673_v43  ;;  %v8675_v7 = vld [vmem:[#allocation10_spill] sm:$0xff] }
 0x1ad   :  { %v1353_v63 = vpop.f32.mrb[68].mxu0  ;;  %2266 = vmatprep.mubr.f32.mxu1 %v570_v29  ;;  %v621_v28 = vld [vmem:[#allocation2 + $0x28a] sm:$0xff] }
 0x1ae   :  { %8672 = vst [vmem:[#allocation9_spill] sm:$0xff] %v7431_v46  ;;  %v7435_v17 = vadd.f32 %v8674_v32, %v1353_v63  ;;  %4936 = vmatmul.mubr.f32.gmra.mrb[174].mxu0 %v618_v27  ;;  %v1355_v40 = vpop.f32.mrb[69].mxu0  ;;  %v828_v46 = vld [vmem:[#allocation2 + $0x30] sm:$0xff]  ;;  %v893_v27 = vld [vmem:[#allocation2 + $0x39] sm:$0xff] }
 0x1af   :  { %v2003_v5 = vpop.f32.mrb[84].mxu1  ;;  %4938 = vmatprep.mubr.f32.mxu0 %v619_v26  ;;  %v8676_v29 = vld [vmem:[#allocation13_spill] sm:$0xff] }
 0x1b0   :  { %v7438_v59 = vadd.f32 %v2003_v5, %v7119_v18  ;;  %v2005_v50 = vpop.f32.mrb[85].mxu1  ;;  %2267 = vmatmul.mubr.f32.gmra.mrb[190].mxu1 %v8675_v7  ;;  %v622_v26 = vld [vmem:[#allocation2 + $0x292] sm:$0xff]  ;;  %v623_v5 = vld [vmem:[#allocation2 + $0x2a2] sm:$0xff] }
 0x1b1   :  { %v1358_v43 = vpop.f32.mrb[70].mxu0  ;;  %2770 = vmatprep.mubr.f32.mxu1 %v892_v13  ;;  %v829_v13 = vld [vmem:[#allocation2 + $0x38] sm:$0xff] }
 0x1b2   :  { %v7442_v9 = vadd.f32 %v8676_v29, %v1358_v43  ;;  %4939 = vmatmul.mubr.f32.gmra.mrb[176].mxu0 %v620_v3  ;;  %v1360_v32 = vpop.f32.mrb[71].mxu0  ;;  %v894_v43 = vld [vmem:[#allocation2 + $0x49] sm:$0xff] }
 0x1b3   :  { %v2008_v63 = vpop.f32.mrb[86].mxu1  ;;  %4941 = vmatprep.mubr.f32.mxu0 %v621_v28 }
 0x1b4   :  { %v7445_v40 = vadd.f32 %v2008_v63, %v7135_v15  ;;  %v2010_v18 = vpop.f32.mrb[87].mxu1  ;;  %2771 = vmatmul.mubr.f32.vlgmr.msra.gmra.mrb[192].mxu1 %v828_v46  ;;  %v624_v15 = vld [vmem:[#allocation2 + $0x2aa] sm:$0xff] }
 0x1b5   :  { %5498 = vmatpush3.bf16.msra.mxu1 %v6887_v4  ;;  %v1363_v50 = vpop.f32.mrb[72].mxu0  ;;  %2775 = vmatprep.mubr.f32.mxu1 %v893_v27  ;;  %v625_v4 = vld [vmem:[#allocation2 + $0x2ba] sm:$0xff]  ;;  %v830_v27 = vld [vmem:[#allocation2 + $0x48] sm:$0xff] }
 0x1b6   :  { %v7449_v7 = vadd.f32 %v7123_v39, %v1363_v50  ;;  %4942 = vmatmul.mubr.f32.gmra.mrb[178].mxu0 %v622_v26  ;;  %v1365_v3 = vpop.f32.mrb[73].mxu0  ;;  %5491 = vmatprep.subr.bf16.mxu1 %v7126_v45  ;;  %v895_v26 = vld [vmem:[#allocation2 + $0x51] sm:$0xff] }
 0x1b7   :  { %v2013_v28 = vpop.f32.mrb[88].mxu1  ;;  %4944 = vmatprep.mubr.f32.mxu0 %v623_v5 }
 0x1b8   :  { %v7453_v29 = vadd.f32 %v2013_v28, %v7155_v47  ;;  %v2015_v46 = vpop.f32.mrb[89].mxu1  ;;  %2776 = vmatmul.mubr.f32.gmra.mrb[194].mxu1 %v829_v13  ;;  %v626_v47 = vld [vmem:[#allocation2 + $0x2c2] sm:$0xff]  ;;  %v627_v13 = vld [vmem:[#allocation2 + $0x2d2] sm:$0xff] }
 0x1b9   :  { %v1368_v32 = vpop.f32.mrb[74].mxu0  ;;  %2780 = vmatprep.mubr.f32.mxu1 %v894_v43  ;;  %5499 = vmatpush3.bf16.msra.mxu1 %v7126_v45  ;;  %v831_v45 = vld [vmem:[#allocation2 + $0x50] sm:$0xff] }
 0x1ba   :  { %v7457_v39 = vadd.f32 %v7121_v11, %v1368_v32  ;;  %4945 = vmatmul.mubr.f32.gmra.mrb[180].mxu0 %v624_v15  ;;  %v1370_v63 = vpop.f32.mrb[75].mxu0  ;;  %5492 = vmatprep.subr.bf16.mxu1 %v7146_v33  ;;  %v8677_v11 = vld [vmem:[#allocation16_spill] sm:$0xff] }
 0x1bb   :  { %v2018_v18 = vpop.f32.mrb[90].mxu1  ;;  %4947 = vmatprep.mubr.f32.mxu0 %v625_v4  ;;  %v896_v15 = vld [vmem:[#allocation2 + $0x61] sm:$0xff] }
 0x1bc   :  { %v7461_v5 = vadd.f32 %v2018_v18, %v7179_v52  ;;  %v2020_v50 = vpop.f32.mrb[91].mxu1  ;;  %2781 = vmatmul.mubr.f32.gmra.mrb[196].mxu1 %v830_v27  ;;  %v628_v52 = vld [vmem:[#allocation2 + $0x2da] sm:$0xff]  ;;  %v629_v27 = vld [vmem:[#allocation2 + $0x2ea] sm:$0xff] }
 0x1bd   :  { %v1373_v3 = vpop.f32.mrb[76].mxu0  ;;  %2785 = vmatprep.mubr.f32.mxu1 %v895_v26  ;;  %5500 = vmatpush3.bf16.msra.mxu1 %v7146_v33  ;;  %v832_v33 = vld [vmem:[#allocation2 + $0x60] sm:$0xff]  ;;  %v897_v50 = vld [vmem:[#allocation2 + $0x69] sm:$0xff] }
 0x1be   :  { %v7465_v43 = vadd.f32 %v8677_v11, %v1373_v3  ;;  %4948 = vmatmul.mubr.f32.gmra.mrb[182].mxu0 %v626_v47  ;;  %v1375_v28 = vpop.f32.mrb[77].mxu0  ;;  %5493 = vmatprep.subr.bf16.mxu1 %v7169_v51  ;;  %v8678_v26 = vld [vmem:[#allocation15_spill] sm:$0xff] }
 0x1bf   :  { %v2023_v46 = vpop.f32.mrb[92].mxu1  ;;  %4950 = vmatprep.mubr.f32.mxu0 %v627_v13  ;;  %v631_v11 = vld [vmem:[#allocation2 + $0x302] sm:$0xff] }
 0x1c0   :  { %v7469_v4 = vadd.f32 %v2023_v46, %v7203_v31  ;;  %v2025_v32 = vpop.f32.mrb[93].mxu1  ;;  %2786 = vmatmul.mubr.f32.gmra.mrb[198].mxu1 %v831_v45  ;;  %v630_v31 = vld [vmem:[#allocation2 + $0x2f2] sm:$0xff] }
 0x1c1   :  { %v1378_v63 = vpop.f32.mrb[78].mxu0  ;;  %2790 = vmatprep.mubr.f32.mxu1 %v896_v15  ;;  %5501 = vmatpush3.bf16.msra.mxu1 %v7169_v51  ;;  %v833_v51 = vld [vmem:[#allocation2 + $0x68] sm:$0xff]  ;;  %v898_v32 = vld [vmem:[#allocation2 + $0x79] sm:$0xff] }
 0x1c2   :  { %v7473_v18 = vadd.f32 %v8678_v26, %v1378_v63  ;;  %4951 = vmatmul.mubr.f32.gmra.mrb[184].mxu0 %v628_v52  ;;  %v1380_v47 = vpop.f32.mrb[79].mxu0  ;;  %5494 = vmatprep.subr.bf16.mxu1 %v7193_v55  ;;  %v8679_v15 = vld [vmem:[#allocation20_spill] sm:$0xff]  ;;  %v633_v26 = vld [vmem:[#allocation2 + $0x31a] sm:$0xff] }
 0x1c3   :  { %v2028_v13 = vpop.f32.mrb[94].mxu1  ;;  %4953 = vmatprep.mubr.f32.mxu0 %v629_v27 }
 0x1c4   :  { %v7477_v3 = vadd.f32 %v2028_v13, %v7227_v48  ;;  %v2030_v45 = vpop.f32.mrb[95].mxu1  ;;  %2791 = vmatmul.mubr.f32.gmra.mrb[200].mxu1 %v832_v33  ;;  %v632_v48 = vld [vmem:[#allocation2 + $0x30a] sm:$0xff] }
 0x1c5   :  { %v1383_v28 = vpop.f32.mrb[80].mxu0  ;;  %2795 = vmatprep.mubr.f32.mxu1 %v897_v50  ;;  %5502 = vmatpush3.bf16.msra.mxu1 %v7193_v55  ;;  %v834_v55 = vld [vmem:[#allocation2 + $0x78] sm:$0xff]  ;;  %v899_v45 = vld [vmem:[#allocation2 + $0x81] sm:$0xff] }
 0x1c6   :  { %v7481_v46 = vadd.f32 %v8679_v15, %v1383_v28  ;;  %4954 = vmatmul.mubr.f32.gmra.mrb[186].mxu0 %v630_v31  ;;  %v1385_v52 = vpop.f32.mrb[81].mxu0  ;;  %5495 = vmatprep.subr.bf16.mxu1 %v7217_v49  ;;  %v8680_v50 = vld [vmem:[#allocation18_spill] sm:$0xff] }
 0x1c7   :  { %v2033_v27 = vpop.f32.mrb[96].mxu1  ;;  %4956 = vmatprep.mubr.f32.mxu0 %v631_v11  ;;  %v835_v52 = vld [vmem:[#allocation2 + $0x80] sm:$0xff] }
 0x1c8   :  { %v7485_v63 = vadd.f32 %v2033_v27, %v7251_v19  ;;  %v2035_v33 = vpop.f32.mrb[97].mxu1  ;;  %2796 = vmatmul.mubr.f32.gmra.mrb[202].mxu1 %v833_v51  ;;  %v634_v19 = vld [vmem:[#allocation2 + $0x322] sm:$0xff] }
 0x1c9   :  { %v1388_v47 = vpop.f32.mrb[82].mxu0  ;;  %2800 = vmatprep.mubr.f32.mxu1 %v898_v32  ;;  %5503 = vmatpush3.bf16.msra.mxu1 %v7217_v49  ;;  %v3813_v49 = vld [vmem:[%s8542_s4 + $0x10] sm:$0xff]  ;;  %v3814_v32 = vld [vmem:[%s8542_s4 + $0x18] sm:$0xff]  ;;  %v8681_v27 = vld [vmem:[#allocation24_spill] sm:$0xff] }
 0x1ca   :  { %v7489_v13 = vadd.f32 %v8680_v50, %v1388_v47  ;;  %4957 = vmatmul.mubr.f32.gmra.mrb[188].mxu0 %v632_v48  ;;  %v1390_v31 = vpop.f32.mrb[83].mxu0  ;;  %5496 = vmatprep.subr.bf16.mxu1 %v7241_v10  ;;  %v900_v33 = vld [vmem:[#allocation2 + $0x91] sm:$0xff] }
 0x1cb   :  { %v2038_v11 = vpop.f32.mrb[98].mxu1  ;;  %4959 = vmatprep.mubr.f32.mxu0 %v633_v26  ;;  %v8682_v47 = vld [vmem:[#allocation17_spill] sm:$0xff]  ;;  %v5462_v31 = vpack.c.bf16 %v3814_v32, %v3813_v49  ;;  %v901_v49 = vld [vmem:[#allocation2 + $0x99] sm:$0xff] }
 0x1cc   :  { %v7493_v28 = vadd.f32 %v2038_v11, %v7269_v53  ;;  %v2040_v51 = vpop.f32.mrb[99].mxu1  ;;  %2801 = vmatmul.mubr.f32.gmra.mrb[204].mxu1 %v834_v55  ;;  %v3815_v11 = vld [vmem:[%s8542_s4 + $0x20] sm:$0xff] }
 0x1cd   :  { %v1393_v15 = vpop.f32.mrb[84].mxu0  ;;  %2805 = vmatprep.mubr.f32.mxu1 %v899_v45  ;;  %5504 = vmatpush3.bf16.msra.mxu1 %v7241_v10  ;;  %v836_v10 = vld [vmem:[#allocation2 + $0x90] sm:$0xff]  ;;  %v8683_v51 = vld [vmem:[#allocation22_spill] sm:$0xff] }
 0x1ce   :  { %v7503_v48 = vadd.f32 %v8681_v27, %v1393_v15  ;;  %4960 = vmatmul.mubr.f32.gmra.mrb[190].mxu0 %v634_v19  ;;  %v1395_v53 = vpop.f32.mrb[85].mxu0  ;;  %5497 = vmatprep.subr.bf16.mxu1 %v7265_v1  ;;  %v3816_v19 = vld [vmem:[%s8542_s4 + $0x28] sm:$0xff]  ;;  %v8685_v27 = vld [vmem:[#allocation21_spill] sm:$0xff] }
 0x1cf   :  { %v2043_v26 = vpop.f32.mrb[100].mxu1  ;;  %4994 = vmatprep.mubr.f32.mxu0 %v8682_v47  ;;  %v837_v47 = vld [vmem:[#allocation2 + $0x98] sm:$0xff] }
 0x1d0   :  { %v7508_v55 = vadd.f32 %v2043_v26, %v7291_v38  ;;  %v2045_v50 = vpop.f32.mrb[101].mxu1  ;;  %2806 = vmatmul.mubr.f32.gmra.mrb[206].mxu1 %v835_v52  ;;  %v8684_v38 = vld [vmem:[#allocation19_spill] sm:$0xff]  ;;  %v5466_v26 = vpack.c.bf16 %v3816_v19, %v3815_v11  ;;  %v8688_v11 = vld [vmem:[#allocation25_spill] sm:$0xff] }
 0x1d1   :  { %v1398_v45 = vpop.f32.mrb[86].mxu0  ;;  %2810 = vmatprep.mubr.f32.mxu1 %v900_v33  ;;  %5505 = vmatpush3.bf16.msra.mxu1 %v7265_v1  ;;  %v3817_v50 = vld [vmem:[%s8542_s4 + $0x30] sm:$0xff] }
 0x1d2   :  { %v7518_v15 = vadd.f32 %v8683_v51, %v1398_v45  ;;  %4995 = vmatmul.mubr.f32.vlgmr.msra.gmra.mrb[192].mxu0 %v8684_v38  ;;  %v1400_v52 = vpop.f32.mrb[87].mxu0  ;;  %v3818_v45 = vld [vmem:[%s8542_s4 + $0x38] sm:$0xff]  ;;  %v8686_v51 = vld [vmem:[#allocation28_spill] sm:$0xff] }
 0x1d3   :  { %v2048_v32 = vpop.f32.mrb[102].mxu1  ;;  %4997 = vmatprep.mubr.f32.mxu0 %v8685_v27  ;;  %5461 = vmatpush3.bf16.msra.mxu0 %v7293_v22 }
 0x1d4   :  { %v7524_v53 = vadd.f32 %v2048_v32, %v7309_v37  ;;  %v2050_v33 = vpop.f32.mrb[103].mxu1  ;;  %2811 = vmatmul.mubr.f32.gmra.mrb[208].mxu1 %v836_v10  ;;  %5463 = vmatprep.subr.bf16.mxu0 %v5462_v31  ;;  %v8687_v37 = vld [vmem:[#allocation23_spill] sm:$0xff]  ;;  %v902_v10 = vld [vmem:[#allocation2 + $0xa9] sm:$0xff]  ;;  %v5470_v32 = vpack.c.bf16 %v3818_v45, %v3817_v50 }
 0x1d5   :  { %v1403_v1 = vpop.f32.mrb[88].mxu0  ;;  %2815 = vmatprep.mubr.f32.mxu1 %v901_v49  ;;  %v838_v33 = vld [vmem:[#allocation2 + $0xa8] sm:$0xff]  ;;  %v8692_v50 = vld [vmem:[#allocation29_spill] sm:$0xff] }
 0x1d6   :  { %v7533_v22 = vadd.f32 %v8686_v51, %v1403_v1  ;;  %4998 = vmatmul.mubr.f32.gmra.mrb[194].mxu0 %v8687_v37  ;;  %v1405_v38 = vpop.f32.mrb[89].mxu0  ;;  %v3819_v1 = vld [vmem:[%s8542_s4 + $0x40] sm:$0xff]  ;;  %v3820_v51 = vld [vmem:[%s8542_s4 + $0x48] sm:$0xff]  ;;  %v8690_v37 = vld [vmem:[#allocation26_spill] sm:$0xff] }
 0x1d7   :  { %v2053_v52 = vpop.f32.mrb[104].mxu1  ;;  %5000 = vmatprep.mubr.f32.mxu0 %v8688_v11  ;;  %5465 = vmatpush3.bf16.msra.mxu0 %v5462_v31  ;;  %v5474_v11 = vpack.c.bf16 %v3820_v51, %v3819_v1  ;;  %v8696_v1 = vld [vmem:[#allocation33_spill] sm:$0xff] }
 0x1d8   :  { %v7538_v19 = vadd.f32 %v2053_v52, %v7323_v54  ;;  %v2055_v49 = vpop.f32.mrb[105].mxu1  ;;  %2816 = vmatmul.mubr.f32.gmra.mrb[210].mxu1 %v837_v47  ;;  %5467 = vmatprep.subr.bf16.mxu0 %v5466_v26  ;;  %v8691_v54 = vld [vmem:[#allocation27_spill] sm:$0xff]  ;;  %v903_v47 = vld [vmem:[#allocation2 + $0xb1] sm:$0xff] }
 0x1d9   :  { %v1408_v27 = vpop.f32.mrb[90].mxu0  ;;  %2820 = vmatprep.mubr.f32.mxu1 %v902_v10 }
 0x1da   :  { %8689 = vst [vmem:[#allocation8_spill] sm:$0xff] %v7538_v19  ;;  %v7547_v31 = vadd.f32 %v8690_v37, %v1408_v27  ;;  %5001 = vmatmul.mubr.f32.gmra.mrb[196].mxu0 %v8691_v54  ;;  %v1410_v38 = vpop.f32.mrb[91].mxu0  ;;  %v839_v19 = vld [vmem:[#allocation2 + $0xb0] sm:$0xff]  ;;  %v3822_v37 = vld [vmem:[%s8542_s4 + $0x58] sm:$0xff]  ;;  %v8694_v54 = vld [vmem:[#allocation32_spill] sm:$0xff] }
 0x1db   :  { %v2058_v52 = vpop.f32.mrb[106].mxu1  ;;  %5003 = vmatprep.mubr.f32.mxu0 %v8692_v50  ;;  %5469 = vmatpush3.bf16.msra.mxu0 %v5466_v26  ;;  %v3821_v27 = vld [vmem:[%s8542_s4 + $0x50] sm:$0xff] }
 0x1dc   :  { %v7552_v45 = vadd.f32 %v2058_v52, %v7337_v24  ;;  %v2060_v10 = vpop.f32.mrb[107].mxu1  ;;  %2821 = vmatmul.mubr.f32.gmra.mrb[212].mxu1 %v838_v33  ;;  %5471 = vmatprep.subr.bf16.mxu0 %v5470_v32  ;;  %v8695_v24 = vld [vmem:[#allocation31_spill] sm:$0xff]  ;;  %v5478_v50 = vpack.c.bf16 %v3822_v37, %v3821_v27  ;;  %v8699_v27 = vld [vmem:[#allocation36_spill] sm:$0xff] }
 0x1dd   :  { %v1413_v49 = vpop.f32.mrb[92].mxu0  ;;  %2825 = vmatprep.mubr.f32.mxu1 %v903_v47  ;;  %v904_v33 = vld [vmem:[#allocation2 + $0xc1] sm:$0xff] }
 0x1de   :  { %8693 = vst [vmem:[#allocation4_spill] sm:$0xff] %v7552_v45  ;;  %v7561_v26 = vadd.f32 %v8694_v54, %v1413_v49  ;;  %5004 = vmatmul.mubr.f32.gmra.mrb[198].mxu0 %v8695_v24  ;;  %v1415_v38 = vpop.f32.mrb[93].mxu0  ;;  %v840_v45 = vld [vmem:[#allocation2 + $0xc0] sm:$0xff]  ;;  %v3824_v54 = vld [vmem:[%s8542_s4 + $0x68] sm:$0xff]  ;;  %v8698_v24 = vld [vmem:[#allocation30_spill] sm:$0xff] }
 0x1df   :  { %v2063_v52 = vpop.f32.mrb[108].mxu1  ;;  %5006 = vmatprep.mubr.f32.mxu0 %v8696_v1  ;;  %5473 = vmatpush3.bf16.msra.mxu0 %v5470_v32  ;;  %v3823_v49 = vld [vmem:[%s8542_s4 + $0x60] sm:$0xff] }
 0x1e0   :  { %v7566_v51 = vadd.f32 %v2063_v52, %v7349_v6  ;;  %v2065_v47 = vpop.f32.mrb[109].mxu1  ;;  %2826 = vmatmul.mubr.f32.gmra.mrb[214].mxu1 %v839_v19  ;;  %5475 = vmatprep.subr.bf16.mxu0 %v5474_v11  ;;  %v905_v19 = vld [vmem:[#allocation2 + $0xc9] sm:$0xff]  ;;  %v5482_v52 = vpack.c.bf16 %v3824_v54, %v3823_v49 }
 0x1e1   :  { %v1418_v10 = vpop.f32.mrb[94].mxu0  ;;  %2830 = vmatprep.mubr.f32.mxu1 %v904_v33  ;;  %v841_v47 = vld [vmem:[#allocation2 + $0xc8] sm:$0xff] }
 0x1e2   :  { %8697 = vst [vmem:[#allocation11_spill] sm:$0xff] %v7566_v51  ;;  %v7575_v32 = vadd.f32 %v8698_v24, %v1418_v10  ;;  %5007 = vmatmul.mubr.f32.gmra.mrb[200].mxu0 %v7256_v35  ;;  %v1420_v6 = vpop.f32.mrb[95].mxu0  ;;  %v3825_v35 = vld [vmem:[%s8542_s4 + $0x70] sm:$0xff]  ;;  %v3826_v10 = vld [vmem:[%s8542_s4 + $0x78] sm:$0xff]  ;;  %v8701_v24 = vld [vmem:[#allocation35_spill] sm:$0xff] }
 0x1e3   :  { %v2068_v38 = vpop.f32.mrb[110].mxu1  ;;  %5009 = vmatprep.mubr.f32.mxu0 %v8699_v27  ;;  %5477 = vmatpush3.bf16.msra.mxu0 %v5474_v11  ;;  %v907_v51 = vld [vmem:[#allocation2 + $0xe1] sm:$0xff] }
 0x1e4   :  { %v7580_v37 = vadd.f32 %v2068_v38, %v7357_v30  ;;  %v2070_v33 = vpop.f32.mrb[111].mxu1  ;;  %2831 = vmatmul.mubr.f32.gmra.mrb[216].mxu1 %v840_v45  ;;  %5479 = vmatprep.subr.bf16.mxu0 %v5478_v50  ;;  %v8702_v30 = vld [vmem:[#allocation38_spill] sm:$0xff] }
 0x1e5   :  { %v1423_v1 = vpop.f32.mrb[96].mxu0  ;;  %2835 = vmatprep.mubr.f32.mxu1 %v905_v19  ;;  %v906_v45 = vld [vmem:[#allocation2 + $0xd9] sm:$0xff]  ;;  %v5486_v19 = vpack.c.bf16 %v3826_v10, %v3825_v35 }
 0x1e6   :  { %8700 = vst [vmem:[#allocation5_spill] sm:$0xff] %v7580_v37  ;;  %v7589_v11 = vadd.f32 %v8701_v24, %v1423_v1  ;;  %5010 = vmatmul.mubr.f32.gmra.mrb[202].mxu0 %v8702_v30  ;;  %v1425_v6 = vpop.f32.mrb[97].mxu0  ;;  %v842_v33 = vld [vmem:[#allocation2 + $0xd8] sm:$0xff]  ;;  %v8704_v30 = vld [vmem:[#allocation41_spill] sm:$0xff]  ;;  %v8705_v35 = vld [vmem:[#allocation39_spill] sm:$0xff] }
 0x1e7   :  { %v2073_v38 = vpop.f32.mrb[112].mxu1  ;;  %5012 = vmatprep.mubr.f32.mxu0 %v7280_v12  ;;  %5481 = vmatpush3.bf16.msra.mxu0 %v5478_v50  ;;  %v8703_v1 = vld [vmem:[#allocation34_spill] sm:$0xff] }
 0x1e8   :  { %v7594_v49 = vadd.f32 %v2073_v38, %v7365_v20  ;;  %v2075_v54 = vpop.f32.mrb[113].mxu1  ;;  %2836 = vmatmul.mubr.f32.gmra.mrb[218].mxu1 %v841_v47  ;;  %5483 = vmatprep.subr.bf16.mxu0 %v5482_v52  ;;  %v843_v47 = vld [vmem:[#allocation2 + $0xe0] sm:$0xff] }
 0x1e9   :  { %v1428_v27 = vpop.f32.mrb[98].mxu0  ;;  %2840 = vmatprep.mubr.f32.mxu1 %v906_v45  ;;  %v8706_v45 = vld [vmem:[#allocation44_spill] sm:$0xff]  ;;  %v908_v54 = vld [vmem:[#allocation2 + $0xf1] sm:$0xff] }
 0x1ea   :  { %v7597_v24 = vadd.f32 %v8703_v1, %v1428_v27  ;;  %5013 = vmatmul.mubr.f32.gmra.mrb[204].mxu0 %v8704_v30  ;;  %v1430_v6 = vpop.f32.mrb[99].mxu0  ;;  %v8707_v1 = vld [vmem:[#allocation46_spill] sm:$0xff]  ;;  %v8709_v30 = vld [vmem:[#allocation48_spill] sm:$0xff] }
 0x1eb   :  { %v2078_v37 = vpop.f32.mrb[114].mxu1  ;;  %5015 = vmatprep.mubr.f32.mxu0 %v7304_v8  ;;  %5485 = vmatpush3.bf16.msra.mxu0 %v5482_v52  ;;  %v8708_v52 = vld [vmem:[#allocation37_spill] sm:$0xff] }
 0x1ec   :  { %v7602_v12 = vadd.f32 %v2078_v37, %v7372_v23  ;;  %v2080_v20 = vpop.f32.mrb[115].mxu1  ;;  %2841 = vmatmul.mubr.f32.gmra.mrb[220].mxu1 %v842_v33  ;;  %5487 = vmatprep.subr.bf16.mxu0 %v5486_v19 }
 0x1ed   :  { %v1433_v50 = vpop.f32.mrb[100].mxu0  ;;  %2845 = vmatprep.mubr.f32.mxu1 %v907_v51  ;;  %v844_v51 = vld [vmem:[#allocation2 + $0xf0] sm:$0xff]  ;;  %v909_v20 = vld [vmem:[#allocation2 + $0xf9] sm:$0xff] }
 0x1ee   :  { %v7605_v10 = vadd.f32 %v8705_v35, %v1433_v50  ;;  %5016 = vmatmul.mubr.f32.gmra.mrb[206].mxu0 %v8706_v45  ;;  %v1435_v38 = vpop.f32.mrb[101].mxu0  ;;  %v8710_v35 = vld [vmem:[#allocation50_spill] sm:$0xff]  ;;  %v976_v45 = vld [vmem:[#allocation2 + $0x122] sm:$0xff] }
 0x1ef   :  { %v2083_v27 = vpop.f32.mrb[116].mxu1  ;;  %5018 = vmatprep.mubr.f32.mxu0 %v8707_v1  ;;  %5489 = vmatpush3.bf16.msra.mxu0 %v5486_v19  ;;  %v845_v38 = vld [vmem:[#allocation2 + $0xf8] sm:$0xff] }
 0x1f0   :  { %v7610_v8 = vadd.f32 %v2083_v27, %v7379_v16  ;;  %v2085_v23 = vpop.f32.mrb[117].mxu1  ;;  %2846 = vmatmul.mubr.f32.gmra.mrb[222].mxu1 %v843_v47 }
 0x1f1   :  { %v1438_v37 = vpop.f32.mrb[102].mxu0  ;;  %2850 = vmatprep.mubr.f32.mxu1 %v908_v54  ;;  %v8711_v54 = vld [vmem:[#allocation42_spill] sm:$0xff]  ;;  %v910_v23 = vld [vmem:[#allocation2 + $0x109] sm:$0xff] }
 0x1f2   :  { %v7613_v33 = vadd.f32 %v8708_v52, %v1438_v37  ;;  %5019 = vmatmul.mubr.f32.gmra.mrb[208].mxu0 %v8709_v30  ;;  %v1440_v6 = vpop.f32.mrb[103].mxu0  ;;  %v8712_v37 = vld [vmem:[#allocation52_spill] sm:$0xff] }
 0x1f3   :  { %v2088_v50 = vpop.f32.mrb[118].mxu1  ;;  %5021 = vmatprep.mubr.f32.mxu0 %v8710_v35  ;;  %v977_v30 = vld [vmem:[#allocation2 + $0x12a] sm:$0xff] }
 0x1f4   :  { %v7618_v19 = vadd.f32 %v2088_v50, %v7386_v58  ;;  %v2090_v16 = vpop.f32.mrb[119].mxu1  ;;  %2851 = vmatmul.mubr.f32.gmra.mrb[224].mxu1 %v844_v51  ;;  %v978_v51 = vld [vmem:[#allocation2 + $0x13a] sm:$0xff]  ;;  %v8714_v35 = vld [vmem:[#allocation40_spill] sm:$0xff] }
 0x1f5   :  { %v1443_v47 = vpop.f32.mrb[104].mxu0  ;;  %2855 = vmatprep.mubr.f32.mxu1 %v909_v20  ;;  %v846_v20 = vld [vmem:[#allocation2 + $0x108] sm:$0xff] }
 0x1f6   :  { %v7621_v27 = vadd.f32 %v8711_v54, %v1443_v47  ;;  %v1445_v1 = vpop.f32.mrb[105].mxu0  ;;  %5022 = vmatmul.mubr.f32.gmra.mrb[210].mxu0 %v8712_v37  ;;  %v911_v54 = vld [vmem:[#allocation2 + $0x111] sm:$0xff]  ;;  %v979_v37 = vld [vmem:[#allocation2 + $0x142] sm:$0xff] }
 0x1f7   :  { %v2093_v52 = vpop.f32.mrb[120].mxu1  ;;  %5024 = vmatprep.mubr.f32.mxu0 %v976_v45 }
 0x1f8   :  { %v7625_v6 = vadd.f32 %v2093_v52, %v7393_v57  ;;  %v2095_v58 = vpop.f32.mrb[121].mxu1  ;;  %2856 = vmatmul.mubr.f32.gmra.mrb[226].mxu1 %v845_v38  ;;  %v980_v52 = vld [vmem:[#allocation2 + $0x152] sm:$0xff] }
 0x1f9   :  { %v1448_v50 = vpop.f32.mrb[106].mxu0  ;;  %2860 = vmatprep.mubr.f32.mxu1 %v910_v23  ;;  %v847_v58 = vld [vmem:[#allocation2 + $0x110] sm:$0xff] }
 0x1fa   :  { %8713 = vst [vmem:[#allocation12_spill] sm:$0xff] %v7625_v6  ;;  %v7628_v16 = vadd.f32 %v8714_v35, %v1448_v50  ;;  %v1450_v47 = vpop.f32.mrb[107].mxu0  ;;  %5025 = vmatmul.mubr.f32.gmra.mrb[212].mxu0 %v977_v30  ;;  %v8716_v23 = vld [vmem:[#allocation45_spill] sm:$0xff]  ;;  %v912_v35 = vld [vmem:[#allocation2 + $0x121] sm:$0xff] }
 0x1fb   :  { %v2098_v1 = vpop.f32.mrb[122].mxu1  ;;  %5027 = vmatprep.mubr.f32.mxu0 %v978_v51  ;;  %v981_v30 = vld [vmem:[#allocation2 + $0x15a] sm:$0xff] }
 0x1fc   :  { %v7631_v45 = vadd.f32 %v2098_v1, %v7400_v62  ;;  %v2100_v57 = vpop.f32.mrb[123].mxu1  ;;  %2861 = vmatmul.mubr.f32.gmra.mrb[228].mxu1 %v846_v20  ;;  %v982_v1 = vld [vmem:[#allocation2 + $0x16a] sm:$0xff] }
 0x1fd   :  { %v1453_v38 = vpop.f32.mrb[108].mxu0  ;;  %2865 = vmatprep.mubr.f32.mxu1 %v911_v54  ;;  %v848_v57 = vld [vmem:[#allocation2 + $0x120] sm:$0xff] }
 0x1fe   :  { %8715 = vst [vmem:[#allocation7_spill] sm:$0xff] %v7631_v45  ;;  %v7634_v6 = vadd.f32 %v8716_v23, %v1453_v38  ;;  %v1455_v50 = vpop.f32.mrb[109].mxu0  ;;  %5028 = vmatmul.mubr.f32.gmra.mrb[214].mxu0 %v979_v37  ;;  %v8718_v54 = vld [vmem:[#allocation43_spill] sm:$0xff]  ;;  %v913_v23 = vld [vmem:[#allocation2 + $0x129] sm:$0xff]  ;;  %v983_v37 = vld [vmem:[#allocation2 + $0x172] sm:$0xff] }
 0x1ff   :  { %v2103_v47 = vpop.f32.mrb[124].mxu1  ;;  %5030 = vmatprep.mubr.f32.mxu0 %v980_v52 }
 0x200   :  { %v7637_v51 = vadd.f32 %v2103_v47, %v7407_v60  ;;  %v2105_v62 = vpop.f32.mrb[125].mxu1  ;;  %2866 = vmatmul.mubr.f32.gmra.mrb[230].mxu1 %v847_v58  ;;  %v984_v47 = vld [vmem:[#allocation2 + $0x182] sm:$0xff] }
 0x201   :  { %v1458_v20 = vpop.f32.mrb[110].mxu0  ;;  %2870 = vmatprep.mubr.f32.mxu1 %v912_v35  ;;  %v849_v62 = vld [vmem:[#allocation2 + $0x128] sm:$0xff]  ;;  %v8720_v35 = vld [vmem:[#allocation49_spill] sm:$0xff] }
 0x202   :  { %8717 = vst [vmem:[#allocation14_spill] sm:$0xff] %v7637_v51  ;;  %v7640_v45 = vadd.f32 %v8718_v54, %v1458_v20  ;;  %v1460_v38 = vpop.f32.mrb[111].mxu0  ;;  %5031 = vmatmul.mubr.f32.gmra.mrb[216].mxu0 %v981_v30  ;;  %v914_v54 = vld [vmem:[#allocation2 + $0x139] sm:$0xff]  ;;  %v985_v30 = vld [vmem:[#allocation2 + $0x18a] sm:$0xff] }
 0x203   :  { %v2108_v50 = vpop.f32.mrb[126].mxu1  ;;  %5033 = vmatprep.mubr.f32.mxu0 %v982_v1 }
 0x204   :  { %8719 = vst [vmem:[#allocation10_spill] sm:$0xff] %v7640_v45  ;;  %v7643_v52 = vadd.f32 %v2108_v50, %v7414_v34  ;;  %v2110_v60 = vpop.f32.mrb[127].mxu1  ;;  %2871 = vmatmul.mubr.f32.gmra.mrb[232].mxu1 %v848_v57  ;;  %v986_v50 = vld [vmem:[#allocation2 + $0x19a] sm:$0xff] }
 0x205   :  { %v1463_v58 = vpop.f32.mrb[112].mxu0  ;;  %2875 = vmatprep.mubr.f32.mxu1 %v913_v23  ;;  %v850_v60 = vld [vmem:[#allocation2 + $0x138] sm:$0xff]  ;;  %v8722_v23 = vld [vmem:[#allocation47_spill] sm:$0xff] }
 0x206   :  { %v7646_v51 = vadd.f32 %v8720_v35, %v1463_v58  ;;  %v1465_v20 = vpop.f32.mrb[113].mxu0  ;;  %5034 = vmatmul.mubr.f32.gmra.mrb[218].mxu0 %v983_v37  ;;  %v915_v35 = vld [vmem:[#allocation2 + $0x141] sm:$0xff] }
 0x207   :  { %v2113_v38 = vpop.f32.mrb[128].mxu1  ;;  %5036 = vmatprep.mubr.f32.mxu0 %v984_v47  ;;  %v987_v37 = vld [vmem:[#allocation2 + $0x1a2] sm:$0xff] }
 0x208   :  { %8721 = vst [vmem:[#allocation13_spill] sm:$0xff] %v7646_v51  ;;  %v7649_v1 = vadd.f32 %v2113_v38, %v7421_v0  ;;  %v2115_v34 = vpop.f32.mrb[129].mxu1  ;;  %2876 = vmatmul.mubr.f32.gmra.mrb[234].mxu1 %v849_v62  ;;  %v988_v38 = vld [vmem:[#allocation2 + $0x1e2] sm:$0xff] }
 0x209   :  { %v1468_v57 = vpop.f32.mrb[114].mxu0  ;;  %2880 = vmatprep.mubr.f32.mxu1 %v914_v54  ;;  %v851_v34 = vld [vmem:[#allocation2 + $0x140] sm:$0xff]  ;;  %v8724_v54 = vld [vmem:[#allocation53_spill] sm:$0xff] }
 0x20a   :  { %v7652_v45 = vadd.f32 %v8722_v23, %v1468_v57  ;;  %v1470_v58 = vpop.f32.mrb[115].mxu0  ;;  %5037 = vmatmul.mubr.f32.gmra.mrb[220].mxu0 %v985_v30  ;;  %v916_v23 = vld [vmem:[#allocation2 + $0x151] sm:$0xff] }
 0x20b   :  { %v2118_v20 = vpop.f32.mrb[130].mxu1  ;;  %5039 = vmatprep.mubr.f32.mxu0 %v986_v50  ;;  %v989_v30 = vld [vmem:[#allocation2 + $0x1ea] sm:$0xff] }
 0x20c   :  { %8723 = vst [vmem:[#allocation16_spill] sm:$0xff] %v7652_v45  ;;  %v7655_v47 = vadd.f32 %v2118_v20, %v7428_v2  ;;  %v2120_v0 = vpop.f32.mrb[131].mxu1  ;;  %2881 = vmatmul.mubr.f32.gmra.mrb[236].mxu1 %v850_v60  ;;  %v990_v20 = vld [vmem:[#allocation2 + $0x1fa] sm:$0xff] }
 0x20d   :  { %v1473_v62 = vpop.f32.mrb[116].mxu0  ;;  %2885 = vmatprep.mubr.f32.mxu1 %v915_v35  ;;  %v852_v0 = vld [vmem:[#allocation2 + $0x150] sm:$0xff]  ;;  %v8725_v35 = vld [vmem:[#allocation51_spill] sm:$0xff] }
 0x20e   :  { %v7658_v51 = vadd.f32 %v8724_v54, %v1473_v62  ;;  %v1475_v57 = vpop.f32.mrb[117].mxu0  ;;  %5040 = vmatmul.mubr.f32.gmra.mrb[222].mxu0 %v987_v37  ;;  %v917_v54 = vld [vmem:[#allocation2 + $0x159] sm:$0xff]  ;;  %v991_v37 = vld [vmem:[#allocation2 + $0x202] sm:$0xff] }
 0x20f   :  { %v2123_v58 = vpop.f32.mrb[132].mxu1  ;;  %5042 = vmatprep.mubr.f32.mxu0 %v988_v38 }
 0x210   :  { %v7661_v50 = vadd.f32 %v2123_v58, %v7435_v17  ;;  %v2125_v2 = vpop.f32.mrb[133].mxu1  ;;  %2886 = vmatmul.mubr.f32.gmra.mrb[238].mxu1 %v851_v34  ;;  %v992_v58 = vld [vmem:[#allocation2 + $0x212] sm:$0xff] }
 0x211   :  { %v1478_v60 = vpop.f32.mrb[118].mxu0  ;;  %2890 = vmatprep.mubr.f32.mxu1 %v916_v23  ;;  %v853_v2 = vld [vmem:[#allocation2 + $0x158] sm:$0xff] }
 0x212   :  { %v7664_v45 = vadd.f32 %v8725_v35, %v1478_v60  ;;  %v1480_v62 = vpop.f32.mrb[119].mxu0  ;;  %5043 = vmatmul.mubr.f32.gmra.mrb[224].mxu0 %v989_v30  ;;  %v918_v35 = vld [vmem:[#allocation2 + $0x169] sm:$0xff]  ;;  %v993_v30 = vld [vmem:[#allocation2 + $0x21a] sm:$0xff] }
 0x213   :  { %v2128_v57 = vpop.f32.mrb[134].mxu1  ;;  %5045 = vmatprep.mubr.f32.mxu0 %v990_v20 }
 0x214   :  { %8726 = vst [vmem:[#allocation15_spill] sm:$0xff] %v7664_v45  ;;  %v7667_v38 = vadd.f32 %v2128_v57, %v7442_v9  ;;  %v2130_v17 = vpop.f32.mrb[135].mxu1  ;;  %2891 = vmatmul.mubr.f32.gmra.mrb[240].mxu1 %v852_v0  ;;  %v994_v57 = vld [vmem:[#allocation2 + $0x22a] sm:$0xff] }
 0x215   :  { %v1483_v34 = vpop.f32.mrb[120].mxu0  ;;  %2895 = vmatprep.mubr.f32.mxu1 %v917_v54  ;;  %v854_v17 = vld [vmem:[#allocation2 + $0x168] sm:$0xff]  ;;  %v8727_v54 = vld [vmem:[#allocation54_spill] sm:$0xff] }
 0x216   :  { %v7670_v23 = vadd.f32 %v7353_v25, %v1483_v34  ;;  %v1485_v60 = vpop.f32.mrb[121].mxu0  ;;  %5046 = vmatmul.mubr.f32.gmra.mrb[226].mxu0 %v991_v37  ;;  %v919_v34 = vld [vmem:[#allocation2 + $0x171] sm:$0xff] }
 0x217   :  { %v2133_v62 = vpop.f32.mrb[136].mxu1  ;;  %5048 = vmatprep.mubr.f32.mxu0 %v992_v58  ;;  %v995_v37 = vld [vmem:[#allocation2 + $0x232] sm:$0xff] }
 0x218   :  { %v7673_v20 = vadd.f32 %v2133_v62, %v7449_v7  ;;  %v2135_v9 = vpop.f32.mrb[137].mxu1  ;;  %2896 = vmatmul.mubr.f32.gmra.mrb[242].mxu1 %v853_v2  ;;  %v996_v62 = vld [vmem:[#allocation2 + $0x242] sm:$0xff] }
 0x219   :  { %v1488_v0 = vpop.f32.mrb[122].mxu0  ;;  %2900 = vmatprep.mubr.f32.mxu1 %v918_v35  ;;  %v855_v9 = vld [vmem:[#allocation2 + $0x170] sm:$0xff] }
 0x21a   :  { %v7676_v45 = vadd.f32 %v8727_v54, %v1488_v0  ;;  %v1490_v25 = vpop.f32.mrb[123].mxu0  ;;  %5049 = vmatmul.mubr.f32.gmra.mrb[228].mxu0 %v993_v30  ;;  %v920_v54 = vld [vmem:[#allocation2 + $0x181] sm:$0xff]  ;;  %v997_v30 = vld [vmem:[#allocation2 + $0x24a] sm:$0xff] }
 0x21b   :  { %v2138_v60 = vpop.f32.mrb[138].mxu1  ;;  %5051 = vmatprep.mubr.f32.mxu0 %v994_v57 }
 0x21c   :  { %8728 = vst [vmem:[#allocation20_spill] sm:$0xff] %v7676_v45  ;;  %v7679_v58 = vadd.f32 %v2138_v60, %v7457_v39  ;;  %v2140_v7 = vpop.f32.mrb[139].mxu1  ;;  %2901 = vmatmul.mubr.f32.gmra.mrb[244].mxu1 %v854_v17  ;;  %v998_v60 = vld [vmem:[#allocation2 + $0x25a] sm:$0xff] }
 0x21d   :  { %v1493_v2 = vpop.f32.mrb[124].mxu0  ;;  %2905 = vmatprep.mubr.f32.mxu1 %v919_v34  ;;  %v856_v7 = vld [vmem:[#allocation2 + $0x180] sm:$0xff] }
 0x21e   :  { %v7682_v35 = vadd.f32 %v7361_v42, %v1493_v2  ;;  %v1495_v0 = vpop.f32.mrb[125].mxu0  ;;  %5052 = vmatmul.mubr.f32.gmra.mrb[230].mxu0 %v995_v37  ;;  %v8729_v34 = vld [vmem:[#allocation55_spill] sm:$0xff]  ;;  %v921_v2 = vld [vmem:[#allocation2 + $0x189] sm:$0xff] }
 0x21f   :  { %v2143_v25 = vpop.f32.mrb[140].mxu1  ;;  %5054 = vmatprep.mubr.f32.mxu0 %v996_v62  ;;  %v999_v37 = vld [vmem:[#allocation2 + $0x262] sm:$0xff] }
 0x220   :  { %v7685_v57 = vadd.f32 %v2143_v25, %v7465_v43  ;;  %v2145_v39 = vpop.f32.mrb[141].mxu1  ;;  %2906 = vmatmul.mubr.f32.gmra.mrb[246].mxu1 %v855_v9  ;;  %v1000_v25 = vld [vmem:[#allocation2 + $0x272] sm:$0xff] }
 0x221   :  { %v1498_v17 = vpop.f32.mrb[126].mxu0  ;;  %2910 = vmatprep.mubr.f32.mxu1 %v920_v54  ;;  %v857_v39 = vld [vmem:[#allocation2 + $0x188] sm:$0xff] }
 0x222   :  { %v7688_v45 = vadd.f32 %v8729_v34, %v1498_v17  ;;  %v1500_v42 = vpop.f32.mrb[127].mxu0  ;;  %5055 = vmatmul.mubr.f32.gmra.mrb[232].mxu0 %v997_v30  ;;  %v922_v34 = vld [vmem:[#allocation2 + $0x199] sm:$0xff] }
 0x223   :  { %v2148_v0 = vpop.f32.mrb[142].mxu1  ;;  %5057 = vmatprep.mubr.f32.mxu0 %v998_v60  ;;  %v1001_v60 = vld [vmem:[#allocation2 + $0x27a] sm:$0xff] }
 0x224   :  { %v7691_v62 = vadd.f32 %v2148_v0, %v7473_v18  ;;  %v2150_v43 = vpop.f32.mrb[143].mxu1  ;;  %2911 = vmatmul.mubr.f32.gmra.mrb[248].mxu1 %v856_v7  ;;  %v1002_v0 = vld [vmem:[#allocation2 + $0x28a] sm:$0xff] }
 0x225   :  { %v4868_v9 = vpop.f32.mrb[128].mxu0  ;;  %2915 = vmatprep.mubr.f32.mxu1 %v921_v2  ;;  %v858_v43 = vld [vmem:[#allocation2 + $0x198] sm:$0xff] }
 0x226   :  { %v7694_v54 = vadd.f32 %v4868_v9, %v7376_v36  ;;  %v2338_v17 = vpop.f32.mrb[129].mxu0  ;;  %5058 = vmatmul.mubr.f32.gmra.mrb[234].mxu0 %v999_v37  ;;  %v923_v37 = vld [vmem:[#allocation2 + $0x1a1] sm:$0xff] }
 0x227   :  { %v2153_v42 = vpop.f32.mrb[144].mxu1  ;;  %v7697_v30 = vadd.f32 %v2338_v17, %v7369_v56  ;;  %5060 = vmatprep.mubr.f32.mxu0 %v1000_v25  ;;  %v1003_v25 = vld [vmem:[#allocation2 + $0x292] sm:$0xff]  ;;  %v1004_v17 = vld [vmem:[#allocation2 + $0x2a2] sm:$0xff] }
 0x228   :  { %8730 = vst [vmem:[#allocation18_spill] sm:$0xff] %v7694_v54  ;;  %v7700_v18 = vadd.f32 %v2153_v42, %v7481_v46  ;;  %v2155_v7 = vpop.f32.mrb[145].mxu1  ;;  %2916 = vmatmul.mubr.f32.gmra.mrb[250].mxu1 %v857_v39 }
 0x229   :  { %v4871_v2 = vpop.f32.mrb[130].mxu0  ;;  %2920 = vmatprep.mubr.f32.mxu1 %v922_v34  ;;  %v924_v7 = vld [vmem:[#allocation2 + $0x1e1] sm:$0xff] }
 0x22a   :  { %v7703_v36 = vadd.f32 %v4871_v2, %v7390_v41  ;;  %v2348_v9 = vpop.f32.mrb[131].mxu0  ;;  %5061 = vmatmul.mubr.f32.gmra.mrb[236].mxu0 %v1001_v60  ;;  %v7720_v2 = vld [vmem:[#allocation2 + $0x8] sm:$0xff] }
 0x22b   :  { %v2158_v54 = vpop.f32.mrb[146].mxu1  ;;  %v7706_v56 = vadd.f32 %v2348_v9, %v7383_v44  ;;  %5063 = vmatprep.mubr.f32.mxu0 %v1002_v0  ;;  %v1005_v0 = vld [vmem:[#allocation2 + $0x2aa] sm:$0xff]  ;;  %8732 = vst [vmem:[#allocation17_spill] sm:$0xff] %v7720_v2  ;;  %v860_v9 = vld [vmem:[#allocation2 + $0x1e0] sm:$0xff] }
 0x22c   :  { %v7709_v46 = vadd.f32 %v2158_v54, %v7489_v13  ;;  %v2160_v39 = vpop.f32.mrb[147].mxu1  ;;  %2921 = vmatmul.mubr.f32.gmra.mrb[252].mxu1 %v858_v43  ;;  %v1006_v43 = vld [vmem:[#allocation2 + $0x2ba] sm:$0xff] }
 0x22d   :  { %v4874_v34 = vpop.f32.mrb[132].mxu0  ;;  %2925 = vmatprep.mubr.f32.mxu1 %v923_v37 }
 0x22e   :  { %v7712_v41 = vadd.f32 %v4874_v34, %v7403_v14  ;;  %v2358_v42 = vpop.f32.mrb[133].mxu0  ;;  %5064 = vmatmul.mubr.f32.gmra.mrb[238].mxu0 %v1003_v25 }
 0x22f   :  { %v2163_v60 = vpop.f32.mrb[148].mxu1  ;;  %v7715_v44 = vadd.f32 %v2358_v42, %v7396_v61  ;;  %5066 = vmatprep.mubr.f32.mxu0 %v1004_v17  ;;  %v925_v61 = vld [vmem:[#allocation2 + $0x1e9] sm:$0xff]  ;;  %v8734_v17 = vld [vmem:[#allocation6_spill] sm:$0xff] }
 0x230   :  { %v7718_v13 = vadd.f32 %v2163_v60, %v7503_v48  ;;  %v2165_v54 = vpop.f32.mrb[149].mxu1  ;;  %2926 = vmatmul.mubr.f32.gmra.mrb[254].mxu1 %v7720_v2  ;;  %v1007_v48 = vld [vmem:[#allocation2 + $0x2c2] sm:$0xff] }
 0x231   :  { %8731 = vst [vmem:[#allocation24_spill] sm:$0xff] %v7715_v44  ;;  %v4877_v14 = vpop.f32.mrb[134].mxu0  ;;  %2930 = vmatprep.mubr.f32.mxu1 %v924_v7  ;;  %v1008_v54 = vld [vmem:[#allocation2 + $0x2d2] sm:$0xff]  ;;  %v861_v44 = vld [vmem:[#allocation2 + $0x1e8] sm:$0xff] }
 0x232   :  { %v7724_v37 = vadd.f32 %v4877_v14, %v7417_v21  ;;  %v2368_v25 = vpop.f32.mrb[135].mxu0  ;;  %5067 = vmatmul.mubr.f32.gmra.mrb[240].mxu0 %v1005_v0  ;;  %v8735_v21 = vld [vmem:[#allocation9_spill] sm:$0xff]  ;;  %v926_v0 = vld [vmem:[#allocation2 + $0x1f9] sm:$0xff] }
 0x233   :  { %v2168_v39 = vpop.f32.mrb[150].mxu1  ;;  %v7727_v34 = vadd.f32 %v2368_v25, %v8734_v17  ;;  %5069 = vmatprep.mubr.f32.mxu0 %v1006_v43  ;;  %v8737_v25 = vld [vmem:[#allocation3_spill] sm:$0xff] }
 0x234   :  { %8733 = vst [vmem:[#allocation22_spill] sm:$0xff] %v7724_v37  ;;  %v7730_v42 = vadd.f32 %v2168_v39, %v7518_v15  ;;  %v2170_v60 = vpop.f32.mrb[151].mxu1  ;;  %2931 = vmatmul.mubr.f32.gmra.mrb[0].mxu1 %v860_v9  ;;  %v1009_v43 = vld [vmem:[#allocation2 + $0x2da] sm:$0xff]  ;;  %v1010_v39 = vld [vmem:[#allocation2 + $0x2ea] sm:$0xff] }
 0x235   :  { %v4880_v7 = vpop.f32.mrb[136].mxu0  ;;  %2935 = vmatprep.mubr.f32.mxu1 %v925_v61  ;;  %v862_v60 = vld [vmem:[#allocation2 + $0x1f8] sm:$0xff] }
 0x236   :  { %v7733_v14 = vadd.f32 %v4880_v7, %v8735_v21  ;;  %v2378_v37 = vpop.f32.mrb[137].mxu0  ;;  %5070 = vmatmul.mubr.f32.gmra.mrb[242].mxu0 %v1007_v48  ;;  %v927_v48 = vld [vmem:[#allocation2 + $0x201] sm:$0xff] }
 0x237   :  { %v2173_v2 = vpop.f32.mrb[152].mxu1  ;;  %v7736_v17 = vadd.f32 %v2378_v37, %v8737_v25  ;;  %5072 = vmatprep.mubr.f32.mxu0 %v1008_v54  ;;  %v1011_v54 = vld [vmem:[#allocation2 + $0x2f2] sm:$0xff] }
 0x238   :  { %8736 = vst [vmem:[#allocation19_spill] sm:$0xff] %v7733_v14  ;;  %v7739_v15 = vadd.f32 %v2173_v2, %v7533_v22  ;;  %v2175_v9 = vpop.f32.mrb[153].mxu1  ;;  %2936 = vmatmul.mubr.f32.gmra.mrb[2].mxu1 %v861_v44 }
 0x239   :  { %v4883_v61 = vpop.f32.mrb[138].mxu0  ;;  %2940 = vmatprep.mubr.f32.mxu1 %v926_v0  ;;  %v863_v0 = vld [vmem:[#allocation2 + $0x200] sm:$0xff]  ;;  %v928_v9 = vld [vmem:[#allocation2 + $0x211] sm:$0xff] }
 0x23a   :  { %v7742_v7 = vadd.f32 %v4883_v61, %v7445_v40  ;;  %v2388_v21 = vpop.f32.mrb[139].mxu0  ;;  %5073 = vmatmul.mubr.f32.gmra.mrb[244].mxu0 %v1009_v43 }
 0x23b   :  { %v2178_v14 = vpop.f32.mrb[154].mxu1  ;;  %v7745_v37 = vadd.f32 %v2388_v21, %v7438_v59  ;;  %5075 = vmatprep.mubr.f32.mxu0 %v1010_v39  ;;  %v5546_v39 = vld [vmem:[#allocation2 + $0x19] sm:$0xff] }
 0x23c   :  { %v7748_v22 = vadd.f32 %v2178_v14, %v7547_v31  ;;  %v2180_v44 = vpop.f32.mrb[155].mxu1  ;;  %2941 = vmatmul.mubr.f32.gmra.mrb[4].mxu1 %v862_v60  ;;  %v864_v60 = vld [vmem:[#allocation2 + $0x210] sm:$0xff] }
 0x23d   :  { %v4886_v2 = vpop.f32.mrb[140].mxu0  ;;  %2945 = vmatprep.mubr.f32.mxu1 %v927_v48  ;;  %v929_v48 = vld [vmem:[#allocation2 + $0x219] sm:$0xff] }
 0x23e   :  { %v7751_v40 = vadd.f32 %v4886_v2, %v7461_v5  ;;  %v2398_v25 = vpop.f32.mrb[141].mxu0  ;;  %5076 = vmatmul.mubr.f32.gmra.mrb[246].mxu0 %v1011_v54  ;;  %v5547_v54 = vld [vmem:[#allocation2 + $0x21] sm:$0xff]  ;;  %v5548_v2 = vld [vmem:[#allocation2 + $0x31] sm:$0xff] }
 0x23f   :  { %v2183_v43 = vpop.f32.mrb[156].mxu1  ;;  %v7754_v59 = vadd.f32 %v2398_v25, %v7453_v29  ;;  %5122 = vmatprep.mubr.f32.mxu0 %v5546_v39  ;;  %v930_v39 = vld [vmem:[#allocation2 + $0x229] sm:$0xff] }
 0x240   :  { %v7757_v31 = vadd.f32 %v2183_v43, %v7561_v26  ;;  %v2185_v14 = vpop.f32.mrb[157].mxu1  ;;  %2946 = vmatmul.mubr.f32.gmra.mrb[6].mxu1 %v863_v0 }
 0x241   :  { %v4889_v61 = vpop.f32.mrb[142].mxu0  ;;  %2950 = vmatprep.mubr.f32.mxu1 %v928_v9  ;;  %v865_v9 = vld [vmem:[#allocation2 + $0x218] sm:$0xff] }
 0x242   :  { %v7760_v5 = vadd.f32 %v4889_v61, %v7477_v3  ;;  %v2408_v21 = vpop.f32.mrb[143].mxu0  ;;  %5123 = vmatmul.mubr.f32.vlgmr.msra.gmra.mrb[248].mxu0 %v5547_v54  ;;  %v5549_v14 = vld [vmem:[#allocation2 + $0x39] sm:$0xff]  ;;  %v866_v54 = vld [vmem:[#allocation2 + $0x228] sm:$0xff] }
 0x243   :  { %v2188_v44 = vpop.f32.mrb[158].mxu1  ;;  %v7763_v29 = vadd.f32 %v2408_v21, %v7469_v4  ;;  %5125 = vmatprep.mubr.f32.mxu0 %v5548_v2  ;;  %v5550_v21 = vld [vmem:[#allocation2 + $0x49] sm:$0xff]  ;;  %v931_v2 = vld [vmem:[#allocation2 + $0x231] sm:$0xff] }
 0x244   :  { %v7766_v26 = vadd.f32 %v2188_v44, %v7575_v32  ;;  %v2190_v0 = vpop.f32.mrb[159].mxu1  ;;  %2951 = vmatmul.mubr.f32.gmra.mrb[8].mxu1 %v864_v60 }
 0x245   :  { %v4892_v25 = vpop.f32.mrb[144].mxu0  ;;  %2955 = vmatprep.mubr.f32.mxu1 %v929_v48  ;;  %v5551_v0 = vld [vmem:[#allocation2 + $0x51] sm:$0xff] }
 0x246   :  { %v7769_v3 = vadd.f32 %v4892_v25, %v7493_v28  ;;  %v2418_v43 = vpop.f32.mrb[145].mxu0  ;;  %5126 = vmatmul.mubr.f32.gmra.mrb[250].mxu0 %v5549_v14  ;;  %v867_v14 = vld [vmem:[#allocation2 + $0x230] sm:$0xff] }
 0x247   :  { %v2193_v61 = vpop.f32.mrb[160].mxu1  ;;  %v7772_v4 = vadd.f32 %v2418_v43, %v7485_v63  ;;  %5128 = vmatprep.mubr.f32.mxu0 %v5550_v21  ;;  %v5552_v43 = vld [vmem:[#allocation2 + $0x61] sm:$0xff] }
 0x248   :  { %v7775_v32 = vadd.f32 %v2193_v61, %v7589_v11  ;;  %v2195_v60 = vpop.f32.mrb[161].mxu1  ;;  %2956 = vmatmul.mubr.f32.gmra.mrb[10].mxu1 %v865_v9 }
 0x249   :  { %v4895_v48 = vpop.f32.mrb[146].mxu0  ;;  %2960 = vmatprep.mubr.f32.mxu1 %v930_v39  ;;  %v932_v60 = vld [vmem:[#allocation2 + $0x241] sm:$0xff] }
 0x24a   :  { %v7778_v28 = vadd.f32 %v4895_v48, %v7524_v53  ;;  %v2428_v44 = vpop.f32.mrb[147].mxu0  ;;  %5129 = vmatmul.mubr.f32.gmra.mrb[252].mxu0 %v5551_v0  ;;  %v8739_v53 = vld [vmem:[#allocation4_spill] sm:$0xff] }
 0x24b   :  { %v2198_v25 = vpop.f32.mrb[162].mxu1  ;;  %v7781_v63 = vadd.f32 %v2428_v44, %v7508_v55  ;;  %5131 = vmatprep.mubr.f32.mxu0 %v5552_v43  ;;  %v5553_v48 = vld [vmem:[#allocation2 + $0x69] sm:$0xff]  ;;  %v5554_v43 = vld [vmem:[#allocation2 + $0x79] sm:$0xff] }
 0x24c   :  { %8738 = vst [vmem:[#allocation21_spill] sm:$0xff] %v7778_v28  ;;  %v7784_v11 = vadd.f32 %v2198_v25, %v7597_v24  ;;  %v2200_v9 = vpop.f32.mrb[163].mxu1  ;;  %2961 = vmatmul.mubr.f32.gmra.mrb[12].mxu1 %v866_v54  ;;  %v8741_v55 = vld [vmem:[#allocation8_spill] sm:$0xff]  ;;  %v868_v25 = vld [vmem:[#allocation2 + $0x240] sm:$0xff] }
 0x24d   :  { %v4898_v39 = vpop.f32.mrb[148].mxu0  ;;  %2965 = vmatprep.mubr.f32.mxu1 %v931_v2  ;;  %v8742_v9 = vld [vmem:[#allocation5_spill] sm:$0xff] }
 0x24e   :  { %v7787_v61 = vadd.f32 %v4898_v39, %v8739_v53  ;;  %v2438_v21 = vpop.f32.mrb[149].mxu0  ;;  %5132 = vmatmul.mubr.f32.gmra.mrb[254].mxu0 %v5553_v48  ;;  %v5555_v48 = vld [vmem:[#allocation2 + $0x81] sm:$0xff] }
 0x24f   :  { %v2203_v0 = vpop.f32.mrb[164].mxu1  ;;  %v7790_v44 = vadd.f32 %v2438_v21, %v8741_v55  ;;  %5134 = vmatprep.mubr.f32.mxu0 %v5554_v43  ;;  %v8744_v21 = vld [vmem:[#allocation11_spill] sm:$0xff]  ;;  %v5556_v43 = vld [vmem:[#allocation2 + $0x91] sm:$0xff] }
 0x250   :  { %8740 = vst [vmem:[#allocation28_spill] sm:$0xff] %v7787_v61  ;;  %v7793_v24 = vadd.f32 %v2203_v0, %v7605_v10  ;;  %v2205_v54 = vpop.f32.mrb[165].mxu1  ;;  %2966 = vmatmul.mubr.f32.gmra.mrb[14].mxu1 %v867_v14  ;;  %v933_v61 = vld [vmem:[#allocation2 + $0x249] sm:$0xff] }
 0x251   :  { %v4901_v2 = vpop.f32.mrb[150].mxu0  ;;  %2970 = vmatprep.mubr.f32.mxu1 %v932_v60  ;;  %v869_v0 = vld [vmem:[#allocation2 + $0x248] sm:$0xff] }
 0x252   :  { %v7796_v39 = vadd.f32 %v4901_v2, %v8742_v9  ;;  %v2448_v53 = vpop.f32.mrb[151].mxu0  ;;  %5135 = vmatmul.mubr.f32.gmra.mrb[0].mxu0 %v5555_v48  ;;  %v934_v9 = vld [vmem:[#allocation2 + $0x259] sm:$0xff] }
 0x253   :  { %v2208_v28 = vpop.f32.mrb[166].mxu1  ;;  %v7799_v55 = vadd.f32 %v2448_v53, %v8744_v21  ;;  %5137 = vmatprep.mubr.f32.mxu0 %v5556_v43  ;;  %v5557_v48 = vld [vmem:[#allocation2 + $0x99] sm:$0xff]  ;;  %v5558_v21 = vld [vmem:[#allocation2 + $0xa9] sm:$0xff] }
 0x254   :  { %8743 = vst [vmem:[#allocation23_spill] sm:$0xff] %v7796_v39  ;;  %v7802_v10 = vadd.f32 %v2208_v28, %v7613_v33  ;;  %v2210_v14 = vpop.f32.mrb[167].mxu1  ;;  %2971 = vmatmul.mubr.f32.gmra.mrb[16].mxu1 %v868_v25  ;;  %v870_v25 = vld [vmem:[#allocation2 + $0x258] sm:$0xff] }
 0x255   :  { %v4904_v60 = vpop.f32.mrb[152].mxu0  ;;  %2975 = vmatprep.mubr.f32.mxu1 %v933_v61  ;;  %v935_v14 = vld [vmem:[#allocation2 + $0x261] sm:$0xff] }
 0x256   :  { %v7805_v54 = vadd.f32 %v4904_v60, %v7602_v12  ;;  %v2458_v2 = vpop.f32.mrb[153].mxu0  ;;  %5138 = vmatmul.mubr.f32.gmra.mrb[2].mxu0 %v5557_v48  ;;  %v5559_v60 = vld [vmem:[#allocation2 + $0xb1] sm:$0xff] }
 0x257   :  { %v2213_v39 = vpop.f32.mrb[168].mxu1  ;;  %v7808_v53 = vadd.f32 %v2458_v2, %v7594_v49  ;;  %5140 = vmatprep.mubr.f32.mxu0 %v5558_v21  ;;  %v5560_v2 = vld [vmem:[#allocation2 + $0xc1] sm:$0xff] }
 0x258   :  { %v7811_v33 = vadd.f32 %v2213_v39, %v7621_v27  ;;  %v2215_v28 = vpop.f32.mrb[169].mxu1  ;;  %2976 = vmatmul.mubr.f32.gmra.mrb[18].mxu1 %v869_v0 }
 0x259   :  { %v4907_v61 = vpop.f32.mrb[154].mxu0  ;;  %2980 = vmatprep.mubr.f32.mxu1 %v934_v9  ;;  %v871_v9 = vld [vmem:[#allocation2 + $0x260] sm:$0xff] }
 0x25a   :  { %v7814_v12 = vadd.f32 %v4907_v61, %v7618_v19  ;;  %v2468_v43 = vpop.f32.mrb[155].mxu0  ;;  %5141 = vmatmul.mubr.f32.gmra.mrb[4].mxu0 %v5559_v60  ;;  %v8746_v19 = vld [vmem:[#allocation7_spill] sm:$0xff]  ;;  %v936_v61 = vld [vmem:[#allocation2 + $0x271] sm:$0xff]  ;;  %v5561_v60 = vld [vmem:[#allocation2 + $0xc9] sm:$0xff] }
 0x25b   :  { %v2218_v48 = vpop.f32.mrb[170].mxu1  ;;  %v7817_v49 = vadd.f32 %v2468_v43, %v7610_v8  ;;  %5143 = vmatprep.mubr.f32.mxu0 %v5560_v2  ;;  %v8748_v8 = vld [vmem:[#allocation12_spill] sm:$0xff]  ;;  %v5562_v2 = vld [vmem:[#allocation2 + $0xd9] sm:$0xff] }
 0x25c   :  { %8745 = vst [vmem:[#allocation25_spill] sm:$0xff] %v7814_v12  ;;  %v7820_v27 = vadd.f32 %v2218_v48, %v7628_v16  ;;  %v2220_v39 = vpop.f32.mrb[171].mxu1  ;;  %2981 = vmatmul.mubr.f32.gmra.mrb[20].mxu1 %v870_v25  ;;  %v872_v48 = vld [vmem:[#allocation2 + $0x270] sm:$0xff] }
 0x25d   :  { %v4910_v0 = vpop.f32.mrb[156].mxu0  ;;  %2985 = vmatprep.mubr.f32.mxu1 %v935_v14 }
 0x25e   :  { %v7823_v21 = vadd.f32 %v4910_v0, %v8746_v19  ;;  %v2478_v28 = vpop.f32.mrb[157].mxu0  ;;  %5144 = vmatmul.mubr.f32.gmra.mrb[6].mxu0 %v5561_v60  ;;  %v937_v19 = vld [vmem:[#allocation2 + $0x279] sm:$0xff]  ;;  %v5563_v60 = vld [vmem:[#allocation2 + $0xe1] sm:$0xff] }
 0x25f   :  { %v2223_v12 = vpop.f32.mrb[172].mxu1  ;;  %v7826_v43 = vadd.f32 %v2478_v28, %v8748_v8  ;;  %5146 = vmatprep.mubr.f32.mxu0 %v5562_v2  ;;  %v8751_v28 = vld [vmem:[#allocation14_spill] sm:$0xff] }
 0x260   :  { %8747 = vst [vmem:[#allocation26_spill] sm:$0xff] %v7823_v21  ;;  %v7829_v16 = vadd.f32 %v2223_v12, %v7634_v6  ;;  %v2225_v25 = vpop.f32.mrb[173].mxu1  ;;  %2986 = vmatmul.mubr.f32.gmra.mrb[22].mxu1 %v871_v9  ;;  %v5564_v2 = vld [vmem:[#allocation2 + $0xf1] sm:$0xff] }
 0x261   :  { %8749 = vst [vmem:[#allocation27_spill] sm:$0xff] %v7826_v43  ;;  %v4913_v14 = vpop.f32.mrb[158].mxu0  ;;  %2990 = vmatprep.mubr.f32.mxu1 %v936_v61  ;;  %v8752_v6 = vld [vmem:[#allocation10_spill] sm:$0xff] }
 0x262   :  { %v7832_v39 = vadd.f32 %v4913_v14, %v7643_v52  ;;  %v2488_v0 = vpop.f32.mrb[159].mxu0  ;;  %5147 = vmatmul.mubr.f32.gmra.mrb[8].mxu0 %v5563_v60  ;;  %v873_v25 = vld [vmem:[#allocation2 + $0x278] sm:$0xff] }
 0x263   :  { %v2228_v21 = vpop.f32.mrb[174].mxu1  ;;  %v7835_v8 = vadd.f32 %v2488_v0, %v8751_v28  ;;  %5149 = vmatprep.mubr.f32.mxu0 %v5564_v2  ;;  %v5565_v60 = vld [vmem:[#allocation2 + $0xf9] sm:$0xff]  ;;  %v5566_v28 = vld [vmem:[#allocation2 + $0x109] sm:$0xff] }
 0x264   :  { %8750 = vst [vmem:[#allocation29_spill] sm:$0xff] %v7832_v39  ;;  %v7838_v12 = vadd.f32 %v2228_v21, %v8752_v6  ;;  %v2230_v9 = vpop.f32.mrb[175].mxu1  ;;  %2991 = vmatmul.mubr.f32.gmra.mrb[24].mxu1 %v872_v48  ;;  %v938_v39 = vld [vmem:[#allocation2 + $0x289] sm:$0xff] }
 0x265   :  { %v4916_v61 = vpop.f32.mrb[160].mxu0  ;;  %2995 = vmatprep.mubr.f32.mxu1 %v937_v19  ;;  %v8754_v21 = vld [vmem:[#allocation13_spill] sm:$0xff]  ;;  %v874_v6 = vld [vmem:[#allocation2 + $0x288] sm:$0xff] }
 0x266   :  { %v7841_v52 = vadd.f32 %v4916_v61, %v7655_v47  ;;  %v2498_v14 = vpop.f32.mrb[161].mxu0  ;;  %5150 = vmatmul.mubr.f32.gmra.mrb[10].mxu0 %v5565_v60  ;;  %v939_v61 = vld [vmem:[#allocation2 + $0x291] sm:$0xff] }
 0x267   :  { %v2233_v43 = vpop.f32.mrb[176].mxu1  ;;  %v7844_v0 = vadd.f32 %v2498_v14, %v7649_v1  ;;  %5152 = vmatprep.mubr.f32.mxu0 %v5566_v28  ;;  %v5567_v60 = vld [vmem:[#allocation2 + $0x111] sm:$0xff]  ;;  %v5568_v14 = vld [vmem:[#allocation2 + $0x121] sm:$0xff] }
 0x268   :  { %8753 = vst [vmem:[#allocation32_spill] sm:$0xff] %v7841_v52  ;;  %v7847_v2 = vadd.f32 %v2233_v43, %v8754_v21  ;;  %v2235_v48 = vpop.f32.mrb[177].mxu1  ;;  %2996 = vmatmul.mubr.f32.gmra.mrb[26].mxu1 %v873_v25  ;;  %v8756_v43 = vld [vmem:[#allocation16_spill] sm:$0xff]  ;;  %v875_v21 = vld [vmem:[#allocation2 + $0x290] sm:$0xff] }
 0x269   :  { %v4919_v19 = vpop.f32.mrb[162].mxu0  ;;  %3000 = vmatprep.mubr.f32.mxu1 %v938_v39 }
 0x26a   :  { %v7850_v47 = vadd.f32 %v4919_v19, %v7667_v38  ;;  %v2508_v9 = vpop.f32.mrb[163].mxu0  ;;  %5153 = vmatmul.mubr.f32.gmra.mrb[12].mxu0 %v5567_v60  ;;  %v940_v19 = vld [vmem:[#allocation2 + $0x2a1] sm:$0xff]  ;;  %v5569_v60 = vld [vmem:[#allocation2 + $0x129] sm:$0xff] }
 0x26b   :  { %v2238_v52 = vpop.f32.mrb[178].mxu1  ;;  %v7853_v1 = vadd.f32 %v2508_v9, %v7661_v50  ;;  %5155 = vmatprep.mubr.f32.mxu0 %v5568_v14  ;;  %v5570_v9 = vld [vmem:[#allocation2 + $0x139] sm:$0xff] }
 0x26c   :  { %8755 = vst [vmem:[#allocation31_spill] sm:$0xff] %v7850_v47  ;;  %v7856_v28 = vadd.f32 %v2238_v52, %v8756_v43  ;;  %v2240_v25 = vpop.f32.mrb[179].mxu1  ;;  %3001 = vmatmul.mubr.f32.gmra.mrb[28].mxu1 %v874_v6  ;;  %v876_v14 = vld [vmem:[#allocation2 + $0x2a0] sm:$0xff] }
 0x26d   :  { %v4922_v39 = vpop.f32.mrb[164].mxu0  ;;  %3005 = vmatprep.mubr.f32.mxu1 %v939_v61  ;;  %v941_v25 = vld [vmem:[#allocation2 + $0x2a9] sm:$0xff] }
 0x26e   :  { %v7859_v38 = vadd.f32 %v4922_v39, %v7679_v58  ;;  %v2518_v48 = vpop.f32.mrb[165].mxu0  ;;  %5156 = vmatmul.mubr.f32.gmra.mrb[14].mxu0 %v5569_v60  ;;  %v5571_v39 = vld [vmem:[#allocation2 + $0x141] sm:$0xff] }
 0x26f   :  { %v2243_v47 = vpop.f32.mrb[180].mxu1  ;;  %v7862_v50 = vadd.f32 %v2518_v48, %v7673_v20  ;;  %5158 = vmatprep.mubr.f32.mxu0 %v5570_v9  ;;  %v5572_v48 = vld [vmem:[#allocation2 + $0x151] sm:$0xff]  ;;  %v877_v9 = vld [vmem:[#allocation2 + $0x2a8] sm:$0xff] }
 0x270   :  { %v7865_v52 = vadd.f32 %v2243_v47, %v7658_v51  ;;  %v2245_v6 = vpop.f32.mrb[181].mxu1  ;;  %3006 = vmatmul.mubr.f32.gmra.mrb[30].mxu1 %v875_v21  ;;  %v8758_v51 = vld [vmem:[#allocation15_spill] sm:$0xff] }
 0x271   :  { %v4925_v61 = vpop.f32.mrb[166].mxu0  ;;  %3010 = vmatprep.mubr.f32.mxu1 %v940_v19 }
 0x272   :  { %v7868_v58 = vadd.f32 %v4925_v61, %v7691_v62  ;;  %v2528_v43 = vpop.f32.mrb[167].mxu0  ;;  %5159 = vmatmul.mubr.f32.gmra.mrb[16].mxu0 %v5571_v39  ;;  %v942_v61 = vld [vmem:[#allocation2 + $0x2b9] sm:$0xff] }
 0x273   :  { %v2248_v60 = vpop.f32.mrb[182].mxu1  ;;  %v7871_v20 = vadd.f32 %v2528_v43, %v7685_v57  ;;  %5161 = vmatprep.mubr.f32.mxu0 %v5572_v48  ;;  %v5573_v39 = vld [vmem:[#allocation2 + $0x159] sm:$0xff]  ;;  %v5574_v43 = vld [vmem:[#allocation2 + $0x169] sm:$0xff] }
 0x274   :  { %8757 = vst [vmem:[#allocation33_spill] sm:$0xff] %v7868_v58  ;;  %v7874_v47 = vadd.f32 %v2248_v60, %v8758_v51  ;;  %v2250_v21 = vpop.f32.mrb[183].mxu1  ;;  %3011 = vmatmul.mubr.f32.gmra.mrb[32].mxu1 %v876_v14  ;;  %v878_v48 = vld [vmem:[#allocation2 + $0x2b8] sm:$0xff] }
 0x275   :  { %v4928_v19 = vpop.f32.mrb[168].mxu0  ;;  %3015 = vmatprep.mubr.f32.mxu1 %v941_v25  ;;  %v943_v21 = vld [vmem:[#allocation2 + $0x2c1] sm:$0xff] }
 0x276   :  { %v7877_v62 = vadd.f32 %v4928_v19, %v7709_v46  ;;  %v2538_v6 = vpop.f32.mrb[169].mxu0  ;;  %5162 = vmatmul.mubr.f32.gmra.mrb[18].mxu0 %v5573_v39  ;;  %v5575_v19 = vld [vmem:[#allocation2 + $0x171] sm:$0xff] }
 0x277   :  { %v2253_v58 = vpop.f32.mrb[184].mxu1  ;;  %v7880_v57 = vadd.f32 %v2538_v6, %v7700_v18  ;;  %5164 = vmatprep.mubr.f32.mxu0 %v5574_v43  ;;  %v5576_v6 = vld [vmem:[#allocation2 + $0x181] sm:$0xff] }
 0x278   :  { %v7883_v60 = vadd.f32 %v2253_v58, %v7670_v23  ;;  %v2255_v14 = vpop.f32.mrb[185].mxu1  ;;  %3016 = vmatmul.mubr.f32.gmra.mrb[34].mxu1 %v877_v9  ;;  %v8760_v23 = vld [vmem:[#allocation20_spill] sm:$0xff]  ;;  %v879_v43 = vld [vmem:[#allocation2 + $0x2c0] sm:$0xff] }
 0x279   :  { %v4931_v25 = vpop.f32.mrb[170].mxu0  ;;  %3020 = vmatprep.mubr.f32.mxu1 %v942_v61 }
 0x27a   :  { %v7886_v46 = vadd.f32 %v4931_v25, %v7730_v42  ;;  %v2548_v51 = vpop.f32.mrb[171].mxu0  ;;  %5165 = vmatmul.mubr.f32.gmra.mrb[20].mxu0 %v5575_v19  ;;  %v944_v25 = vld [vmem:[#allocation2 + $0x2d1] sm:$0xff]  ;;  %v5577_v19 = vld [vmem:[#allocation2 + $0x189] sm:$0xff] }
 0x27b   :  { %v2258_v39 = vpop.f32.mrb[186].mxu1  ;;  %v7889_v18 = vadd.f32 %v2548_v51, %v7718_v13  ;;  %5167 = vmatprep.mubr.f32.mxu0 %v5576_v6  ;;  %v5578_v51 = vld [vmem:[#allocation2 + $0x1c9] sm:$0xff] }
 0x27c   :  { %8759 = vst [vmem:[#allocation30_spill] sm:$0xff] %v7886_v46  ;;  %v7892_v58 = vadd.f32 %v2258_v39, %v8760_v23  ;;  %v2260_v9 = vpop.f32.mrb[187].mxu1  ;;  %3021 = vmatmul.mubr.f32.gmra.mrb[36].mxu1 %v878_v48  ;;  %v880_v6 = vld [vmem:[#allocation2 + $0x2d0] sm:$0xff] }
 0x27d   :  { %v4934_v61 = vpop.f32.mrb[172].mxu0  ;;  %3025 = vmatprep.mubr.f32.mxu1 %v943_v21  ;;  %v945_v9 = vld [vmem:[#allocation2 + $0x2d9] sm:$0xff] }
 0x27e   :  { %v7895_v42 = vadd.f32 %v4934_v61, %v7748_v22  ;;  %v2558_v14 = vpop.f32.mrb[173].mxu0  ;;  %5168 = vmatmul.mubr.f32.gmra.mrb[22].mxu0 %v5577_v19  ;;  %v5579_v61 = vld [vmem:[#allocation2 + $0x1d1] sm:$0xff] }
 0x27f   :  { %v2263_v46 = vpop.f32.mrb[188].mxu1  ;;  %v7898_v13 = vadd.f32 %v2558_v14, %v7739_v15  ;;  %5170 = vmatprep.mubr.f32.mxu0 %v5578_v51  ;;  %v5580_v14 = vld [vmem:[#allocation2 + $0x1e1] sm:$0xff] }
 0x280   :  { %v7901_v39 = vadd.f32 %v2263_v46, %v7682_v35  ;;  %v2265_v48 = vpop.f32.mrb[189].mxu1  ;;  %3026 = vmatmul.mubr.f32.gmra.mrb[38].mxu1 %v879_v43 }
 0x281   :  { %v4937_v21 = vpop.f32.mrb[174].mxu0  ;;  %3030 = vmatprep.mubr.f32.mxu1 %v944_v25  ;;  %v881_v25 = vld [vmem:[#allocation2 + $0x2d8] sm:$0xff]  ;;  %v946_v48 = vld [vmem:[#allocation2 + $0x2e9] sm:$0xff] }
 0x282   :  { %v7904_v22 = vadd.f32 %v4937_v21, %v7766_v26  ;;  %v2568_v23 = vpop.f32.mrb[175].mxu0  ;;  %5171 = vmatmul.mubr.f32.gmra.mrb[24].mxu0 %v5579_v61  ;;  %v5581_v21 = vld [vmem:[#allocation2 + $0x1e9] sm:$0xff]  ;;  %v5582_v61 = vld [vmem:[#allocation2 + $0x1f9] sm:$0xff] }
 0x283   :  { %v2268_v19 = vpop.f32.mrb[190].mxu1  ;;  %v7907_v15 = vadd.f32 %v2568_v23, %v7757_v31  ;;  %5173 = vmatprep.mubr.f32.mxu0 %v5580_v14  ;;  %v947_v14 = vld [vmem:[#allocation2 + $0x2f1] sm:$0xff] }
 0x284   :  { %v7910_v35 = vadd.f32 %v2268_v19, %v7688_v45  ;;  %v2270_v46 = vpop.f32.mrb[191].mxu1  ;;  %3031 = vmatmul.mubr.f32.gmra.mrb[40].mxu1 %v880_v6 }
 0x285   :  { %v4940_v43 = vpop.f32.mrb[176].mxu0  ;;  %3035 = vmatprep.mubr.f32.mxu1 %v945_v9  ;;  %v882_v9 = vld [vmem:[#allocation2 + $0x2e8] sm:$0xff] }
 0x286   :  { %v7913_v26 = vadd.f32 %v4940_v43, %v7784_v11  ;;  %v2578_v51 = vpop.f32.mrb[177].mxu0  ;;  %5174 = vmatmul.mubr.f32.gmra.mrb[26].mxu0 %v5581_v21  ;;  %v5583_v46 = vld [vmem:[#allocation2 + $0x201] sm:$0xff] }
 0x287   :  { %v7916_v31 = vadd.f32 %v2578_v51, %v7775_v32  ;;  %v7918_v23 = vpop.f32.mrb[192].mxu1  ;;  %5176 = vmatprep.mubr.f32.mxu0 %v5582_v61  ;;  %v5584_v51 = vld [vmem:[#allocation2 + $0x211] sm:$0xff] }
 0x288   :  { %v2774_v45 = vpop.f32.mrb[193].mxu1  ;;  %3036 = vmatmul.mubr.f32.gmra.mrb[42].mxu1 %v881_v25 }
 0x289   :  { %v4943_v6 = vpop.f32.mrb[178].mxu0  ;;  %3040 = vmatprep.mubr.f32.mxu1 %v946_v48  ;;  %v883_v48 = vld [vmem:[#allocation2 + $0x2f0] sm:$0xff]  ;;  %v948_v45 = vld [vmem:[#allocation2 + $0x301] sm:$0xff] }
 0x28a   :  { %v7921_v19 = vadd.f32 %v4943_v6, %v7802_v10  ;;  %v2588_v11 = vpop.f32.mrb[179].mxu0  ;;  %5177 = vmatmul.mubr.f32.gmra.mrb[28].mxu0 %v5583_v46  ;;  %v5585_v6 = vld [vmem:[#allocation2 + $0x219] sm:$0xff] }
 0x28b   :  { %v7924_v43 = vadd.f32 %v2588_v11, %v7793_v24  ;;  %v7926_v32 = vpop.f32.mrb[194].mxu1  ;;  %5179 = vmatprep.mubr.f32.mxu0 %v5584_v51  ;;  %v5586_v11 = vld [vmem:[#allocation2 + $0x229] sm:$0xff] }
 0x28c   :  { %v2779_v21 = vpop.f32.mrb[195].mxu1  ;;  %3041 = vmatmul.mubr.f32.gmra.mrb[44].mxu1 %v882_v9 }
 0x28d   :  { %v4946_v25 = vpop.f32.mrb[180].mxu0  ;;  %3045 = vmatprep.mubr.f32.mxu1 %v947_v14  ;;  %v884_v14 = vld [vmem:[#allocation2 + $0x300] sm:$0xff] }
 0x28e   :  { %v7929_v61 = vadd.f32 %v4946_v25, %v7820_v27  ;;  %v2598_v10 = vpop.f32.mrb[181].mxu0  ;;  %5180 = vmatmul.mubr.f32.gmra.mrb[30].mxu0 %v5585_v6  ;;  %v949_v25 = vld [vmem:[#allocation2 + $0x309] sm:$0xff] }
 0x28f   :  { %v7932_v46 = vadd.f32 %v2598_v10, %v7811_v33  ;;  %v7934_v24 = vpop.f32.mrb[196].mxu1  ;;  %5182 = vmatprep.mubr.f32.mxu0 %v5586_v11  ;;  %v5588_v10 = vld [vmem:[#allocation2 + $0x241] sm:$0xff] }
 0x290   :  { %8761 = vst [vmem:[#allocation36_spill] sm:$0xff] %v7929_v61  ;;  %v2784_v51 = vpop.f32.mrb[197].mxu1  ;;  %3046 = vmatmul.mubr.f32.gmra.mrb[46].mxu1 %v883_v48  ;;  %v5587_v61 = vld [vmem:[#allocation2 + $0x231] sm:$0xff] }
 0x291   :  { %v4949_v9 = vpop.f32.mrb[182].mxu0  ;;  %3050 = vmatprep.mubr.f32.mxu1 %v948_v45  ;;  %v885_v45 = vld [vmem:[#allocation2 + $0x308] sm:$0xff] }
 0x292   :  { %v7937_v21 = vadd.f32 %v4949_v9, %v7838_v12  ;;  %v2608_v27 = vpop.f32.mrb[183].mxu0  ;;  %5183 = vmatmul.mubr.f32.gmra.mrb[32].mxu0 %v5587_v61  ;;  %v950_v9 = vld [vmem:[#allocation2 + $0x319] sm:$0xff] }
 0x293   :  { %v7940_v6 = vadd.f32 %v2608_v27, %v7829_v16  ;;  %v7942_v33 = vpop.f32.mrb[198].mxu1  ;;  %5185 = vmatprep.mubr.f32.mxu0 %v5588_v10  ;;  %v5590_v27 = vld [vmem:[#allocation2 + $0x259] sm:$0xff] }
 0x294   :  { %8762 = vst [vmem:[#allocation35_spill] sm:$0xff] %v7937_v21  ;;  %v2789_v11 = vpop.f32.mrb[199].mxu1  ;;  %3051 = vmatmul.mubr.f32.gmra.mrb[48].mxu1 %v884_v14  ;;  %v5589_v21 = vld [vmem:[#allocation2 + $0x249] sm:$0xff] }
 0x295   :  { %v4952_v48 = vpop.f32.mrb[184].mxu0  ;;  %3055 = vmatprep.mubr.f32.mxu1 %v949_v25  ;;  %v886_v25 = vld [vmem:[#allocation2 + $0x318] sm:$0xff] }
 0x296   :  { %v7945_v51 = vadd.f32 %v4952_v48, %v7856_v28  ;;  %v2618_v12 = vpop.f32.mrb[185].mxu0  ;;  %5186 = vmatmul.mubr.f32.gmra.mrb[34].mxu0 %v5589_v21  ;;  %v951_v48 = vld [vmem:[#allocation2 + $0x321] sm:$0xff] }
 0x297   :  { %v7948_v61 = vadd.f32 %v2618_v12, %v7847_v2  ;;  %v7950_v16 = vpop.f32.mrb[200].mxu1  ;;  %5188 = vmatprep.mubr.f32.mxu0 %v5590_v27  ;;  %v5592_v12 = vld [vmem:[#allocation2 + $0x271] sm:$0xff] }
 0x298   :  { %8763 = vst [vmem:[#allocation38_spill] sm:$0xff] %v7945_v51  ;;  %v2794_v10 = vpop.f32.mrb[201].mxu1  ;;  %3056 = vmatmul.mubr.f32.gmra.mrb[50].mxu1 %v885_v45  ;;  %v5591_v51 = vld [vmem:[#allocation2 + $0x261] sm:$0xff] }
 0x299   :  { %v4955_v14 = vpop.f32.mrb[186].mxu0  ;;  %3060 = vmatprep.mubr.f32.mxu1 %v950_v9  ;;  %v887_v9 = vld [vmem:[#allocation2 + $0x320] sm:$0xff] }
 0x29a   :  { %v7953_v11 = vadd.f32 %v4955_v14, %v7874_v47  ;;  %v2628_v28 = vpop.f32.mrb[187].mxu0  ;;  %5189 = vmatmul.mubr.f32.gmra.mrb[36].mxu0 %v5591_v51  ;;  %v952_v14 = vld [vmem:[#allocation2 + $0x331] sm:$0xff] }
 0x29b   :  { %v7956_v21 = vadd.f32 %v2628_v28, %v7865_v52  ;;  %v7958_v2 = vpop.f32.mrb[202].mxu1  ;;  %5191 = vmatprep.mubr.f32.mxu0 %v5592_v12  ;;  %v5594_v28 = vld [vmem:[#allocation2 + $0x289] sm:$0xff] }
 0x29c   :  { %8764 = vst [vmem:[#allocation34_spill] sm:$0xff] %v7953_v11  ;;  %v2799_v27 = vpop.f32.mrb[203].mxu1  ;;  %3061 = vmatmul.mubr.f32.gmra.mrb[52].mxu1 %v886_v25  ;;  %v5593_v11 = vld [vmem:[#allocation2 + $0x279] sm:$0xff] }
 0x29d   :  { %v4958_v45 = vpop.f32.mrb[188].mxu0  ;;  %3065 = vmatprep.mubr.f32.mxu1 %v951_v48  ;;  %v888_v48 = vld [vmem:[#allocation2 + $0x330] sm:$0xff] }
 0x29e   :  { %v7961_v10 = vadd.f32 %v4958_v45, %v7892_v58  ;;  %v2638_v47 = vpop.f32.mrb[189].mxu0  ;;  %5192 = vmatmul.mubr.f32.gmra.mrb[38].mxu0 %v5593_v11  ;;  %v953_v45 = vld [vmem:[#allocation2 + $0x339] sm:$0xff] }
 0x29f   :  { %v7964_v51 = vadd.f32 %v2638_v47, %v7883_v60  ;;  %v7966_v52 = vpop.f32.mrb[204].mxu1  ;;  %5194 = vmatprep.mubr.f32.mxu0 %v5594_v28  ;;  %v5596_v47 = vld [vmem:[#allocation2 + $0x2a1] sm:$0xff] }
 0x2a0   :  { %8765 = vst [vmem:[#allocation41_spill] sm:$0xff] %v7961_v10  ;;  %v2804_v12 = vpop.f32.mrb[205].mxu1  ;;  %3066 = vmatmul.mubr.f32.gmra.mrb[54].mxu1 %v887_v9  ;;  %v5595_v10 = vld [vmem:[#allocation2 + $0x291] sm:$0xff] }
 0x2a1   :  { %8766 = vst [vmem:[#allocation39_spill] sm:$0xff] %v7964_v51  ;;  %v4961_v25 = vpop.f32.mrb[190].mxu0  ;;  %3070 = vmatprep.mubr.f32.mxu1 %v952_v14  ;;  %v889_v14 = vld [vmem:[#allocation2 + $0x338] sm:$0xff] }
 0x2a2   :  { %v7969_v27 = vadd.f32 %v4961_v25, %v7910_v35  ;;  %v2648_v58 = vpop.f32.mrb[191].mxu0  ;;  %5195 = vmatmul.mubr.f32.gmra.mrb[40].mxu0 %v5595_v10  ;;  %v954_v25 = vld [vmem:[#allocation2 + $0x349] sm:$0xff]  ;;  %v5598_v10 = vld [vmem:[#allocation2 + $0x2b9] sm:$0xff] }
 0x2a3   :  { %v7972_v11 = vadd.f32 %v2648_v58, %v7901_v39  ;;  %v7974_v60 = vpop.f32.mrb[206].mxu1  ;;  %5197 = vmatprep.mubr.f32.mxu0 %v5596_v47  ;;  %v8769_v58 = vld [vmem:[#allocation18_spill] sm:$0xff] }
 0x2a4   :  { %8767 = vst [vmem:[#allocation44_spill] sm:$0xff] %v7969_v27  ;;  %v2809_v28 = vpop.f32.mrb[207].mxu1  ;;  %3071 = vmatmul.mubr.f32.gmra.mrb[56].mxu1 %v888_v48  ;;  %v5597_v27 = vld [vmem:[#allocation2 + $0x2a9] sm:$0xff] }
 0x2a5   :  { %8768 = vst [vmem:[#allocation46_spill] sm:$0xff] %v7972_v11  ;;  %v4996_v9 = vpop.f32.mrb[192].mxu0  ;;  %3075 = vmatprep.mubr.f32.mxu1 %v953_v45  ;;  %v890_v28 = vld [vmem:[#allocation2 + $0x348] sm:$0xff] }
 0x2a6   :  { %v3163_v12 = vadd.f32 %v4996_v9, %v7926_v32  ;;  %v3157_v35 = vpop.f32.mrb[193].mxu0  ;;  %5198 = vmatmul.mubr.f32.gmra.mrb[42].mxu0 %v5597_v27 }
 0x2a7   :  { %v7977_v51 = vpop.f32.mrb[208].mxu1  ;;  %v3158_v39 = vadd.f32 %v3157_v35, %v7918_v23  ;;  %5200 = vmatprep.mubr.f32.mxu0 %v5598_v10  ;;  %v955_v23 = vld [vmem:[#allocation2 + $0x351] sm:$0xff]  ;;  %v5599_v35 = vld [vmem:[#allocation2 + $0x2c1] sm:$0xff] }
 0x2a8   :  { %v3477_v11 = vadd.f32 %v3163_v12, %v8769_v58  ;;  %v2814_v47 = vpop.f32.mrb[209].mxu1  ;;  %3076 = vmatmul.mubr.f32.gmra.mrb[58].mxu1 %v889_v14 }
 0x2a9   :  { %v3476_v48 = vadd.f32 %v3158_v39, %v7697_v30  ;;  %v4999_v45 = vpop.f32.mrb[194].mxu0  ;;  %3080 = vmatprep.mubr.f32.mxu1 %v954_v25  ;;  %v5600_v25 = vld [vmem:[#allocation2 + $0x2d1] sm:$0xff] }
 0x2aa   :  { %v3610_v32 = vmul.f32 %v3477_v11, %v3477_v11  ;;  %3748 = vst [vmem:[%s8543_s5 + $0x8] sm:$0xff] %v3477_v11  ;;  %v3173_v27 = vadd.f32 %v4999_v45, %v7942_v33  ;;  %v3167_v9 = vpop.f32.mrb[195].mxu0  ;;  %5201 = vmatmul.mubr.f32.gmra.mrb[44].mxu0 %v5599_v35  ;;  %v1012_v35 = vld [vmem:[#allocation2 + $0x302] sm:$0xff] }
 0x2ab   :  { %v3540_v10 = vadd.f32 %v3477_v11, %v3476_v48  ;;  %v3609_v12 = vmul.f32 %v3476_v48, %v3476_v48  ;;  %3747 = vst [vmem:[%s8543_s5] sm:$0xff] %v3476_v48  ;;  %v2817_v30 = vpop.f32.mrb[210].mxu1  ;;  %v3168_v14 = vadd.f32 %v3167_v9, %v7934_v24  ;;  %5203 = vmatprep.mubr.f32.mxu0 %v5600_v25  ;;  %v5601_v24 = vld [vmem:[#allocation2 + $0x2d9] sm:$0xff] }
 0x2ac   :  { %v3479_v39 = vadd.f32 %v3173_v27, %v7703_v36  ;;  %v2819_v58 = vpop.f32.mrb[211].mxu1  ;;  %3081 = vmatmul.mubr.f32.gmra.mrb[60].mxu1 %v890_v28  ;;  %v5602_v28 = vld [vmem:[#allocation2 + $0x2e9] sm:$0xff] }
 0x2ad   :  { %v3673_v33 = vadd.f32 %v3610_v32, %v3609_v12  ;;  %v3478_v47 = vadd.f32 %v3168_v14, %v7706_v56  ;;  %v5002_v45 = vpop.f32.mrb[196].mxu0  ;;  %3085 = vmatprep.mubr.f32.mxu1 %v955_v23 }
 0x2ae   :  { %3750 = vst [vmem:[%s8543_s5 + $0x18] sm:$0xff] %v3479_v39  ;;  %v3183_v11 = vadd.f32 %v5002_v45, %v7958_v2  ;;  %v3177_v48 = vpop.f32.mrb[197].mxu0  ;;  %5204 = vmatmul.mubr.f32.gmra.mrb[46].mxu0 %v5601_v24  ;;  %v8770_v2 = vld [vmem:[#allocation17_spill] sm:$0xff]  ;;  %v3612_v23 = vmul.f32 %v3479_v39, %v3479_v39 }
 0x2af   :  { %v3541_v9 = vadd.f32 %v3540_v10, %v3478_v47  ;;  %v3611_v25 = vmul.f32 %v3478_v47, %v3478_v47  ;;  %3749 = vst [vmem:[%s8543_s5 + $0x10] sm:$0xff] %v3478_v47  ;;  %v7999_v36 = vpop.f32.mrb[212].mxu1  ;;  %v3178_v56 = vadd.f32 %v3177_v48, %v7950_v16  ;;  %5206 = vmatprep.mubr.f32.mxu0 %v5602_v28  ;;  %v8771_v10 = vld [vmem:[#allocation24_spill] sm:$0xff]  ;;  %v1014_v48 = vld [vmem:[#allocation2 + $0x31a] sm:$0xff] }
 0x2b0   :  { %v3481_v32 = vadd.f32 %v3183_v11, %v7712_v41  ;;  %v2824_v27 = vpop.f32.mrb[213].mxu1  ;;  %3086 = vmatmul.mubr.f32.gmra.mrb[62].mxu1 %v8770_v2  ;;  %v1013_v24 = vld [vmem:[#allocation2 + $0x30a] sm:$0xff] }
 0x2b1   :  { %v3542_v12 = vadd.f32 %v3541_v9, %v3479_v39  ;;  %v3674_v14 = vadd.f32 %v3673_v33, %v3611_v25  ;;  %v3480_v58 = vadd.f32 %v3178_v56, %v8771_v10  ;;  %v5005_v45 = vpop.f32.mrb[198].mxu0  ;;  %5078 = vmatprep.mubr.f32.mxu1 %v1012_v35  ;;  %v5603_v41 = vld [vmem:[#allocation2 + $0x2f1] sm:$0xff]  ;;  %v5604_v35 = vld [vmem:[#allocation2 + $0x301] sm:$0xff] }
 0x2b2   :  { %3752 = vst [vmem:[%s8543_s5 + $0x28] sm:$0xff] %v3481_v32  ;;  %v3193_v16 = vadd.f32 %v5005_v45, %v7974_v60  ;;  %v3187_v47 = vpop.f32.mrb[199].mxu0  ;;  %5207 = vmatmul.mubr.f32.gmra.mrb[48].mxu0 %v5603_v41  ;;  %v8772_v9 = vld [vmem:[#allocation22_spill] sm:$0xff]  ;;  %v3614_v60 = vmul.f32 %v3481_v32, %v3481_v32 }
 0x2b3   :  { %v3675_v11 = vadd.f32 %v3674_v14, %v3612_v23  ;;  %v3543_v28 = vadd.f32 %v3542_v12, %v3480_v58  ;;  %v3613_v27 = vmul.f32 %v3480_v58, %v3480_v58  ;;  %3751 = vst [vmem:[%s8543_s5 + $0x20] sm:$0xff] %v3480_v58  ;;  %v2827_v39 = vpop.f32.mrb[214].mxu1  ;;  %v3188_v33 = vadd.f32 %v3187_v47, %v7966_v52  ;;  %v1015_v14 = vld [vmem:[#allocation2 + $0x322] sm:$0xff]  ;;  %v1016_v45 = vld [vmem:[#allocation2 + $0x332] sm:$0xff] }
 0x2b4   :  { %5209 = vmatprep.mubr.f32.mxu0 %v5604_v35  ;;  %v3483_v25 = vadd.f32 %v3193_v16, %v8772_v9  ;;  %v2829_v56 = vpop.f32.mrb[215].mxu1  ;;  %5079 = vmatmul.mubr.f32.vlgmr.msra.gmra.mrb[64].mxu1 %v1013_v24  ;;  %v5605_v47 = vld [vmem:[#allocation2 + $0x309] sm:$0xff] }
 0x2b5   :  { %v3544_v2 = vadd.f32 %v3543_v28, %v3481_v32  ;;  %v3676_v10 = vadd.f32 %v3675_v11, %v3613_v27  ;;  %v3482_v23 = vadd.f32 %v3188_v33, %v7727_v34  ;;  %v5008_v12 = vpop.f32.mrb[200].mxu0  ;;  %5081 = vmatprep.mubr.f32.mxu1 %v1014_v48  ;;  %v5606_v48 = vld [vmem:[#allocation2 + $0x319] sm:$0xff] }
 0x2b6   :  { %3754 = vst [vmem:[%s8543_s5 + $0x38] sm:$0xff] %v3483_v25  ;;  %v3203_v58 = vadd.f32 %v5008_v12, %v2817_v30  ;;  %v3197_v52 = vpop.f32.mrb[201].mxu0  ;;  %5210 = vmatmul.mubr.f32.gmra.mrb[50].mxu0 %v5605_v47  ;;  %v8773_v11 = vld [vmem:[#allocation19_spill] sm:$0xff]  ;;  %v3616_v30 = vmul.f32 %v3483_v25, %v3483_v25 }
 0x2b7   :  { %v3677_v16 = vadd.f32 %v3676_v10, %v3614_v60  ;;  %v3545_v41 = vadd.f32 %v3544_v2, %v3482_v23  ;;  %v3615_v24 = vmul.f32 %v3482_v23, %v3482_v23  ;;  %3753 = vst [vmem:[%s8543_s5 + $0x30] sm:$0xff] %v3482_v23  ;;  %v2832_v34 = vpop.f32.mrb[216].mxu1  ;;  %v3198_v32 = vadd.f32 %v3197_v52, %v7977_v51  ;;  %v1017_v60 = vld [vmem:[#allocation2 + $0x33a] sm:$0xff]  ;;  %v1018_v10 = vld [vmem:[#allocation2 + $0x34a] sm:$0xff] }
 0x2b8   :  { %5212 = vmatprep.mubr.f32.mxu0 %v5606_v48  ;;  %v3485_v28 = vadd.f32 %v3203_v58, %v8773_v11  ;;  %v2834_v27 = vpop.f32.mrb[217].mxu1  ;;  %5082 = vmatmul.mubr.f32.gmra.mrb[66].mxu1 %v1015_v14  ;;  %v5607_v23 = vld [vmem:[#allocation2 + $0x321] sm:$0xff]  ;;  %v5608_v52 = vld [vmem:[#allocation2 + $0x331] sm:$0xff] }
 0x2b9   :  { %v3546_v33 = vadd.f32 %v3545_v41, %v3483_v25  ;;  %v3678_v35 = vadd.f32 %v3677_v16, %v3615_v24  ;;  %v3484_v9 = vadd.f32 %v3198_v32, %v7736_v17  ;;  %v5011_v56 = vpop.f32.mrb[202].mxu0  ;;  %5084 = vmatprep.mubr.f32.mxu1 %v1016_v45  ;;  %v1019_v48 = vld [vmem:[#allocation2 + $0x352] sm:$0xff] }
 0x2ba   :  { %3756 = vst [vmem:[%s8543_s5 + $0x48] sm:$0xff] %v3485_v28  ;;  %v3213_v2 = vadd.f32 %v5011_v56, %v2827_v39  ;;  %v3207_v51 = vpop.f32.mrb[203].mxu0  ;;  %5213 = vmatmul.mubr.f32.gmra.mrb[52].mxu0 %v5607_v23  ;;  %v3618_v39 = vmul.f32 %v3485_v28, %v3485_v28  ;;  %v5609_v27 = vld [vmem:[#allocation2 + $0x339] sm:$0xff] }
 0x2bb   :  { %v3679_v12 = vadd.f32 %v3678_v35, %v3616_v30  ;;  %v3547_v58 = vadd.f32 %v3546_v33, %v3484_v9  ;;  %v3617_v14 = vmul.f32 %v3484_v9, %v3484_v9  ;;  %3755 = vst [vmem:[%s8543_s5 + $0x40] sm:$0xff] %v3484_v9  ;;  %v2837_v17 = vpop.f32.mrb[218].mxu1  ;;  %v3208_v25 = vadd.f32 %v3207_v51, %v7999_v36 }
 0x2bc   :  { %5215 = vmatprep.mubr.f32.mxu0 %v5608_v52  ;;  %v3487_v45 = vadd.f32 %v3213_v2, %v7742_v7  ;;  %v2839_v47 = vpop.f32.mrb[219].mxu1  ;;  %5085 = vmatmul.mubr.f32.gmra.mrb[68].mxu1 %v1017_v60 }
 0x2bd   :  { %v3548_v16 = vadd.f32 %v3547_v58, %v3485_v28  ;;  %v3680_v41 = vadd.f32 %v3679_v12, %v3617_v14  ;;  %v3486_v24 = vadd.f32 %v3208_v25, %v7745_v37  ;;  %v5014_v32 = vpop.f32.mrb[204].mxu0  ;;  %5087 = vmatprep.mubr.f32.mxu1 %v1018_v10 }
 0x2be   :  { %3758 = vst [vmem:[%s8543_s5 + $0x58] sm:$0xff] %v3487_v45  ;;  %v3223_v11 = vadd.f32 %v5014_v32, %v2837_v17  ;;  %v3217_v36 = vpop.f32.mrb[205].mxu0  ;;  %5216 = vmatmul.mubr.f32.gmra.mrb[54].mxu0 %v5609_v27  ;;  %v3620_v56 = vmul.f32 %v3487_v45, %v3487_v45 }
 0x2bf   :  { %v3681_v30 = vadd.f32 %v3680_v41, %v3618_v39  ;;  %v3549_v7 = vadd.f32 %v3548_v16, %v3486_v24  ;;  %v3619_v33 = vmul.f32 %v3486_v24, %v3486_v24  ;;  %3757 = vst [vmem:[%s8543_s5 + $0x50] sm:$0xff] %v3486_v24  ;;  %v2842_v28 = vpop.f32.mrb[220].mxu1  ;;  %v3218_v37 = vadd.f32 %v3217_v36, %v2832_v34 }
 0x2c0   :  { %v3489_v35 = vadd.f32 %v3223_v11, %v7751_v40  ;;  %v2844_v9 = vpop.f32.mrb[221].mxu1  ;;  %5088 = vmatmul.mubr.f32.gmra.mrb[70].mxu1 %v1019_v48 }
 0x2c1   :  { %v3550_v60 = vadd.f32 %v3549_v7, %v3487_v45  ;;  %v3682_v2 = vadd.f32 %v3681_v30, %v3619_v33  ;;  %v3488_v51 = vadd.f32 %v3218_v37, %v7754_v59  ;;  %v5017_v10 = vpop.f32.mrb[206].mxu0 }
 0x2c2   :  { %3760 = vst [vmem:[%s8543_s5 + $0x68] sm:$0xff] %v3489_v35  ;;  %v3227_v23 = vpop.f32.mrb[207].mxu0  ;;  %v3622_v52 = vmul.f32 %v3489_v35, %v3489_v35 }
 0x2c3   :  { %v3683_v12 = vadd.f32 %v3682_v2, %v3620_v56  ;;  %v3551_v58 = vadd.f32 %v3550_v60, %v3488_v51  ;;  %v3621_v14 = vmul.f32 %v3488_v51, %v3488_v51  ;;  %3759 = vst [vmem:[%s8543_s5 + $0x60] sm:$0xff] %v3488_v51  ;;  %v2847_v40 = vpop.f32.mrb[222].mxu1  ;;  %v3228_v34 = vadd.f32 %v3227_v23, %v2842_v28 }
 0x2c4   :  { %v3233_v17 = vadd.f32 %v5017_v10, %v2847_v40  ;;  %v2849_v25 = vpop.f32.mrb[223].mxu1 }
 0x2c5   :  { %v3552_v45 = vadd.f32 %v3551_v58, %v3489_v35  ;;  %v3684_v59 = vadd.f32 %v3683_v12, %v3621_v14  ;;  %v3490_v47 = vadd.f32 %v3228_v34, %v7763_v29  ;;  %v5020_v39 = vpop.f32.mrb[208].mxu0 }
 0x2c6   :  { %v3491_v16 = vadd.f32 %v3233_v17, %v7760_v5  ;;  %v3237_v41 = vpop.f32.mrb[209].mxu0 }
 0x2c7   :  { %v3685_v24 = vadd.f32 %v3684_v59, %v3622_v52  ;;  %v3553_v32 = vadd.f32 %v3552_v45, %v3490_v47  ;;  %v3623_v48 = vmul.f32 %v3490_v47, %v3490_v47  ;;  %3761 = vst [vmem:[%s8543_s5 + $0x70] sm:$0xff] %v3490_v47  ;;  %v2852_v11 = vpop.f32.mrb[224].mxu1 }
 0x2c8   :  { %3762 = vst [vmem:[%s8543_s5 + $0x78] sm:$0xff] %v3491_v16  ;;  %v3238_v36 = vadd.f32 %v3237_v41, %v2852_v11  ;;  %v2854_v27 = vpop.f32.mrb[225].mxu1  ;;  %v3624_v30 = vmul.f32 %v3491_v16, %v3491_v16 }
 0x2c9   :  { %v3554_v29 = vadd.f32 %v3553_v32, %v3491_v16  ;;  %v3686_v7 = vadd.f32 %v3685_v24, %v3623_v48  ;;  %v5023_v33 = vpop.f32.mrb[210].mxu0  ;;  %v8774_v32 = vld [vmem:[#allocation21_spill] sm:$0xff] }
 0x2ca   :  { %v3492_v5 = vadd.f32 %v3238_v36, %v7772_v4  ;;  %v3247_v28 = vpop.f32.mrb[211].mxu0 }
 0x2cb   :  { %v3687_v37 = vadd.f32 %v3686_v7, %v3624_v30  ;;  %v2857_v35 = vpop.f32.mrb[226].mxu1 }
 0x2cc   :  { %v3555_v9 = vadd.f32 %v3554_v29, %v3492_v5  ;;  %v3625_v56 = vmul.f32 %v3492_v5, %v3492_v5  ;;  %3763 = vst [vmem:[%s8543_s5 + $0x80] sm:$0xff] %v3492_v5  ;;  %v3243_v60 = vadd.f32 %v5020_v39, %v2857_v35  ;;  %v2859_v2 = vpop.f32.mrb[227].mxu1 }
 0x2cd   :  { %v5026_v51 = vpop.f32.mrb[212].mxu0 }
 0x2ce   :  { %v3688_v10 = vadd.f32 %v3687_v37, %v3625_v56  ;;  %v3493_v23 = vadd.f32 %v3243_v60, %v7769_v3  ;;  %v3257_v12 = vpop.f32.mrb[213].mxu0 }
 0x2cf   :  { %v2862_v58 = vpop.f32.mrb[228].mxu1 }
 0x2d0   :  { %v3556_v14 = vadd.f32 %v3555_v9, %v3493_v23  ;;  %v3626_v40 = vmul.f32 %v3493_v23, %v3493_v23  ;;  %3764 = vst [vmem:[%s8543_s5 + $0x88] sm:$0xff] %v3493_v23  ;;  %v3248_v4 = vadd.f32 %v3247_v28, %v2862_v58  ;;  %v2864_v34 = vpop.f32.mrb[229].mxu1  ;;  %v8775_v23 = vld [vmem:[#allocation28_spill] sm:$0xff] }
 0x2d1   :  { %v5029_v17 = vpop.f32.mrb[214].mxu0 }
 0x2d2   :  { %v3689_v25 = vadd.f32 %v3688_v10, %v3626_v40  ;;  %v3494_v52 = vadd.f32 %v3248_v4, %v7781_v63  ;;  %v3267_v45 = vpop.f32.mrb[215].mxu0 }
 0x2d3   :  { %v2867_v59 = vpop.f32.mrb[230].mxu1 }
 0x2d4   :  { %v3557_v47 = vadd.f32 %v3556_v14, %v3494_v52  ;;  %v3627_v39 = vmul.f32 %v3494_v52, %v3494_v52  ;;  %3765 = vst [vmem:[%s8543_s5 + $0x90] sm:$0xff] %v3494_v52  ;;  %v3253_v3 = vadd.f32 %v5023_v33, %v2867_v59  ;;  %v2869_v16 = vpop.f32.mrb[231].mxu1 }
 0x2d5   :  { %v5032_v41 = vpop.f32.mrb[216].mxu0 }
 0x2d6   :  { %v3690_v24 = vadd.f32 %v3689_v25, %v3627_v39  ;;  %v3495_v48 = vadd.f32 %v3253_v3, %v8774_v32  ;;  %v3277_v11 = vpop.f32.mrb[217].mxu0 }
 0x2d7   :  { %v2872_v36 = vpop.f32.mrb[232].mxu1 }
 0x2d8   :  { %v3558_v27 = vadd.f32 %v3557_v47, %v3495_v48  ;;  %v3628_v30 = vmul.f32 %v3495_v48, %v3495_v48  ;;  %3766 = vst [vmem:[%s8543_s5 + $0x98] sm:$0xff] %v3495_v48  ;;  %v3258_v63 = vadd.f32 %v3257_v12, %v2872_v36  ;;  %v2874_v29 = vpop.f32.mrb[233].mxu1  ;;  %v8776_v48 = vld [vmem:[#allocation23_spill] sm:$0xff] }
 0x2d9   :  { %v8071_v7 = vpop.f32.mrb[218].mxu0 }
 0x2da   :  { %v3691_v5 = vadd.f32 %v3690_v24, %v3628_v30  ;;  %v3496_v33 = vadd.f32 %v3258_v63, %v7790_v44  ;;  %v3287_v28 = vpop.f32.mrb[219].mxu0 }
 0x2db   :  { %v2877_v37 = vpop.f32.mrb[234].mxu1 }
 0x2dc   :  { %v3559_v35 = vadd.f32 %v3558_v27, %v3496_v33  ;;  %v3629_v9 = vmul.f32 %v3496_v33, %v3496_v33  ;;  %3767 = vst [vmem:[%s8543_s5 + $0xa0] sm:$0xff] %v3496_v33  ;;  %v3263_v56 = vadd.f32 %v5026_v51, %v2877_v37  ;;  %v2879_v60 = vpop.f32.mrb[235].mxu1 }
 0x2dd   :  { %v8077_v2 = vpop.f32.mrb[220].mxu0 }
 0x2de   :  { %v3692_v10 = vadd.f32 %v3691_v5, %v3629_v9  ;;  %v3497_v12 = vadd.f32 %v3263_v56, %v8775_v23  ;;  %v8080_v58 = vpop.f32.mrb[221].mxu0 }
 0x2df   :  { %v2882_v14 = vpop.f32.mrb[236].mxu1 }
 0x2e0   :  { %v3560_v40 = vadd.f32 %v3559_v35, %v3497_v12  ;;  %v3630_v44 = vmul.f32 %v3497_v12, %v3497_v12  ;;  %3768 = vst [vmem:[%s8543_s5 + $0xa8] sm:$0xff] %v3497_v12  ;;  %v3268_v4 = vadd.f32 %v3267_v45, %v2882_v14  ;;  %v2884_v34 = vpop.f32.mrb[237].mxu1 }
 0x2e1   :  { %v8085_v25 = vpop.f32.mrb[222].mxu0 }
 0x2e2   :  { %v3693_v51 = vadd.f32 %v3692_v10, %v3630_v44  ;;  %v3498_v52 = vadd.f32 %v3268_v4, %v7799_v55  ;;  %v8088_v59 = vpop.f32.mrb[223].mxu0 }
 0x2e3   :  { %v2887_v47 = vpop.f32.mrb[238].mxu1 }
 0x2e4   :  { %v3561_v39 = vadd.f32 %v3560_v40, %v3498_v52  ;;  %v3631_v3 = vmul.f32 %v3498_v52, %v3498_v52  ;;  %3769 = vst [vmem:[%s8543_s5 + $0xb0] sm:$0xff] %v3498_v52  ;;  %v3273_v16 = vadd.f32 %v5029_v17, %v2887_v47  ;;  %v2889_v24 = vpop.f32.mrb[239].mxu1 }
 0x2e5   :  { %v8093_v32 = vpop.f32.mrb[224].mxu0 }
 0x2e6   :  { %v3694_v45 = vadd.f32 %v3693_v51, %v3631_v3  ;;  %v3499_v36 = vadd.f32 %v3273_v16, %v8776_v48  ;;  %v8096_v27 = vpop.f32.mrb[225].mxu0 }
 0x2e7   :  { %v2892_v30 = vpop.f32.mrb[240].mxu1 }
 0x2e8   :  { %v3562_v55 = vadd.f32 %v3561_v39, %v3499_v36  ;;  %v3632_v63 = vmul.f32 %v3499_v36, %v3499_v36  ;;  %3770 = vst [vmem:[%s8543_s5 + $0xb8] sm:$0xff] %v3499_v36  ;;  %v3278_v29 = vadd.f32 %v3277_v11, %v2892_v30  ;;  %v2894_v5 = vpop.f32.mrb[241].mxu1  ;;  %v8777_v36 = vld [vmem:[#allocation25_spill] sm:$0xff] }
 0x2e9   :  { %v8101_v33 = vpop.f32.mrb[226].mxu0 }
 0x2ea   :  { %v3695_v17 = vadd.f32 %v3694_v45, %v3632_v63  ;;  %v3500_v37 = vadd.f32 %v3278_v29, %v7808_v53  ;;  %v8104_v35 = vpop.f32.mrb[227].mxu0 }
 0x2eb   :  { %v2897_v9 = vpop.f32.mrb[242].mxu1 }
 0x2ec   :  { %v3563_v56 = vadd.f32 %v3562_v55, %v3500_v37  ;;  %v3633_v60 = vmul.f32 %v3500_v37, %v3500_v37  ;;  %3771 = vst [vmem:[%s8543_s5 + $0xc0] sm:$0xff] %v3500_v37  ;;  %v3283_v10 = vadd.f32 %v5032_v41, %v2897_v9  ;;  %v2899_v23 = vpop.f32.mrb[243].mxu1  ;;  %v8778_v9 = vld [vmem:[#allocation27_spill] sm:$0xff] }
 0x2ed   :  { %v8109_v12 = vpop.f32.mrb[228].mxu0 }
 0x2ee   :  { %v3696_v11 = vadd.f32 %v3695_v17, %v3633_v60  ;;  %v3501_v14 = vadd.f32 %v3283_v10, %v7805_v54  ;;  %v8112_v40 = vpop.f32.mrb[229].mxu0 }
 0x2ef   :  { %v2902_v44 = vpop.f32.mrb[244].mxu1 }
 0x2f0   :  { %v3564_v53 = vadd.f32 %v3563_v56, %v3501_v14  ;;  %v3634_v4 = vmul.f32 %v3501_v14, %v3501_v14  ;;  %3772 = vst [vmem:[%s8543_s5 + $0xc8] sm:$0xff] %v3501_v14  ;;  %v3288_v34 = vadd.f32 %v3287_v28, %v2902_v44  ;;  %v2904_v51 = vpop.f32.mrb[245].mxu1 }
 0x2f1   :  { %v8117_v52 = vpop.f32.mrb[230].mxu0 }
 0x2f2   :  { %v3697_v41 = vadd.f32 %v3696_v11, %v3634_v4  ;;  %v3502_v47 = vadd.f32 %v3288_v34, %v7817_v49  ;;  %v8120_v39 = vpop.f32.mrb[231].mxu0  ;;  %v8779_v4 = vld [vmem:[#allocation26_spill] sm:$0xff] }
 0x2f3   :  { %v2907_v3 = vpop.f32.mrb[246].mxu1 }
 0x2f4   :  { %v3565_v54 = vadd.f32 %v3564_v53, %v3502_v47  ;;  %v3635_v16 = vmul.f32 %v3502_v47, %v3502_v47  ;;  %3773 = vst [vmem:[%s8543_s5 + $0xd0] sm:$0xff] %v3502_v47  ;;  %v3293_v24 = vadd.f32 %v8071_v7, %v2907_v3  ;;  %v2909_v45 = vpop.f32.mrb[247].mxu1 }
 0x2f5   :  { %v8126_v48 = vpop.f32.mrb[232].mxu0 }
 0x2f6   :  { %v3698_v28 = vadd.f32 %v3697_v41, %v3635_v16  ;;  %v3503_v30 = vadd.f32 %v3293_v24, %v8777_v36  ;;  %v8129_v55 = vpop.f32.mrb[233].mxu0 }
 0x2f7   :  { %v2912_v49 = vpop.f32.mrb[248].mxu1 }
 0x2f8   :  { %v3566_v63 = vadd.f32 %v3565_v54, %v3503_v30  ;;  %v3636_v29 = vmul.f32 %v3503_v30, %v3503_v30  ;;  %3774 = vst [vmem:[%s8543_s5 + $0xd8] sm:$0xff] %v3503_v30  ;;  %v3298_v5 = vadd.f32 %v8080_v58, %v2912_v49  ;;  %v2914_v17 = vpop.f32.mrb[249].mxu1 }
 0x2f9   :  { %v8135_v37 = vpop.f32.mrb[234].mxu0  ;;  %v8780_v17 = vld [vmem:[#allocation29_spill] sm:$0xff] }
 0x2fa   :  { %v3699_v7 = vadd.f32 %v3698_v28, %v3636_v29  ;;  %v3504_v56 = vadd.f32 %v3298_v5, %v8778_v9  ;;  %v8138_v60 = vpop.f32.mrb[235].mxu0 }
 0x2fb   :  { %v2917_v10 = vpop.f32.mrb[250].mxu1 }
 0x2fc   :  { %v3567_v23 = vadd.f32 %v3566_v63, %v3504_v56  ;;  %v3637_v11 = vmul.f32 %v3504_v56, %v3504_v56  ;;  %3775 = vst [vmem:[%s8543_s5 + $0xe0] sm:$0xff] %v3504_v56  ;;  %v3303_v14 = vadd.f32 %v8077_v2, %v2917_v10  ;;  %v2919_v44 = vpop.f32.mrb[251].mxu1 }
 0x2fd   :  { %v8144_v53 = vpop.f32.mrb[236].mxu0 }
 0x2fe   :  { %v3700_v58 = vadd.f32 %v3699_v7, %v3637_v11  ;;  %v3505_v34 = vadd.f32 %v3303_v14, %v8779_v4  ;;  %v8147_v51 = vpop.f32.mrb[237].mxu0 }
 0x2ff   :  { %v2922_v41 = vpop.f32.mrb[252].mxu1 }
 0x300   :  { %v3568_v47 = vadd.f32 %v3567_v23, %v3505_v34  ;;  %v3638_v3 = vmul.f32 %v3505_v34, %v3505_v34  ;;  %3776 = vst [vmem:[%s8543_s5 + $0xe8] sm:$0xff] %v3505_v34  ;;  %v3308_v54 = vadd.f32 %v8088_v59, %v2922_v41  ;;  %v2924_v16 = vpop.f32.mrb[253].mxu1 }
 0x301   :  { %v8153_v24 = vpop.f32.mrb[238].mxu0  ;;  %v8781_v16 = vld [vmem:[#allocation32_spill] sm:$0xff] }
 0x302   :  { %v3701_v2 = vadd.f32 %v3700_v58, %v3638_v3  ;;  %v3506_v45 = vadd.f32 %v3308_v54, %v7835_v8  ;;  %v8156_v28 = vpop.f32.mrb[239].mxu0 }
 0x303   :  { %v2927_v36 = vpop.f32.mrb[254].mxu1 }
 0x304   :  { %v3569_v30 = vadd.f32 %v3568_v47, %v3506_v45  ;;  %v3639_v49 = vmul.f32 %v3506_v45, %v3506_v45  ;;  %3777 = vst [vmem:[%s8543_s5 + $0xf0] sm:$0xff] %v3506_v45  ;;  %v3313_v63 = vadd.f32 %v8085_v25, %v2927_v36  ;;  %v2929_v29 = vpop.f32.mrb[255].mxu1 }
 0x305   :  { %v8162_v5 = vpop.f32.mrb[240].mxu0 }
 0x306   :  { %v3702_v59 = vadd.f32 %v3701_v2, %v3639_v49  ;;  %v3507_v7 = vadd.f32 %v3313_v63, %v8780_v17  ;;  %v8165_v9 = vpop.f32.mrb[241].mxu0 }
 0x307   :  { %v2932_v8 = vpop.f32.mrb[0].mxu1 }
 0x308   :  { %v3570_v56 = vadd.f32 %v3569_v30, %v3507_v7  ;;  %v3640_v10 = vmul.f32 %v3507_v7, %v3507_v7  ;;  %3778 = vst [vmem:[%s8543_s5 + $0xf8] sm:$0xff] %v3507_v7  ;;  %v3318_v23 = vadd.f32 %v8096_v27, %v2932_v8  ;;  %v2934_v11 = vpop.f32.mrb[1].mxu1 }
 0x309   :  { %v8171_v14 = vpop.f32.mrb[242].mxu0 }
 0x30a   :  { %v3703_v25 = vadd.f32 %v3702_v59, %v3640_v10  ;;  %v3508_v44 = vadd.f32 %v3318_v23, %v7844_v0  ;;  %v8174_v58 = vpop.f32.mrb[243].mxu0 }
 0x30b   :  { %v2937_v4 = vpop.f32.mrb[2].mxu1 }
 0x30c   :  { %v3571_v34 = vadd.f32 %v3570_v56, %v3508_v44  ;;  %v3641_v41 = vmul.f32 %v3508_v44, %v3508_v44  ;;  %3779 = vst [vmem:[%s8543_s5 + $0x100] sm:$0xff] %v3508_v44  ;;  %v3323_v47 = vadd.f32 %v8093_v32, %v2937_v4  ;;  %v2939_v3 = vpop.f32.mrb[3].mxu1 }
 0x30d   :  { %v8180_v54 = vpop.f32.mrb[244].mxu0 }
 0x30e   :  { %v3704_v27 = vadd.f32 %v3703_v25, %v3641_v41  ;;  %v3509_v2 = vadd.f32 %v3323_v47, %v8781_v16  ;;  %v8183_v45 = vpop.f32.mrb[245].mxu0  ;;  %v8782_v25 = vld [vmem:[#allocation31_spill] sm:$0xff] }
 0x30f   :  { %v2942_v0 = vpop.f32.mrb[4].mxu1 }
 0x310   :  { %v3572_v36 = vadd.f32 %v3571_v34, %v3509_v2  ;;  %v3642_v30 = vmul.f32 %v3509_v2, %v3509_v2  ;;  %3780 = vst [vmem:[%s8543_s5 + $0x108] sm:$0xff] %v3509_v2  ;;  %v3328_v49 = vadd.f32 %v8104_v35, %v2942_v0  ;;  %v2944_v63 = vpop.f32.mrb[5].mxu1 }
 0x311   :  { %v8189_v29 = vpop.f32.mrb[246].mxu0 }
 0x312   :  { %v3705_v32 = vadd.f32 %v3704_v27, %v3642_v30  ;;  %v3510_v59 = vadd.f32 %v3328_v49, %v7853_v1  ;;  %v8192_v17 = vpop.f32.mrb[247].mxu0 }
 0x313   :  { %v2947_v7 = vpop.f32.mrb[6].mxu1 }
 0x314   :  { %v3573_v8 = vadd.f32 %v3572_v36, %v3510_v59  ;;  %v3643_v56 = vmul.f32 %v3510_v59, %v3510_v59  ;;  %3781 = vst [vmem:[%s8543_s5 + $0x110] sm:$0xff] %v3510_v59  ;;  %v3333_v10 = vadd.f32 %v8101_v33, %v2947_v7  ;;  %v2949_v23 = vpop.f32.mrb[7].mxu1 }
 0x315   :  { %v5124_v11 = vpop.f32.mrb[248].mxu0 }
 0x316   :  { %v3706_v35 = vadd.f32 %v3705_v32, %v3643_v56  ;;  %v3511_v44 = vadd.f32 %v3333_v10, %v8782_v25  ;;  %4213 = vst [vmem:[%s8544_s7 + $0x8] sm:$0xff] %v5124_v11  ;;  %v3893_v1 = vpop.f32.mrb[249].mxu0 }
 0x317   :  { %v2952_v4 = vpop.f32.mrb[8].mxu1  ;;  %4212 = vst [vmem:[%s8544_s7] sm:$0xff] %v3893_v1 }
 0x318   :  { %v3574_v34 = vadd.f32 %v3573_v8, %v3511_v44  ;;  %v3644_v41 = vmul.f32 %v3511_v44, %v3511_v44  ;;  %3782 = vst [vmem:[%s8543_s5 + $0x118] sm:$0xff] %v3511_v44  ;;  %v3338_v33 = vadd.f32 %v8112_v40, %v2952_v4  ;;  %v2954_v47 = vpop.f32.mrb[9].mxu1 }
 0x319   :  { %v5127_v3 = vpop.f32.mrb[250].mxu0 }
 0x31a   :  { %v3707_v27 = vadd.f32 %v3706_v35, %v3644_v41  ;;  %v3512_v16 = vadd.f32 %v3338_v33, %v7862_v50  ;;  %4215 = vst [vmem:[%s8544_s7 + $0x18] sm:$0xff] %v5127_v3  ;;  %v3903_v2 = vpop.f32.mrb[251].mxu0  ;;  %v8783_v41 = vld [vmem:[#allocation33_spill] sm:$0xff] }
 0x31b   :  { %v2957_v0 = vpop.f32.mrb[10].mxu1  ;;  %4214 = vst [vmem:[%s8544_s7 + $0x10] sm:$0xff] %v3903_v2 }
 0x31c   :  { %v3575_v36 = vadd.f32 %v3574_v34, %v3512_v16  ;;  %v3645_v30 = vmul.f32 %v3512_v16, %v3512_v16  ;;  %3783 = vst [vmem:[%s8543_s5 + $0x120] sm:$0xff] %v3512_v16  ;;  %v3343_v40 = vadd.f32 %v8109_v12, %v2957_v0  ;;  %v2959_v49 = vpop.f32.mrb[11].mxu1 }
 0x31d   :  { %v5130_v50 = vpop.f32.mrb[252].mxu0 }
 0x31e   :  { %v3708_v63 = vadd.f32 %v3707_v27, %v3645_v30  ;;  %v3513_v32 = vadd.f32 %v3343_v40, %v7859_v38  ;;  %4217 = vst [vmem:[%s8544_s7 + $0x28] sm:$0xff] %v5130_v50  ;;  %v3913_v59 = vpop.f32.mrb[253].mxu0 }
 0x31f   :  { %v2962_v7 = vpop.f32.mrb[12].mxu1  ;;  %4216 = vst [vmem:[%s8544_s7 + $0x20] sm:$0xff] %v3913_v59 }
 0x320   :  { %v3576_v8 = vadd.f32 %v3575_v36, %v3513_v32  ;;  %v3646_v56 = vmul.f32 %v3513_v32, %v3513_v32  ;;  %3784 = vst [vmem:[%s8543_s5 + $0x128] sm:$0xff] %v3513_v32  ;;  %v3348_v12 = vadd.f32 %v8120_v39, %v2962_v7  ;;  %v2964_v10 = vpop.f32.mrb[13].mxu1 }
 0x321   :  { %v5133_v38 = vpop.f32.mrb[254].mxu0 }
 0x322   :  { %v3709_v23 = vadd.f32 %v3708_v63, %v3646_v56  ;;  %v3514_v11 = vadd.f32 %v3348_v12, %v7871_v20  ;;  %4219 = vst [vmem:[%s8544_s7 + $0x38] sm:$0xff] %v5133_v38  ;;  %v3923_v35 = vpop.f32.mrb[255].mxu0 }
 0x323   :  { %v2967_v25 = vpop.f32.mrb[14].mxu1  ;;  %4218 = vst [vmem:[%s8544_s7 + $0x30] sm:$0xff] %v3923_v35 }
 0x324   :  { %v3577_v44 = vadd.f32 %v3576_v8, %v3514_v11  ;;  %v3647_v1 = vmul.f32 %v3514_v11, %v3514_v11  ;;  %3785 = vst [vmem:[%s8543_s5 + $0x130] sm:$0xff] %v3514_v11  ;;  %v3353_v39 = vadd.f32 %v8117_v52, %v2967_v25  ;;  %v2969_v4 = vpop.f32.mrb[15].mxu1 }
 0x325   :  { %v5136_v20 = vpop.f32.mrb[0].mxu0 }
 0x326   :  { %v3710_v34 = vadd.f32 %v3709_v23, %v3647_v1  ;;  %v3515_v33 = vadd.f32 %v3353_v39, %v8783_v41  ;;  %4221 = vst [vmem:[%s8544_s7 + $0x48] sm:$0xff] %v5136_v20  ;;  %v3933_v47 = vpop.f32.mrb[1].mxu0  ;;  %v8784_v20 = vld [vmem:[#allocation30_spill] sm:$0xff] }
 0x327   :  { %v2972_v3 = vpop.f32.mrb[16].mxu1  ;;  %4220 = vst [vmem:[%s8544_s7 + $0x40] sm:$0xff] %v3933_v47 }
 0x328   :  { %v3578_v27 = vadd.f32 %v3577_v44, %v3515_v33  ;;  %v3648_v16 = vmul.f32 %v3515_v33, %v3515_v33  ;;  %3786 = vst [vmem:[%s8543_s5 + $0x138] sm:$0xff] %v3515_v33  ;;  %v3358_v52 = vadd.f32 %v8129_v55, %v2972_v3  ;;  %v2974_v2 = vpop.f32.mrb[17].mxu1 }
 0x329   :  { %v5139_v0 = vpop.f32.mrb[2].mxu0 }
 0x32a   :  { %v3711_v36 = vadd.f32 %v3710_v34, %v3648_v16  ;;  %v3516_v30 = vadd.f32 %v3358_v52, %v7880_v57  ;;  %4223 = vst [vmem:[%s8544_s7 + $0x58] sm:$0xff] %v5139_v0  ;;  %v3943_v40 = vpop.f32.mrb[3].mxu0 }
 0x32b   :  { %v2977_v49 = vpop.f32.mrb[18].mxu1  ;;  %4222 = vst [vmem:[%s8544_s7 + $0x50] sm:$0xff] %v3943_v40 }
 0x32c   :  { %v3579_v50 = vadd.f32 %v3578_v27, %v3516_v30  ;;  %v3649_v63 = vmul.f32 %v3516_v30, %v3516_v30  ;;  %3787 = vst [vmem:[%s8543_s5 + $0x140] sm:$0xff] %v3516_v30  ;;  %v3363_v55 = vadd.f32 %v8126_v48, %v2977_v49  ;;  %v2979_v32 = vpop.f32.mrb[19].mxu1 }
 0x32d   :  { %v5142_v57 = vpop.f32.mrb[4].mxu0 }
 0x32e   :  { %v3712_v59 = vadd.f32 %v3711_v36, %v3649_v63  ;;  %v3517_v7 = vadd.f32 %v3363_v55, %v7877_v62  ;;  %4225 = vst [vmem:[%s8544_s7 + $0x68] sm:$0xff] %v5142_v57  ;;  %v3953_v8 = vpop.f32.mrb[5].mxu0 }
 0x32f   :  { %v2982_v56 = vpop.f32.mrb[20].mxu1  ;;  %4224 = vst [vmem:[%s8544_s7 + $0x60] sm:$0xff] %v3953_v8 }
 0x330   :  { %v3580_v12 = vadd.f32 %v3579_v50, %v3517_v7  ;;  %v3650_v10 = vmul.f32 %v3517_v7, %v3517_v7  ;;  %3788 = vst [vmem:[%s8543_s5 + $0x148] sm:$0xff] %v3517_v7  ;;  %v3368_v48 = vadd.f32 %v8138_v60, %v2982_v56  ;;  %v2984_v38 = vpop.f32.mrb[21].mxu1 }
 0x331   :  { %v5145_v62 = vpop.f32.mrb[6].mxu0 }
 0x332   :  { %v3713_v23 = vadd.f32 %v3712_v59, %v3650_v10  ;;  %v3518_v11 = vadd.f32 %v3368_v48, %v7889_v18  ;;  %4227 = vst [vmem:[%s8544_s7 + $0x78] sm:$0xff] %v5145_v62  ;;  %v3963_v35 = vpop.f32.mrb[7].mxu0 }
 0x333   :  { %v2987_v25 = vpop.f32.mrb[22].mxu1  ;;  %4226 = vst [vmem:[%s8544_s7 + $0x70] sm:$0xff] %v3963_v35 }
 0x334   :  { %v3581_v44 = vadd.f32 %v3580_v12, %v3518_v11  ;;  %v3651_v1 = vmul.f32 %v3518_v11, %v3518_v11  ;;  %3789 = vst [vmem:[%s8543_s5 + $0x150] sm:$0xff] %v3518_v11  ;;  %v3373_v60 = vadd.f32 %v8135_v37, %v2987_v25  ;;  %v2989_v39 = vpop.f32.mrb[23].mxu1 }
 0x335   :  { %v5148_v18 = vpop.f32.mrb[8].mxu0 }
 0x336   :  { %v3714_v4 = vadd.f32 %v3713_v23, %v3651_v1  ;;  %v3519_v34 = vadd.f32 %v3373_v60, %v8784_v20  ;;  %4229 = vst [vmem:[%s8544_s7 + $0x88] sm:$0xff] %v5148_v18  ;;  %v3973_v41 = vpop.f32.mrb[9].mxu0 }
 0x337   :  { %v2992_v33 = vpop.f32.mrb[24].mxu1  ;;  %4228 = vst [vmem:[%s8544_s7 + $0x80] sm:$0xff] %v3973_v41 }
 0x338   :  { %v3582_v47 = vadd.f32 %v3581_v44, %v3519_v34  ;;  %v3652_v3 = vmul.f32 %v3519_v34, %v3519_v34  ;;  %3790 = vst [vmem:[%s8543_s5 + $0x158] sm:$0xff] %v3519_v34  ;;  %v3378_v37 = vadd.f32 %v8147_v51, %v2992_v33  ;;  %v2994_v27 = vpop.f32.mrb[25].mxu1 }
 0x339   :  { %v5151_v16 = vpop.f32.mrb[10].mxu0 }
 0x33a   :  { %v3715_v52 = vadd.f32 %v3714_v4, %v3652_v3  ;;  %v3520_v2 = vadd.f32 %v3378_v37, %v7898_v13  ;;  %4231 = vst [vmem:[%s8544_s7 + $0x98] sm:$0xff] %v5151_v16  ;;  %v3983_v0 = vpop.f32.mrb[11].mxu0 }
 0x33b   :  { %v2997_v36 = vpop.f32.mrb[26].mxu1  ;;  %4230 = vst [vmem:[%s8544_s7 + $0x90] sm:$0xff] %v3983_v0 }
 0x33c   :  { %v3583_v30 = vadd.f32 %v3582_v47, %v3520_v2  ;;  %v3653_v40 = vmul.f32 %v3520_v2, %v3520_v2  ;;  %3791 = vst [vmem:[%s8543_s5 + $0x160] sm:$0xff] %v3520_v2  ;;  %v3383_v51 = vadd.f32 %v8144_v53, %v2997_v36  ;;  %v2999_v49 = vpop.f32.mrb[27].mxu1 }
 0x33d   :  { %v5154_v13 = vpop.f32.mrb[12].mxu0 }
 0x33e   :  { %v3716_v50 = vadd.f32 %v3715_v52, %v3653_v40  ;;  %v3521_v63 = vadd.f32 %v3383_v51, %v7895_v42  ;;  %4233 = vst [vmem:[%s8544_s7 + $0xa8] sm:$0xff] %v5154_v13  ;;  %v3993_v55 = vpop.f32.mrb[13].mxu0 }
 0x33f   :  { %v3002_v32 = vpop.f32.mrb[28].mxu1  ;;  %4232 = vst [vmem:[%s8544_s7 + $0xa0] sm:$0xff] %v3993_v55 }
 0x340   :  { %v3584_v57 = vadd.f32 %v3583_v30, %v3521_v63  ;;  %v3654_v59 = vmul.f32 %v3521_v63, %v3521_v63  ;;  %3792 = vst [vmem:[%s8543_s5 + $0x168] sm:$0xff] %v3521_v63  ;;  %v3388_v53 = vadd.f32 %v8156_v28, %v3002_v32  ;;  %v3004_v7 = vpop.f32.mrb[29].mxu1 }
 0x341   :  { %v5157_v42 = vpop.f32.mrb[14].mxu0 }
 0x342   :  { %v3717_v8 = vadd.f32 %v3716_v50, %v3654_v59  ;;  %v3522_v56 = vadd.f32 %v3388_v53, %v7907_v15  ;;  %4235 = vst [vmem:[%s8544_s7 + $0xb8] sm:$0xff] %v5157_v42  ;;  %v4003_v12 = vpop.f32.mrb[15].mxu0 }
 0x343   :  { %v3007_v10 = vpop.f32.mrb[30].mxu1  ;;  %4234 = vst [vmem:[%s8544_s7 + $0xb0] sm:$0xff] %v4003_v12 }
 0x344   :  { %v3585_v48 = vadd.f32 %v3584_v57, %v3522_v56  ;;  %v3655_v38 = vmul.f32 %v3522_v56, %v3522_v56  ;;  %3793 = vst [vmem:[%s8543_s5 + $0x170] sm:$0xff] %v3522_v56  ;;  %v3393_v28 = vadd.f32 %v8153_v24, %v3007_v10  ;;  %v3009_v62 = vpop.f32.mrb[31].mxu1 }
 0x345   :  { %v5160_v15 = vpop.f32.mrb[16].mxu0 }
 0x346   :  { %v3718_v23 = vadd.f32 %v3717_v8, %v3655_v38  ;;  %v3523_v11 = vadd.f32 %v3393_v28, %v7904_v22  ;;  %4237 = vst [vmem:[%s8544_s7 + $0xc8] sm:$0xff] %v5160_v15  ;;  %v4013_v35 = vpop.f32.mrb[17].mxu0  ;;  %v8785_v28 = vld [vmem:[#allocation36_spill] sm:$0xff] }
 0x347   :  { %v3012_v25 = vpop.f32.mrb[32].mxu1  ;;  %4236 = vst [vmem:[%s8544_s7 + $0xc0] sm:$0xff] %v4013_v35 }
 0x348   :  { %v3586_v44 = vadd.f32 %v3585_v48, %v3523_v11  ;;  %v3656_v1 = vmul.f32 %v3523_v11, %v3523_v11  ;;  %3794 = vst [vmem:[%s8543_s5 + $0x178] sm:$0xff] %v3523_v11  ;;  %v3398_v24 = vadd.f32 %v8165_v9, %v3012_v25  ;;  %v3014_v60 = vpop.f32.mrb[33].mxu1 }
 0x349   :  { %v5163_v22 = vpop.f32.mrb[18].mxu0 }
 0x34a   :  { %v3719_v39 = vadd.f32 %v3718_v23, %v3656_v1  ;;  %v3524_v18 = vadd.f32 %v3398_v24, %v7916_v31  ;;  %4239 = vst [vmem:[%s8544_s7 + $0xd8] sm:$0xff] %v5163_v22  ;;  %v4023_v4 = vpop.f32.mrb[19].mxu0 }
 0x34b   :  { %v3017_v20 = vpop.f32.mrb[34].mxu1  ;;  %4238 = vst [vmem:[%s8544_s7 + $0xd0] sm:$0xff] %v4023_v4 }
 0x34c   :  { %v3587_v34 = vadd.f32 %v3586_v44, %v3524_v18  ;;  %v3657_v41 = vmul.f32 %v3524_v18, %v3524_v18  ;;  %3795 = vst [vmem:[%s8543_s5 + $0x180] sm:$0xff] %v3524_v18  ;;  %v3403_v9 = vadd.f32 %v8162_v5, %v3017_v20  ;;  %v3019_v33 = vpop.f32.mrb[35].mxu1 }
 0x34d   :  { %v5166_v31 = vpop.f32.mrb[20].mxu0 }
 0x34e   :  { %v3720_v47 = vadd.f32 %v3719_v39, %v3657_v41  ;;  %v3525_v3 = vadd.f32 %v3403_v9, %v7913_v26  ;;  %4241 = vst [vmem:[%s8544_s7 + $0xe8] sm:$0xff] %v5166_v31  ;;  %v4033_v37 = vpop.f32.mrb[21].mxu0 }
 0x34f   :  { %v3022_v27 = vpop.f32.mrb[36].mxu1  ;;  %4240 = vst [vmem:[%s8544_s7 + $0xe0] sm:$0xff] %v4033_v37 }
 0x350   :  { %v3588_v16 = vadd.f32 %v3587_v34, %v3525_v3  ;;  %v3658_v52 = vmul.f32 %v3525_v3, %v3525_v3  ;;  %3796 = vst [vmem:[%s8543_s5 + $0x188] sm:$0xff] %v3525_v3  ;;  %v3408_v5 = vadd.f32 %v8174_v58, %v3022_v27  ;;  %v3024_v2 = vpop.f32.mrb[37].mxu1  ;;  %v8786_v34 = vld [vmem:[#allocation35_spill] sm:$0xff] }
 0x351   :  { %v5169_v26 = vpop.f32.mrb[22].mxu0 }
 0x352   :  { %v3721_v0 = vadd.f32 %v3720_v47, %v3658_v52  ;;  %v3526_v36 = vadd.f32 %v3408_v5, %v7924_v43  ;;  %4243 = vst [vmem:[%s8544_s7 + $0xf8] sm:$0xff] %v5169_v26  ;;  %v4043_v30 = vpop.f32.mrb[23].mxu0 }
 0x353   :  { %v3027_v40 = vpop.f32.mrb[38].mxu1  ;;  %4242 = vst [vmem:[%s8544_s7 + $0xf0] sm:$0xff] %v4043_v30 }
 0x354   :  { %v3589_v51 = vadd.f32 %v3588_v16, %v3526_v36  ;;  %v3659_v49 = vmul.f32 %v3526_v36, %v3526_v36  ;;  %3797 = vst [vmem:[%s8543_s5 + $0x190] sm:$0xff] %v3526_v36  ;;  %v3413_v58 = vadd.f32 %v8171_v14, %v3027_v40  ;;  %v3029_v13 = vpop.f32.mrb[39].mxu1 }
 0x355   :  { %v5172_v43 = vpop.f32.mrb[24].mxu0 }
 0x356   :  { %v3722_v50 = vadd.f32 %v3721_v0, %v3659_v49  ;;  %v3527_v63 = vadd.f32 %v3413_v58, %v7921_v19  ;;  %4245 = vst [vmem:[%s8544_s7 + $0x108] sm:$0xff] %v5172_v43  ;;  %v4053_v55 = vpop.f32.mrb[25].mxu0 }
 0x357   :  { %v3032_v32 = vpop.f32.mrb[40].mxu1  ;;  %4244 = vst [vmem:[%s8544_s7 + $0x100] sm:$0xff] %v4053_v55 }
 0x358   :  { %v3590_v57 = vadd.f32 %v3589_v51, %v3527_v63  ;;  %v3660_v59 = vmul.f32 %v3527_v63, %v3527_v63  ;;  %3798 = vst [vmem:[%s8543_s5 + $0x198] sm:$0xff] %v3527_v63  ;;  %v3418_v14 = vadd.f32 %v8183_v45, %v3032_v32  ;;  %v3034_v53 = vpop.f32.mrb[41].mxu1 }
 0x359   :  { %v5175_v19 = vpop.f32.mrb[26].mxu0 }
 0x35a   :  { %v3723_v7 = vadd.f32 %v3722_v50, %v3660_v59  ;;  %v3528_v42 = vadd.f32 %v3418_v14, %v7932_v46  ;;  %4247 = vst [vmem:[%s8544_s7 + $0x118] sm:$0xff] %v5175_v19  ;;  %v4063_v8 = vpop.f32.mrb[27].mxu0 }
 0x35b   :  { %v3037_v56 = vpop.f32.mrb[42].mxu1  ;;  %4246 = vst [vmem:[%s8544_s7 + $0x110] sm:$0xff] %v4063_v8 }
 0x35c   :  { %v3591_v12 = vadd.f32 %v3590_v57, %v3528_v42  ;;  %v3661_v10 = vmul.f32 %v3528_v42, %v3528_v42  ;;  %3799 = vst [vmem:[%s8543_s5 + $0x1a0] sm:$0xff] %v3528_v42  ;;  %v3423_v45 = vadd.f32 %v8180_v54, %v3037_v56  ;;  %v3039_v48 = vpop.f32.mrb[43].mxu1 }
 0x35d   :  { %v5178_v46 = vpop.f32.mrb[28].mxu0 }
 0x35e   :  { %v3724_v38 = vadd.f32 %v3723_v7, %v3661_v10  ;;  %v3529_v62 = vadd.f32 %v3423_v45, %v8785_v28  ;;  %4249 = vst [vmem:[%s8544_s7 + $0x128] sm:$0xff] %v5178_v46  ;;  %v4073_v15 = vpop.f32.mrb[29].mxu0  ;;  %v8787_v28 = vld [vmem:[#allocation38_spill] sm:$0xff] }
 0x35f   :  { %v3042_v23 = vpop.f32.mrb[44].mxu1  ;;  %4248 = vst [vmem:[%s8544_s7 + $0x120] sm:$0xff] %v4073_v15 }
 0x360   :  { %v3592_v11 = vadd.f32 %v3591_v12, %v3529_v62  ;;  %v3662_v35 = vmul.f32 %v3529_v62, %v3529_v62  ;;  %3800 = vst [vmem:[%s8543_s5 + $0x1a8] sm:$0xff] %v3529_v62  ;;  %v3428_v54 = vadd.f32 %v8192_v17, %v3042_v23  ;;  %v3044_v25 = vpop.f32.mrb[45].mxu1 }
 0x361   :  { %v5181_v44 = vpop.f32.mrb[30].mxu0 }
 0x362   :  { %v3725_v1 = vadd.f32 %v3724_v38, %v3662_v35  ;;  %v3530_v24 = vadd.f32 %v3428_v54, %v7940_v6  ;;  %4251 = vst [vmem:[%s8544_s7 + $0x138] sm:$0xff] %v5181_v44  ;;  %v4083_v60 = vpop.f32.mrb[31].mxu0 }
 0x363   :  { %v3047_v22 = vpop.f32.mrb[46].mxu1  ;;  %4250 = vst [vmem:[%s8544_s7 + $0x130] sm:$0xff] %v4083_v60 }
 0x364   :  { %v3593_v39 = vadd.f32 %v3592_v11, %v3530_v24  ;;  %v3663_v18 = vmul.f32 %v3530_v24, %v3530_v24  ;;  %3801 = vst [vmem:[%s8543_s5 + $0x1b0] sm:$0xff] %v3530_v24  ;;  %v3433_v17 = vadd.f32 %v8189_v29, %v3047_v22  ;;  %v3049_v4 = vpop.f32.mrb[47].mxu1  ;;  %v8788_v24 = vld [vmem:[#allocation34_spill] sm:$0xff] }
 0x365   :  { %v5184_v6 = vpop.f32.mrb[32].mxu0 }
 0x366   :  { %v3726_v20 = vadd.f32 %v3725_v1, %v3663_v18  ;;  %v3531_v41 = vadd.f32 %v3433_v17, %v8786_v34  ;;  %4253 = vst [vmem:[%s8544_s7 + $0x148] sm:$0xff] %v5184_v6  ;;  %v4093_v9 = vpop.f32.mrb[33].mxu0 }
 0x367   :  { %v3052_v33 = vpop.f32.mrb[48].mxu1  ;;  %4252 = vst [vmem:[%s8544_s7 + $0x140] sm:$0xff] %v4093_v9 }
 0x368   :  { %v8425_v31 = vadd.f32 %v3593_v39, %v3531_v41  ;;  %v3664_v47 = vmul.f32 %v3531_v41, %v3531_v41  ;;  %3802 = vst [vmem:[%s8543_s5 + $0x1b8] sm:$0xff] %v3531_v41  ;;  %v3054_v29 = vpop.f32.mrb[49].mxu1 }
 0x369   :  { %v5187_v3 = vpop.f32.mrb[34].mxu0 }
 0x36a   :  { %v8430_v37 = vadd.f32 %v3726_v20, %v3664_v47  ;;  %4255 = vst [vmem:[%s8544_s7 + $0x158] sm:$0xff] %v5187_v3  ;;  %v4103_v27 = vpop.f32.mrb[35].mxu0  ;;  %v8789_v47 = vld [vmem:[#allocation41_spill] sm:$0xff] }
 0x36b   :  { %v3057_v16 = vpop.f32.mrb[50].mxu1  ;;  %4254 = vst [vmem:[%s8544_s7 + $0x150] sm:$0xff] %v4103_v27 }
 0x36c   :  { %v3059_v52 = vpop.f32.mrb[51].mxu1 }
 0x36d   :  { %v5190_v5 = vpop.f32.mrb[36].mxu0 }
 0x36e   :  { %4257 = vst [vmem:[%s8544_s7 + $0x168] sm:$0xff] %v5190_v5  ;;  %v4113_v2 = vpop.f32.mrb[37].mxu0 }
 0x36f   :  { %v3062_v26 = vpop.f32.mrb[52].mxu1  ;;  %4256 = vst [vmem:[%s8544_s7 + $0x160] sm:$0xff] %v4113_v2 }
 0x370   :  { %v3064_v0 = vpop.f32.mrb[53].mxu1 }
 0x371   :  { %v5193_v36 = vpop.f32.mrb[38].mxu0 }
 0x372   :  { %4259 = vst [vmem:[%s8544_s7 + $0x178] sm:$0xff] %v5193_v36  ;;  %v4123_v30 = vpop.f32.mrb[39].mxu0 }
 0x373   :  { %v3067_v40 = vpop.f32.mrb[54].mxu1  ;;  %4258 = vst [vmem:[%s8544_s7 + $0x170] sm:$0xff] %v4123_v30 }
 0x374   :  { %v3069_v51 = vpop.f32.mrb[55].mxu1 }
 0x375   :  { %v5196_v49 = vpop.f32.mrb[40].mxu0 }
 0x376   :  { %4261 = vst [vmem:[%s8544_s7 + $0x188] sm:$0xff] %v5196_v49  ;;  %v4133_v58 = vpop.f32.mrb[41].mxu0  ;;  %v8791_v49 = vld [vmem:[#allocation44_spill] sm:$0xff] }
 0x377   :  { %v3072_v13 = vpop.f32.mrb[56].mxu1  ;;  %4260 = vst [vmem:[%s8544_s7 + $0x180] sm:$0xff] %v4133_v58 }
 0x378   :  { %v3074_v43 = vpop.f32.mrb[57].mxu1 }
 0x379   :  { %v5199_v50 = vpop.f32.mrb[42].mxu0 }
 0x37a   :  { %4263 = vst [vmem:[%s8544_s7 + $0x198] sm:$0xff] %v5199_v50  ;;  %v4143_v63 = vpop.f32.mrb[43].mxu0  ;;  %v8792_v50 = vld [vmem:[#allocation46_spill] sm:$0xff] }
 0x37b   :  { %v3077_v55 = vpop.f32.mrb[58].mxu1  ;;  %4262 = vst [vmem:[%s8544_s7 + $0x190] sm:$0xff] %v4143_v63 }
 0x37c   :  { %v3079_v32 = vpop.f32.mrb[59].mxu1 }
 0x37d   :  { %v5202_v57 = vpop.f32.mrb[44].mxu0 }
 0x37e   :  { %4265 = vst [vmem:[%s8544_s7 + $0x1a8] sm:$0xff] %v5202_v57  ;;  %v4153_v59 = vpop.f32.mrb[45].mxu0 }
 0x37f   :  { %v8465_v14 = vpop.f32.mrb[60].mxu1  ;;  %4264 = vst [vmem:[%s8544_s7 + $0x1a0] sm:$0xff] %v4153_v59 }
 0x380   :  { %v3084_v53 = vpop.f32.mrb[61].mxu1 }
 0x381   :  { %v5205_v19 = vpop.f32.mrb[46].mxu0 }
 0x382   :  { %4267 = vst [vmem:[%s8544_s7 + $0x1b8] sm:$0xff] %v5205_v19  ;;  %v4163_v7 = vpop.f32.mrb[47].mxu0 }
 0x383   :  { %v3087_v42 = vpop.f32.mrb[62].mxu1  ;;  %4266 = vst [vmem:[%s8544_s7 + $0x1b0] sm:$0xff] %v4163_v7 }
 0x384   :  { %v3089_v8 = vpop.f32.mrb[63].mxu1 }
 0x385   :  { %v5208_v56 = vpop.f32.mrb[48].mxu0 }
 0x386   :  { %4269 = vst [vmem:[%s8544_s7 + $0x1c8] sm:$0xff] %v5208_v56  ;;  %v4173_v12 = vpop.f32.mrb[49].mxu0 }
 0x387   :  { %v5080_v10 = vpop.f32.mrb[64].mxu1  ;;  %4268 = vst [vmem:[%s8544_s7 + $0x1c0] sm:$0xff] %v4173_v12 }
 0x388   :  { %v3443_v45 = vadd.f32 %v5080_v10, %v3057_v16  ;;  %v3437_v48 = vpop.f32.mrb[65].mxu1  ;;  %v8790_v16 = vld [vmem:[#allocation39_spill] sm:$0xff] }
 0x389   :  { %v3438_v46 = vadd.f32 %v3437_v48, %v3052_v33  ;;  %v5211_v38 = vpop.f32.mrb[50].mxu0 }
 0x38a   :  { %v3533_v62 = vadd.f32 %v3443_v45, %v8787_v28  ;;  %4271 = vst [vmem:[%s8544_s7 + $0x1d8] sm:$0xff] %v5211_v38  ;;  %v4183_v15 = vpop.f32.mrb[51].mxu0 }
 0x38b   :  { %v3532_v23 = vadd.f32 %v3438_v46, %v7948_v61  ;;  %v5083_v11 = vpop.f32.mrb[66].mxu1  ;;  %4270 = vst [vmem:[%s8544_s7 + $0x1d0] sm:$0xff] %v4183_v15 }
 0x38c   :  { %3804 = vst [vmem:[%s8543_s5 + $0x1c8] sm:$0xff] %v3533_v62  ;;  %v3453_v35 = vadd.f32 %v5083_v11, %v3067_v40  ;;  %v3447_v54 = vpop.f32.mrb[67].mxu1  ;;  %v3666_v39 = vmul.f32 %v3533_v62, %v3533_v62 }
 0x38d   :  { %v3595_v25 = vadd.f32 %v8425_v31, %v3532_v23  ;;  %v3665_v44 = vmul.f32 %v3532_v23, %v3532_v23  ;;  %3803 = vst [vmem:[%s8543_s5 + $0x1c0] sm:$0xff] %v3532_v23  ;;  %v3448_v1 = vadd.f32 %v3447_v54, %v3062_v26  ;;  %v5214_v61 = vpop.f32.mrb[52].mxu0 }
 0x38e   :  { %v3535_v60 = vadd.f32 %v3453_v35, %v8788_v24  ;;  %4273 = vst [vmem:[%s8544_s7 + $0x1e8] sm:$0xff] %v5214_v61  ;;  %v4193_v22 = vpop.f32.mrb[53].mxu0 }
 0x38f   :  { %v3728_v18 = vadd.f32 %v8430_v37, %v3665_v44  ;;  %v3534_v17 = vadd.f32 %v3448_v1, %v7956_v21  ;;  %v3596_v4 = vadd.f32 %v3595_v25, %v3533_v62  ;;  %v5086_v6 = vpop.f32.mrb[68].mxu1  ;;  %4272 = vst [vmem:[%s8544_s7 + $0x1e0] sm:$0xff] %v4193_v22 }
 0x390   :  { %3806 = vst [vmem:[%s8543_s5 + $0x1d8] sm:$0xff] %v3535_v60  ;;  %v3463_v20 = vadd.f32 %v5086_v6, %v3077_v55  ;;  %v3457_v34 = vpop.f32.mrb[69].mxu1  ;;  %v3668_v37 = vmul.f32 %v3535_v60, %v3535_v60 }
 0x391   :  { %v3597_v41 = vadd.f32 %v3596_v4, %v3534_v17  ;;  %v3667_v9 = vmul.f32 %v3534_v17, %v3534_v17  ;;  %v3729_v33 = vadd.f32 %v3728_v18, %v3666_v39  ;;  %3805 = vst [vmem:[%s8543_s5 + $0x1d0] sm:$0xff] %v3534_v17  ;;  %v3458_v21 = vadd.f32 %v3457_v34, %v3072_v13  ;;  %v5217_v31 = vpop.f32.mrb[54].mxu0 }
 0x392   :  { %v3537_v29 = vadd.f32 %v3463_v20, %v8789_v47  ;;  %4275 = vst [vmem:[%s8544_s7 + $0x1f8] sm:$0xff] %v5217_v31  ;;  %v4203_v3 = vpop.f32.mrb[55].mxu0 }
 0x393   :  { %v3730_v27 = vadd.f32 %v3729_v33, %v3667_v9  ;;  %v3536_v52 = vadd.f32 %v3458_v21, %v8790_v16  ;;  %v3598_v5 = vadd.f32 %v3597_v41, %v3535_v60  ;;  %v5089_v2 = vpop.f32.mrb[70].mxu1  ;;  %4274 = vst [vmem:[%s8544_s7 + $0x1f0] sm:$0xff] %v4203_v3 }
 0x394   :  { %3808 = vst [vmem:[%s8543_s5 + $0x1e8] sm:$0xff] %v3537_v29  ;;  %v3473_v26 = vadd.f32 %v5089_v2, %v3087_v42  ;;  %v3467_v0 = vpop.f32.mrb[71].mxu1  ;;  %v3670_v13 = vmul.f32 %v3537_v29, %v3537_v29 }
 0x395   :  { %v3599_v36 = vadd.f32 %v3598_v5, %v3536_v52  ;;  %v3669_v30 = vmul.f32 %v3536_v52, %v3536_v52  ;;  %v3731_v40 = vadd.f32 %v3730_v27, %v3668_v37  ;;  %3807 = vst [vmem:[%s8543_s5 + $0x1e0] sm:$0xff] %v3536_v52  ;;  %v3468_v51 = vadd.f32 %v3467_v0, %v8465_v14 }
 0x396   :  { %v3539_v58 = vadd.f32 %v3473_v26, %v8791_v49 }
 0x397   :  { %v3732_v43 = vadd.f32 %v3731_v40, %v3669_v30  ;;  %v3538_v63 = vadd.f32 %v3468_v51, %v8792_v50  ;;  %v3600_v55 = vadd.f32 %v3599_v36, %v3537_v29 }
 0x398   :  { %3810 = vst [vmem:[%s8543_s5 + $0x1f8] sm:$0xff] %v3539_v58  ;;  %v3672_v53 = vmul.f32 %v3539_v58, %v3539_v58 }
 0x399   :  { %v3601_v32 = vadd.f32 %v3600_v55, %v3538_v63  ;;  %v3671_v57 = vmul.f32 %v3538_v63, %v3538_v63  ;;  %v3733_v59 = vadd.f32 %v3732_v43, %v3670_v13  ;;  %3809 = vst [vmem:[%s8543_s5 + $0x1f0] sm:$0xff] %v3538_v63 }
 0x39b   :  { %v3602_v14 = vadd.f32 %v3601_v32, %v3539_v58  ;;  %v3734_v19 = vadd.f32 %v3733_v59, %v3671_v57 }
 0x39d   :  { %v3603_v7 = vrot.slane %v3602_v14, 4  ;;  %v3735_v42 = vadd.f32 %v3734_v19, %v3672_v53 }
 0x39f   :  { %v3604_v8 = vadd.f32 %v3603_v7, %v3602_v14  ;;  %v3736_v56 = vrot.slane %v3735_v42, 4 }
 0x3a1   :  { %v3605_v12 = vrot.slane %v3604_v8, 2  ;;  %v3737_v10 = vadd.f32 %v3736_v56, %v3735_v42 }
 0x3a3   :  { %v3606_v45 = vadd.f32 %v3605_v12, %v3604_v8  ;;  %v3738_v48 = vrot.slane %v3737_v10, 2 }
 0x3a5   :  { %v3607_v46 = vrot.slane %v3606_v45, 1  ;;  %v3739_v38 = vadd.f32 %v3738_v48, %v3737_v10 }
 0x3a7   :  { %v3740_v28 = vrot.slane %v3739_v38, 1  ;;  %v3608_v62 = vadd.f32 %v3607_v46, %v3606_v45 }
 0x3a9   :  { %v3741_v15 = vadd.f32 %v3740_v28, %v3739_v38 }
 0x3ab   :  { %v3743_v23 = vsel %vm3742_vm0, %v3608_v62, %v3741_v15 }
 0x3ac   :  { %v3745_v11 = vsel %vm3744_vm1, %v3743_v23, 0.0 }
 0x3ad   :  { %3746 = vst [vmem:[%s8545_s6] sm:$0xff] %v3745_v11 }

</bundles_post_ra>
